<compile_context>
chip_gen: v7x
topology: tpu7x:2x2x1
jax: 0.10.0
libtpu: 0.0.40
codegen_flags: <defaults>
</compile_context>

<pallas_src>
import functools

import jax
import jax.numpy as jnp
from jax.experimental import pallas as pl
from jax.experimental.pallas import tpu as pltpu

EPS = 1e-5  # nn.BatchNorm2d default


def _pick_tile(m, cap=512):
    """Row-tile size: full extent if small, else a divisor that is a multiple of 16."""
    if m <= cap:
        return m
    for t in range(cap, 15, -1):
        if m % t == 0 and t % 16 == 0:
            return t
    return m


def _cparams(n_axes):
    return pltpu.CompilerParams(
        dimension_semantics=("parallel",) * n_axes,
        vmem_limit_bytes=32 * 1024 * 1024)


# ----------------------------- Pallas kernels -----------------------------

def _vert_conv_kernel(kh, kw, H, *refs):
    """Vertical masked conv (per batch, per output column) + bias + BN-stat partials."""
    xcols = refs[:kw]                                     # kw refs, each (Hp, C) bf16
    w_ref, b_ref, cond_ref, h_ref, ssum_ref, ssq_ref = refs[kw:]
    C2 = b_ref.shape[-1]
    C = C2 // 2
    acc = jnp.zeros((H, C2), jnp.float32)
    for j in range(kw):
        for i in range(kh):
            lhs = xcols[j][pl.ds(i, H), :]                # (H, C) bf16 window
            acc = acc + jnp.dot(lhs, w_ref[i * kw + j],
                                preferred_element_type=jnp.float32)
    acc = acc + b_ref[...]
    h_ref[...] = acc.astype(h_ref.dtype)
    # stats of the BN input of gate_v: (h_vert + cond)[:, :C]
    a = acc[:, :C] + cond_ref[...][:, :C]
    ssum_ref[...] = jnp.sum(a, axis=0, keepdims=True)
    ssq_ref[...] = jnp.sum(a * a, axis=0, keepdims=True)


def _horiz_fused_kernel(kwh, *refs):
    """horiz conv + vert_to_horiz 1x1 + bias + cond, plus BN-stat partials."""
    xcols = refs[:kwh]                                    # kwh refs, each (H, C) bf16
    hv_ref, wh_ref, wv2h_ref, b_ref, cond_ref, s_ref, ssum_ref, ssq_ref = refs[kwh:]
    C2 = b_ref.shape[-1]
    C = C2 // 2
    acc = jnp.dot(hv_ref[...], wv2h_ref[...], preferred_element_type=jnp.float32)
    for j in range(kwh):
        acc = acc + jnp.dot(xcols[j][...], wh_ref[j],
                            preferred_element_type=jnp.float32)
    acc = acc + b_ref[...] + cond_ref[...]
    s_ref[...] = acc.astype(s_ref.dtype)
    a = acc[:, :C]
    ssum_ref[...] = jnp.sum(a, axis=0, keepdims=True)
    ssq_ref[...] = jnp.sum(a * a, axis=0, keepdims=True)


def _gate_v_kernel(h_ref, cond_ref, mean_ref, inv_ref, gam_ref, bet_ref, o_ref):
    """GatedActivation for the vertical stack (cond added in-kernel)."""
    x = h_ref[...].astype(jnp.float32)                    # (tm, 2C)
    C = mean_ref.shape[-1]
    cond = cond_ref[...]                                  # (1, 2C) f32
    a = x[:, :C] + cond[:, :C]
    g = x[:, C:] + cond[:, C:]
    bn = (a - mean_ref[...]) * inv_ref[...] * gam_ref[...] + bet_ref[...]
    gate = pl.reciprocal(1.0 + jnp.exp(-g), approx=True)  # sigmoid via EUP
    o_ref[...] = (jnp.maximum(bn, 0.0) * gate).astype(o_ref.dtype)


def _gate_h_resid_kernel(s_ref, mean_ref, inv_ref, gam_ref, bet_ref,
                         w_ref, bias_ref, hr_ref, psum_ref, psq_ref):
    """GatedActivation (horizontal) fused with the horiz_resid 1x1 conv + BN-stat partials."""
    x = s_ref[...].astype(jnp.float32)                    # (tm, 2C), cond already included
    C = mean_ref.shape[-1]
    a = x[:, :C]
    g = x[:, C:]
    bn = (a - mean_ref[...]) * inv_ref[...] * gam_ref[...] + bet_ref[...]
    gated = jnp.maximum(bn, 0.0) * pl.reciprocal(1.0 + jnp.exp(-g), approx=True)
    hr = jnp.dot(gated.astype(jnp.bfloat16), w_ref[...],
                 preferred_element_type=jnp.float32) + bias_ref[...]
    hr_ref[...] = hr.astype(hr_ref.dtype)
    psum_ref[...] = jnp.sum(hr, axis=0, keepdims=True)
    psq_ref[...] = jnp.sum(hr * hr, axis=0, keepdims=True)


def _bn_add_kernel(x_ref, res_ref, mean_ref, inv_ref, gam_ref, bet_ref, o_ref):
    y = (x_ref[...].astype(jnp.float32) - mean_ref[...]) * inv_ref[...] * gam_ref[...] + bet_ref[...]
    o_ref[...] = (y + res_ref[...].astype(jnp.float32)).astype(o_ref.dtype)


def _bn_kernel(x_ref, mean_ref, inv_ref, gam_ref, bet_ref, o_ref):
    y = (x_ref[...].astype(jnp.float32) - mean_ref[...]) * inv_ref[...] * gam_ref[...] + bet_ref[...]
    o_ref[...] = y.astype(o_ref.dtype)


def _head_stats_kernel(x_ref, w_ref, b_ref, psum_ref, psq_ref):
    """Stats of y1 = x @ w1 + b1 (y1 is recomputed later instead of re-read from HBM)."""
    y = jnp.dot(x_ref[...], w_ref[...], preferred_element_type=jnp.float32) + b_ref[...]
    psum_ref[...] = jnp.sum(y, axis=0, keepdims=True)
    psq_ref[...] = jnp.sum(y * y, axis=0, keepdims=True)


def _head_out_kernel(x_ref, w1_ref, b1_ref, mean_ref, inv_ref, gam_ref, bet_ref,
                     w2_ref, b2_ref, tgt_ref, logits_ref, loss_ref):
    """1x1 -> BN -> ReLU -> 1x1 and per-tile cross-entropy partial sums."""
    y = jnp.dot(x_ref[...], w1_ref[...], preferred_element_type=jnp.float32) + b1_ref[...]
    y = (y - mean_ref[...]) * inv_ref[...] * gam_ref[...] + bet_ref[...]
    y = jnp.maximum(y, 0.0)
    lg = jnp.dot(y.astype(jnp.bfloat16), w2_ref[...],
                 preferred_element_type=jnp.float32) + b2_ref[...]
    logits_ref[...] = lg
    m = jnp.max(lg, axis=-1, keepdims=True)
    lse = jnp.log(jnp.sum(jnp.exp(lg - m), axis=-1, keepdims=True)) + m
    iota = jax.lax.broadcasted_iota(jnp.int32, lg.shape, 1)
    picked = jnp.sum(jnp.where(iota == tgt_ref[...], lg, 0.0), axis=-1, keepdims=True)
    loss_ref[...] = jnp.sum(lse - picked, axis=0, keepdims=True)


# ----------------------------- wrappers -----------------------------

def finalize_stats(psum, psq, count):
    """Combine per-step partial sums into (mean, 1/sqrt(var+eps)) of shape (1, C)."""
    axes = tuple(range(psum.ndim - 1))
    s = jnp.sum(psum, axis=axes)
    sq = jnp.sum(psq, axis=axes)
    mean = s / count
    var = jnp.maximum(sq / count - mean * mean, 0.0)
    inv = jax.lax.rsqrt(var + EPS)
    return mean.reshape(1, -1), inv.reshape(1, -1)


def vert_conv(xv, w_flat, bias, cond, k):
    """Vertical masked conv. xv: (B, W, H, C) bf16 (width-major)."""
    B, W, H, C = xv.shape
    kh, kw = k // 2 + 1, k
    C2 = w_flat.shape[-1]
    pad = k // 2
    xp = jnp.pad(xv, ((0, 0), (pad, pad), (pad, 0), (0, 0)))   # pad W both sides, H top
    Hp = H + pad

    tap_specs = [
        pl.BlockSpec((None, None, Hp, C), lambda b, c, j=j: (b, c + j, 0, 0))
        for j in range(kw)
    ]
    in_specs = tap_specs + [
        pl.BlockSpec((kh * kw, C, C2), lambda b, c: (0, 0, 0)),
        pl.BlockSpec((1, C2), lambda b, c: (0, 0)),
        pl.BlockSpec((None, 1, C2), lambda b, c: (b, 0, 0)),
    ]
    out_shape = (jax.ShapeDtypeStruct((B, W, H, C2), jnp.bfloat16),
                 jax.ShapeDtypeStruct((B, W, 1, C2 // 2), jnp.float32),
                 jax.ShapeDtypeStruct((B, W, 1, C2 // 2), jnp.float32))
    out_specs = (pl.BlockSpec((None, None, H, C2), lambda b, c: (b, c, 0, 0)),
                 pl.BlockSpec((None, None, 1, C2 // 2), lambda b, c: (b, c, 0, 0)),
                 pl.BlockSpec((None, None, 1, C2 // 2), lambda b, c: (b, c, 0, 0)))
    return pl.pallas_call(
        functools.partial(_vert_conv_kernel, kh, kw, H),
        out_shape=out_shape, grid=(B, W),
        in_specs=in_specs, out_specs=out_specs,
        compiler_params=_cparams(2),
    )(*([xp] * kw), w_flat, bias, cond)


def horiz_fused(xh, hv, wh, wv2h, bias, cond, k):
    """Horizontal masked conv + vert_to_horiz 1x1 + cond, fused. xh/hv width-major."""
    B, W, H, C = xh.shape
    kwh = k // 2 + 1
    C2 = wv2h.shape[-1]
    pad = k // 2
    xp = jnp.pad(xh, ((0, 0), (pad, 0), (0, 0), (0, 0)))        # pad W on the left only

    tap_specs = [
        pl.BlockSpec((None, None, H, C), lambda b, c, j=j: (b, c + j, 0, 0))
        for j in range(kwh)
    ]
    in_specs = tap_specs + [
        pl.BlockSpec((None, None, H, C2), lambda b, c: (b, c, 0, 0)),   # h_vert
        pl.BlockSpec((kwh, C, C2), lambda b, c: (0, 0, 0)),
        pl.BlockSpec((C2, C2), lambda b, c: (0, 0)),
        pl.BlockSpec((1, C2), lambda b, c: (0, 0)),
        pl.BlockSpec((None, 1, C2), lambda b, c: (b, 0, 0)),
    ]
    out_shape = (jax.ShapeDtypeStruct((B, W, H, C2), jnp.bfloat16),
                 jax.ShapeDtypeStruct((B, W, 1, C2 // 2), jnp.float32),
                 jax.ShapeDtypeStruct((B, W, 1, C2 // 2), jnp.float32))
    out_specs = (pl.BlockSpec((None, None, H, C2), lambda b, c: (b, c, 0, 0)),
                 pl.BlockSpec((None, None, 1, C2 // 2), lambda b, c: (b, c, 0, 0)),
                 pl.BlockSpec((None, None, 1, C2 // 2), lambda b, c: (b, c, 0, 0)))
    return pl.pallas_call(
        functools.partial(_horiz_fused_kernel, kwh),
        out_shape=out_shape, grid=(B, W),
        in_specs=in_specs, out_specs=out_specs,
        compiler_params=_cparams(2),
    )(*([xp] * kwh), hv, wh, wv2h, bias, cond)


def gate_v_apply(h, cond, mean, inv, gamma, beta):
    """GatedActivation of the vertical stack over (B, W*H, 2C)."""
    B, WH, C2 = h.shape
    C = C2 // 2
    tm = _pick_tile(WH)
    grid = (B, WH // tm)
    one_c = pl.BlockSpec((1, C), lambda b, m: (0, 0))
    return pl.pallas_call(
        _gate_v_kernel,
        out_shape=jax.ShapeDtypeStruct((B, WH, C), jnp.bfloat16),
        grid=grid,
        in_specs=[pl.BlockSpec((None, tm, C2), lambda b, m: (b, m, 0)),
                  pl.BlockSpec((None, 1, C2), lambda b, m: (b, 0, 0)),
                  one_c, one_c, one_c, one_c],
        out_specs=pl.BlockSpec((None, tm, C), lambda b, m: (b, m, 0)),
        compiler_params=_cparams(2),
    )(h, cond, mean, inv, gamma, beta)


def gate_h_resid(s, mean, inv, gamma, beta, w_hr, b_hr):
    """Horizontal gate + horiz_resid 1x1, with BN-stat partials for the resid BN."""
    B, WH, C2 = s.shape
    C = C2 // 2
    tm = _pick_tile(WH)
    nt = WH // tm
    one_c = pl.BlockSpec((1, C), lambda b, m: (0, 0))
    return pl.pallas_call(
        _gate_h_resid_kernel,
        out_shape=(jax.ShapeDtypeStruct((B, WH, C), jnp.bfloat16),
                   jax.ShapeDtypeStruct((B, nt, 1, C), jnp.float32),
                   jax.ShapeDtypeStruct((B, nt, 1, C), jnp.float32)),
        grid=(B, nt),
        in_specs=[pl.BlockSpec((None, tm, C2), lambda b, m: (b, m, 0)),
                  one_c, one_c, one_c, one_c,
                  pl.BlockSpec((C, C), lambda b, m: (0, 0)),
                  pl.BlockSpec((1, C), lambda b, m: (0, 0))],
        out_specs=(pl.BlockSpec((None, tm, C), lambda b, m: (b, m, 0)),
                   pl.BlockSpec((None, None, 1, C), lambda b, m: (b, m, 0, 0)),
                   pl.BlockSpec((None, None, 1, C), lambda b, m: (b, m, 0, 0))),
        compiler_params=_cparams(2),
    )(s, mean, inv, gamma, beta, w_hr, b_hr)


def bn_apply(x, mean, inv, gamma, beta, residual=None):
    """Apply BN (training-mode batch stats) and optionally add the residual."""
    B, WH, C = x.shape
    tm = _pick_tile(WH)
    grid = (B, WH // tm)
    row = pl.BlockSpec((None, tm, C), lambda b, m: (b, m, 0))
    one = pl.BlockSpec((1, C), lambda b, m: (0, 0))
    if residual is not None:
        return pl.pallas_call(
            _bn_add_kernel,
            out_shape=jax.ShapeDtypeStruct((B, WH, C), jnp.bfloat16),
            grid=grid, in_specs=[row, row, one, one, one, one], out_specs=row,
            compiler_params=_cparams(2),
        )(x, residual, mean, inv, gamma, beta)
    return pl.pallas_call(
        _bn_kernel,
        out_shape=jax.ShapeDtypeStruct((B, WH, C), jnp.bfloat16),
        grid=grid, in_specs=[row, one, one, one, one], out_specs=row,
        compiler_params=_cparams(2),
    )(x, mean, inv, gamma, beta)


def head_forward(xh_flat, targets, params):
    """output_conv (1x1 -> BN -> ReLU -> 1x1) + mean cross-entropy."""
    M, C = xh_flat.shape
    Cm = params['out_w1'].shape[1]
    K = params['out_w2'].shape[1]
    tm = _pick_tile(M)
    nt = M // tm
    w1 = params['out_w1'].astype(jnp.bfloat16)
    w2 = params['out_w2'].astype(jnp.bfloat16)
    one_cm = pl.BlockSpec((1, Cm), lambda i: (0, 0))

    ps, pq = pl.pallas_call(
        _head_stats_kernel,
        out_shape=(jax.ShapeDtypeStruct((nt, 1, Cm), jnp.float32),
                   jax.ShapeDtypeStruct((nt, 1, Cm), jnp.float32)),
        grid=(nt,),
        in_specs=[pl.BlockSpec((tm, C), lambda i: (i, 0)),
                  pl.BlockSpec((C, Cm), lambda i: (0, 0)),
                  one_cm],
        out_specs=(pl.BlockSpec((None, 1, Cm), lambda i: (i, 0, 0)),
                   pl.BlockSpec((None, 1, Cm), lambda i: (i, 0, 0))),
        compiler_params=_cparams(1),
    )(xh_flat, w1, params['out_b1'])
    mean, inv = finalize_stats(ps, pq, M)

    logits, lpart = pl.pallas_call(
        _head_out_kernel,
        out_shape=(jax.ShapeDtypeStruct((M, K), jnp.float32),
                   jax.ShapeDtypeStruct((nt, 1, 1), jnp.float32)),
        grid=(nt,),
        in_specs=[pl.BlockSpec((tm, C), lambda i: (i, 0)),
                  pl.BlockSpec((C, Cm), lambda i: (0, 0)),
                  one_cm, one_cm, one_cm, one_cm, one_cm,
                  pl.BlockSpec((Cm, K), lambda i: (0, 0)),
                  pl.BlockSpec((1, K), lambda i: (0, 0)),
                  pl.BlockSpec((tm, 1), lambda i: (i, 0))],
        out_specs=(pl.BlockSpec((tm, K), lambda i: (i, 0)),
                   pl.BlockSpec((None, 1, 1), lambda i: (i, 0, 0))),
        compiler_params=_cparams(1),
    )(xh_flat, w1, params['out_b1'], mean, inv,
      params['out_bn_g'], params['out_bn_b'], w2, params['out_b2'], targets)

    loss = jnp.sum(lpart) / M
    return logits, loss


# ----------------------------- model -----------------------------

def gated_layer(p, cfg, x_v, x_h, cond):
    """One ConditionalGatedMaskedConv2d layer. x_v/x_h: (B, W, H, C) bf16."""
    k, residual = cfg
    B, W, H, C = x_v.shape
    n = B * H * W

    # vertical stack (output rows are computed only for the H valid (cropped) rows)
    hv, vs, vq = vert_conv(x_v, p['w_vert'], p['b_vert'], cond, k)
    mean_v, inv_v = finalize_stats(vs, vq, n)
    out_v = gate_v_apply(hv.reshape(B, W * H, 2 * C), cond,
                         mean_v, inv_v, p['bn_v_g'], p['bn_v_b'])

    # horizontal stack: horiz conv + vert_to_horiz + cond, fused (cropped by construction)
    s, hs, hq = horiz_fused(x_h, hv, p['w_horiz'], p['w_v2h'],
                            p['b_h_sum'], cond, k)
    mean_h, inv_h = finalize_stats(hs, hq, n)
    hr, rs, rq = gate_h_resid(s.reshape(B, W * H, 2 * C),
                              mean_h, inv_h, p['bn_h_g'], p['bn_h_b'],
                              p['w_hr'], p['b_hr'])
    mean_r, inv_r = finalize_stats(rs, rq, n)
    res = x_h.reshape(B, W * H, C) if residual else None
    out_h = bn_apply(hr, mean_r, inv_r, p['bn_r_g'], p['bn_r_b'], residual=res)

    return out_v.reshape(B, W, H, C), out_h.reshape(B, W, H, C)


def pixelcnn_forward(params, img, label, cfgs):
    B, H, W = img.shape
    C = params['embedding'].shape[1]

    # token embedding (JAX gather), laid out width-major (B, W, H, C), bf16 activations
    x = params['embedding'][img]                      # (B, H, W, C)
    x = jnp.transpose(x, (0, 2, 1, 3)).astype(jnp.bfloat16)
    x_v, x_h = x, x

    for p, cfg in zip(params['layers'], cfgs):
        cond = p['cond_emb'][label].reshape(B, 1, 2 * C).astype(jnp.float32)
        lp = {
            'w_vert': p['w_vert'].astype(jnp.bfloat16), 'b_vert': p['b_vert'],
            'w_horiz': p['w_horiz'].astype(jnp.bfloat16),
            'w_v2h': p['w_v2h'].astype(jnp.bfloat16),
            'b_h_sum': p['b_horiz'] + p['b_v2h'],
            'w_hr': p['w_hr'].astype(jnp.bfloat16), 'b_hr': p['b_hr'],
            'bn_v_g': p['bn_v_g'], 'bn_v_b': p['bn_v_b'],
            'bn_h_g': p['bn_h_g'], 'bn_h_b': p['bn_h_b'],
            'bn_r_g': p['bn_r_g'], 'bn_r_b': p['bn_r_b'],
        }
        x_v, x_h = gated_layer(lp, cfg, x_v, x_h, cond)

    M = B * W * H
    xh_flat = x_h.reshape(M, C)
    targets = jnp.transpose(img, (0, 2, 1)).reshape(M, 1).astype(jnp.int32)
    logits_flat, loss = head_forward(xh_flat, targets, params)
    K = logits_flat.shape[-1]
    logits = logits_flat.reshape(B, W, H, K).transpose(0, 3, 2, 1)   # NCHW
    return {'logits': logits, 'loss': loss}


def init_params(key, input_size, hidden_size, num_layer, num_mode):
    C = hidden_size
    keys = iter(jax.random.split(key, 16 + 10 * num_layer))

    def nrm(shape, scale=0.05):
        return (scale * jax.random.normal(next(keys), shape)).astype(jnp.float32)

    params = {'embedding': nrm((input_size, C))}
    layers, cfgs = [], []
    for i in range(num_layer):
        k = 7 if i == 0 else 3
        residual = (i != 0)
        cfgs.append((k, residual))
        kh, kw = k // 2 + 1, k
        kwh = k // 2 + 1
        w_vert = nrm((kh, kw, C, 2 * C))
        w_horiz = nrm((kwh, C, 2 * C))
        if i == 0:  # mask 'A' -> make_causal(): zero last vertical row / last horizontal tap
            w_vert = w_vert.at[kh - 1].set(0.0)
            w_horiz = w_horiz.at[kwh - 1].set(0.0)
        layers.append(dict(
            cond_emb=nrm((num_mode, 2 * C)),
            w_vert=w_vert.reshape(kh * kw, C, 2 * C), b_vert=nrm((1, 2 * C)),
            w_horiz=w_horiz, b_horiz=nrm((1, 2 * C)),
            w_v2h=nrm((2 * C, 2 * C)), b_v2h=nrm((1, 2 * C)),
            w_hr=nrm((C, C)), b_hr=nrm((1, C)),
            bn_v_g=jnp.ones((1, C), jnp.float32), bn_v_b=jnp.zeros((1, C), jnp.float32),
            bn_h_g=jnp.ones((1, C), jnp.float32), bn_h_b=jnp.zeros((1, C), jnp.float32),
            bn_r_g=jnp.ones((1, C), jnp.float32), bn_r_b=jnp.zeros((1, C), jnp.float32),
        ))
    params['layers'] = layers
    params['out_w1'] = nrm((C, 512)); params['out_b1'] = nrm((1, 512))
    params['out_bn_g'] = jnp.ones((1, 512), jnp.float32)
    params['out_bn_b'] = jnp.zeros((1, 512), jnp.float32)
    params['out_w2'] = nrm((512, input_size)); params['out_b2'] = nrm((1, input_size))
    return params, cfgs


# TODO(synk): generate() (autoregressive multinomial sampling loop) is not implemented;
# only the training forward pass (logits + loss) is reproduced.

if __name__ == "__main__":
    input_size, hidden_size, num_layer, num_mode = 64, 32, 3, 4
    B, H, W = 2, 8, 8

    key = jax.random.PRNGKey(0)
    kp, ki, kl = jax.random.split(key, 3)
    params, cfgs = init_params(kp, input_size, hidden_size, num_layer, num_mode)

    img = jax.random.randint(ki, (B, H, W), 0, input_size, dtype=jnp.int32)
    label = jax.random.randint(kl, (B,), 0, num_mode, dtype=jnp.int32)

    fwd = jax.jit(lambda p, im, lb: pixelcnn_forward(p, im, lb, cfgs))
    out = jax.block_until_ready(fwd(params, img, label))

    assert out['logits'].shape == (B, input_size, H, W)
    assert out['logits'].dtype == jnp.float32
    assert out['loss'].shape == ()
    assert bool(jnp.isfinite(out['loss']))
    assert bool(jnp.all(jnp.isfinite(out['logits'])))
    print("KERNEL_OK")
</pallas_src>

<mosaic_0001>
module attributes {stable_mosaic.version = 11 : i64} {
  func.func @_vert_conv_kernel(%arg0: i32, %arg1: i32, %arg2: memref<1x1x11x32xbf16, #tpu.memory_space<vmem>>, %arg3: memref<1x1x11x32xbf16, #tpu.memory_space<vmem>>, %arg4: memref<1x1x11x32xbf16, #tpu.memory_space<vmem>>, %arg5: memref<1x1x11x32xbf16, #tpu.memory_space<vmem>>, %arg6: memref<1x1x11x32xbf16, #tpu.memory_space<vmem>>, %arg7: memref<1x1x11x32xbf16, #tpu.memory_space<vmem>>, %arg8: memref<1x1x11x32xbf16, #tpu.memory_space<vmem>>, %arg9: memref<28x32x64xbf16, #tpu.memory_space<vmem>>, %arg10: memref<1x64xf32, #tpu.memory_space<vmem>>, %arg11: memref<1x1x64xf32, #tpu.memory_space<vmem>>, %arg12: memref<1x1x8x64xbf16, #tpu.memory_space<vmem>>, %arg13: memref<1x1x1x32xf32, #tpu.memory_space<vmem>>, %arg14: memref<1x1x1x32xf32, #tpu.memory_space<vmem>>) attributes {dimension_semantics = [#tpu.dimension_semantics<parallel>, #tpu.dimension_semantics<parallel>], iteration_bounds = array<i64: 2, 8>, scalar_prefetch = 0 : i64, scratch_operands = 0 : i64, tpu.core_type = #tpu.core_type<tc>, window_params = [{transform_indices = @transform_0, window_bounds = array<i64: 1, 1, 11, 32>}, {transform_indices = @transform_1, window_bounds = array<i64: 1, 1, 11, 32>}, {transform_indices = @transform_2, window_bounds = array<i64: 1, 1, 11, 32>}, {transform_indices = @transform_3, window_bounds = array<i64: 1, 1, 11, 32>}, {transform_indices = @transform_4, window_bounds = array<i64: 1, 1, 11, 32>}, {transform_indices = @transform_5, window_bounds = array<i64: 1, 1, 11, 32>}, {transform_indices = @transform_6, window_bounds = array<i64: 1, 1, 11, 32>}, {pipeline_mode = #tpu.pipeline_mode<synchronous>, transform_indices = @transform_7, window_bounds = array<i64: 28, 32, 64>}, {pipeline_mode = #tpu.pipeline_mode<synchronous>, transform_indices = @transform_8, window_bounds = array<i64: 1, 64>}, {transform_indices = @transform_9, window_bounds = array<i64: 1, 1, 64>}, {transform_indices = @transform_10, window_bounds = array<i64: 1, 1, 8, 64>}, {transform_indices = @transform_11, window_bounds = array<i64: 1, 1, 1, 32>}, {transform_indices = @transform_12, window_bounds = array<i64: 1, 1, 1, 32>}]} {
    %cst = arith.constant 0.000000e+00 : f32
    %0 = vector.broadcast %cst : f32 to vector<8x64xf32>
    %c0 = arith.constant 0 : index
    %c0_0 = arith.constant 0 : index
    %c0_1 = arith.constant 0 : index
    %c0_2 = arith.constant 0 : index
    %1 = vector.load %arg2[%c0, %c0_0, %c0_1, %c0_2] : memref<1x1x11x32xbf16, #tpu.memory_space<vmem>>, vector<1x1x8x32xbf16>
    %2 = vector.shape_cast %1 : vector<1x1x8x32xbf16> to vector<8x32xbf16>
    %c0_3 = arith.constant 0 : index
    %c0_4 = arith.constant 0 : index
    %c0_5 = arith.constant 0 : index
    %3 = vector.load %arg9[%c0_3, %c0_4, %c0_5] : memref<28x32x64xbf16, #tpu.memory_space<vmem>>, vector<1x32x64xbf16>
    %4 = vector.shape_cast %3 : vector<1x32x64xbf16> to vector<32x64xbf16>
    %cst_6 = arith.constant dense<0.000000e+00> : vector<8x64xf32>
    %5 = tpu.matmul %2, %4, %cst_6 {dimension_numbers = #tpu.dot_dimension_numbers<[1], [0], [0], [1], [0, 0, 1, 1], [], []>} : vector<8x32xbf16>, vector<32x64xbf16>, vector<8x64xf32> -> vector<8x64xf32>
    %6 = arith.addf %0, %5 : vector<8x64xf32>
    %c0_7 = arith.constant 0 : index
    %c0_8 = arith.constant 0 : index
    %c1 = arith.constant 1 : index
    %c0_9 = arith.constant 0 : index
    %7 = vector.load %arg2[%c0_7, %c0_8, %c1, %c0_9] : memref<1x1x11x32xbf16, #tpu.memory_space<vmem>>, vector<1x1x8x32xbf16>
    %8 = vector.shape_cast %7 : vector<1x1x8x32xbf16> to vector<8x32xbf16>
    %c7 = arith.constant 7 : index
    %c0_10 = arith.constant 0 : index
    %c0_11 = arith.constant 0 : index
    %9 = vector.load %arg9[%c7, %c0_10, %c0_11] : memref<28x32x64xbf16, #tpu.memory_space<vmem>>, vector<1x32x64xbf16>
    %10 = vector.shape_cast %9 : vector<1x32x64xbf16> to vector<32x64xbf16>
    %cst_12 = arith.constant dense<0.000000e+00> : vector<8x64xf32>
    %11 = tpu.matmul %8, %10, %cst_12 {dimension_numbers = #tpu.dot_dimension_numbers<[1], [0], [0], [1], [0, 0, 1, 1], [], []>} : vector<8x32xbf16>, vector<32x64xbf16>, vector<8x64xf32> -> vector<8x64xf32>
    %12 = arith.addf %6, %11 : vector<8x64xf32>
    %c0_13 = arith.constant 0 : index
    %c0_14 = arith.constant 0 : index
    %c2 = arith.constant 2 : index
    %c0_15 = arith.constant 0 : index
    %13 = vector.load %arg2[%c0_13, %c0_14, %c2, %c0_15] : memref<1x1x11x32xbf16, #tpu.memory_space<vmem>>, vector<1x1x8x32xbf16>
    %14 = vector.shape_cast %13 : vector<1x1x8x32xbf16> to vector<8x32xbf16>
    %c14 = arith.constant 14 : index
    %c0_16 = arith.constant 0 : index
    %c0_17 = arith.constant 0 : index
    %15 = vector.load %arg9[%c14, %c0_16, %c0_17] : memref<28x32x64xbf16, #tpu.memory_space<vmem>>, vector<1x32x64xbf16>
    %16 = vector.shape_cast %15 : vector<1x32x64xbf16> to vector<32x64xbf16>
    %cst_18 = arith.constant dense<0.000000e+00> : vector<8x64xf32>
    %17 = tpu.matmul %14, %16, %cst_18 {dimension_numbers = #tpu.dot_dimension_numbers<[1], [0], [0], [1], [0, 0, 1, 1], [], []>} : vector<8x32xbf16>, vector<32x64xbf16>, vector<8x64xf32> -> vector<8x64xf32>
    %18 = arith.addf %12, %17 : vector<8x64xf32>
    %c0_19 = arith.constant 0 : index
    %c0_20 = arith.constant 0 : index
    %c3 = arith.constant 3 : index
    %c0_21 = arith.constant 0 : index
    %19 = vector.load %arg2[%c0_19, %c0_20, %c3, %c0_21] : memref<1x1x11x32xbf16, #tpu.memory_space<vmem>>, vector<1x1x8x32xbf16>
    %20 = vector.shape_cast %19 : vector<1x1x8x32xbf16> to vector<8x32xbf16>
    %c21 = arith.constant 21 : index
    %c0_22 = arith.constant 0 : index
    %c0_23 = arith.constant 0 : index
    %21 = vector.load %arg9[%c21, %c0_22, %c0_23] : memref<28x32x64xbf16, #tpu.memory_space<vmem>>, vector<1x32x64xbf16>
    %22 = vector.shape_cast %21 : vector<1x32x64xbf16> to vector<32x64xbf16>
    %cst_24 = arith.constant dense<0.000000e+00> : vector<8x64xf32>
    %23 = tpu.matmul %20, %22, %cst_24 {dimension_numbers = #tpu.dot_dimension_numbers<[1], [0], [0], [1], [0, 0, 1, 1], [], []>} : vector<8x32xbf16>, vector<32x64xbf16>, vector<8x64xf32> -> vector<8x64xf32>
    %24 = arith.addf %18, %23 : vector<8x64xf32>
    %c0_25 = arith.constant 0 : index
    %c0_26 = arith.constant 0 : index
    %c0_27 = arith.constant 0 : index
    %c0_28 = arith.constant 0 : index
    %25 = vector.load %arg3[%c0_25, %c0_26, %c0_27, %c0_28] : memref<1x1x11x32xbf16, #tpu.memory_space<vmem>>, vector<1x1x8x32xbf16>
    %26 = vector.shape_cast %25 : vector<1x1x8x32xbf16> to vector<8x32xbf16>
    %c1_29 = arith.constant 1 : index
    %c0_30 = arith.constant 0 : index
    %c0_31 = arith.constant 0 : index
    %27 = vector.load %arg9[%c1_29, %c0_30, %c0_31] : memref<28x32x64xbf16, #tpu.memory_space<vmem>>, vector<1x32x64xbf16>
    %28 = vector.shape_cast %27 : vector<1x32x64xbf16> to vector<32x64xbf16>
    %cst_32 = arith.constant dense<0.000000e+00> : vector<8x64xf32>
    %29 = tpu.matmul %26, %28, %cst_32 {dimension_numbers = #tpu.dot_dimension_numbers<[1], [0], [0], [1], [0, 0, 1, 1], [], []>} : vector<8x32xbf16>, vector<32x64xbf16>, vector<8x64xf32> -> vector<8x64xf32>
    %30 = arith.addf %24, %29 : vector<8x64xf32>
    %c0_33 = arith.constant 0 : index
    %c0_34 = arith.constant 0 : index
    %c1_35 = arith.constant 1 : index
    %c0_36 = arith.constant 0 : index
    %31 = vector.load %arg3[%c0_33, %c0_34, %c1_35, %c0_36] : memref<1x1x11x32xbf16, #tpu.memory_space<vmem>>, vector<1x1x8x32xbf16>
    %32 = vector.shape_cast %31 : vector<1x1x8x32xbf16> to vector<8x32xbf16>
    %c8 = arith.constant 8 : index
    %c0_37 = arith.constant 0 : index
    %c0_38 = arith.constant 0 : index
    %33 = vector.load %arg9[%c8, %c0_37, %c0_38] : memref<28x32x64xbf16, #tpu.memory_space<vmem>>, vector<1x32x64xbf16>
    %34 = vector.shape_cast %33 : vector<1x32x64xbf16> to vector<32x64xbf16>
    %cst_39 = arith.constant dense<0.000000e+00> : vector<8x64xf32>
    %35 = tpu.matmul %32, %34, %cst_39 {dimension_numbers = #tpu.dot_dimension_numbers<[1], [0], [0], [1], [0, 0, 1, 1], [], []>} : vector<8x32xbf16>, vector<32x64xbf16>, vector<8x64xf32> -> vector<8x64xf32>
    %36 = arith.addf %30, %35 : vector<8x64xf32>
    %c0_40 = arith.constant 0 : index
    %c0_41 = arith.constant 0 : index
    %c2_42 = arith.constant 2 : index
    %c0_43 = arith.constant 0 : index
    %37 = vector.load %arg3[%c0_40, %c0_41, %c2_42, %c0_43] : memref<1x1x11x32xbf16, #tpu.memory_space<vmem>>, vector<1x1x8x32xbf16>
    %38 = vector.shape_cast %37 : vector<1x1x8x32xbf16> to vector<8x32xbf16>
    %c15 = arith.constant 15 : index
    %c0_44 = arith.constant 0 : index
    %c0_45 = arith.constant 0 : index
    %39 = vector.load %arg9[%c15, %c0_44, %c0_45] : memref<28x32x64xbf16, #tpu.memory_space<vmem>>, vector<1x32x64xbf16>
    %40 = vector.shape_cast %39 : vector<1x32x64xbf16> to vector<32x64xbf16>
    %cst_46 = arith.constant dense<0.000000e+00> : vector<8x64xf32>
    %41 = tpu.matmul %38, %40, %cst_46 {dimension_numbers = #tpu.dot_dimension_numbers<[1], [0], [0], [1], [0, 0, 1, 1], [], []>} : vector<8x32xbf16>, vector<32x64xbf16>, vector<8x64xf32> -> vector<8x64xf32>
    %42 = arith.addf %36, %41 : vector<8x64xf32>
    %c0_47 = arith.constant 0 : index
    %c0_48 = arith.constant 0 : index
    %c3_49 = arith.constant 3 : index
    %c0_50 = arith.constant 0 : index
    %43 = vector.load %arg3[%c0_47, %c0_48, %c3_49, %c0_50] : memref<1x1x11x32xbf16, #tpu.memory_space<vmem>>, vector<1x1x8x32xbf16>
    %44 = vector.shape_cast %43 : vector<1x1x8x32xbf16> to vector<8x32xbf16>
    %c22 = arith.constant 22 : index
    %c0_51 = arith.constant 0 : index
    %c0_52 = arith.constant 0 : index
    %45 = vector.load %arg9[%c22, %c0_51, %c0_52] : memref<28x32x64xbf16, #tpu.memory_space<vmem>>, vector<1x32x64xbf16>
    %46 = vector.shape_cast %45 : vector<1x32x64xbf16> to vector<32x64xbf16>
    %cst_53 = arith.constant dense<0.000000e+00> : vector<8x64xf32>
    %47 = tpu.matmul %44, %46, %cst_53 {dimension_numbers = #tpu.dot_dimension_numbers<[1], [0], [0], [1], [0, 0, 1, 1], [], []>} : vector<8x32xbf16>, vector<32x64xbf16>, vector<8x64xf32> -> vector<8x64xf32>
    %48 = arith.addf %42, %47 : vector<8x64xf32>
    %c0_54 = arith.constant 0 : index
    %c0_55 = arith.constant 0 : index
    %c0_56 = arith.constant 0 : index
    %c0_57 = arith.constant 0 : index
    %49 = vector.load %arg4[%c0_54, %c0_55, %c0_56, %c0_57] : memref<1x1x11x32xbf16, #tpu.memory_space<vmem>>, vector<1x1x8x32xbf16>
    %50 = vector.shape_cast %49 : vector<1x1x8x32xbf16> to vector<8x32xbf16>
    %c2_58 = arith.constant 2 : index
    %c0_59 = arith.constant 0 : index
    %c0_60 = arith.constant 0 : index
    %51 = vector.load %arg9[%c2_58, %c0_59, %c0_60] : memref<28x32x64xbf16, #tpu.memory_space<vmem>>, vector<1x32x64xbf16>
    %52 = vector.shape_cast %51 : vector<1x32x64xbf16> to vector<32x64xbf16>
    %cst_61 = arith.constant dense<0.000000e+00> : vector<8x64xf32>
    %53 = tpu.matmul %50, %52, %cst_61 {dimension_numbers = #tpu.dot_dimension_numbers<[1], [0], [0], [1], [0, 0, 1, 1], [], []>} : vector<8x32xbf16>, vector<32x64xbf16>, vector<8x64xf32> -> vector<8x64xf32>
    %54 = arith.addf %48, %53 : vector<8x64xf32>
    %c0_62 = arith.constant 0 : index
    %c0_63 = arith.constant 0 : index
    %c1_64 = arith.constant 1 : index
    %c0_65 = arith.constant 0 : index
    %55 = vector.load %arg4[%c0_62, %c0_63, %c1_64, %c0_65] : memref<1x1x11x32xbf16, #tpu.memory_space<vmem>>, vector<1x1x8x32xbf16>
    %56 = vector.shape_cast %55 : vector<1x1x8x32xbf16> to vector<8x32xbf16>
    %c9 = arith.constant 9 : index
    %c0_66 = arith.constant 0 : index
    %c0_67 = arith.constant 0 : index
    %57 = vector.load %arg9[%c9, %c0_66, %c0_67] : memref<28x32x64xbf16, #tpu.memory_space<vmem>>, vector<1x32x64xbf16>
    %58 = vector.shape_cast %57 : vector<1x32x64xbf16> to vector<32x64xbf16>
    %cst_68 = arith.constant dense<0.000000e+00> : vector<8x64xf32>
    %59 = tpu.matmul %56, %58, %cst_68 {dimension_numbers = #tpu.dot_dimension_numbers<[1], [0], [0], [1], [0, 0, 1, 1], [], []>} : vector<8x32xbf16>, vector<32x64xbf16>, vector<8x64xf32> -> vector<8x64xf32>
    %60 = arith.addf %54, %59 : vector<8x64xf32>
    %c0_69 = arith.constant 0 : index
    %c0_70 = arith.constant 0 : index
    %c2_71 = arith.constant 2 : index
    %c0_72 = arith.constant 0 : index
    %61 = vector.load %arg4[%c0_69, %c0_70, %c2_71, %c0_72] : memref<1x1x11x32xbf16, #tpu.memory_space<vmem>>, vector<1x1x8x32xbf16>
    %62 = vector.shape_cast %61 : vector<1x1x8x32xbf16> to vector<8x32xbf16>
    %c16 = arith.constant 16 : index
    %c0_73 = arith.constant 0 : index
    %c0_74 = arith.constant 0 : index
    %63 = vector.load %arg9[%c16, %c0_73, %c0_74] : memref<28x32x64xbf16, #tpu.memory_space<vmem>>, vector<1x32x64xbf16>
    %64 = vector.shape_cast %63 : vector<1x32x64xbf16> to vector<32x64xbf16>
    %cst_75 = arith.constant dense<0.000000e+00> : vector<8x64xf32>
    %65 = tpu.matmul %62, %64, %cst_75 {dimension_numbers = #tpu.dot_dimension_numbers<[1], [0], [0], [1], [0, 0, 1, 1], [], []>} : vector<8x32xbf16>, vector<32x64xbf16>, vector<8x64xf32> -> vector<8x64xf32>
    %66 = arith.addf %60, %65 : vector<8x64xf32>
    %c0_76 = arith.constant 0 : index
    %c0_77 = arith.constant 0 : index
    %c3_78 = arith.constant 3 : index
    %c0_79 = arith.constant 0 : index
    %67 = vector.load %arg4[%c0_76, %c0_77, %c3_78, %c0_79] : memref<1x1x11x32xbf16, #tpu.memory_space<vmem>>, vector<1x1x8x32xbf16>
    %68 = vector.shape_cast %67 : vector<1x1x8x32xbf16> to vector<8x32xbf16>
    %c23 = arith.constant 23 : index
    %c0_80 = arith.constant 0 : index
    %c0_81 = arith.constant 0 : index
    %69 = vector.load %arg9[%c23, %c0_80, %c0_81] : memref<28x32x64xbf16, #tpu.memory_space<vmem>>, vector<1x32x64xbf16>
    %70 = vector.shape_cast %69 : vector<1x32x64xbf16> to vector<32x64xbf16>
    %cst_82 = arith.constant dense<0.000000e+00> : vector<8x64xf32>
    %71 = tpu.matmul %68, %70, %cst_82 {dimension_numbers = #tpu.dot_dimension_numbers<[1], [0], [0], [1], [0, 0, 1, 1], [], []>} : vector<8x32xbf16>, vector<32x64xbf16>, vector<8x64xf32> -> vector<8x64xf32>
    %72 = arith.addf %66, %71 : vector<8x64xf32>
    %c0_83 = arith.constant 0 : index
    %c0_84 = arith.constant 0 : index
    %c0_85 = arith.constant 0 : index
    %c0_86 = arith.constant 0 : index
    %73 = vector.load %arg5[%c0_83, %c0_84, %c0_85, %c0_86] : memref<1x1x11x32xbf16, #tpu.memory_space<vmem>>, vector<1x1x8x32xbf16>
    %74 = vector.shape_cast %73 : vector<1x1x8x32xbf16> to vector<8x32xbf16>
    %c3_87 = arith.constant 3 : index
    %c0_88 = arith.constant 0 : index
    %c0_89 = arith.constant 0 : index
    %75 = vector.load %arg9[%c3_87, %c0_88, %c0_89] : memref<28x32x64xbf16, #tpu.memory_space<vmem>>, vector<1x32x64xbf16>
    %76 = vector.shape_cast %75 : vector<1x32x64xbf16> to vector<32x64xbf16>
    %cst_90 = arith.constant dense<0.000000e+00> : vector<8x64xf32>
    %77 = tpu.matmul %74, %76, %cst_90 {dimension_numbers = #tpu.dot_dimension_numbers<[1], [0], [0], [1], [0, 0, 1, 1], [], []>} : vector<8x32xbf16>, vector<32x64xbf16>, vector<8x64xf32> -> vector<8x64xf32>
    %78 = arith.addf %72, %77 : vector<8x64xf32>
    %c0_91 = arith.constant 0 : index
    %c0_92 = arith.constant 0 : index
    %c1_93 = arith.constant 1 : index
    %c0_94 = arith.constant 0 : index
    %79 = vector.load %arg5[%c0_91, %c0_92, %c1_93, %c0_94] : memref<1x1x11x32xbf16, #tpu.memory_space<vmem>>, vector<1x1x8x32xbf16>
    %80 = vector.shape_cast %79 : vector<1x1x8x32xbf16> to vector<8x32xbf16>
    %c10 = arith.constant 10 : index
    %c0_95 = arith.constant 0 : index
    %c0_96 = arith.constant 0 : index
    %81 = vector.load %arg9[%c10, %c0_95, %c0_96] : memref<28x32x64xbf16, #tpu.memory_space<vmem>>, vector<1x32x64xbf16>
    %82 = vector.shape_cast %81 : vector<1x32x64xbf16> to vector<32x64xbf16>
    %cst_97 = arith.constant dense<0.000000e+00> : vector<8x64xf32>
    %83 = tpu.matmul %80, %82, %cst_97 {dimension_numbers = #tpu.dot_dimension_numbers<[1], [0], [0], [1], [0, 0, 1, 1], [], []>} : vector<8x32xbf16>, vector<32x64xbf16>, vector<8x64xf32> -> vector<8x64xf32>
    %84 = arith.addf %78, %83 : vector<8x64xf32>
    %c0_98 = arith.constant 0 : index
    %c0_99 = arith.constant 0 : index
    %c2_100 = arith.constant 2 : index
    %c0_101 = arith.constant 0 : index
    %85 = vector.load %arg5[%c0_98, %c0_99, %c2_100, %c0_101] : memref<1x1x11x32xbf16, #tpu.memory_space<vmem>>, vector<1x1x8x32xbf16>
    %86 = vector.shape_cast %85 : vector<1x1x8x32xbf16> to vector<8x32xbf16>
    %c17 = arith.constant 17 : index
    %c0_102 = arith.constant 0 : index
    %c0_103 = arith.constant 0 : index
    %87 = vector.load %arg9[%c17, %c0_102, %c0_103] : memref<28x32x64xbf16, #tpu.memory_space<vmem>>, vector<1x32x64xbf16>
    %88 = vector.shape_cast %87 : vector<1x32x64xbf16> to vector<32x64xbf16>
    %cst_104 = arith.constant dense<0.000000e+00> : vector<8x64xf32>
    %89 = tpu.matmul %86, %88, %cst_104 {dimension_numbers = #tpu.dot_dimension_numbers<[1], [0], [0], [1], [0, 0, 1, 1], [], []>} : vector<8x32xbf16>, vector<32x64xbf16>, vector<8x64xf32> -> vector<8x64xf32>
    %90 = arith.addf %84, %89 : vector<8x64xf32>
    %c0_105 = arith.constant 0 : index
    %c0_106 = arith.constant 0 : index
    %c3_107 = arith.constant 3 : index
    %c0_108 = arith.constant 0 : index
    %91 = vector.load %arg5[%c0_105, %c0_106, %c3_107, %c0_108] : memref<1x1x11x32xbf16, #tpu.memory_space<vmem>>, vector<1x1x8x32xbf16>
    %92 = vector.shape_cast %91 : vector<1x1x8x32xbf16> to vector<8x32xbf16>
    %c24 = arith.constant 24 : index
    %c0_109 = arith.constant 0 : index
    %c0_110 = arith.constant 0 : index
    %93 = vector.load %arg9[%c24, %c0_109, %c0_110] : memref<28x32x64xbf16, #tpu.memory_space<vmem>>, vector<1x32x64xbf16>
    %94 = vector.shape_cast %93 : vector<1x32x64xbf16> to vector<32x64xbf16>
    %cst_111 = arith.constant dense<0.000000e+00> : vector<8x64xf32>
    %95 = tpu.matmul %92, %94, %cst_111 {dimension_numbers = #tpu.dot_dimension_numbers<[1], [0], [0], [1], [0, 0, 1, 1], [], []>} : vector<8x32xbf16>, vector<32x64xbf16>, vector<8x64xf32> -> vector<8x64xf32>
    %96 = arith.addf %90, %95 : vector<8x64xf32>
    %c0_112 = arith.constant 0 : index
    %c0_113 = arith.constant 0 : index
    %c0_114 = arith.constant 0 : index
    %c0_115 = arith.constant 0 : index
    %97 = vector.load %arg6[%c0_112, %c0_113, %c0_114, %c0_115] : memref<1x1x11x32xbf16, #tpu.memory_space<vmem>>, vector<1x1x8x32xbf16>
    %98 = vector.shape_cast %97 : vector<1x1x8x32xbf16> to vector<8x32xbf16>
    %c4 = arith.constant 4 : index
    %c0_116 = arith.constant 0 : index
    %c0_117 = arith.constant 0 : index
    %99 = vector.load %arg9[%c4, %c0_116, %c0_117] : memref<28x32x64xbf16, #tpu.memory_space<vmem>>, vector<1x32x64xbf16>
    %100 = vector.shape_cast %99 : vector<1x32x64xbf16> to vector<32x64xbf16>
    %cst_118 = arith.constant dense<0.000000e+00> : vector<8x64xf32>
    %101 = tpu.matmul %98, %100, %cst_118 {dimension_numbers = #tpu.dot_dimension_numbers<[1], [0], [0], [1], [0, 0, 1, 1], [], []>} : vector<8x32xbf16>, vector<32x64xbf16>, vector<8x64xf32> -> vector<8x64xf32>
    %102 = arith.addf %96, %101 : vector<8x64xf32>
    %c0_119 = arith.constant 0 : index
    %c0_120 = arith.constant 0 : index
    %c1_121 = arith.constant 1 : index
    %c0_122 = arith.constant 0 : index
    %103 = vector.load %arg6[%c0_119, %c0_120, %c1_121, %c0_122] : memref<1x1x11x32xbf16, #tpu.memory_space<vmem>>, vector<1x1x8x32xbf16>
    %104 = vector.shape_cast %103 : vector<1x1x8x32xbf16> to vector<8x32xbf16>
    %c11 = arith.constant 11 : index
    %c0_123 = arith.constant 0 : index
    %c0_124 = arith.constant 0 : index
    %105 = vector.load %arg9[%c11, %c0_123, %c0_124] : memref<28x32x64xbf16, #tpu.memory_space<vmem>>, vector<1x32x64xbf16>
    %106 = vector.shape_cast %105 : vector<1x32x64xbf16> to vector<32x64xbf16>
    %cst_125 = arith.constant dense<0.000000e+00> : vector<8x64xf32>
    %107 = tpu.matmul %104, %106, %cst_125 {dimension_numbers = #tpu.dot_dimension_numbers<[1], [0], [0], [1], [0, 0, 1, 1], [], []>} : vector<8x32xbf16>, vector<32x64xbf16>, vector<8x64xf32> -> vector<8x64xf32>
    %108 = arith.addf %102, %107 : vector<8x64xf32>
    %c0_126 = arith.constant 0 : index
    %c0_127 = arith.constant 0 : index
    %c2_128 = arith.constant 2 : index
    %c0_129 = arith.constant 0 : index
    %109 = vector.load %arg6[%c0_126, %c0_127, %c2_128, %c0_129] : memref<1x1x11x32xbf16, #tpu.memory_space<vmem>>, vector<1x1x8x32xbf16>
    %110 = vector.shape_cast %109 : vector<1x1x8x32xbf16> to vector<8x32xbf16>
    %c18 = arith.constant 18 : index
    %c0_130 = arith.constant 0 : index
    %c0_131 = arith.constant 0 : index
    %111 = vector.load %arg9[%c18, %c0_130, %c0_131] : memref<28x32x64xbf16, #tpu.memory_space<vmem>>, vector<1x32x64xbf16>
    %112 = vector.shape_cast %111 : vector<1x32x64xbf16> to vector<32x64xbf16>
    %cst_132 = arith.constant dense<0.000000e+00> : vector<8x64xf32>
    %113 = tpu.matmul %110, %112, %cst_132 {dimension_numbers = #tpu.dot_dimension_numbers<[1], [0], [0], [1], [0, 0, 1, 1], [], []>} : vector<8x32xbf16>, vector<32x64xbf16>, vector<8x64xf32> -> vector<8x64xf32>
    %114 = arith.addf %108, %113 : vector<8x64xf32>
    %c0_133 = arith.constant 0 : index
    %c0_134 = arith.constant 0 : index
    %c3_135 = arith.constant 3 : index
    %c0_136 = arith.constant 0 : index
    %115 = vector.load %arg6[%c0_133, %c0_134, %c3_135, %c0_136] : memref<1x1x11x32xbf16, #tpu.memory_space<vmem>>, vector<1x1x8x32xbf16>
    %116 = vector.shape_cast %115 : vector<1x1x8x32xbf16> to vector<8x32xbf16>
    %c25 = arith.constant 25 : index
    %c0_137 = arith.constant 0 : index
    %c0_138 = arith.constant 0 : index
    %117 = vector.load %arg9[%c25, %c0_137, %c0_138] : memref<28x32x64xbf16, #tpu.memory_space<vmem>>, vector<1x32x64xbf16>
    %118 = vector.shape_cast %117 : vector<1x32x64xbf16> to vector<32x64xbf16>
    %cst_139 = arith.constant dense<0.000000e+00> : vector<8x64xf32>
    %119 = tpu.matmul %116, %118, %cst_139 {dimension_numbers = #tpu.dot_dimension_numbers<[1], [0], [0], [1], [0, 0, 1, 1], [], []>} : vector<8x32xbf16>, vector<32x64xbf16>, vector<8x64xf32> -> vector<8x64xf32>
    %120 = arith.addf %114, %119 : vector<8x64xf32>
    %c0_140 = arith.constant 0 : index
    %c0_141 = arith.constant 0 : index
    %c0_142 = arith.constant 0 : index
    %c0_143 = arith.constant 0 : index
    %121 = vector.load %arg7[%c0_140, %c0_141, %c0_142, %c0_143] : memref<1x1x11x32xbf16, #tpu.memory_space<vmem>>, vector<1x1x8x32xbf16>
    %122 = vector.shape_cast %121 : vector<1x1x8x32xbf16> to vector<8x32xbf16>
    %c5 = arith.constant 5 : index
    %c0_144 = arith.constant 0 : index
    %c0_145 = arith.constant 0 : index
    %123 = vector.load %arg9[%c5, %c0_144, %c0_145] : memref<28x32x64xbf16, #tpu.memory_space<vmem>>, vector<1x32x64xbf16>
    %124 = vector.shape_cast %123 : vector<1x32x64xbf16> to vector<32x64xbf16>
    %cst_146 = arith.constant dense<0.000000e+00> : vector<8x64xf32>
    %125 = tpu.matmul %122, %124, %cst_146 {dimension_numbers = #tpu.dot_dimension_numbers<[1], [0], [0], [1], [0, 0, 1, 1], [], []>} : vector<8x32xbf16>, vector<32x64xbf16>, vector<8x64xf32> -> vector<8x64xf32>
    %126 = arith.addf %120, %125 : vector<8x64xf32>
    %c0_147 = arith.constant 0 : index
    %c0_148 = arith.constant 0 : index
    %c1_149 = arith.constant 1 : index
    %c0_150 = arith.constant 0 : index
    %127 = vector.load %arg7[%c0_147, %c0_148, %c1_149, %c0_150] : memref<1x1x11x32xbf16, #tpu.memory_space<vmem>>, vector<1x1x8x32xbf16>
    %128 = vector.shape_cast %127 : vector<1x1x8x32xbf16> to vector<8x32xbf16>
    %c12 = arith.constant 12 : index
    %c0_151 = arith.constant 0 : index
    %c0_152 = arith.constant 0 : index
    %129 = vector.load %arg9[%c12, %c0_151, %c0_152] : memref<28x32x64xbf16, #tpu.memory_space<vmem>>, vector<1x32x64xbf16>
    %130 = vector.shape_cast %129 : vector<1x32x64xbf16> to vector<32x64xbf16>
    %cst_153 = arith.constant dense<0.000000e+00> : vector<8x64xf32>
    %131 = tpu.matmul %128, %130, %cst_153 {dimension_numbers = #tpu.dot_dimension_numbers<[1], [0], [0], [1], [0, 0, 1, 1], [], []>} : vector<8x32xbf16>, vector<32x64xbf16>, vector<8x64xf32> -> vector<8x64xf32>
    %132 = arith.addf %126, %131 : vector<8x64xf32>
    %c0_154 = arith.constant 0 : index
    %c0_155 = arith.constant 0 : index
    %c2_156 = arith.constant 2 : index
    %c0_157 = arith.constant 0 : index
    %133 = vector.load %arg7[%c0_154, %c0_155, %c2_156, %c0_157] : memref<1x1x11x32xbf16, #tpu.memory_space<vmem>>, vector<1x1x8x32xbf16>
    %134 = vector.shape_cast %133 : vector<1x1x8x32xbf16> to vector<8x32xbf16>
    %c19 = arith.constant 19 : index
    %c0_158 = arith.constant 0 : index
    %c0_159 = arith.constant 0 : index
    %135 = vector.load %arg9[%c19, %c0_158, %c0_159] : memref<28x32x64xbf16, #tpu.memory_space<vmem>>, vector<1x32x64xbf16>
    %136 = vector.shape_cast %135 : vector<1x32x64xbf16> to vector<32x64xbf16>
    %cst_160 = arith.constant dense<0.000000e+00> : vector<8x64xf32>
    %137 = tpu.matmul %134, %136, %cst_160 {dimension_numbers = #tpu.dot_dimension_numbers<[1], [0], [0], [1], [0, 0, 1, 1], [], []>} : vector<8x32xbf16>, vector<32x64xbf16>, vector<8x64xf32> -> vector<8x64xf32>
    %138 = arith.addf %132, %137 : vector<8x64xf32>
    %c0_161 = arith.constant 0 : index
    %c0_162 = arith.constant 0 : index
    %c3_163 = arith.constant 3 : index
    %c0_164 = arith.constant 0 : index
    %139 = vector.load %arg7[%c0_161, %c0_162, %c3_163, %c0_164] : memref<1x1x11x32xbf16, #tpu.memory_space<vmem>>, vector<1x1x8x32xbf16>
    %140 = vector.shape_cast %139 : vector<1x1x8x32xbf16> to vector<8x32xbf16>
    %c26 = arith.constant 26 : index
    %c0_165 = arith.constant 0 : index
    %c0_166 = arith.constant 0 : index
    %141 = vector.load %arg9[%c26, %c0_165, %c0_166] : memref<28x32x64xbf16, #tpu.memory_space<vmem>>, vector<1x32x64xbf16>
    %142 = vector.shape_cast %141 : vector<1x32x64xbf16> to vector<32x64xbf16>
    %cst_167 = arith.constant dense<0.000000e+00> : vector<8x64xf32>
    %143 = tpu.matmul %140, %142, %cst_167 {dimension_numbers = #tpu.dot_dimension_numbers<[1], [0], [0], [1], [0, 0, 1, 1], [], []>} : vector<8x32xbf16>, vector<32x64xbf16>, vector<8x64xf32> -> vector<8x64xf32>
    %144 = arith.addf %138, %143 : vector<8x64xf32>
    %c0_168 = arith.constant 0 : index
    %c0_169 = arith.constant 0 : index
    %c0_170 = arith.constant 0 : index
    %c0_171 = arith.constant 0 : index
    %145 = vector.load %arg8[%c0_168, %c0_169, %c0_170, %c0_171] : memref<1x1x11x32xbf16, #tpu.memory_space<vmem>>, vector<1x1x8x32xbf16>
    %146 = vector.shape_cast %145 : vector<1x1x8x32xbf16> to vector<8x32xbf16>
    %c6 = arith.constant 6 : index
    %c0_172 = arith.constant 0 : index
    %c0_173 = arith.constant 0 : index
    %147 = vector.load %arg9[%c6, %c0_172, %c0_173] : memref<28x32x64xbf16, #tpu.memory_space<vmem>>, vector<1x32x64xbf16>
    %148 = vector.shape_cast %147 : vector<1x32x64xbf16> to vector<32x64xbf16>
    %cst_174 = arith.constant dense<0.000000e+00> : vector<8x64xf32>
    %149 = tpu.matmul %146, %148, %cst_174 {dimension_numbers = #tpu.dot_dimension_numbers<[1], [0], [0], [1], [0, 0, 1, 1], [], []>} : vector<8x32xbf16>, vector<32x64xbf16>, vector<8x64xf32> -> vector<8x64xf32>
    %150 = arith.addf %144, %149 : vector<8x64xf32>
    %c0_175 = arith.constant 0 : index
    %c0_176 = arith.constant 0 : index
    %c1_177 = arith.constant 1 : index
    %c0_178 = arith.constant 0 : index
    %151 = vector.load %arg8[%c0_175, %c0_176, %c1_177, %c0_178] : memref<1x1x11x32xbf16, #tpu.memory_space<vmem>>, vector<1x1x8x32xbf16>
    %152 = vector.shape_cast %151 : vector<1x1x8x32xbf16> to vector<8x32xbf16>
    %c13 = arith.constant 13 : index
    %c0_179 = arith.constant 0 : index
    %c0_180 = arith.constant 0 : index
    %153 = vector.load %arg9[%c13, %c0_179, %c0_180] : memref<28x32x64xbf16, #tpu.memory_space<vmem>>, vector<1x32x64xbf16>
    %154 = vector.shape_cast %153 : vector<1x32x64xbf16> to vector<32x64xbf16>
    %cst_181 = arith.constant dense<0.000000e+00> : vector<8x64xf32>
    %155 = tpu.matmul %152, %154, %cst_181 {dimension_numbers = #tpu.dot_dimension_numbers<[1], [0], [0], [1], [0, 0, 1, 1], [], []>} : vector<8x32xbf16>, vector<32x64xbf16>, vector<8x64xf32> -> vector<8x64xf32>
    %156 = arith.addf %150, %155 : vector<8x64xf32>
    %c0_182 = arith.constant 0 : index
    %c0_183 = arith.constant 0 : index
    %c2_184 = arith.constant 2 : index
    %c0_185 = arith.constant 0 : index
    %157 = vector.load %arg8[%c0_182, %c0_183, %c2_184, %c0_185] : memref<1x1x11x32xbf16, #tpu.memory_space<vmem>>, vector<1x1x8x32xbf16>
    %158 = vector.shape_cast %157 : vector<1x1x8x32xbf16> to vector<8x32xbf16>
    %c20 = arith.constant 20 : index
    %c0_186 = arith.constant 0 : index
    %c0_187 = arith.constant 0 : index
    %159 = vector.load %arg9[%c20, %c0_186, %c0_187] : memref<28x32x64xbf16, #tpu.memory_space<vmem>>, vector<1x32x64xbf16>
    %160 = vector.shape_cast %159 : vector<1x32x64xbf16> to vector<32x64xbf16>
    %cst_188 = arith.constant dense<0.000000e+00> : vector<8x64xf32>
    %161 = tpu.matmul %158, %160, %cst_188 {dimension_numbers = #tpu.dot_dimension_numbers<[1], [0], [0], [1], [0, 0, 1, 1], [], []>} : vector<8x32xbf16>, vector<32x64xbf16>, vector<8x64xf32> -> vector<8x64xf32>
    %162 = arith.addf %156, %161 : vector<8x64xf32>
    %c0_189 = arith.constant 0 : index
    %c0_190 = arith.constant 0 : index
    %c3_191 = arith.constant 3 : index
    %c0_192 = arith.constant 0 : index
    %163 = vector.load %arg8[%c0_189, %c0_190, %c3_191, %c0_192] : memref<1x1x11x32xbf16, #tpu.memory_space<vmem>>, vector<1x1x8x32xbf16>
    %164 = vector.shape_cast %163 : vector<1x1x8x32xbf16> to vector<8x32xbf16>
    %c27 = arith.constant 27 : index
    %c0_193 = arith.constant 0 : index
    %c0_194 = arith.constant 0 : index
    %165 = vector.load %arg9[%c27, %c0_193, %c0_194] : memref<28x32x64xbf16, #tpu.memory_space<vmem>>, vector<1x32x64xbf16>
    %166 = vector.shape_cast %165 : vector<1x32x64xbf16> to vector<32x64xbf16>
    %cst_195 = arith.constant dense<0.000000e+00> : vector<8x64xf32>
    %167 = tpu.matmul %164, %166, %cst_195 {dimension_numbers = #tpu.dot_dimension_numbers<[1], [0], [0], [1], [0, 0, 1, 1], [], []>} : vector<8x32xbf16>, vector<32x64xbf16>, vector<8x64xf32> -> vector<8x64xf32>
    %168 = arith.addf %162, %167 : vector<8x64xf32>
    %c0_196 = arith.constant 0 : index
    %c0_197 = arith.constant 0 : index
    %169 = vector.load %arg10[%c0_196, %c0_197] : memref<1x64xf32, #tpu.memory_space<vmem>>, vector<1x64xf32>
    %170 = vector.broadcast %169 : vector<1x64xf32> to vector<8x64xf32>
    %171 = arith.addf %168, %170 : vector<8x64xf32>
    %172 = arith.truncf %171 : vector<8x64xf32> to vector<8x64xbf16>
    %c0_198 = arith.constant 0 : index
    %c0_199 = arith.constant 0 : index
    %c0_200 = arith.constant 0 : index
    %c0_201 = arith.constant 0 : index
    %173 = vector.load %arg12[%c0_198, %c0_199, %c0_200, %c0_201] : memref<1x1x8x64xbf16, #tpu.memory_space<vmem>>, vector<1x1x8x64xbf16>
    %174 = vector.shape_cast %173 : vector<1x1x8x64xbf16> to vector<8x64xbf16>
    %175 = vector.shape_cast %172 : vector<8x64xbf16> to vector<1x1x8x64xbf16>
    tpu.vector_store %arg12[%c0_198, %c0_199, %c0_200, %c0_201], %175 {strides = array<i32>} : memref<1x1x8x64xbf16, #tpu.memory_space<vmem>>, vector<1x1x8x64xbf16>,
    %176 = vector.extract_strided_slice %171 {offsets = [0, 0], sizes = [8, 32], strides = [1, 1]} : vector<8x64xf32> to vector<8x32xf32>
    %c0_202 = arith.constant 0 : index
    %c0_203 = arith.constant 0 : index
    %c0_204 = arith.constant 0 : index
    %177 = vector.load %arg11[%c0_202, %c0_203, %c0_204] : memref<1x1x64xf32, #tpu.memory_space<vmem>>, vector<1x1x64xf32>
    %178 = vector.shape_cast %177 : vector<1x1x64xf32> to vector<1x64xf32>
    %179 = vector.extract_strided_slice %178 {offsets = [0, 0], sizes = [1, 32], strides = [1, 1]} : vector<1x64xf32> to vector<1x32xf32>
    %180 = vector.broadcast %179 : vector<1x32xf32> to vector<8x32xf32>
    %181 = arith.addf %176, %180 : vector<8x32xf32>
    %cst_205 = arith.constant dense<0.000000e+00> : vector<32xf32>
    %182 = vector.multi_reduction <add>, %181, %cst_205 [0] : vector<8x32xf32> to vector<32xf32>
    %183 = vector.shape_cast %182 : vector<32xf32> to vector<1x32xf32>
    %c0_206 = arith.constant 0 : index
    %c0_207 = arith.constant 0 : index
    %c0_208 = arith.constant 0 : index
    %c0_209 = arith.constant 0 : index
    %184 = vector.load %arg13[%c0_206, %c0_207, %c0_208, %c0_209] : memref<1x1x1x32xf32, #tpu.memory_space<vmem>>, vector<1x1x1x32xf32>
    %185 = vector.shape_cast %184 : vector<1x1x1x32xf32> to vector<1x32xf32>
    %186 = vector.shape_cast %183 : vector<1x32xf32> to vector<1x1x1x32xf32>
    tpu.vector_store %arg13[%c0_206, %c0_207, %c0_208, %c0_209], %186 {strides = array<i32>} : memref<1x1x1x32xf32, #tpu.memory_space<vmem>>, vector<1x1x1x32xf32>,
    %187 = arith.mulf %181, %181 : vector<8x32xf32>
    %cst_210 = arith.constant dense<0.000000e+00> : vector<32xf32>
    %188 = vector.multi_reduction <add>, %187, %cst_210 [0] : vector<8x32xf32> to vector<32xf32>
    %189 = vector.shape_cast %188 : vector<32xf32> to vector<1x32xf32>
    %c0_211 = arith.constant 0 : index
    %c0_212 = arith.constant 0 : index
    %c0_213 = arith.constant 0 : index
    %c0_214 = arith.constant 0 : index
    %190 = vector.load %arg14[%c0_211, %c0_212, %c0_213, %c0_214] : memref<1x1x1x32xf32, #tpu.memory_space<vmem>>, vector<1x1x1x32xf32>
    %191 = vector.shape_cast %190 : vector<1x1x1x32xf32> to vector<1x32xf32>
    %192 = vector.shape_cast %189 : vector<1x32xf32> to vector<1x1x1x32xf32>
    tpu.vector_store %arg14[%c0_211, %c0_212, %c0_213, %c0_214], %192 {strides = array<i32>} : memref<1x1x1x32xf32, #tpu.memory_space<vmem>>, vector<1x1x1x32xf32>,
    return
  }
  func.func @transform_0(%arg0: i32, %arg1: i32) -> (i32, i32, i32, i32) {
    %c0_i32 = arith.constant 0 : i32
    %0 = arith.addi %arg1, %c0_i32 : i32
    %c0_i32_0 = arith.constant 0 : i32
    %c0_i32_1 = arith.constant 0 : i32
    %c0_i32_2 = arith.constant 0 : i32
    return %arg0, %0, %c0_i32_0, %c0_i32_1 : i32, i32, i32, i32
  }
  func.func @transform_1(%arg0: i32, %arg1: i32) -> (i32, i32, i32, i32) {
    %c1_i32 = arith.constant 1 : i32
    %0 = arith.addi %arg1, %c1_i32 : i32
    %c0_i32 = arith.constant 0 : i32
    %c0_i32_0 = arith.constant 0 : i32
    %c0_i32_1 = arith.constant 0 : i32
    return %arg0, %0, %c0_i32, %c0_i32_0 : i32, i32, i32, i32
  }
  func.func @transform_2(%arg0: i32, %arg1: i32) -> (i32, i32, i32, i32) {
    %c2_i32 = arith.constant 2 : i32
    %0 = arith.addi %arg1, %c2_i32 : i32
    %c0_i32 = arith.constant 0 : i32
    %c0_i32_0 = arith.constant 0 : i32
    %c0_i32_1 = arith.constant 0 : i32
    return %arg0, %0, %c0_i32, %c0_i32_0 : i32, i32, i32, i32
  }
  func.func @transform_3(%arg0: i32, %arg1: i32) -> (i32, i32, i32, i32) {
    %c3_i32 = arith.constant 3 : i32
    %0 = arith.addi %arg1, %c3_i32 : i32
    %c0_i32 = arith.constant 0 : i32
    %c0_i32_0 = arith.constant 0 : i32
    %c0_i32_1 = arith.constant 0 : i32
    return %arg0, %0, %c0_i32, %c0_i32_0 : i32, i32, i32, i32
  }
  func.func @transform_4(%arg0: i32, %arg1: i32) -> (i32, i32, i32, i32) {
    %c4_i32 = arith.constant 4 : i32
    %0 = arith.addi %arg1, %c4_i32 : i32
    %c0_i32 = arith.constant 0 : i32
    %c0_i32_0 = arith.constant 0 : i32
    %c0_i32_1 = arith.constant 0 : i32
    return %arg0, %0, %c0_i32, %c0_i32_0 : i32, i32, i32, i32
  }
  func.func @transform_5(%arg0: i32, %arg1: i32) -> (i32, i32, i32, i32) {
    %c5_i32 = arith.constant 5 : i32
    %0 = arith.addi %arg1, %c5_i32 : i32
    %c0_i32 = arith.constant 0 : i32
    %c0_i32_0 = arith.constant 0 : i32
    %c0_i32_1 = arith.constant 0 : i32
    return %arg0, %0, %c0_i32, %c0_i32_0 : i32, i32, i32, i32
  }
  func.func @transform_6(%arg0: i32, %arg1: i32) -> (i32, i32, i32, i32) {
    %c6_i32 = arith.constant 6 : i32
    %0 = arith.addi %arg1, %c6_i32 : i32
    %c0_i32 = arith.constant 0 : i32
    %c0_i32_0 = arith.constant 0 : i32
    %c0_i32_1 = arith.constant 0 : i32
    return %arg0, %0, %c0_i32, %c0_i32_0 : i32, i32, i32, i32
  }
  func.func @transform_7(%arg0: i32, %arg1: i32) -> (i32, i32, i32) {
    %c0_i32 = arith.constant 0 : i32
    %c0_i32_0 = arith.constant 0 : i32
    %c0_i32_1 = arith.constant 0 : i32
    %c0_i32_2 = arith.constant 0 : i32
    return %c0_i32, %c0_i32_0, %c0_i32_1 : i32, i32, i32
  }
  func.func @transform_8(%arg0: i32, %arg1: i32) -> (i32, i32) {
    %c0_i32 = arith.constant 0 : i32
    %c0_i32_0 = arith.constant 0 : i32
    %c0_i32_1 = arith.constant 0 : i32
    return %c0_i32, %c0_i32_0 : i32, i32
  }
  func.func @transform_9(%arg0: i32, %arg1: i32) -> (i32, i32, i32) {
    %c0_i32 = arith.constant 0 : i32
    %c0_i32_0 = arith.constant 0 : i32
    %c0_i32_1 = arith.constant 0 : i32
    return %arg0, %c0_i32, %c0_i32_0 : i32, i32, i32
  }
  func.func @transform_10(%arg0: i32, %arg1: i32) -> (i32, i32, i32, i32) {
    %c0_i32 = arith.constant 0 : i32
    %c0_i32_0 = arith.constant 0 : i32
    %c0_i32_1 = arith.constant 0 : i32
    return %arg0, %arg1, %c0_i32, %c0_i32_0 : i32, i32, i32, i32
  }
  func.func @transform_11(%arg0: i32, %arg1: i32) -> (i32, i32, i32, i32) {
    %c0_i32 = arith.constant 0 : i32
    %c0_i32_0 = arith.constant 0 : i32
    %c0_i32_1 = arith.constant 0 : i32
    return %arg0, %arg1, %c0_i32, %c0_i32_0 : i32, i32, i32, i32
  }
  func.func @transform_12(%arg0: i32, %arg1: i32) -> (i32, i32, i32, i32) {
    %c0_i32 = arith.constant 0 : i32
    %c0_i32_0 = arith.constant 0 : i32
    %c0_i32_1 = arith.constant 0 : i32
    return %arg0, %arg1, %c0_i32, %c0_i32_0 : i32, i32, i32, i32
  }
}

module attributes {stable_mosaic.version = 11 : i64} {
  func.func @_horiz_fused_kernel(%arg0: i32, %arg1: i32, %arg2: memref<1x1x8x32xbf16, #tpu.memory_space<vmem>>, %arg3: memref<1x1x8x32xbf16, #tpu.memory_space<vmem>>, %arg4: memref<1x1x8x32xbf16, #tpu.memory_space<vmem>>, %arg5: memref<1x1x8x32xbf16, #tpu.memory_space<vmem>>, %arg6: memref<1x1x8x64xbf16, #tpu.memory_space<vmem>>, %arg7: memref<4x32x64xbf16, #tpu.memory_space<vmem>>, %arg8: memref<64x64xbf16, #tpu.memory_space<vmem>>, %arg9: memref<1x64xf32, #tpu.memory_space<vmem>>, %arg10: memref<1x1x64xf32, #tpu.memory_space<vmem>>, %arg11: memref<1x1x8x64xbf16, #tpu.memory_space<vmem>>, %arg12: memref<1x1x1x32xf32, #tpu.memory_space<vmem>>, %arg13: memref<1x1x1x32xf32, #tpu.memory_space<vmem>>) attributes {dimension_semantics = [#tpu.dimension_semantics<parallel>, #tpu.dimension_semantics<parallel>], iteration_bounds = array<i64: 2, 8>, scalar_prefetch = 0 : i64, scratch_operands = 0 : i64, tpu.core_type = #tpu.core_type<tc>, window_params = [{transform_indices = @transform_0, window_bounds = array<i64: 1, 1, 8, 32>}, {transform_indices = @transform_1, window_bounds = array<i64: 1, 1, 8, 32>}, {transform_indices = @transform_2, window_bounds = array<i64: 1, 1, 8, 32>}, {transform_indices = @transform_3, window_bounds = array<i64: 1, 1, 8, 32>}, {transform_indices = @transform_4, window_bounds = array<i64: 1, 1, 8, 64>}, {pipeline_mode = #tpu.pipeline_mode<synchronous>, transform_indices = @transform_5, window_bounds = array<i64: 4, 32, 64>}, {pipeline_mode = #tpu.pipeline_mode<synchronous>, transform_indices = @transform_6, window_bounds = array<i64: 64, 64>}, {pipeline_mode = #tpu.pipeline_mode<synchronous>, transform_indices = @transform_7, window_bounds = array<i64: 1, 64>}, {transform_indices = @transform_8, window_bounds = array<i64: 1, 1, 64>}, {transform_indices = @transform_9, window_bounds = array<i64: 1, 1, 8, 64>}, {transform_indices = @transform_10, window_bounds = array<i64: 1, 1, 1, 32>}, {transform_indices = @transform_11, window_bounds = array<i64: 1, 1, 1, 32>}]} {
    %c0 = arith.constant 0 : index
    %c0_0 = arith.constant 0 : index
    %c0_1 = arith.constant 0 : index
    %c0_2 = arith.constant 0 : index
    %0 = vector.load %arg6[%c0, %c0_0, %c0_1, %c0_2] : memref<1x1x8x64xbf16, #tpu.memory_space<vmem>>, vector<1x1x8x64xbf16>
    %1 = vector.shape_cast %0 : vector<1x1x8x64xbf16> to vector<8x64xbf16>
    %c0_3 = arith.constant 0 : index
    %c0_4 = arith.constant 0 : index
    %2 = vector.load %arg8[%c0_3, %c0_4] : memref<64x64xbf16, #tpu.memory_space<vmem>>, vector<64x64xbf16>
    %cst = arith.constant dense<0.000000e+00> : vector<8x64xf32>
    %3 = tpu.matmul %1, %2, %cst {dimension_numbers = #tpu.dot_dimension_numbers<[1], [0], [0], [1], [0, 0, 1, 1], [], []>} : vector<8x64xbf16>, vector<64x64xbf16>, vector<8x64xf32> -> vector<8x64xf32>
    %c0_5 = arith.constant 0 : index
    %c0_6 = arith.constant 0 : index
    %c0_7 = arith.constant 0 : index
    %c0_8 = arith.constant 0 : index
    %4 = vector.load %arg2[%c0_5, %c0_6, %c0_7, %c0_8] : memref<1x1x8x32xbf16, #tpu.memory_space<vmem>>, vector<1x1x8x32xbf16>
    %5 = vector.shape_cast %4 : vector<1x1x8x32xbf16> to vector<8x32xbf16>
    %c0_9 = arith.constant 0 : index
    %c0_10 = arith.constant 0 : index
    %c0_11 = arith.constant 0 : index
    %6 = vector.load %arg7[%c0_9, %c0_10, %c0_11] : memref<4x32x64xbf16, #tpu.memory_space<vmem>>, vector<1x32x64xbf16>
    %7 = vector.shape_cast %6 : vector<1x32x64xbf16> to vector<32x64xbf16>
    %cst_12 = arith.constant dense<0.000000e+00> : vector<8x64xf32>
    %8 = tpu.matmul %5, %7, %cst_12 {dimension_numbers = #tpu.dot_dimension_numbers<[1], [0], [0], [1], [0, 0, 1, 1], [], []>} : vector<8x32xbf16>, vector<32x64xbf16>, vector<8x64xf32> -> vector<8x64xf32>
    %9 = arith.addf %3, %8 : vector<8x64xf32>
    %c0_13 = arith.constant 0 : index
    %c0_14 = arith.constant 0 : index
    %c0_15 = arith.constant 0 : index
    %c0_16 = arith.constant 0 : index
    %10 = vector.load %arg3[%c0_13, %c0_14, %c0_15, %c0_16] : memref<1x1x8x32xbf16, #tpu.memory_space<vmem>>, vector<1x1x8x32xbf16>
    %11 = vector.shape_cast %10 : vector<1x1x8x32xbf16> to vector<8x32xbf16>
    %c1 = arith.constant 1 : index
    %c0_17 = arith.constant 0 : index
    %c0_18 = arith.constant 0 : index
    %12 = vector.load %arg7[%c1, %c0_17, %c0_18] : memref<4x32x64xbf16, #tpu.memory_space<vmem>>, vector<1x32x64xbf16>
    %13 = vector.shape_cast %12 : vector<1x32x64xbf16> to vector<32x64xbf16>
    %cst_19 = arith.constant dense<0.000000e+00> : vector<8x64xf32>
    %14 = tpu.matmul %11, %13, %cst_19 {dimension_numbers = #tpu.dot_dimension_numbers<[1], [0], [0], [1], [0, 0, 1, 1], [], []>} : vector<8x32xbf16>, vector<32x64xbf16>, vector<8x64xf32> -> vector<8x64xf32>
    %15 = arith.addf %9, %14 : vector<8x64xf32>
    %c0_20 = arith.constant 0 : index
    %c0_21 = arith.constant 0 : index
    %c0_22 = arith.constant 0 : index
    %c0_23 = arith.constant 0 : index
    %16 = vector.load %arg4[%c0_20, %c0_21, %c0_22, %c0_23] : memref<1x1x8x32xbf16, #tpu.memory_space<vmem>>, vector<1x1x8x32xbf16>
    %17 = vector.shape_cast %16 : vector<1x1x8x32xbf16> to vector<8x32xbf16>
    %c2 = arith.constant 2 : index
    %c0_24 = arith.constant 0 : index
    %c0_25 = arith.constant 0 : index
    %18 = vector.load %arg7[%c2, %c0_24, %c0_25] : memref<4x32x64xbf16, #tpu.memory_space<vmem>>, vector<1x32x64xbf16>
    %19 = vector.shape_cast %18 : vector<1x32x64xbf16> to vector<32x64xbf16>
    %cst_26 = arith.constant dense<0.000000e+00> : vector<8x64xf32>
    %20 = tpu.matmul %17, %19, %cst_26 {dimension_numbers = #tpu.dot_dimension_numbers<[1], [0], [0], [1], [0, 0, 1, 1], [], []>} : vector<8x32xbf16>, vector<32x64xbf16>, vector<8x64xf32> -> vector<8x64xf32>
    %21 = arith.addf %15, %20 : vector<8x64xf32>
    %c0_27 = arith.constant 0 : index
    %c0_28 = arith.constant 0 : index
    %c0_29 = arith.constant 0 : index
    %c0_30 = arith.constant 0 : index
    %22 = vector.load %arg5[%c0_27, %c0_28, %c0_29, %c0_30] : memref<1x1x8x32xbf16, #tpu.memory_space<vmem>>, vector<1x1x8x32xbf16>
    %23 = vector.shape_cast %22 : vector<1x1x8x32xbf16> to vector<8x32xbf16>
    %c3 = arith.constant 3 : index
    %c0_31 = arith.constant 0 : index
    %c0_32 = arith.constant 0 : index
    %24 = vector.load %arg7[%c3, %c0_31, %c0_32] : memref<4x32x64xbf16, #tpu.memory_space<vmem>>, vector<1x32x64xbf16>
    %25 = vector.shape_cast %24 : vector<1x32x64xbf16> to vector<32x64xbf16>
    %cst_33 = arith.constant dense<0.000000e+00> : vector<8x64xf32>
    %26 = tpu.matmul %23, %25, %cst_33 {dimension_numbers = #tpu.dot_dimension_numbers<[1], [0], [0], [1], [0, 0, 1, 1], [], []>} : vector<8x32xbf16>, vector<32x64xbf16>, vector<8x64xf32> -> vector<8x64xf32>
    %27 = arith.addf %21, %26 : vector<8x64xf32>
    %c0_34 = arith.constant 0 : index
    %c0_35 = arith.constant 0 : index
    %28 = vector.load %arg9[%c0_34, %c0_35] : memref<1x64xf32, #tpu.memory_space<vmem>>, vector<1x64xf32>
    %29 = vector.broadcast %28 : vector<1x64xf32> to vector<8x64xf32>
    %30 = arith.addf %27, %29 : vector<8x64xf32>
    %c0_36 = arith.constant 0 : index
    %c0_37 = arith.constant 0 : index
    %c0_38 = arith.constant 0 : index
    %31 = vector.load %arg10[%c0_36, %c0_37, %c0_38] : memref<1x1x64xf32, #tpu.memory_space<vmem>>, vector<1x1x64xf32>
    %32 = vector.shape_cast %31 : vector<1x1x64xf32> to vector<1x64xf32>
    %33 = vector.broadcast %32 : vector<1x64xf32> to vector<8x64xf32>
    %34 = arith.addf %30, %33 : vector<8x64xf32>
    %35 = arith.truncf %34 : vector<8x64xf32> to vector<8x64xbf16>
    %c0_39 = arith.constant 0 : index
    %c0_40 = arith.constant 0 : index
    %c0_41 = arith.constant 0 : index
    %c0_42 = arith.constant 0 : index
    %36 = vector.load %arg11[%c0_39, %c0_40, %c0_41, %c0_42] : memref<1x1x8x64xbf16, #tpu.memory_space<vmem>>, vector<1x1x8x64xbf16>
    %37 = vector.shape_cast %36 : vector<1x1x8x64xbf16> to vector<8x64xbf16>
    %38 = vector.shape_cast %35 : vector<8x64xbf16> to vector<1x1x8x64xbf16>
    tpu.vector_store %arg11[%c0_39, %c0_40, %c0_41, %c0_42], %38 {strides = array<i32>} : memref<1x1x8x64xbf16, #tpu.memory_space<vmem>>, vector<1x1x8x64xbf16>,
    %39 = vector.extract_strided_slice %34 {offsets = [0, 0], sizes = [8, 32], strides = [1, 1]} : vector<8x64xf32> to vector<8x32xf32>
    %cst_43 = arith.constant dense<0.000000e+00> : vector<32xf32>
    %40 = vector.multi_reduction <add>, %39, %cst_43 [0] : vector<8x32xf32> to vector<32xf32>
    %41 = vector.shape_cast %40 : vector<32xf32> to vector<1x32xf32>
    %c0_44 = arith.constant 0 : index
    %c0_45 = arith.constant 0 : index
    %c0_46 = arith.constant 0 : index
    %c0_47 = arith.constant 0 : index
    %42 = vector.load %arg12[%c0_44, %c0_45, %c0_46, %c0_47] : memref<1x1x1x32xf32, #tpu.memory_space<vmem>>, vector<1x1x1x32xf32>
    %43 = vector.shape_cast %42 : vector<1x1x1x32xf32> to vector<1x32xf32>
    %44 = vector.shape_cast %41 : vector<1x32xf32> to vector<1x1x1x32xf32>
    tpu.vector_store %arg12[%c0_44, %c0_45, %c0_46, %c0_47], %44 {strides = array<i32>} : memref<1x1x1x32xf32, #tpu.memory_space<vmem>>, vector<1x1x1x32xf32>,
    %45 = arith.mulf %39, %39 : vector<8x32xf32>
    %cst_48 = arith.constant dense<0.000000e+00> : vector<32xf32>
    %46 = vector.multi_reduction <add>, %45, %cst_48 [0] : vector<8x32xf32> to vector<32xf32>
    %47 = vector.shape_cast %46 : vector<32xf32> to vector<1x32xf32>
    %c0_49 = arith.constant 0 : index
    %c0_50 = arith.constant 0 : index
    %c0_51 = arith.constant 0 : index
    %c0_52 = arith.constant 0 : index
    %48 = vector.load %arg13[%c0_49, %c0_50, %c0_51, %c0_52] : memref<1x1x1x32xf32, #tpu.memory_space<vmem>>, vector<1x1x1x32xf32>
    %49 = vector.shape_cast %48 : vector<1x1x1x32xf32> to vector<1x32xf32>
    %50 = vector.shape_cast %47 : vector<1x32xf32> to vector<1x1x1x32xf32>
    tpu.vector_store %arg13[%c0_49, %c0_50, %c0_51, %c0_52], %50 {strides = array<i32>} : memref<1x1x1x32xf32, #tpu.memory_space<vmem>>, vector<1x1x1x32xf32>,
    return
  }
  func.func @transform_0(%arg0: i32, %arg1: i32) -> (i32, i32, i32, i32) {
    %c0_i32 = arith.constant 0 : i32
    %0 = arith.addi %arg1, %c0_i32 : i32
    %c0_i32_0 = arith.constant 0 : i32
    %c0_i32_1 = arith.constant 0 : i32
    %c0_i32_2 = arith.constant 0 : i32
    return %arg0, %0, %c0_i32_0, %c0_i32_1 : i32, i32, i32, i32
  }
  func.func @transform_1(%arg0: i32, %arg1: i32) -> (i32, i32, i32, i32) {
    %c1_i32 = arith.constant 1 : i32
    %0 = arith.addi %arg1, %c1_i32 : i32
    %c0_i32 = arith.constant 0 : i32
    %c0_i32_0 = arith.constant 0 : i32
    %c0_i32_1 = arith.constant 0 : i32
    return %arg0, %0, %c0_i32, %c0_i32_0 : i32, i32, i32, i32
  }
  func.func @transform_2(%arg0: i32, %arg1: i32) -> (i32, i32, i32, i32) {
    %c2_i32 = arith.constant 2 : i32
    %0 = arith.addi %arg1, %c2_i32 : i32
    %c0_i32 = arith.constant 0 : i32
    %c0_i32_0 = arith.constant 0 : i32
    %c0_i32_1 = arith.constant 0 : i32
    return %arg0, %0, %c0_i32, %c0_i32_0 : i32, i32, i32, i32
  }
  func.func @transform_3(%arg0: i32, %arg1: i32) -> (i32, i32, i32, i32) {
    %c3_i32 = arith.constant 3 : i32
    %0 = arith.addi %arg1, %c3_i32 : i32
    %c0_i32 = arith.constant 0 : i32
    %c0_i32_0 = arith.constant 0 : i32
    %c0_i32_1 = arith.constant 0 : i32
    return %arg0, %0, %c0_i32, %c0_i32_0 : i32, i32, i32, i32
  }
  func.func @transform_4(%arg0: i32, %arg1: i32) -> (i32, i32, i32, i32) {
    %c0_i32 = arith.constant 0 : i32
    %c0_i32_0 = arith.constant 0 : i32
    %c0_i32_1 = arith.constant 0 : i32
    return %arg0, %arg1, %c0_i32, %c0_i32_0 : i32, i32, i32, i32
  }
  func.func @transform_5(%arg0: i32, %arg1: i32) -> (i32, i32, i32) {
    %c0_i32 = arith.constant 0 : i32
    %c0_i32_0 = arith.constant 0 : i32
    %c0_i32_1 = arith.constant 0 : i32
    %c0_i32_2 = arith.constant 0 : i32
    return %c0_i32, %c0_i32_0, %c0_i32_1 : i32, i32, i32
  }
  func.func @transform_6(%arg0: i32, %arg1: i32) -> (i32, i32) {
    %c0_i32 = arith.constant 0 : i32
    %c0_i32_0 = arith.constant 0 : i32
    %c0_i32_1 = arith.constant 0 : i32
    return %c0_i32, %c0_i32_0 : i32, i32
  }
  func.func @transform_7(%arg0: i32, %arg1: i32) -> (i32, i32) {
    %c0_i32 = arith.constant 0 : i32
    %c0_i32_0 = arith.constant 0 : i32
    %c0_i32_1 = arith.constant 0 : i32
    return %c0_i32, %c0_i32_0 : i32, i32
  }
  func.func @transform_8(%arg0: i32, %arg1: i32) -> (i32, i32, i32) {
    %c0_i32 = arith.constant 0 : i32
    %c0_i32_0 = arith.constant 0 : i32
    %c0_i32_1 = arith.constant 0 : i32
    return %arg0, %c0_i32, %c0_i32_0 : i32, i32, i32
  }
  func.func @transform_9(%arg0: i32, %arg1: i32) -> (i32, i32, i32, i32) {
    %c0_i32 = arith.constant 0 : i32
    %c0_i32_0 = arith.constant 0 : i32
    %c0_i32_1 = arith.constant 0 : i32
    return %arg0, %arg1, %c0_i32, %c0_i32_0 : i32, i32, i32, i32
  }
  func.func @transform_10(%arg0: i32, %arg1: i32) -> (i32, i32, i32, i32) {
    %c0_i32 = arith.constant 0 : i32
    %c0_i32_0 = arith.constant 0 : i32
    %c0_i32_1 = arith.constant 0 : i32
    return %arg0, %arg1, %c0_i32, %c0_i32_0 : i32, i32, i32, i32
  }
  func.func @transform_11(%arg0: i32, %arg1: i32) -> (i32, i32, i32, i32) {
    %c0_i32 = arith.constant 0 : i32
    %c0_i32_0 = arith.constant 0 : i32
    %c0_i32_1 = arith.constant 0 : i32
    return %arg0, %arg1, %c0_i32, %c0_i32_0 : i32, i32, i32, i32
  }
}

module attributes {stable_mosaic.version = 11 : i64} {
  func.func @_bn_kernel(%arg0: i32, %arg1: i32, %arg2: memref<1x64x32xbf16, #tpu.memory_space<vmem>>, %arg3: memref<1x32xf32, #tpu.memory_space<vmem>>, %arg4: memref<1x32xf32, #tpu.memory_space<vmem>>, %arg5: memref<1x32xf32, #tpu.memory_space<vmem>>, %arg6: memref<1x32xf32, #tpu.memory_space<vmem>>, %arg7: memref<1x64x32xbf16, #tpu.memory_space<vmem>>) attributes {dimension_semantics = [#tpu.dimension_semantics<parallel>, #tpu.dimension_semantics<parallel>], iteration_bounds = array<i64: 2, 1>, scalar_prefetch = 0 : i64, scratch_operands = 0 : i64, tpu.core_type = #tpu.core_type<tc>, window_params = [{transform_indices = @transform_0, window_bounds = array<i64: 1, 64, 32>}, {pipeline_mode = #tpu.pipeline_mode<synchronous>, transform_indices = @transform_1, window_bounds = array<i64: 1, 32>}, {pipeline_mode = #tpu.pipeline_mode<synchronous>, transform_indices = @transform_2, window_bounds = array<i64: 1, 32>}, {pipeline_mode = #tpu.pipeline_mode<synchronous>, transform_indices = @transform_3, window_bounds = array<i64: 1, 32>}, {pipeline_mode = #tpu.pipeline_mode<synchronous>, transform_indices = @transform_4, window_bounds = array<i64: 1, 32>}, {transform_indices = @transform_5, window_bounds = array<i64: 1, 64, 32>}]} {
    %c0 = arith.constant 0 : index
    %c0_0 = arith.constant 0 : index
    %c0_1 = arith.constant 0 : index
    %0 = vector.load %arg2[%c0, %c0_0, %c0_1] : memref<1x64x32xbf16, #tpu.memory_space<vmem>>, vector<1x64x32xbf16>
    %1 = vector.shape_cast %0 : vector<1x64x32xbf16> to vector<64x32xbf16>
    %2 = arith.extf %1 : vector<64x32xbf16> to vector<64x32xf32>
    %c0_2 = arith.constant 0 : index
    %c0_3 = arith.constant 0 : index
    %3 = vector.load %arg3[%c0_2, %c0_3] : memref<1x32xf32, #tpu.memory_space<vmem>>, vector<1x32xf32>
    %4 = vector.broadcast %3 : vector<1x32xf32> to vector<64x32xf32>
    %5 = arith.subf %2, %4 : vector<64x32xf32>
    %c0_4 = arith.constant 0 : index
    %c0_5 = arith.constant 0 : index
    %6 = vector.load %arg4[%c0_4, %c0_5] : memref<1x32xf32, #tpu.memory_space<vmem>>, vector<1x32xf32>
    %7 = vector.broadcast %6 : vector<1x32xf32> to vector<64x32xf32>
    %8 = arith.mulf %5, %7 : vector<64x32xf32>
    %c0_6 = arith.constant 0 : index
    %c0_7 = arith.constant 0 : index
    %9 = vector.load %arg5[%c0_6, %c0_7] : memref<1x32xf32, #tpu.memory_space<vmem>>, vector<1x32xf32>
    %10 = vector.broadcast %9 : vector<1x32xf32> to vector<64x32xf32>
    %11 = arith.mulf %8, %10 : vector<64x32xf32>
    %c0_8 = arith.constant 0 : index
    %c0_9 = arith.constant 0 : index
    %12 = vector.load %arg6[%c0_8, %c0_9] : memref<1x32xf32, #tpu.memory_space<vmem>>, vector<1x32xf32>
    %13 = vector.broadcast %12 : vector<1x32xf32> to vector<64x32xf32>
    %14 = arith.addf %11, %13 : vector<64x32xf32>
    %15 = arith.truncf %14 : vector<64x32xf32> to vector<64x32xbf16>
    %c0_10 = arith.constant 0 : index
    %c0_11 = arith.constant 0 : index
    %c0_12 = arith.constant 0 : index
    %16 = vector.load %arg7[%c0_10, %c0_11, %c0_12] : memref<1x64x32xbf16, #tpu.memory_space<vmem>>, vector<1x64x32xbf16>
    %17 = vector.shape_cast %16 : vector<1x64x32xbf16> to vector<64x32xbf16>
    %18 = vector.shape_cast %15 : vector<64x32xbf16> to vector<1x64x32xbf16>
    tpu.vector_store %arg7[%c0_10, %c0_11, %c0_12], %18 {strides = array<i32>} : memref<1x64x32xbf16, #tpu.memory_space<vmem>>, vector<1x64x32xbf16>,
    return
  }
  func.func @transform_0(%arg0: i32, %arg1: i32) -> (i32, i32, i32) {
    %c0_i32 = arith.constant 0 : i32
    %c0_i32_0 = arith.constant 0 : i32
    return %arg0, %arg1, %c0_i32 : i32, i32, i32
  }
  func.func @transform_1(%arg0: i32, %arg1: i32) -> (i32, i32) {
    %c0_i32 = arith.constant 0 : i32
    %c0_i32_0 = arith.constant 0 : i32
    %c0_i32_1 = arith.constant 0 : i32
    return %c0_i32, %c0_i32_0 : i32, i32
  }
  func.func @transform_2(%arg0: i32, %arg1: i32) -> (i32, i32) {
    %c0_i32 = arith.constant 0 : i32
    %c0_i32_0 = arith.constant 0 : i32
    %c0_i32_1 = arith.constant 0 : i32
    return %c0_i32, %c0_i32_0 : i32, i32
  }
  func.func @transform_3(%arg0: i32, %arg1: i32) -> (i32, i32) {
    %c0_i32 = arith.constant 0 : i32
    %c0_i32_0 = arith.constant 0 : i32
    %c0_i32_1 = arith.constant 0 : i32
    return %c0_i32, %c0_i32_0 : i32, i32
  }
  func.func @transform_4(%arg0: i32, %arg1: i32) -> (i32, i32) {
    %c0_i32 = arith.constant 0 : i32
    %c0_i32_0 = arith.constant 0 : i32
    %c0_i32_1 = arith.constant 0 : i32
    return %c0_i32, %c0_i32_0 : i32, i32
  }
  func.func @transform_5(%arg0: i32, %arg1: i32) -> (i32, i32, i32) {
    %c0_i32 = arith.constant 0 : i32
    %c0_i32_0 = arith.constant 0 : i32
    return %arg0, %arg1, %c0_i32 : i32, i32, i32
  }
}

module attributes {stable_mosaic.version = 11 : i64} {
  func.func @_gate_h_resid_kernel(%arg0: i32, %arg1: i32, %arg2: memref<1x64x64xbf16, #tpu.memory_space<vmem>>, %arg3: memref<1x32xf32, #tpu.memory_space<vmem>>, %arg4: memref<1x32xf32, #tpu.memory_space<vmem>>, %arg5: memref<1x32xf32, #tpu.memory_space<vmem>>, %arg6: memref<1x32xf32, #tpu.memory_space<vmem>>, %arg7: memref<32x32xbf16, #tpu.memory_space<vmem>>, %arg8: memref<1x32xf32, #tpu.memory_space<vmem>>, %arg9: memref<1x64x32xbf16, #tpu.memory_space<vmem>>, %arg10: memref<1x1x1x32xf32, #tpu.memory_space<vmem>>, %arg11: memref<1x1x1x32xf32, #tpu.memory_space<vmem>>) attributes {dimension_semantics = [#tpu.dimension_semantics<parallel>, #tpu.dimension_semantics<parallel>], iteration_bounds = array<i64: 2, 1>, scalar_prefetch = 0 : i64, scratch_operands = 0 : i64, tpu.core_type = #tpu.core_type<tc>, window_params = [{transform_indices = @transform_0, window_bounds = array<i64: 1, 64, 64>}, {pipeline_mode = #tpu.pipeline_mode<synchronous>, transform_indices = @transform_1, window_bounds = array<i64: 1, 32>}, {pipeline_mode = #tpu.pipeline_mode<synchronous>, transform_indices = @transform_2, window_bounds = array<i64: 1, 32>}, {pipeline_mode = #tpu.pipeline_mode<synchronous>, transform_indices = @transform_3, window_bounds = array<i64: 1, 32>}, {pipeline_mode = #tpu.pipeline_mode<synchronous>, transform_indices = @transform_4, window_bounds = array<i64: 1, 32>}, {pipeline_mode = #tpu.pipeline_mode<synchronous>, transform_indices = @transform_5, window_bounds = array<i64: 32, 32>}, {pipeline_mode = #tpu.pipeline_mode<synchronous>, transform_indices = @transform_6, window_bounds = array<i64: 1, 32>}, {transform_indices = @transform_7, window_bounds = array<i64: 1, 64, 32>}, {transform_indices = @transform_8, window_bounds = array<i64: 1, 1, 1, 32>}, {transform_indices = @transform_9, window_bounds = array<i64: 1, 1, 1, 32>}]} {
    %c0 = arith.constant 0 : index
    %c0_0 = arith.constant 0 : index
    %c0_1 = arith.constant 0 : index
    %0 = vector.load %arg2[%c0, %c0_0, %c0_1] : memref<1x64x64xbf16, #tpu.memory_space<vmem>>, vector<1x64x64xbf16>
    %1 = vector.shape_cast %0 : vector<1x64x64xbf16> to vector<64x64xbf16>
    %2 = arith.extf %1 : vector<64x64xbf16> to vector<64x64xf32>
    %3 = vector.extract_strided_slice %2 {offsets = [0, 0], sizes = [64, 32], strides = [1, 1]} : vector<64x64xf32> to vector<64x32xf32>
    %4 = vector.extract_strided_slice %2 {offsets = [0, 32], sizes = [64, 32], strides = [1, 1]} : vector<64x64xf32> to vector<64x32xf32>
    %c0_2 = arith.constant 0 : index
    %c0_3 = arith.constant 0 : index
    %5 = vector.load %arg3[%c0_2, %c0_3] : memref<1x32xf32, #tpu.memory_space<vmem>>, vector<1x32xf32>
    %6 = vector.broadcast %5 : vector<1x32xf32> to vector<64x32xf32>
    %7 = arith.subf %3, %6 : vector<64x32xf32>
    %c0_4 = arith.constant 0 : index
    %c0_5 = arith.constant 0 : index
    %8 = vector.load %arg4[%c0_4, %c0_5] : memref<1x32xf32, #tpu.memory_space<vmem>>, vector<1x32xf32>
    %9 = vector.broadcast %8 : vector<1x32xf32> to vector<64x32xf32>
    %10 = arith.mulf %7, %9 : vector<64x32xf32>
    %c0_6 = arith.constant 0 : index
    %c0_7 = arith.constant 0 : index
    %11 = vector.load %arg5[%c0_6, %c0_7] : memref<1x32xf32, #tpu.memory_space<vmem>>, vector<1x32xf32>
    %12 = vector.broadcast %11 : vector<1x32xf32> to vector<64x32xf32>
    %13 = arith.mulf %10, %12 : vector<64x32xf32>
    %c0_8 = arith.constant 0 : index
    %c0_9 = arith.constant 0 : index
    %14 = vector.load %arg6[%c0_8, %c0_9] : memref<1x32xf32, #tpu.memory_space<vmem>>, vector<1x32xf32>
    %15 = vector.broadcast %14 : vector<1x32xf32> to vector<64x32xf32>
    %16 = arith.addf %13, %15 : vector<64x32xf32>
    %cst = arith.constant 0.000000e+00 : f32
    %17 = vector.broadcast %cst : f32 to vector<64x32xf32>
    %18 = arith.maximumf %16, %17 : vector<64x32xf32>
    %cst_10 = arith.constant 0.000000e+00 : f32
    %19 = vector.broadcast %cst_10 : f32 to vector<64x32xf32>
    %20 = arith.subf %19, %4 : vector<64x32xf32>
    %21 = math.exp %20 : vector<64x32xf32>
    %cst_11 = arith.constant 1.000000e+00 : f32
    %22 = vector.broadcast %cst_11 : f32 to vector<64x32xf32>
    %23 = arith.addf %22, %21 : vector<64x32xf32>
    %24 = tpu.reciprocal %23 {approx = true} : vector<64x32xf32> -> vector<64x32xf32>
    %25 = arith.mulf %18, %24 : vector<64x32xf32>
    %26 = arith.truncf %25 : vector<64x32xf32> to vector<64x32xbf16>
    %c0_12 = arith.constant 0 : index
    %c0_13 = arith.constant 0 : index
    %27 = vector.load %arg7[%c0_12, %c0_13] : memref<32x32xbf16, #tpu.memory_space<vmem>>, vector<32x32xbf16>
    %cst_14 = arith.constant dense<0.000000e+00> : vector<64x32xf32>
    %28 = tpu.matmul %26, %27, %cst_14 {dimension_numbers = #tpu.dot_dimension_numbers<[1], [0], [0], [1], [0, 0, 1, 1], [], []>} : vector<64x32xbf16>, vector<32x32xbf16>, vector<64x32xf32> -> vector<64x32xf32>
    %c0_15 = arith.constant 0 : index
    %c0_16 = arith.constant 0 : index
    %29 = vector.load %arg8[%c0_15, %c0_16] : memref<1x32xf32, #tpu.memory_space<vmem>>, vector<1x32xf32>
    %30 = vector.broadcast %29 : vector<1x32xf32> to vector<64x32xf32>
    %31 = arith.addf %28, %30 : vector<64x32xf32>
    %32 = arith.truncf %31 : vector<64x32xf32> to vector<64x32xbf16>
    %c0_17 = arith.constant 0 : index
    %c0_18 = arith.constant 0 : index
    %c0_19 = arith.constant 0 : index
    %33 = vector.load %arg9[%c0_17, %c0_18, %c0_19] : memref<1x64x32xbf16, #tpu.memory_space<vmem>>, vector<1x64x32xbf16>
    %34 = vector.shape_cast %33 : vector<1x64x32xbf16> to vector<64x32xbf16>
    %35 = vector.shape_cast %32 : vector<64x32xbf16> to vector<1x64x32xbf16>
    tpu.vector_store %arg9[%c0_17, %c0_18, %c0_19], %35 {strides = array<i32>} : memref<1x64x32xbf16, #tpu.memory_space<vmem>>, vector<1x64x32xbf16>,
    %cst_20 = arith.constant dense<0.000000e+00> : vector<32xf32>
    %36 = vector.multi_reduction <add>, %31, %cst_20 [0] : vector<64x32xf32> to vector<32xf32>
    %37 = vector.shape_cast %36 : vector<32xf32> to vector<1x32xf32>
    %c0_21 = arith.constant 0 : index
    %c0_22 = arith.constant 0 : index
    %c0_23 = arith.constant 0 : index
    %c0_24 = arith.constant 0 : index
    %38 = vector.load %arg10[%c0_21, %c0_22, %c0_23, %c0_24] : memref<1x1x1x32xf32, #tpu.memory_space<vmem>>, vector<1x1x1x32xf32>
    %39 = vector.shape_cast %38 : vector<1x1x1x32xf32> to vector<1x32xf32>
    %40 = vector.shape_cast %37 : vector<1x32xf32> to vector<1x1x1x32xf32>
    tpu.vector_store %arg10[%c0_21, %c0_22, %c0_23, %c0_24], %40 {strides = array<i32>} : memref<1x1x1x32xf32, #tpu.memory_space<vmem>>, vector<1x1x1x32xf32>,
    %41 = arith.mulf %31, %31 : vector<64x32xf32>
    %cst_25 = arith.constant dense<0.000000e+00> : vector<32xf32>
    %42 = vector.multi_reduction <add>, %41, %cst_25 [0] : vector<64x32xf32> to vector<32xf32>
    %43 = vector.shape_cast %42 : vector<32xf32> to vector<1x32xf32>
    %c0_26 = arith.constant 0 : index
    %c0_27 = arith.constant 0 : index
    %c0_28 = arith.constant 0 : index
    %c0_29 = arith.constant 0 : index
    %44 = vector.load %arg11[%c0_26, %c0_27, %c0_28, %c0_29] : memref<1x1x1x32xf32, #tpu.memory_space<vmem>>, vector<1x1x1x32xf32>
    %45 = vector.shape_cast %44 : vector<1x1x1x32xf32> to vector<1x32xf32>
    %46 = vector.shape_cast %43 : vector<1x32xf32> to vector<1x1x1x32xf32>
    tpu.vector_store %arg11[%c0_26, %c0_27, %c0_28, %c0_29], %46 {strides = array<i32>} : memref<1x1x1x32xf32, #tpu.memory_space<vmem>>, vector<1x1x1x32xf32>,
    return
  }
  func.func @transform_0(%arg0: i32, %arg1: i32) -> (i32, i32, i32) {
    %c0_i32 = arith.constant 0 : i32
    %c0_i32_0 = arith.constant 0 : i32
    return %arg0, %arg1, %c0_i32 : i32, i32, i32
  }
  func.func @transform_1(%arg0: i32, %arg1: i32) -> (i32, i32) {
    %c0_i32 = arith.constant 0 : i32
    %c0_i32_0 = arith.constant 0 : i32
    %c0_i32_1 = arith.constant 0 : i32
    return %c0_i32, %c0_i32_0 : i32, i32
  }
  func.func @transform_2(%arg0: i32, %arg1: i32) -> (i32, i32) {
    %c0_i32 = arith.constant 0 : i32
    %c0_i32_0 = arith.constant 0 : i32
    %c0_i32_1 = arith.constant 0 : i32
    return %c0_i32, %c0_i32_0 : i32, i32
  }
  func.func @transform_3(%arg0: i32, %arg1: i32) -> (i32, i32) {
    %c0_i32 = arith.constant 0 : i32
    %c0_i32_0 = arith.constant 0 : i32
    %c0_i32_1 = arith.constant 0 : i32
    return %c0_i32, %c0_i32_0 : i32, i32
  }
  func.func @transform_4(%arg0: i32, %arg1: i32) -> (i32, i32) {
    %c0_i32 = arith.constant 0 : i32
    %c0_i32_0 = arith.constant 0 : i32
    %c0_i32_1 = arith.constant 0 : i32
    return %c0_i32, %c0_i32_0 : i32, i32
  }
  func.func @transform_5(%arg0: i32, %arg1: i32) -> (i32, i32) {
    %c0_i32 = arith.constant 0 : i32
    %c0_i32_0 = arith.constant 0 : i32
    %c0_i32_1 = arith.constant 0 : i32
    return %c0_i32, %c0_i32_0 : i32, i32
  }
  func.func @transform_6(%arg0: i32, %arg1: i32) -> (i32, i32) {
    %c0_i32 = arith.constant 0 : i32
    %c0_i32_0 = arith.constant 0 : i32
    %c0_i32_1 = arith.constant 0 : i32
    return %c0_i32, %c0_i32_0 : i32, i32
  }
  func.func @transform_7(%arg0: i32, %arg1: i32) -> (i32, i32, i32) {
    %c0_i32 = arith.constant 0 : i32
    %c0_i32_0 = arith.constant 0 : i32
    return %arg0, %arg1, %c0_i32 : i32, i32, i32
  }
  func.func @transform_8(%arg0: i32, %arg1: i32) -> (i32, i32, i32, i32) {
    %c0_i32 = arith.constant 0 : i32
    %c0_i32_0 = arith.constant 0 : i32
    %c0_i32_1 = arith.constant 0 : i32
    return %arg0, %arg1, %c0_i32, %c0_i32_0 : i32, i32, i32, i32
  }
  func.func @transform_9(%arg0: i32, %arg1: i32) -> (i32, i32, i32, i32) {
    %c0_i32 = arith.constant 0 : i32
    %c0_i32_0 = arith.constant 0 : i32
    %c0_i32_1 = arith.constant 0 : i32
    return %arg0, %arg1, %c0_i32, %c0_i32_0 : i32, i32, i32, i32
  }
}

module attributes {stable_mosaic.version = 11 : i64} {
  func.func @_gate_v_kernel(%arg0: i32, %arg1: i32, %arg2: memref<1x64x64xbf16, #tpu.memory_space<vmem>>, %arg3: memref<1x1x64xf32, #tpu.memory_space<vmem>>, %arg4: memref<1x32xf32, #tpu.memory_space<vmem>>, %arg5: memref<1x32xf32, #tpu.memory_space<vmem>>, %arg6: memref<1x32xf32, #tpu.memory_space<vmem>>, %arg7: memref<1x32xf32, #tpu.memory_space<vmem>>, %arg8: memref<1x64x32xbf16, #tpu.memory_space<vmem>>) attributes {dimension_semantics = [#tpu.dimension_semantics<parallel>, #tpu.dimension_semantics<parallel>], iteration_bounds = array<i64: 2, 1>, scalar_prefetch = 0 : i64, scratch_operands = 0 : i64, tpu.core_type = #tpu.core_type<tc>, window_params = [{transform_indices = @transform_0, window_bounds = array<i64: 1, 64, 64>}, {transform_indices = @transform_1, window_bounds = array<i64: 1, 1, 64>}, {pipeline_mode = #tpu.pipeline_mode<synchronous>, transform_indices = @transform_2, window_bounds = array<i64: 1, 32>}, {pipeline_mode = #tpu.pipeline_mode<synchronous>, transform_indices = @transform_3, window_bounds = array<i64: 1, 32>}, {pipeline_mode = #tpu.pipeline_mode<synchronous>, transform_indices = @transform_4, window_bounds = array<i64: 1, 32>}, {pipeline_mode = #tpu.pipeline_mode<synchronous>, transform_indices = @transform_5, window_bounds = array<i64: 1, 32>}, {transform_indices = @transform_6, window_bounds = array<i64: 1, 64, 32>}]} {
    %c0 = arith.constant 0 : index
    %c0_0 = arith.constant 0 : index
    %c0_1 = arith.constant 0 : index
    %0 = vector.load %arg2[%c0, %c0_0, %c0_1] : memref<1x64x64xbf16, #tpu.memory_space<vmem>>, vector<1x64x64xbf16>
    %1 = vector.shape_cast %0 : vector<1x64x64xbf16> to vector<64x64xbf16>
    %2 = arith.extf %1 : vector<64x64xbf16> to vector<64x64xf32>
    %c0_2 = arith.constant 0 : index
    %c0_3 = arith.constant 0 : index
    %c0_4 = arith.constant 0 : index
    %3 = vector.load %arg3[%c0_2, %c0_3, %c0_4] : memref<1x1x64xf32, #tpu.memory_space<vmem>>, vector<1x1x64xf32>
    %4 = vector.shape_cast %3 : vector<1x1x64xf32> to vector<1x64xf32>
    %5 = vector.extract_strided_slice %2 {offsets = [0, 0], sizes = [64, 32], strides = [1, 1]} : vector<64x64xf32> to vector<64x32xf32>
    %6 = vector.extract_strided_slice %4 {offsets = [0, 0], sizes = [1, 32], strides = [1, 1]} : vector<1x64xf32> to vector<1x32xf32>
    %7 = vector.broadcast %6 : vector<1x32xf32> to vector<64x32xf32>
    %8 = arith.addf %5, %7 : vector<64x32xf32>
    %9 = vector.extract_strided_slice %2 {offsets = [0, 32], sizes = [64, 32], strides = [1, 1]} : vector<64x64xf32> to vector<64x32xf32>
    %10 = vector.extract_strided_slice %4 {offsets = [0, 32], sizes = [1, 32], strides = [1, 1]} : vector<1x64xf32> to vector<1x32xf32>
    %11 = vector.broadcast %10 : vector<1x32xf32> to vector<64x32xf32>
    %12 = arith.addf %9, %11 : vector<64x32xf32>
    %c0_5 = arith.constant 0 : index
    %c0_6 = arith.constant 0 : index
    %13 = vector.load %arg4[%c0_5, %c0_6] : memref<1x32xf32, #tpu.memory_space<vmem>>, vector<1x32xf32>
    %14 = vector.broadcast %13 : vector<1x32xf32> to vector<64x32xf32>
    %15 = arith.subf %8, %14 : vector<64x32xf32>
    %c0_7 = arith.constant 0 : index
    %c0_8 = arith.constant 0 : index
    %16 = vector.load %arg5[%c0_7, %c0_8] : memref<1x32xf32, #tpu.memory_space<vmem>>, vector<1x32xf32>
    %17 = vector.broadcast %16 : vector<1x32xf32> to vector<64x32xf32>
    %18 = arith.mulf %15, %17 : vector<64x32xf32>
    %c0_9 = arith.constant 0 : index
    %c0_10 = arith.constant 0 : index
    %19 = vector.load %arg6[%c0_9, %c0_10] : memref<1x32xf32, #tpu.memory_space<vmem>>, vector<1x32xf32>
    %20 = vector.broadcast %19 : vector<1x32xf32> to vector<64x32xf32>
    %21 = arith.mulf %18, %20 : vector<64x32xf32>
    %c0_11 = arith.constant 0 : index
    %c0_12 = arith.constant 0 : index
    %22 = vector.load %arg7[%c0_11, %c0_12] : memref<1x32xf32, #tpu.memory_space<vmem>>, vector<1x32xf32>
    %23 = vector.broadcast %22 : vector<1x32xf32> to vector<64x32xf32>
    %24 = arith.addf %21, %23 : vector<64x32xf32>
    %cst = arith.constant 0.000000e+00 : f32
    %25 = vector.broadcast %cst : f32 to vector<64x32xf32>
    %26 = arith.subf %25, %12 : vector<64x32xf32>
    %27 = math.exp %26 : vector<64x32xf32>
    %cst_13 = arith.constant 1.000000e+00 : f32
    %28 = vector.broadcast %cst_13 : f32 to vector<64x32xf32>
    %29 = arith.addf %28, %27 : vector<64x32xf32>
    %30 = tpu.reciprocal %29 {approx = true} : vector<64x32xf32> -> vector<64x32xf32>
    %cst_14 = arith.constant 0.000000e+00 : f32
    %31 = vector.broadcast %cst_14 : f32 to vector<64x32xf32>
    %32 = arith.maximumf %24, %31 : vector<64x32xf32>
    %33 = arith.mulf %32, %30 : vector<64x32xf32>
    %34 = arith.truncf %33 : vector<64x32xf32> to vector<64x32xbf16>
    %c0_15 = arith.constant 0 : index
    %c0_16 = arith.constant 0 : index
    %c0_17 = arith.constant 0 : index
    %35 = vector.load %arg8[%c0_15, %c0_16, %c0_17] : memref<1x64x32xbf16, #tpu.memory_space<vmem>>, vector<1x64x32xbf16>
    %36 = vector.shape_cast %35 : vector<1x64x32xbf16> to vector<64x32xbf16>
    %37 = vector.shape_cast %34 : vector<64x32xbf16> to vector<1x64x32xbf16>
    tpu.vector_store %arg8[%c0_15, %c0_16, %c0_17], %37 {strides = array<i32>} : memref<1x64x32xbf16, #tpu.memory_space<vmem>>, vector<1x64x32xbf16>,
    return
  }
  func.func @transform_0(%arg0: i32, %arg1: i32) -> (i32, i32, i32) {
    %c0_i32 = arith.constant 0 : i32
    %c0_i32_0 = arith.constant 0 : i32
    return %arg0, %arg1, %c0_i32 : i32, i32, i32
  }
  func.func @transform_1(%arg0: i32, %arg1: i32) -> (i32, i32, i32) {
    %c0_i32 = arith.constant 0 : i32
    %c0_i32_0 = arith.constant 0 : i32
    %c0_i32_1 = arith.constant 0 : i32
    return %arg0, %c0_i32, %c0_i32_0 : i32, i32, i32
  }
  func.func @transform_2(%arg0: i32, %arg1: i32) -> (i32, i32) {
    %c0_i32 = arith.constant 0 : i32
    %c0_i32_0 = arith.constant 0 : i32
    %c0_i32_1 = arith.constant 0 : i32
    return %c0_i32, %c0_i32_0 : i32, i32
  }
  func.func @transform_3(%arg0: i32, %arg1: i32) -> (i32, i32) {
    %c0_i32 = arith.constant 0 : i32
    %c0_i32_0 = arith.constant 0 : i32
    %c0_i32_1 = arith.constant 0 : i32
    return %c0_i32, %c0_i32_0 : i32, i32
  }
  func.func @transform_4(%arg0: i32, %arg1: i32) -> (i32, i32) {
    %c0_i32 = arith.constant 0 : i32
    %c0_i32_0 = arith.constant 0 : i32
    %c0_i32_1 = arith.constant 0 : i32
    return %c0_i32, %c0_i32_0 : i32, i32
  }
  func.func @transform_5(%arg0: i32, %arg1: i32) -> (i32, i32) {
    %c0_i32 = arith.constant 0 : i32
    %c0_i32_0 = arith.constant 0 : i32
    %c0_i32_1 = arith.constant 0 : i32
    return %c0_i32, %c0_i32_0 : i32, i32
  }
  func.func @transform_6(%arg0: i32, %arg1: i32) -> (i32, i32, i32) {
    %c0_i32 = arith.constant 0 : i32
    %c0_i32_0 = arith.constant 0 : i32
    return %arg0, %arg1, %c0_i32 : i32, i32, i32
  }
}

module attributes {stable_mosaic.version = 11 : i64} {
  func.func @_vert_conv_kernel(%arg0: i32, %arg1: i32, %arg2: memref<1x1x9x32xbf16, #tpu.memory_space<vmem>>, %arg3: memref<1x1x9x32xbf16, #tpu.memory_space<vmem>>, %arg4: memref<1x1x9x32xbf16, #tpu.memory_space<vmem>>, %arg5: memref<6x32x64xbf16, #tpu.memory_space<vmem>>, %arg6: memref<1x64xf32, #tpu.memory_space<vmem>>, %arg7: memref<1x1x64xf32, #tpu.memory_space<vmem>>, %arg8: memref<1x1x8x64xbf16, #tpu.memory_space<vmem>>, %arg9: memref<1x1x1x32xf32, #tpu.memory_space<vmem>>, %arg10: memref<1x1x1x32xf32, #tpu.memory_space<vmem>>) attributes {dimension_semantics = [#tpu.dimension_semantics<parallel>, #tpu.dimension_semantics<parallel>], iteration_bounds = array<i64: 2, 8>, scalar_prefetch = 0 : i64, scratch_operands = 0 : i64, tpu.core_type = #tpu.core_type<tc>, window_params = [{transform_indices = @transform_0, window_bounds = array<i64: 1, 1, 9, 32>}, {transform_indices = @transform_1, window_bounds = array<i64: 1, 1, 9, 32>}, {transform_indices = @transform_2, window_bounds = array<i64: 1, 1, 9, 32>}, {pipeline_mode = #tpu.pipeline_mode<synchronous>, transform_indices = @transform_3, window_bounds = array<i64: 6, 32, 64>}, {pipeline_mode = #tpu.pipeline_mode<synchronous>, transform_indices = @transform_4, window_bounds = array<i64: 1, 64>}, {transform_indices = @transform_5, window_bounds = array<i64: 1, 1, 64>}, {transform_indices = @transform_6, window_bounds = array<i64: 1, 1, 8, 64>}, {transform_indices = @transform_7, window_bounds = array<i64: 1, 1, 1, 32>}, {transform_indices = @transform_8, window_bounds = array<i64: 1, 1, 1, 32>}]} {
    %cst = arith.constant 0.000000e+00 : f32
    %0 = vector.broadcast %cst : f32 to vector<8x64xf32>
    %c0 = arith.constant 0 : index
    %c0_0 = arith.constant 0 : index
    %c0_1 = arith.constant 0 : index
    %c0_2 = arith.constant 0 : index
    %1 = vector.load %arg2[%c0, %c0_0, %c0_1, %c0_2] : memref<1x1x9x32xbf16, #tpu.memory_space<vmem>>, vector<1x1x8x32xbf16>
    %2 = vector.shape_cast %1 : vector<1x1x8x32xbf16> to vector<8x32xbf16>
    %c0_3 = arith.constant 0 : index
    %c0_4 = arith.constant 0 : index
    %c0_5 = arith.constant 0 : index
    %3 = vector.load %arg5[%c0_3, %c0_4, %c0_5] : memref<6x32x64xbf16, #tpu.memory_space<vmem>>, vector<1x32x64xbf16>
    %4 = vector.shape_cast %3 : vector<1x32x64xbf16> to vector<32x64xbf16>
    %cst_6 = arith.constant dense<0.000000e+00> : vector<8x64xf32>
    %5 = tpu.matmul %2, %4, %cst_6 {dimension_numbers = #tpu.dot_dimension_numbers<[1], [0], [0], [1], [0, 0, 1, 1], [], []>} : vector<8x32xbf16>, vector<32x64xbf16>, vector<8x64xf32> -> vector<8x64xf32>
    %6 = arith.addf %0, %5 : vector<8x64xf32>
    %c0_7 = arith.constant 0 : index
    %c0_8 = arith.constant 0 : index
    %c1 = arith.constant 1 : index
    %c0_9 = arith.constant 0 : index
    %7 = vector.load %arg2[%c0_7, %c0_8, %c1, %c0_9] : memref<1x1x9x32xbf16, #tpu.memory_space<vmem>>, vector<1x1x8x32xbf16>
    %8 = vector.shape_cast %7 : vector<1x1x8x32xbf16> to vector<8x32xbf16>
    %c3 = arith.constant 3 : index
    %c0_10 = arith.constant 0 : index
    %c0_11 = arith.constant 0 : index
    %9 = vector.load %arg5[%c3, %c0_10, %c0_11] : memref<6x32x64xbf16, #tpu.memory_space<vmem>>, vector<1x32x64xbf16>
    %10 = vector.shape_cast %9 : vector<1x32x64xbf16> to vector<32x64xbf16>
    %cst_12 = arith.constant dense<0.000000e+00> : vector<8x64xf32>
    %11 = tpu.matmul %8, %10, %cst_12 {dimension_numbers = #tpu.dot_dimension_numbers<[1], [0], [0], [1], [0, 0, 1, 1], [], []>} : vector<8x32xbf16>, vector<32x64xbf16>, vector<8x64xf32> -> vector<8x64xf32>
    %12 = arith.addf %6, %11 : vector<8x64xf32>
    %c0_13 = arith.constant 0 : index
    %c0_14 = arith.constant 0 : index
    %c0_15 = arith.constant 0 : index
    %c0_16 = arith.constant 0 : index
    %13 = vector.load %arg3[%c0_13, %c0_14, %c0_15, %c0_16] : memref<1x1x9x32xbf16, #tpu.memory_space<vmem>>, vector<1x1x8x32xbf16>
    %14 = vector.shape_cast %13 : vector<1x1x8x32xbf16> to vector<8x32xbf16>
    %c1_17 = arith.constant 1 : index
    %c0_18 = arith.constant 0 : index
    %c0_19 = arith.constant 0 : index
    %15 = vector.load %arg5[%c1_17, %c0_18, %c0_19] : memref<6x32x64xbf16, #tpu.memory_space<vmem>>, vector<1x32x64xbf16>
    %16 = vector.shape_cast %15 : vector<1x32x64xbf16> to vector<32x64xbf16>
    %cst_20 = arith.constant dense<0.000000e+00> : vector<8x64xf32>
    %17 = tpu.matmul %14, %16, %cst_20 {dimension_numbers = #tpu.dot_dimension_numbers<[1], [0], [0], [1], [0, 0, 1, 1], [], []>} : vector<8x32xbf16>, vector<32x64xbf16>, vector<8x64xf32> -> vector<8x64xf32>
    %18 = arith.addf %12, %17 : vector<8x64xf32>
    %c0_21 = arith.constant 0 : index
    %c0_22 = arith.constant 0 : index
    %c1_23 = arith.constant 1 : index
    %c0_24 = arith.constant 0 : index
    %19 = vector.load %arg3[%c0_21, %c0_22, %c1_23, %c0_24] : memref<1x1x9x32xbf16, #tpu.memory_space<vmem>>, vector<1x1x8x32xbf16>
    %20 = vector.shape_cast %19 : vector<1x1x8x32xbf16> to vector<8x32xbf16>
    %c4 = arith.constant 4 : index
    %c0_25 = arith.constant 0 : index
    %c0_26 = arith.constant 0 : index
    %21 = vector.load %arg5[%c4, %c0_25, %c0_26] : memref<6x32x64xbf16, #tpu.memory_space<vmem>>, vector<1x32x64xbf16>
    %22 = vector.shape_cast %21 : vector<1x32x64xbf16> to vector<32x64xbf16>
    %cst_27 = arith.constant dense<0.000000e+00> : vector<8x64xf32>
    %23 = tpu.matmul %20, %22, %cst_27 {dimension_numbers = #tpu.dot_dimension_numbers<[1], [0], [0], [1], [0, 0, 1, 1], [], []>} : vector<8x32xbf16>, vector<32x64xbf16>, vector<8x64xf32> -> vector<8x64xf32>
    %24 = arith.addf %18, %23 : vector<8x64xf32>
    %c0_28 = arith.constant 0 : index
    %c0_29 = arith.constant 0 : index
    %c0_30 = arith.constant 0 : index
    %c0_31 = arith.constant 0 : index
    %25 = vector.load %arg4[%c0_28, %c0_29, %c0_30, %c0_31] : memref<1x1x9x32xbf16, #tpu.memory_space<vmem>>, vector<1x1x8x32xbf16>
    %26 = vector.shape_cast %25 : vector<1x1x8x32xbf16> to vector<8x32xbf16>
    %c2 = arith.constant 2 : index
    %c0_32 = arith.constant 0 : index
    %c0_33 = arith.constant 0 : index
    %27 = vector.load %arg5[%c2, %c0_32, %c0_33] : memref<6x32x64xbf16, #tpu.memory_space<vmem>>, vector<1x32x64xbf16>
    %28 = vector.shape_cast %27 : vector<1x32x64xbf16> to vector<32x64xbf16>
    %cst_34 = arith.constant dense<0.000000e+00> : vector<8x64xf32>
    %29 = tpu.matmul %26, %28, %cst_34 {dimension_numbers = #tpu.dot_dimension_numbers<[1], [0], [0], [1], [0, 0, 1, 1], [], []>} : vector<8x32xbf16>, vector<32x64xbf16>, vector<8x64xf32> -> vector<8x64xf32>
    %30 = arith.addf %24, %29 : vector<8x64xf32>
    %c0_35 = arith.constant 0 : index
    %c0_36 = arith.constant 0 : index
    %c1_37 = arith.constant 1 : index
    %c0_38 = arith.constant 0 : index
    %31 = vector.load %arg4[%c0_35, %c0_36, %c1_37, %c0_38] : memref<1x1x9x32xbf16, #tpu.memory_space<vmem>>, vector<1x1x8x32xbf16>
    %32 = vector.shape_cast %31 : vector<1x1x8x32xbf16> to vector<8x32xbf16>
    %c5 = arith.constant 5 : index
    %c0_39 = arith.constant 0 : index
    %c0_40 = arith.constant 0 : index
    %33 = vector.load %arg5[%c5, %c0_39, %c0_40] : memref<6x32x64xbf16, #tpu.memory_space<vmem>>, vector<1x32x64xbf16>
    %34 = vector.shape_cast %33 : vector<1x32x64xbf16> to vector<32x64xbf16>
    %cst_41 = arith.constant dense<0.000000e+00> : vector<8x64xf32>
    %35 = tpu.matmul %32, %34, %cst_41 {dimension_numbers = #tpu.dot_dimension_numbers<[1], [0], [0], [1], [0, 0, 1, 1], [], []>} : vector<8x32xbf16>, vector<32x64xbf16>, vector<8x64xf32> -> vector<8x64xf32>
    %36 = arith.addf %30, %35 : vector<8x64xf32>
    %c0_42 = arith.constant 0 : index
    %c0_43 = arith.constant 0 : index
    %37 = vector.load %arg6[%c0_42, %c0_43] : memref<1x64xf32, #tpu.memory_space<vmem>>, vector<1x64xf32>
    %38 = vector.broadcast %37 : vector<1x64xf32> to vector<8x64xf32>
    %39 = arith.addf %36, %38 : vector<8x64xf32>
    %40 = arith.truncf %39 : vector<8x64xf32> to vector<8x64xbf16>
    %c0_44 = arith.constant 0 : index
    %c0_45 = arith.constant 0 : index
    %c0_46 = arith.constant 0 : index
    %c0_47 = arith.constant 0 : index
    %41 = vector.load %arg8[%c0_44, %c0_45, %c0_46, %c0_47] : memref<1x1x8x64xbf16, #tpu.memory_space<vmem>>, vector<1x1x8x64xbf16>
    %42 = vector.shape_cast %41 : vector<1x1x8x64xbf16> to vector<8x64xbf16>
    %43 = vector.shape_cast %40 : vector<8x64xbf16> to vector<1x1x8x64xbf16>
    tpu.vector_store %arg8[%c0_44, %c0_45, %c0_46, %c0_47], %43 {strides = array<i32>} : memref<1x1x8x64xbf16, #tpu.memory_space<vmem>>, vector<1x1x8x64xbf16>,
    %44 = vector.extract_strided_slice %39 {offsets = [0, 0], sizes = [8, 32], strides = [1, 1]} : vector<8x64xf32> to vector<8x32xf32>
    %c0_48 = arith.constant 0 : index
    %c0_49 = arith.constant 0 : index
    %c0_50 = arith.constant 0 : index
    %45 = vector.load %arg7[%c0_48, %c0_49, %c0_50] : memref<1x1x64xf32, #tpu.memory_space<vmem>>, vector<1x1x64xf32>
    %46 = vector.shape_cast %45 : vector<1x1x64xf32> to vector<1x64xf32>
    %47 = vector.extract_strided_slice %46 {offsets = [0, 0], sizes = [1, 32], strides = [1, 1]} : vector<1x64xf32> to vector<1x32xf32>
    %48 = vector.broadcast %47 : vector<1x32xf32> to vector<8x32xf32>
    %49 = arith.addf %44, %48 : vector<8x32xf32>
    %cst_51 = arith.constant dense<0.000000e+00> : vector<32xf32>
    %50 = vector.multi_reduction <add>, %49, %cst_51 [0] : vector<8x32xf32> to vector<32xf32>
    %51 = vector.shape_cast %50 : vector<32xf32> to vector<1x32xf32>
    %c0_52 = arith.constant 0 : index
    %c0_53 = arith.constant 0 : index
    %c0_54 = arith.constant 0 : index
    %c0_55 = arith.constant 0 : index
    %52 = vector.load %arg9[%c0_52, %c0_53, %c0_54, %c0_55] : memref<1x1x1x32xf32, #tpu.memory_space<vmem>>, vector<1x1x1x32xf32>
    %53 = vector.shape_cast %52 : vector<1x1x1x32xf32> to vector<1x32xf32>
    %54 = vector.shape_cast %51 : vector<1x32xf32> to vector<1x1x1x32xf32>
    tpu.vector_store %arg9[%c0_52, %c0_53, %c0_54, %c0_55], %54 {strides = array<i32>} : memref<1x1x1x32xf32, #tpu.memory_space<vmem>>, vector<1x1x1x32xf32>,
    %55 = arith.mulf %49, %49 : vector<8x32xf32>
    %cst_56 = arith.constant dense<0.000000e+00> : vector<32xf32>
    %56 = vector.multi_reduction <add>, %55, %cst_56 [0] : vector<8x32xf32> to vector<32xf32>
    %57 = vector.shape_cast %56 : vector<32xf32> to vector<1x32xf32>
    %c0_57 = arith.constant 0 : index
    %c0_58 = arith.constant 0 : index
    %c0_59 = arith.constant 0 : index
    %c0_60 = arith.constant 0 : index
    %58 = vector.load %arg10[%c0_57, %c0_58, %c0_59, %c0_60] : memref<1x1x1x32xf32, #tpu.memory_space<vmem>>, vector<1x1x1x32xf32>
    %59 = vector.shape_cast %58 : vector<1x1x1x32xf32> to vector<1x32xf32>
    %60 = vector.shape_cast %57 : vector<1x32xf32> to vector<1x1x1x32xf32>
    tpu.vector_store %arg10[%c0_57, %c0_58, %c0_59, %c0_60], %60 {strides = array<i32>} : memref<1x1x1x32xf32, #tpu.memory_space<vmem>>, vector<1x1x1x32xf32>,
    return
  }
  func.func @transform_0(%arg0: i32, %arg1: i32) -> (i32, i32, i32, i32) {
    %c0_i32 = arith.constant 0 : i32
    %0 = arith.addi %arg1, %c0_i32 : i32
    %c0_i32_0 = arith.constant 0 : i32
    %c0_i32_1 = arith.constant 0 : i32
    %c0_i32_2 = arith.constant 0 : i32
    return %arg0, %0, %c0_i32_0, %c0_i32_1 : i32, i32, i32, i32
  }
  func.func @transform_1(%arg0: i32, %arg1: i32) -> (i32, i32, i32, i32) {
    %c1_i32 = arith.constant 1 : i32
    %0 = arith.addi %arg1, %c1_i32 : i32
    %c0_i32 = arith.constant 0 : i32
    %c0_i32_0 = arith.constant 0 : i32
    %c0_i32_1 = arith.constant 0 : i32
    return %arg0, %0, %c0_i32, %c0_i32_0 : i32, i32, i32, i32
  }
  func.func @transform_2(%arg0: i32, %arg1: i32) -> (i32, i32, i32, i32) {
    %c2_i32 = arith.constant 2 : i32
    %0 = arith.addi %arg1, %c2_i32 : i32
    %c0_i32 = arith.constant 0 : i32
    %c0_i32_0 = arith.constant 0 : i32
    %c0_i32_1 = arith.constant 0 : i32
    return %arg0, %0, %c0_i32, %c0_i32_0 : i32, i32, i32, i32
  }
  func.func @transform_3(%arg0: i32, %arg1: i32) -> (i32, i32, i32) {
    %c0_i32 = arith.constant 0 : i32
    %c0_i32_0 = arith.constant 0 : i32
    %c0_i32_1 = arith.constant 0 : i32
    %c0_i32_2 = arith.constant 0 : i32
    return %c0_i32, %c0_i32_0, %c0_i32_1 : i32, i32, i32
  }
  func.func @transform_4(%arg0: i32, %arg1: i32) -> (i32, i32) {
    %c0_i32 = arith.constant 0 : i32
    %c0_i32_0 = arith.constant 0 : i32
    %c0_i32_1 = arith.constant 0 : i32
    return %c0_i32, %c0_i32_0 : i32, i32
  }
  func.func @transform_5(%arg0: i32, %arg1: i32) -> (i32, i32, i32) {
    %c0_i32 = arith.constant 0 : i32
    %c0_i32_0 = arith.constant 0 : i32
    %c0_i32_1 = arith.constant 0 : i32
    return %arg0, %c0_i32, %c0_i32_0 : i32, i32, i32
  }
  func.func @transform_6(%arg0: i32, %arg1: i32) -> (i32, i32, i32, i32) {
    %c0_i32 = arith.constant 0 : i32
    %c0_i32_0 = arith.constant 0 : i32
    %c0_i32_1 = arith.constant 0 : i32
    return %arg0, %arg1, %c0_i32, %c0_i32_0 : i32, i32, i32, i32
  }
  func.func @transform_7(%arg0: i32, %arg1: i32) -> (i32, i32, i32, i32) {
    %c0_i32 = arith.constant 0 : i32
    %c0_i32_0 = arith.constant 0 : i32
    %c0_i32_1 = arith.constant 0 : i32
    return %arg0, %arg1, %c0_i32, %c0_i32_0 : i32, i32, i32, i32
  }
  func.func @transform_8(%arg0: i32, %arg1: i32) -> (i32, i32, i32, i32) {
    %c0_i32 = arith.constant 0 : i32
    %c0_i32_0 = arith.constant 0 : i32
    %c0_i32_1 = arith.constant 0 : i32
    return %arg0, %arg1, %c0_i32, %c0_i32_0 : i32, i32, i32, i32
  }
}

module attributes {stable_mosaic.version = 11 : i64} {
  func.func @_horiz_fused_kernel(%arg0: i32, %arg1: i32, %arg2: memref<1x1x8x32xbf16, #tpu.memory_space<vmem>>, %arg3: memref<1x1x8x32xbf16, #tpu.memory_space<vmem>>, %arg4: memref<1x1x8x64xbf16, #tpu.memory_space<vmem>>, %arg5: memref<2x32x64xbf16, #tpu.memory_space<vmem>>, %arg6: memref<64x64xbf16, #tpu.memory_space<vmem>>, %arg7: memref<1x64xf32, #tpu.memory_space<vmem>>, %arg8: memref<1x1x64xf32, #tpu.memory_space<vmem>>, %arg9: memref<1x1x8x64xbf16, #tpu.memory_space<vmem>>, %arg10: memref<1x1x1x32xf32, #tpu.memory_space<vmem>>, %arg11: memref<1x1x1x32xf32, #tpu.memory_space<vmem>>) attributes {dimension_semantics = [#tpu.dimension_semantics<parallel>, #tpu.dimension_semantics<parallel>], iteration_bounds = array<i64: 2, 8>, scalar_prefetch = 0 : i64, scratch_operands = 0 : i64, tpu.core_type = #tpu.core_type<tc>, window_params = [{transform_indices = @transform_0, window_bounds = array<i64: 1, 1, 8, 32>}, {transform_indices = @transform_1, window_bounds = array<i64: 1, 1, 8, 32>}, {transform_indices = @transform_2, window_bounds = array<i64: 1, 1, 8, 64>}, {pipeline_mode = #tpu.pipeline_mode<synchronous>, transform_indices = @transform_3, window_bounds = array<i64: 2, 32, 64>}, {pipeline_mode = #tpu.pipeline_mode<synchronous>, transform_indices = @transform_4, window_bounds = array<i64: 64, 64>}, {pipeline_mode = #tpu.pipeline_mode<synchronous>, transform_indices = @transform_5, window_bounds = array<i64: 1, 64>}, {transform_indices = @transform_6, window_bounds = array<i64: 1, 1, 64>}, {transform_indices = @transform_7, window_bounds = array<i64: 1, 1, 8, 64>}, {transform_indices = @transform_8, window_bounds = array<i64: 1, 1, 1, 32>}, {transform_indices = @transform_9, window_bounds = array<i64: 1, 1, 1, 32>}]} {
    %c0 = arith.constant 0 : index
    %c0_0 = arith.constant 0 : index
    %c0_1 = arith.constant 0 : index
    %c0_2 = arith.constant 0 : index
    %0 = vector.load %arg4[%c0, %c0_0, %c0_1, %c0_2] : memref<1x1x8x64xbf16, #tpu.memory_space<vmem>>, vector<1x1x8x64xbf16>
    %1 = vector.shape_cast %0 : vector<1x1x8x64xbf16> to vector<8x64xbf16>
    %c0_3 = arith.constant 0 : index
    %c0_4 = arith.constant 0 : index
    %2 = vector.load %arg6[%c0_3, %c0_4] : memref<64x64xbf16, #tpu.memory_space<vmem>>, vector<64x64xbf16>
    %cst = arith.constant dense<0.000000e+00> : vector<8x64xf32>
    %3 = tpu.matmul %1, %2, %cst {dimension_numbers = #tpu.dot_dimension_numbers<[1], [0], [0], [1], [0, 0, 1, 1], [], []>} : vector<8x64xbf16>, vector<64x64xbf16>, vector<8x64xf32> -> vector<8x64xf32>
    %c0_5 = arith.constant 0 : index
    %c0_6 = arith.constant 0 : index
    %c0_7 = arith.constant 0 : index
    %c0_8 = arith.constant 0 : index
    %4 = vector.load %arg2[%c0_5, %c0_6, %c0_7, %c0_8] : memref<1x1x8x32xbf16, #tpu.memory_space<vmem>>, vector<1x1x8x32xbf16>
    %5 = vector.shape_cast %4 : vector<1x1x8x32xbf16> to vector<8x32xbf16>
    %c0_9 = arith.constant 0 : index
    %c0_10 = arith.constant 0 : index
    %c0_11 = arith.constant 0 : index
    %6 = vector.load %arg5[%c0_9, %c0_10, %c0_11] : memref<2x32x64xbf16, #tpu.memory_space<vmem>>, vector<1x32x64xbf16>
    %7 = vector.shape_cast %6 : vector<1x32x64xbf16> to vector<32x64xbf16>
    %cst_12 = arith.constant dense<0.000000e+00> : vector<8x64xf32>
    %8 = tpu.matmul %5, %7, %cst_12 {dimension_numbers = #tpu.dot_dimension_numbers<[1], [0], [0], [1], [0, 0, 1, 1], [], []>} : vector<8x32xbf16>, vector<32x64xbf16>, vector<8x64xf32> -> vector<8x64xf32>
    %9 = arith.addf %3, %8 : vector<8x64xf32>
    %c0_13 = arith.constant 0 : index
    %c0_14 = arith.constant 0 : index
    %c0_15 = arith.constant 0 : index
    %c0_16 = arith.constant 0 : index
    %10 = vector.load %arg3[%c0_13, %c0_14, %c0_15, %c0_16] : memref<1x1x8x32xbf16, #tpu.memory_space<vmem>>, vector<1x1x8x32xbf16>
    %11 = vector.shape_cast %10 : vector<1x1x8x32xbf16> to vector<8x32xbf16>
    %c1 = arith.constant 1 : index
    %c0_17 = arith.constant 0 : index
    %c0_18 = arith.constant 0 : index
    %12 = vector.load %arg5[%c1, %c0_17, %c0_18] : memref<2x32x64xbf16, #tpu.memory_space<vmem>>, vector<1x32x64xbf16>
    %13 = vector.shape_cast %12 : vector<1x32x64xbf16> to vector<32x64xbf16>
    %cst_19 = arith.constant dense<0.000000e+00> : vector<8x64xf32>
    %14 = tpu.matmul %11, %13, %cst_19 {dimension_numbers = #tpu.dot_dimension_numbers<[1], [0], [0], [1], [0, 0, 1, 1], [], []>} : vector<8x32xbf16>, vector<32x64xbf16>, vector<8x64xf32> -> vector<8x64xf32>
    %15 = arith.addf %9, %14 : vector<8x64xf32>
    %c0_20 = arith.constant 0 : index
    %c0_21 = arith.constant 0 : index
    %16 = vector.load %arg7[%c0_20, %c0_21] : memref<1x64xf32, #tpu.memory_space<vmem>>, vector<1x64xf32>
    %17 = vector.broadcast %16 : vector<1x64xf32> to vector<8x64xf32>
    %18 = arith.addf %15, %17 : vector<8x64xf32>
    %c0_22 = arith.constant 0 : index
    %c0_23 = arith.constant 0 : index
    %c0_24 = arith.constant 0 : index
    %19 = vector.load %arg8[%c0_22, %c0_23, %c0_24] : memref<1x1x64xf32, #tpu.memory_space<vmem>>, vector<1x1x64xf32>
    %20 = vector.shape_cast %19 : vector<1x1x64xf32> to vector<1x64xf32>
    %21 = vector.broadcast %20 : vector<1x64xf32> to vector<8x64xf32>
    %22 = arith.addf %18, %21 : vector<8x64xf32>
    %23 = arith.truncf %22 : vector<8x64xf32> to vector<8x64xbf16>
    %c0_25 = arith.constant 0 : index
    %c0_26 = arith.constant 0 : index
    %c0_27 = arith.constant 0 : index
    %c0_28 = arith.constant 0 : index
    %24 = vector.load %arg9[%c0_25, %c0_26, %c0_27, %c0_28] : memref<1x1x8x64xbf16, #tpu.memory_space<vmem>>, vector<1x1x8x64xbf16>
    %25 = vector.shape_cast %24 : vector<1x1x8x64xbf16> to vector<8x64xbf16>
    %26 = vector.shape_cast %23 : vector<8x64xbf16> to vector<1x1x8x64xbf16>
    tpu.vector_store %arg9[%c0_25, %c0_26, %c0_27, %c0_28], %26 {strides = array<i32>} : memref<1x1x8x64xbf16, #tpu.memory_space<vmem>>, vector<1x1x8x64xbf16>,
    %27 = vector.extract_strided_slice %22 {offsets = [0, 0], sizes = [8, 32], strides = [1, 1]} : vector<8x64xf32> to vector<8x32xf32>
    %cst_29 = arith.constant dense<0.000000e+00> : vector<32xf32>
    %28 = vector.multi_reduction <add>, %27, %cst_29 [0] : vector<8x32xf32> to vector<32xf32>
    %29 = vector.shape_cast %28 : vector<32xf32> to vector<1x32xf32>
    %c0_30 = arith.constant 0 : index
    %c0_31 = arith.constant 0 : index
    %c0_32 = arith.constant 0 : index
    %c0_33 = arith.constant 0 : index
    %30 = vector.load %arg10[%c0_30, %c0_31, %c0_32, %c0_33] : memref<1x1x1x32xf32, #tpu.memory_space<vmem>>, vector<1x1x1x32xf32>
    %31 = vector.shape_cast %30 : vector<1x1x1x32xf32> to vector<1x32xf32>
    %32 = vector.shape_cast %29 : vector<1x32xf32> to vector<1x1x1x32xf32>
    tpu.vector_store %arg10[%c0_30, %c0_31, %c0_32, %c0_33], %32 {strides = array<i32>} : memref<1x1x1x32xf32, #tpu.memory_space<vmem>>, vector<1x1x1x32xf32>,
    %33 = arith.mulf %27, %27 : vector<8x32xf32>
    %cst_34 = arith.constant dense<0.000000e+00> : vector<32xf32>
    %34 = vector.multi_reduction <add>, %33, %cst_34 [0] : vector<8x32xf32> to vector<32xf32>
    %35 = vector.shape_cast %34 : vector<32xf32> to vector<1x32xf32>
    %c0_35 = arith.constant 0 : index
    %c0_36 = arith.constant 0 : index
    %c0_37 = arith.constant 0 : index
    %c0_38 = arith.constant 0 : index
    %36 = vector.load %arg11[%c0_35, %c0_36, %c0_37, %c0_38] : memref<1x1x1x32xf32, #tpu.memory_space<vmem>>, vector<1x1x1x32xf32>
    %37 = vector.shape_cast %36 : vector<1x1x1x32xf32> to vector<1x32xf32>
    %38 = vector.shape_cast %35 : vector<1x32xf32> to vector<1x1x1x32xf32>
    tpu.vector_store %arg11[%c0_35, %c0_36, %c0_37, %c0_38], %38 {strides = array<i32>} : memref<1x1x1x32xf32, #tpu.memory_space<vmem>>, vector<1x1x1x32xf32>,
    return
  }
  func.func @transform_0(%arg0: i32, %arg1: i32) -> (i32, i32, i32, i32) {
    %c0_i32 = arith.constant 0 : i32
    %0 = arith.addi %arg1, %c0_i32 : i32
    %c0_i32_0 = arith.constant 0 : i32
    %c0_i32_1 = arith.constant 0 : i32
    %c0_i32_2 = arith.constant 0 : i32
    return %arg0, %0, %c0_i32_0, %c0_i32_1 : i32, i32, i32, i32
  }
  func.func @transform_1(%arg0: i32, %arg1: i32) -> (i32, i32, i32, i32) {
    %c1_i32 = arith.constant 1 : i32
    %0 = arith.addi %arg1, %c1_i32 : i32
    %c0_i32 = arith.constant 0 : i32
    %c0_i32_0 = arith.constant 0 : i32
    %c0_i32_1 = arith.constant 0 : i32
    return %arg0, %0, %c0_i32, %c0_i32_0 : i32, i32, i32, i32
  }
  func.func @transform_2(%arg0: i32, %arg1: i32) -> (i32, i32, i32, i32) {
    %c0_i32 = arith.constant 0 : i32
    %c0_i32_0 = arith.constant 0 : i32
    %c0_i32_1 = arith.constant 0 : i32
    return %arg0, %arg1, %c0_i32, %c0_i32_0 : i32, i32, i32, i32
  }
  func.func @transform_3(%arg0: i32, %arg1: i32) -> (i32, i32, i32) {
    %c0_i32 = arith.constant 0 : i32
    %c0_i32_0 = arith.constant 0 : i32
    %c0_i32_1 = arith.constant 0 : i32
    %c0_i32_2 = arith.constant 0 : i32
    return %c0_i32, %c0_i32_0, %c0_i32_1 : i32, i32, i32
  }
  func.func @transform_4(%arg0: i32, %arg1: i32) -> (i32, i32) {
    %c0_i32 = arith.constant 0 : i32
    %c0_i32_0 = arith.constant 0 : i32
    %c0_i32_1 = arith.constant 0 : i32
    return %c0_i32, %c0_i32_0 : i32, i32
  }
  func.func @transform_5(%arg0: i32, %arg1: i32) -> (i32, i32) {
    %c0_i32 = arith.constant 0 : i32
    %c0_i32_0 = arith.constant 0 : i32
    %c0_i32_1 = arith.constant 0 : i32
    return %c0_i32, %c0_i32_0 : i32, i32
  }
  func.func @transform_6(%arg0: i32, %arg1: i32) -> (i32, i32, i32) {
    %c0_i32 = arith.constant 0 : i32
    %c0_i32_0 = arith.constant 0 : i32
    %c0_i32_1 = arith.constant 0 : i32
    return %arg0, %c0_i32, %c0_i32_0 : i32, i32, i32
  }
  func.func @transform_7(%arg0: i32, %arg1: i32) -> (i32, i32, i32, i32) {
    %c0_i32 = arith.constant 0 : i32
    %c0_i32_0 = arith.constant 0 : i32
    %c0_i32_1 = arith.constant 0 : i32
    return %arg0, %arg1, %c0_i32, %c0_i32_0 : i32, i32, i32, i32
  }
  func.func @transform_8(%arg0: i32, %arg1: i32) -> (i32, i32, i32, i32) {
    %c0_i32 = arith.constant 0 : i32
    %c0_i32_0 = arith.constant 0 : i32
    %c0_i32_1 = arith.constant 0 : i32
    return %arg0, %arg1, %c0_i32, %c0_i32_0 : i32, i32, i32, i32
  }
  func.func @transform_9(%arg0: i32, %arg1: i32) -> (i32, i32, i32, i32) {
    %c0_i32 = arith.constant 0 : i32
    %c0_i32_0 = arith.constant 0 : i32
    %c0_i32_1 = arith.constant 0 : i32
    return %arg0, %arg1, %c0_i32, %c0_i32_0 : i32, i32, i32, i32
  }
}

module attributes {stable_mosaic.version = 11 : i64} {
  func.func @_bn_add_kernel(%arg0: i32, %arg1: i32, %arg2: memref<1x64x32xbf16, #tpu.memory_space<vmem>>, %arg3: memref<1x64x32xbf16, #tpu.memory_space<vmem>>, %arg4: memref<1x32xf32, #tpu.memory_space<vmem>>, %arg5: memref<1x32xf32, #tpu.memory_space<vmem>>, %arg6: memref<1x32xf32, #tpu.memory_space<vmem>>, %arg7: memref<1x32xf32, #tpu.memory_space<vmem>>, %arg8: memref<1x64x32xbf16, #tpu.memory_space<vmem>>) attributes {dimension_semantics = [#tpu.dimension_semantics<parallel>, #tpu.dimension_semantics<parallel>], iteration_bounds = array<i64: 2, 1>, scalar_prefetch = 0 : i64, scratch_operands = 0 : i64, tpu.core_type = #tpu.core_type<tc>, window_params = [{transform_indices = @transform_0, window_bounds = array<i64: 1, 64, 32>}, {transform_indices = @transform_1, window_bounds = array<i64: 1, 64, 32>}, {pipeline_mode = #tpu.pipeline_mode<synchronous>, transform_indices = @transform_2, window_bounds = array<i64: 1, 32>}, {pipeline_mode = #tpu.pipeline_mode<synchronous>, transform_indices = @transform_3, window_bounds = array<i64: 1, 32>}, {pipeline_mode = #tpu.pipeline_mode<synchronous>, transform_indices = @transform_4, window_bounds = array<i64: 1, 32>}, {pipeline_mode = #tpu.pipeline_mode<synchronous>, transform_indices = @transform_5, window_bounds = array<i64: 1, 32>}, {transform_indices = @transform_6, window_bounds = array<i64: 1, 64, 32>}]} {
    %c0 = arith.constant 0 : index
    %c0_0 = arith.constant 0 : index
    %c0_1 = arith.constant 0 : index
    %0 = vector.load %arg2[%c0, %c0_0, %c0_1] : memref<1x64x32xbf16, #tpu.memory_space<vmem>>, vector<1x64x32xbf16>
    %1 = vector.shape_cast %0 : vector<1x64x32xbf16> to vector<64x32xbf16>
    %2 = arith.extf %1 : vector<64x32xbf16> to vector<64x32xf32>
    %c0_2 = arith.constant 0 : index
    %c0_3 = arith.constant 0 : index
    %3 = vector.load %arg4[%c0_2, %c0_3] : memref<1x32xf32, #tpu.memory_space<vmem>>, vector<1x32xf32>
    %4 = vector.broadcast %3 : vector<1x32xf32> to vector<64x32xf32>
    %5 = arith.subf %2, %4 : vector<64x32xf32>
    %c0_4 = arith.constant 0 : index
    %c0_5 = arith.constant 0 : index
    %6 = vector.load %arg5[%c0_4, %c0_5] : memref<1x32xf32, #tpu.memory_space<vmem>>, vector<1x32xf32>
    %7 = vector.broadcast %6 : vector<1x32xf32> to vector<64x32xf32>
    %8 = arith.mulf %5, %7 : vector<64x32xf32>
    %c0_6 = arith.constant 0 : index
    %c0_7 = arith.constant 0 : index
    %9 = vector.load %arg6[%c0_6, %c0_7] : memref<1x32xf32, #tpu.memory_space<vmem>>, vector<1x32xf32>
    %10 = vector.broadcast %9 : vector<1x32xf32> to vector<64x32xf32>
    %11 = arith.mulf %8, %10 : vector<64x32xf32>
    %c0_8 = arith.constant 0 : index
    %c0_9 = arith.constant 0 : index
    %12 = vector.load %arg7[%c0_8, %c0_9] : memref<1x32xf32, #tpu.memory_space<vmem>>, vector<1x32xf32>
    %13 = vector.broadcast %12 : vector<1x32xf32> to vector<64x32xf32>
    %14 = arith.addf %11, %13 : vector<64x32xf32>
    %c0_10 = arith.constant 0 : index
    %c0_11 = arith.constant 0 : index
    %c0_12 = arith.constant 0 : index
    %15 = vector.load %arg3[%c0_10, %c0_11, %c0_12] : memref<1x64x32xbf16, #tpu.memory_space<vmem>>, vector<1x64x32xbf16>
    %16 = vector.shape_cast %15 : vector<1x64x32xbf16> to vector<64x32xbf16>
    %17 = arith.extf %16 : vector<64x32xbf16> to vector<64x32xf32>
    %18 = arith.addf %14, %17 : vector<64x32xf32>
    %19 = arith.truncf %18 : vector<64x32xf32> to vector<64x32xbf16>
    %c0_13 = arith.constant 0 : index
    %c0_14 = arith.constant 0 : index
    %c0_15 = arith.constant 0 : index
    %20 = vector.load %arg8[%c0_13, %c0_14, %c0_15] : memref<1x64x32xbf16, #tpu.memory_space<vmem>>, vector<1x64x32xbf16>
    %21 = vector.shape_cast %20 : vector<1x64x32xbf16> to vector<64x32xbf16>
    %22 = vector.shape_cast %19 : vector<64x32xbf16> to vector<1x64x32xbf16>
    tpu.vector_store %arg8[%c0_13, %c0_14, %c0_15], %22 {strides = array<i32>} : memref<1x64x32xbf16, #tpu.memory_space<vmem>>, vector<1x64x32xbf16>,
    return
  }
  func.func @transform_0(%arg0: i32, %arg1: i32) -> (i32, i32, i32) {
    %c0_i32 = arith.constant 0 : i32
    %c0_i32_0 = arith.constant 0 : i32
    return %arg0, %arg1, %c0_i32 : i32, i32, i32
  }
  func.func @transform_1(%arg0: i32, %arg1: i32) -> (i32, i32, i32) {
    %c0_i32 = arith.constant 0 : i32
    %c0_i32_0 = arith.constant 0 : i32
    return %arg0, %arg1, %c0_i32 : i32, i32, i32
  }
  func.func @transform_2(%arg0: i32, %arg1: i32) -> (i32, i32) {
    %c0_i32 = arith.constant 0 : i32
    %c0_i32_0 = arith.constant 0 : i32
    %c0_i32_1 = arith.constant 0 : i32
    return %c0_i32, %c0_i32_0 : i32, i32
  }
  func.func @transform_3(%arg0: i32, %arg1: i32) -> (i32, i32) {
    %c0_i32 = arith.constant 0 : i32
    %c0_i32_0 = arith.constant 0 : i32
    %c0_i32_1 = arith.constant 0 : i32
    return %c0_i32, %c0_i32_0 : i32, i32
  }
  func.func @transform_4(%arg0: i32, %arg1: i32) -> (i32, i32) {
    %c0_i32 = arith.constant 0 : i32
    %c0_i32_0 = arith.constant 0 : i32
    %c0_i32_1 = arith.constant 0 : i32
    return %c0_i32, %c0_i32_0 : i32, i32
  }
  func.func @transform_5(%arg0: i32, %arg1: i32) -> (i32, i32) {
    %c0_i32 = arith.constant 0 : i32
    %c0_i32_0 = arith.constant 0 : i32
    %c0_i32_1 = arith.constant 0 : i32
    return %c0_i32, %c0_i32_0 : i32, i32
  }
  func.func @transform_6(%arg0: i32, %arg1: i32) -> (i32, i32, i32) {
    %c0_i32 = arith.constant 0 : i32
    %c0_i32_0 = arith.constant 0 : i32
    return %arg0, %arg1, %c0_i32 : i32, i32, i32
  }
}

module attributes {stable_mosaic.version = 11 : i64} {
  func.func @_vert_conv_kernel(%arg0: i32, %arg1: i32, %arg2: memref<1x1x9x32xbf16, #tpu.memory_space<vmem>>, %arg3: memref<1x1x9x32xbf16, #tpu.memory_space<vmem>>, %arg4: memref<1x1x9x32xbf16, #tpu.memory_space<vmem>>, %arg5: memref<6x32x64xbf16, #tpu.memory_space<vmem>>, %arg6: memref<1x64xf32, #tpu.memory_space<vmem>>, %arg7: memref<1x1x64xf32, #tpu.memory_space<vmem>>, %arg8: memref<1x1x8x64xbf16, #tpu.memory_space<vmem>>, %arg9: memref<1x1x1x32xf32, #tpu.memory_space<vmem>>, %arg10: memref<1x1x1x32xf32, #tpu.memory_space<vmem>>) attributes {dimension_semantics = [#tpu.dimension_semantics<parallel>, #tpu.dimension_semantics<parallel>], iteration_bounds = array<i64: 2, 8>, scalar_prefetch = 0 : i64, scratch_operands = 0 : i64, tpu.core_type = #tpu.core_type<tc>, window_params = [{transform_indices = @transform_0, window_bounds = array<i64: 1, 1, 9, 32>}, {transform_indices = @transform_1, window_bounds = array<i64: 1, 1, 9, 32>}, {transform_indices = @transform_2, window_bounds = array<i64: 1, 1, 9, 32>}, {pipeline_mode = #tpu.pipeline_mode<synchronous>, transform_indices = @transform_3, window_bounds = array<i64: 6, 32, 64>}, {pipeline_mode = #tpu.pipeline_mode<synchronous>, transform_indices = @transform_4, window_bounds = array<i64: 1, 64>}, {transform_indices = @transform_5, window_bounds = array<i64: 1, 1, 64>}, {transform_indices = @transform_6, window_bounds = array<i64: 1, 1, 8, 64>}, {transform_indices = @transform_7, window_bounds = array<i64: 1, 1, 1, 32>}, {transform_indices = @transform_8, window_bounds = array<i64: 1, 1, 1, 32>}]} {
    %cst = arith.constant 0.000000e+00 : f32
    %0 = vector.broadcast %cst : f32 to vector<8x64xf32>
    %c0 = arith.constant 0 : index
    %c0_0 = arith.constant 0 : index
    %c0_1 = arith.constant 0 : index
    %c0_2 = arith.constant 0 : index
    %1 = vector.load %arg2[%c0, %c0_0, %c0_1, %c0_2] : memref<1x1x9x32xbf16, #tpu.memory_space<vmem>>, vector<1x1x8x32xbf16>
    %2 = vector.shape_cast %1 : vector<1x1x8x32xbf16> to vector<8x32xbf16>
    %c0_3 = arith.constant 0 : index
    %c0_4 = arith.constant 0 : index
    %c0_5 = arith.constant 0 : index
    %3 = vector.load %arg5[%c0_3, %c0_4, %c0_5] : memref<6x32x64xbf16, #tpu.memory_space<vmem>>, vector<1x32x64xbf16>
    %4 = vector.shape_cast %3 : vector<1x32x64xbf16> to vector<32x64xbf16>
    %cst_6 = arith.constant dense<0.000000e+00> : vector<8x64xf32>
    %5 = tpu.matmul %2, %4, %cst_6 {dimension_numbers = #tpu.dot_dimension_numbers<[1], [0], [0], [1], [0, 0, 1, 1], [], []>} : vector<8x32xbf16>, vector<32x64xbf16>, vector<8x64xf32> -> vector<8x64xf32>
    %6 = arith.addf %0, %5 : vector<8x64xf32>
    %c0_7 = arith.constant 0 : index
    %c0_8 = arith.constant 0 : index
    %c1 = arith.constant 1 : index
    %c0_9 = arith.constant 0 : index
    %7 = vector.load %arg2[%c0_7, %c0_8, %c1, %c0_9] : memref<1x1x9x32xbf16, #tpu.memory_space<vmem>>, vector<1x1x8x32xbf16>
    %8 = vector.shape_cast %7 : vector<1x1x8x32xbf16> to vector<8x32xbf16>
    %c3 = arith.constant 3 : index
    %c0_10 = arith.constant 0 : index
    %c0_11 = arith.constant 0 : index
    %9 = vector.load %arg5[%c3, %c0_10, %c0_11] : memref<6x32x64xbf16, #tpu.memory_space<vmem>>, vector<1x32x64xbf16>
    %10 = vector.shape_cast %9 : vector<1x32x64xbf16> to vector<32x64xbf16>
    %cst_12 = arith.constant dense<0.000000e+00> : vector<8x64xf32>
    %11 = tpu.matmul %8, %10, %cst_12 {dimension_numbers = #tpu.dot_dimension_numbers<[1], [0], [0], [1], [0, 0, 1, 1], [], []>} : vector<8x32xbf16>, vector<32x64xbf16>, vector<8x64xf32> -> vector<8x64xf32>
    %12 = arith.addf %6, %11 : vector<8x64xf32>
    %c0_13 = arith.constant 0 : index
    %c0_14 = arith.constant 0 : index
    %c0_15 = arith.constant 0 : index
    %c0_16 = arith.constant 0 : index
    %13 = vector.load %arg3[%c0_13, %c0_14, %c0_15, %c0_16] : memref<1x1x9x32xbf16, #tpu.memory_space<vmem>>, vector<1x1x8x32xbf16>
    %14 = vector.shape_cast %13 : vector<1x1x8x32xbf16> to vector<8x32xbf16>
    %c1_17 = arith.constant 1 : index
    %c0_18 = arith.constant 0 : index
    %c0_19 = arith.constant 0 : index
    %15 = vector.load %arg5[%c1_17, %c0_18, %c0_19] : memref<6x32x64xbf16, #tpu.memory_space<vmem>>, vector<1x32x64xbf16>
    %16 = vector.shape_cast %15 : vector<1x32x64xbf16> to vector<32x64xbf16>
    %cst_20 = arith.constant dense<0.000000e+00> : vector<8x64xf32>
    %17 = tpu.matmul %14, %16, %cst_20 {dimension_numbers = #tpu.dot_dimension_numbers<[1], [0], [0], [1], [0, 0, 1, 1], [], []>} : vector<8x32xbf16>, vector<32x64xbf16>, vector<8x64xf32> -> vector<8x64xf32>
    %18 = arith.addf %12, %17 : vector<8x64xf32>
    %c0_21 = arith.constant 0 : index
    %c0_22 = arith.constant 0 : index
    %c1_23 = arith.constant 1 : index
    %c0_24 = arith.constant 0 : index
    %19 = vector.load %arg3[%c0_21, %c0_22, %c1_23, %c0_24] : memref<1x1x9x32xbf16, #tpu.memory_space<vmem>>, vector<1x1x8x32xbf16>
    %20 = vector.shape_cast %19 : vector<1x1x8x32xbf16> to vector<8x32xbf16>
    %c4 = arith.constant 4 : index
    %c0_25 = arith.constant 0 : index
    %c0_26 = arith.constant 0 : index
    %21 = vector.load %arg5[%c4, %c0_25, %c0_26] : memref<6x32x64xbf16, #tpu.memory_space<vmem>>, vector<1x32x64xbf16>
    %22 = vector.shape_cast %21 : vector<1x32x64xbf16> to vector<32x64xbf16>
    %cst_27 = arith.constant dense<0.000000e+00> : vector<8x64xf32>
    %23 = tpu.matmul %20, %22, %cst_27 {dimension_numbers = #tpu.dot_dimension_numbers<[1], [0], [0], [1], [0, 0, 1, 1], [], []>} : vector<8x32xbf16>, vector<32x64xbf16>, vector<8x64xf32> -> vector<8x64xf32>
    %24 = arith.addf %18, %23 : vector<8x64xf32>
    %c0_28 = arith.constant 0 : index
    %c0_29 = arith.constant 0 : index
    %c0_30 = arith.constant 0 : index
    %c0_31 = arith.constant 0 : index
    %25 = vector.load %arg4[%c0_28, %c0_29, %c0_30, %c0_31] : memref<1x1x9x32xbf16, #tpu.memory_space<vmem>>, vector<1x1x8x32xbf16>
    %26 = vector.shape_cast %25 : vector<1x1x8x32xbf16> to vector<8x32xbf16>
    %c2 = arith.constant 2 : index
    %c0_32 = arith.constant 0 : index
    %c0_33 = arith.constant 0 : index
    %27 = vector.load %arg5[%c2, %c0_32, %c0_33] : memref<6x32x64xbf16, #tpu.memory_space<vmem>>, vector<1x32x64xbf16>
    %28 = vector.shape_cast %27 : vector<1x32x64xbf16> to vector<32x64xbf16>
    %cst_34 = arith.constant dense<0.000000e+00> : vector<8x64xf32>
    %29 = tpu.matmul %26, %28, %cst_34 {dimension_numbers = #tpu.dot_dimension_numbers<[1], [0], [0], [1], [0, 0, 1, 1], [], []>} : vector<8x32xbf16>, vector<32x64xbf16>, vector<8x64xf32> -> vector<8x64xf32>
    %30 = arith.addf %24, %29 : vector<8x64xf32>
    %c0_35 = arith.constant 0 : index
    %c0_36 = arith.constant 0 : index
    %c1_37 = arith.constant 1 : index
    %c0_38 = arith.constant 0 : index
    %31 = vector.load %arg4[%c0_35, %c0_36, %c1_37, %c0_38] : memref<1x1x9x32xbf16, #tpu.memory_space<vmem>>, vector<1x1x8x32xbf16>
    %32 = vector.shape_cast %31 : vector<1x1x8x32xbf16> to vector<8x32xbf16>
    %c5 = arith.constant 5 : index
    %c0_39 = arith.constant 0 : index
    %c0_40 = arith.constant 0 : index
    %33 = vector.load %arg5[%c5, %c0_39, %c0_40] : memref<6x32x64xbf16, #tpu.memory_space<vmem>>, vector<1x32x64xbf16>
    %34 = vector.shape_cast %33 : vector<1x32x64xbf16> to vector<32x64xbf16>
    %cst_41 = arith.constant dense<0.000000e+00> : vector<8x64xf32>
    %35 = tpu.matmul %32, %34, %cst_41 {dimension_numbers = #tpu.dot_dimension_numbers<[1], [0], [0], [1], [0, 0, 1, 1], [], []>} : vector<8x32xbf16>, vector<32x64xbf16>, vector<8x64xf32> -> vector<8x64xf32>
    %36 = arith.addf %30, %35 : vector<8x64xf32>
    %c0_42 = arith.constant 0 : index
    %c0_43 = arith.constant 0 : index
    %37 = vector.load %arg6[%c0_42, %c0_43] : memref<1x64xf32, #tpu.memory_space<vmem>>, vector<1x64xf32>
    %38 = vector.broadcast %37 : vector<1x64xf32> to vector<8x64xf32>
    %39 = arith.addf %36, %38 : vector<8x64xf32>
    %40 = arith.truncf %39 : vector<8x64xf32> to vector<8x64xbf16>
    %c0_44 = arith.constant 0 : index
    %c0_45 = arith.constant 0 : index
    %c0_46 = arith.constant 0 : index
    %c0_47 = arith.constant 0 : index
    %41 = vector.load %arg8[%c0_44, %c0_45, %c0_46, %c0_47] : memref<1x1x8x64xbf16, #tpu.memory_space<vmem>>, vector<1x1x8x64xbf16>
    %42 = vector.shape_cast %41 : vector<1x1x8x64xbf16> to vector<8x64xbf16>
    %43 = vector.shape_cast %40 : vector<8x64xbf16> to vector<1x1x8x64xbf16>
    tpu.vector_store %arg8[%c0_44, %c0_45, %c0_46, %c0_47], %43 {strides = array<i32>} : memref<1x1x8x64xbf16, #tpu.memory_space<vmem>>, vector<1x1x8x64xbf16>,
    %44 = vector.extract_strided_slice %39 {offsets = [0, 0], sizes = [8, 32], strides = [1, 1]} : vector<8x64xf32> to vector<8x32xf32>
    %c0_48 = arith.constant 0 : index
    %c0_49 = arith.constant 0 : index
    %c0_50 = arith.constant 0 : index
    %45 = vector.load %arg7[%c0_48, %c0_49, %c0_50] : memref<1x1x64xf32, #tpu.memory_space<vmem>>, vector<1x1x64xf32>
    %46 = vector.shape_cast %45 : vector<1x1x64xf32> to vector<1x64xf32>
    %47 = vector.extract_strided_slice %46 {offsets = [0, 0], sizes = [1, 32], strides = [1, 1]} : vector<1x64xf32> to vector<1x32xf32>
    %48 = vector.broadcast %47 : vector<1x32xf32> to vector<8x32xf32>
    %49 = arith.addf %44, %48 : vector<8x32xf32>
    %cst_51 = arith.constant dense<0.000000e+00> : vector<32xf32>
    %50 = vector.multi_reduction <add>, %49, %cst_51 [0] : vector<8x32xf32> to vector<32xf32>
    %51 = vector.shape_cast %50 : vector<32xf32> to vector<1x32xf32>
    %c0_52 = arith.constant 0 : index
    %c0_53 = arith.constant 0 : index
    %c0_54 = arith.constant 0 : index
    %c0_55 = arith.constant 0 : index
    %52 = vector.load %arg9[%c0_52, %c0_53, %c0_54, %c0_55] : memref<1x1x1x32xf32, #tpu.memory_space<vmem>>, vector<1x1x1x32xf32>
    %53 = vector.shape_cast %52 : vector<1x1x1x32xf32> to vector<1x32xf32>
    %54 = vector.shape_cast %51 : vector<1x32xf32> to vector<1x1x1x32xf32>
    tpu.vector_store %arg9[%c0_52, %c0_53, %c0_54, %c0_55], %54 {strides = array<i32>} : memref<1x1x1x32xf32, #tpu.memory_space<vmem>>, vector<1x1x1x32xf32>,
    %55 = arith.mulf %49, %49 : vector<8x32xf32>
    %cst_56 = arith.constant dense<0.000000e+00> : vector<32xf32>
    %56 = vector.multi_reduction <add>, %55, %cst_56 [0] : vector<8x32xf32> to vector<32xf32>
    %57 = vector.shape_cast %56 : vector<32xf32> to vector<1x32xf32>
    %c0_57 = arith.constant 0 : index
    %c0_58 = arith.constant 0 : index
    %c0_59 = arith.constant 0 : index
    %c0_60 = arith.constant 0 : index
    %58 = vector.load %arg10[%c0_57, %c0_58, %c0_59, %c0_60] : memref<1x1x1x32xf32, #tpu.memory_space<vmem>>, vector<1x1x1x32xf32>
    %59 = vector.shape_cast %58 : vector<1x1x1x32xf32> to vector<1x32xf32>
    %60 = vector.shape_cast %57 : vector<1x32xf32> to vector<1x1x1x32xf32>
    tpu.vector_store %arg10[%c0_57, %c0_58, %c0_59, %c0_60], %60 {strides = array<i32>} : memref<1x1x1x32xf32, #tpu.memory_space<vmem>>, vector<1x1x1x32xf32>,
    return
  }
  func.func @transform_0(%arg0: i32, %arg1: i32) -> (i32, i32, i32, i32) {
    %c0_i32 = arith.constant 0 : i32
    %0 = arith.addi %arg1, %c0_i32 : i32
    %c0_i32_0 = arith.constant 0 : i32
    %c0_i32_1 = arith.constant 0 : i32
    %c0_i32_2 = arith.constant 0 : i32
    return %arg0, %0, %c0_i32_0, %c0_i32_1 : i32, i32, i32, i32
  }
  func.func @transform_1(%arg0: i32, %arg1: i32) -> (i32, i32, i32, i32) {
    %c1_i32 = arith.constant 1 : i32
    %0 = arith.addi %arg1, %c1_i32 : i32
    %c0_i32 = arith.constant 0 : i32
    %c0_i32_0 = arith.constant 0 : i32
    %c0_i32_1 = arith.constant 0 : i32
    return %arg0, %0, %c0_i32, %c0_i32_0 : i32, i32, i32, i32
  }
  func.func @transform_2(%arg0: i32, %arg1: i32) -> (i32, i32, i32, i32) {
    %c2_i32 = arith.constant 2 : i32
    %0 = arith.addi %arg1, %c2_i32 : i32
    %c0_i32 = arith.constant 0 : i32
    %c0_i32_0 = arith.constant 0 : i32
    %c0_i32_1 = arith.constant 0 : i32
    return %arg0, %0, %c0_i32, %c0_i32_0 : i32, i32, i32, i32
  }
  func.func @transform_3(%arg0: i32, %arg1: i32) -> (i32, i32, i32) {
    %c0_i32 = arith.constant 0 : i32
    %c0_i32_0 = arith.constant 0 : i32
    %c0_i32_1 = arith.constant 0 : i32
    %c0_i32_2 = arith.constant 0 : i32
    return %c0_i32, %c0_i32_0, %c0_i32_1 : i32, i32, i32
  }
  func.func @transform_4(%arg0: i32, %arg1: i32) -> (i32, i32) {
    %c0_i32 = arith.constant 0 : i32
    %c0_i32_0 = arith.constant 0 : i32
    %c0_i32_1 = arith.constant 0 : i32
    return %c0_i32, %c0_i32_0 : i32, i32
  }
  func.func @transform_5(%arg0: i32, %arg1: i32) -> (i32, i32, i32) {
    %c0_i32 = arith.constant 0 : i32
    %c0_i32_0 = arith.constant 0 : i32
    %c0_i32_1 = arith.constant 0 : i32
    return %arg0, %c0_i32, %c0_i32_0 : i32, i32, i32
  }
  func.func @transform_6(%arg0: i32, %arg1: i32) -> (i32, i32, i32, i32) {
    %c0_i32 = arith.constant 0 : i32
    %c0_i32_0 = arith.constant 0 : i32
    %c0_i32_1 = arith.constant 0 : i32
    return %arg0, %arg1, %c0_i32, %c0_i32_0 : i32, i32, i32, i32
  }
  func.func @transform_7(%arg0: i32, %arg1: i32) -> (i32, i32, i32, i32) {
    %c0_i32 = arith.constant 0 : i32
    %c0_i32_0 = arith.constant 0 : i32
    %c0_i32_1 = arith.constant 0 : i32
    return %arg0, %arg1, %c0_i32, %c0_i32_0 : i32, i32, i32, i32
  }
  func.func @transform_8(%arg0: i32, %arg1: i32) -> (i32, i32, i32, i32) {
    %c0_i32 = arith.constant 0 : i32
    %c0_i32_0 = arith.constant 0 : i32
    %c0_i32_1 = arith.constant 0 : i32
    return %arg0, %arg1, %c0_i32, %c0_i32_0 : i32, i32, i32, i32
  }
}

module attributes {stable_mosaic.version = 11 : i64} {
  func.func @_head_stats_kernel(%arg0: i32, %arg1: memref<128x32xbf16, #tpu.memory_space<vmem>>, %arg2: memref<32x512xbf16, #tpu.memory_space<vmem>>, %arg3: memref<1x512xf32, #tpu.memory_space<vmem>>, %arg4: memref<1x1x512xf32, #tpu.memory_space<vmem>>, %arg5: memref<1x1x512xf32, #tpu.memory_space<vmem>>) attributes {dimension_semantics = [#tpu.dimension_semantics<parallel>], iteration_bounds = array<i64: 1>, scalar_prefetch = 0 : i64, scratch_operands = 0 : i64, tpu.core_type = #tpu.core_type<tc>, window_params = [{transform_indices = @transform_0, window_bounds = array<i64: 128, 32>}, {pipeline_mode = #tpu.pipeline_mode<synchronous>, transform_indices = @transform_1, window_bounds = array<i64: 32, 512>}, {pipeline_mode = #tpu.pipeline_mode<synchronous>, transform_indices = @transform_2, window_bounds = array<i64: 1, 512>}, {transform_indices = @transform_3, window_bounds = array<i64: 1, 1, 512>}, {transform_indices = @transform_4, window_bounds = array<i64: 1, 1, 512>}]} {
    %c0 = arith.constant 0 : index
    %c0_0 = arith.constant 0 : index
    %0 = vector.load %arg1[%c0, %c0_0] : memref<128x32xbf16, #tpu.memory_space<vmem>>, vector<128x32xbf16>
    %c0_1 = arith.constant 0 : index
    %c0_2 = arith.constant 0 : index
    %1 = vector.load %arg2[%c0_1, %c0_2] : memref<32x512xbf16, #tpu.memory_space<vmem>>, vector<32x512xbf16>
    %cst = arith.constant dense<0.000000e+00> : vector<128x512xf32>
    %2 = tpu.matmul %0, %1, %cst {dimension_numbers = #tpu.dot_dimension_numbers<[1], [0], [0], [1], [0, 0, 1, 1], [], []>} : vector<128x32xbf16>, vector<32x512xbf16>, vector<128x512xf32> -> vector<128x512xf32>
    %c0_3 = arith.constant 0 : index
    %c0_4 = arith.constant 0 : index
    %3 = vector.load %arg3[%c0_3, %c0_4] : memref<1x512xf32, #tpu.memory_space<vmem>>, vector<1x512xf32>
    %4 = vector.broadcast %3 : vector<1x512xf32> to vector<128x512xf32>
    %5 = arith.addf %2, %4 : vector<128x512xf32>
    %cst_5 = arith.constant dense<0.000000e+00> : vector<512xf32>
    %6 = vector.multi_reduction <add>, %5, %cst_5 [0] : vector<128x512xf32> to vector<512xf32>
    %7 = vector.shape_cast %6 : vector<512xf32> to vector<1x512xf32>
    %c0_6 = arith.constant 0 : index
    %c0_7 = arith.constant 0 : index
    %c0_8 = arith.constant 0 : index
    %8 = vector.load %arg4[%c0_6, %c0_7, %c0_8] : memref<1x1x512xf32, #tpu.memory_space<vmem>>, vector<1x1x512xf32>
    %9 = vector.shape_cast %8 : vector<1x1x512xf32> to vector<1x512xf32>
    %10 = vector.shape_cast %7 : vector<1x512xf32> to vector<1x1x512xf32>
    tpu.vector_store %arg4[%c0_6, %c0_7, %c0_8], %10 {strides = array<i32>} : memref<1x1x512xf32, #tpu.memory_space<vmem>>, vector<1x1x512xf32>,
    %11 = arith.mulf %5, %5 : vector<128x512xf32>
    %cst_9 = arith.constant dense<0.000000e+00> : vector<512xf32>
    %12 = vector.multi_reduction <add>, %11, %cst_9 [0] : vector<128x512xf32> to vector<512xf32>
    %13 = vector.shape_cast %12 : vector<512xf32> to vector<1x512xf32>
    %c0_10 = arith.constant 0 : index
    %c0_11 = arith.constant 0 : index
    %c0_12 = arith.constant 0 : index
    %14 = vector.load %arg5[%c0_10, %c0_11, %c0_12] : memref<1x1x512xf32, #tpu.memory_space<vmem>>, vector<1x1x512xf32>
    %15 = vector.shape_cast %14 : vector<1x1x512xf32> to vector<1x512xf32>
    %16 = vector.shape_cast %13 : vector<1x512xf32> to vector<1x1x512xf32>
    tpu.vector_store %arg5[%c0_10, %c0_11, %c0_12], %16 {strides = array<i32>} : memref<1x1x512xf32, #tpu.memory_space<vmem>>, vector<1x1x512xf32>,
    return
  }
  func.func @transform_0(%arg0: i32) -> (i32, i32) {
    %c0_i32 = arith.constant 0 : i32
    %c0_i32_0 = arith.constant 0 : i32
    return %arg0, %c0_i32 : i32, i32
  }
  func.func @transform_1(%arg0: i32) -> (i32, i32) {
    %c0_i32 = arith.constant 0 : i32
    %c0_i32_0 = arith.constant 0 : i32
    %c0_i32_1 = arith.constant 0 : i32
    return %c0_i32, %c0_i32_0 : i32, i32
  }
  func.func @transform_2(%arg0: i32) -> (i32, i32) {
    %c0_i32 = arith.constant 0 : i32
    %c0_i32_0 = arith.constant 0 : i32
    %c0_i32_1 = arith.constant 0 : i32
    return %c0_i32, %c0_i32_0 : i32, i32
  }
  func.func @transform_3(%arg0: i32) -> (i32, i32, i32) {
    %c0_i32 = arith.constant 0 : i32
    %c0_i32_0 = arith.constant 0 : i32
    %c0_i32_1 = arith.constant 0 : i32
    return %arg0, %c0_i32, %c0_i32_0 : i32, i32, i32
  }
  func.func @transform_4(%arg0: i32) -> (i32, i32, i32) {
    %c0_i32 = arith.constant 0 : i32
    %c0_i32_0 = arith.constant 0 : i32
    %c0_i32_1 = arith.constant 0 : i32
    return %arg0, %c0_i32, %c0_i32_0 : i32, i32, i32
  }
}

module attributes {stable_mosaic.version = 11 : i64} {
  func.func @_head_out_kernel(%arg0: i32, %arg1: memref<128x32xbf16, #tpu.memory_space<vmem>>, %arg2: memref<32x512xbf16, #tpu.memory_space<vmem>>, %arg3: memref<1x512xf32, #tpu.memory_space<vmem>>, %arg4: memref<1x512xf32, #tpu.memory_space<vmem>>, %arg5: memref<1x512xf32, #tpu.memory_space<vmem>>, %arg6: memref<1x512xf32, #tpu.memory_space<vmem>>, %arg7: memref<1x512xf32, #tpu.memory_space<vmem>>, %arg8: memref<512x64xbf16, #tpu.memory_space<vmem>>, %arg9: memref<1x64xf32, #tpu.memory_space<vmem>>, %arg10: memref<128x1xi32, #tpu.memory_space<vmem>>, %arg11: memref<128x64xf32, #tpu.memory_space<vmem>>, %arg12: memref<1x1x1xf32, #tpu.memory_space<vmem>>) attributes {dimension_semantics = [#tpu.dimension_semantics<parallel>], iteration_bounds = array<i64: 1>, scalar_prefetch = 0 : i64, scratch_operands = 0 : i64, tpu.core_type = #tpu.core_type<tc>, window_params = [{transform_indices = @transform_0, window_bounds = array<i64: 128, 32>}, {pipeline_mode = #tpu.pipeline_mode<synchronous>, transform_indices = @transform_1, window_bounds = array<i64: 32, 512>}, {pipeline_mode = #tpu.pipeline_mode<synchronous>, transform_indices = @transform_2, window_bounds = array<i64: 1, 512>}, {pipeline_mode = #tpu.pipeline_mode<synchronous>, transform_indices = @transform_3, window_bounds = array<i64: 1, 512>}, {pipeline_mode = #tpu.pipeline_mode<synchronous>, transform_indices = @transform_4, window_bounds = array<i64: 1, 512>}, {pipeline_mode = #tpu.pipeline_mode<synchronous>, transform_indices = @transform_5, window_bounds = array<i64: 1, 512>}, {pipeline_mode = #tpu.pipeline_mode<synchronous>, transform_indices = @transform_6, window_bounds = array<i64: 1, 512>}, {pipeline_mode = #tpu.pipeline_mode<synchronous>, transform_indices = @transform_7, window_bounds = array<i64: 512, 64>}, {pipeline_mode = #tpu.pipeline_mode<synchronous>, transform_indices = @transform_8, window_bounds = array<i64: 1, 64>}, {transform_indices = @transform_9, window_bounds = array<i64: 128, 1>}, {transform_indices = @transform_10, window_bounds = array<i64: 128, 64>}, {transform_indices = @transform_11, window_bounds = array<i64: 1, 1, 1>}]} {
    %c0 = arith.constant 0 : index
    %c0_0 = arith.constant 0 : index
    %0 = vector.load %arg1[%c0, %c0_0] : memref<128x32xbf16, #tpu.memory_space<vmem>>, vector<128x32xbf16>
    %c0_1 = arith.constant 0 : index
    %c0_2 = arith.constant 0 : index
    %1 = vector.load %arg2[%c0_1, %c0_2] : memref<32x512xbf16, #tpu.memory_space<vmem>>, vector<32x512xbf16>
    %cst = arith.constant dense<0.000000e+00> : vector<128x512xf32>
    %2 = tpu.matmul %0, %1, %cst {dimension_numbers = #tpu.dot_dimension_numbers<[1], [0], [0], [1], [0, 0, 1, 1], [], []>} : vector<128x32xbf16>, vector<32x512xbf16>, vector<128x512xf32> -> vector<128x512xf32>
    %c0_3 = arith.constant 0 : index
    %c0_4 = arith.constant 0 : index
    %3 = vector.load %arg3[%c0_3, %c0_4] : memref<1x512xf32, #tpu.memory_space<vmem>>, vector<1x512xf32>
    %4 = vector.broadcast %3 : vector<1x512xf32> to vector<128x512xf32>
    %5 = arith.addf %2, %4 : vector<128x512xf32>
    %c0_5 = arith.constant 0 : index
    %c0_6 = arith.constant 0 : index
    %6 = vector.load %arg4[%c0_5, %c0_6] : memref<1x512xf32, #tpu.memory_space<vmem>>, vector<1x512xf32>
    %7 = vector.broadcast %6 : vector<1x512xf32> to vector<128x512xf32>
    %8 = arith.subf %5, %7 : vector<128x512xf32>
    %c0_7 = arith.constant 0 : index
    %c0_8 = arith.constant 0 : index
    %9 = vector.load %arg5[%c0_7, %c0_8] : memref<1x512xf32, #tpu.memory_space<vmem>>, vector<1x512xf32>
    %10 = vector.broadcast %9 : vector<1x512xf32> to vector<128x512xf32>
    %11 = arith.mulf %8, %10 : vector<128x512xf32>
    %c0_9 = arith.constant 0 : index
    %c0_10 = arith.constant 0 : index
    %12 = vector.load %arg6[%c0_9, %c0_10] : memref<1x512xf32, #tpu.memory_space<vmem>>, vector<1x512xf32>
    %13 = vector.broadcast %12 : vector<1x512xf32> to vector<128x512xf32>
    %14 = arith.mulf %11, %13 : vector<128x512xf32>
    %c0_11 = arith.constant 0 : index
    %c0_12 = arith.constant 0 : index
    %15 = vector.load %arg7[%c0_11, %c0_12] : memref<1x512xf32, #tpu.memory_space<vmem>>, vector<1x512xf32>
    %16 = vector.broadcast %15 : vector<1x512xf32> to vector<128x512xf32>
    %17 = arith.addf %14, %16 : vector<128x512xf32>
    %cst_13 = arith.constant 0.000000e+00 : f32
    %18 = vector.broadcast %cst_13 : f32 to vector<128x512xf32>
    %19 = arith.maximumf %17, %18 : vector<128x512xf32>
    %20 = arith.truncf %19 : vector<128x512xf32> to vector<128x512xbf16>
    %c0_14 = arith.constant 0 : index
    %c0_15 = arith.constant 0 : index
    %21 = vector.load %arg8[%c0_14, %c0_15] : memref<512x64xbf16, #tpu.memory_space<vmem>>, vector<512x64xbf16>
    %cst_16 = arith.constant dense<0.000000e+00> : vector<128x64xf32>
    %22 = tpu.matmul %20, %21, %cst_16 {dimension_numbers = #tpu.dot_dimension_numbers<[1], [0], [0], [1], [0, 0, 1, 1], [], []>} : vector<128x512xbf16>, vector<512x64xbf16>, vector<128x64xf32> -> vector<128x64xf32>
    %c0_17 = arith.constant 0 : index
    %c0_18 = arith.constant 0 : index
    %23 = vector.load %arg9[%c0_17, %c0_18] : memref<1x64xf32, #tpu.memory_space<vmem>>, vector<1x64xf32>
    %24 = vector.broadcast %23 : vector<1x64xf32> to vector<128x64xf32>
    %25 = arith.addf %22, %24 : vector<128x64xf32>
    %c0_19 = arith.constant 0 : index
    %c0_20 = arith.constant 0 : index
    %26 = vector.load %arg11[%c0_19, %c0_20] : memref<128x64xf32, #tpu.memory_space<vmem>>, vector<128x64xf32>
    tpu.vector_store %arg11[%c0_19, %c0_20], %25 {strides = array<i32>} : memref<128x64xf32, #tpu.memory_space<vmem>>, vector<128x64xf32>,
    %cst_21 = arith.constant dense<0xFF800000> : vector<128xf32>
    %27 = vector.multi_reduction <maximumf>, %25, %cst_21 [1] : vector<128x64xf32> to vector<128xf32>
    %28 = vector.shape_cast %27 : vector<128xf32> to vector<128x1xf32>
    %29 = vector.broadcast %28 : vector<128x1xf32> to vector<128x64xf32>
    %30 = arith.subf %25, %29 : vector<128x64xf32>
    %31 = math.exp %30 : vector<128x64xf32>
    %cst_22 = arith.constant dense<0.000000e+00> : vector<128xf32>
    %32 = vector.multi_reduction <add>, %31, %cst_22 [1] : vector<128x64xf32> to vector<128xf32>
    %33 = vector.shape_cast %32 : vector<128xf32> to vector<128x1xf32>
    %34 = math.log %33 : vector<128x1xf32>
    %35 = arith.addf %34, %28 : vector<128x1xf32>
    %36 = tpu.iota {dimensions = array<i32: 1>} : vector<128x64xi32>
    %c0_23 = arith.constant 0 : index
    %c0_24 = arith.constant 0 : index
    %37 = vector.load %arg10[%c0_23, %c0_24] : memref<128x1xi32, #tpu.memory_space<vmem>>, vector<128x1xi32>
    %38 = vector.broadcast %37 : vector<128x1xi32> to vector<128x64xi32>
    %39 = arith.cmpi eq, %36, %38 : vector<128x64xi32>
    %cst_25 = arith.constant 0.000000e+00 : f32
    %40 = vector.broadcast %cst_25 : f32 to vector<128x64xf32>
    %41 = arith.select %39, %25, %40 : vector<128x64xi1>, vector<128x64xf32>
    %cst_26 = arith.constant dense<0.000000e+00> : vector<128xf32>
    %42 = vector.multi_reduction <add>, %41, %cst_26 [1] : vector<128x64xf32> to vector<128xf32>
    %43 = vector.shape_cast %42 : vector<128xf32> to vector<128x1xf32>
    %44 = arith.subf %35, %43 : vector<128x1xf32>
    %cst_27 = arith.constant dense<0.000000e+00> : vector<1xf32>
    %45 = vector.multi_reduction <add>, %44, %cst_27 [0] : vector<128x1xf32> to vector<1xf32>
    %46 = vector.shape_cast %45 : vector<1xf32> to vector<1x1xf32>
    %c0_28 = arith.constant 0 : index
    %c0_29 = arith.constant 0 : index
    %c0_30 = arith.constant 0 : index
    %47 = vector.load %arg12[%c0_28, %c0_29, %c0_30] : memref<1x1x1xf32, #tpu.memory_space<vmem>>, vector<1x1x1xf32>
    %48 = vector.shape_cast %47 : vector<1x1x1xf32> to vector<1x1xf32>
    %49 = vector.shape_cast %46 : vector<1x1xf32> to vector<1x1x1xf32>
    tpu.vector_store %arg12[%c0_28, %c0_29, %c0_30], %49 {strides = array<i32>} : memref<1x1x1xf32, #tpu.memory_space<vmem>>, vector<1x1x1xf32>,
    return
  }
  func.func @transform_0(%arg0: i32) -> (i32, i32) {
    %c0_i32 = arith.constant 0 : i32
    %c0_i32_0 = arith.constant 0 : i32
    return %arg0, %c0_i32 : i32, i32
  }
  func.func @transform_1(%arg0: i32) -> (i32, i32) {
    %c0_i32 = arith.constant 0 : i32
    %c0_i32_0 = arith.constant 0 : i32
    %c0_i32_1 = arith.constant 0 : i32
    return %c0_i32, %c0_i32_0 : i32, i32
  }
  func.func @transform_2(%arg0: i32) -> (i32, i32) {
    %c0_i32 = arith.constant 0 : i32
    %c0_i32_0 = arith.constant 0 : i32
    %c0_i32_1 = arith.constant 0 : i32
    return %c0_i32, %c0_i32_0 : i32, i32
  }
  func.func @transform_3(%arg0: i32) -> (i32, i32) {
    %c0_i32 = arith.constant 0 : i32
    %c0_i32_0 = arith.constant 0 : i32
    %c0_i32_1 = arith.constant 0 : i32
    return %c0_i32, %c0_i32_0 : i32, i32
  }
  func.func @transform_4(%arg0: i32) -> (i32, i32) {
    %c0_i32 = arith.constant 0 : i32
    %c0_i32_0 = arith.constant 0 : i32
    %c0_i32_1 = arith.constant 0 : i32
    return %c0_i32, %c0_i32_0 : i32, i32
  }
  func.func @transform_5(%arg0: i32) -> (i32, i32) {
    %c0_i32 = arith.constant 0 : i32
    %c0_i32_0 = arith.constant 0 : i32
    %c0_i32_1 = arith.constant 0 : i32
    return %c0_i32, %c0_i32_0 : i32, i32
  }
  func.func @transform_6(%arg0: i32) -> (i32, i32) {
    %c0_i32 = arith.constant 0 : i32
    %c0_i32_0 = arith.constant 0 : i32
    %c0_i32_1 = arith.constant 0 : i32
    return %c0_i32, %c0_i32_0 : i32, i32
  }
  func.func @transform_7(%arg0: i32) -> (i32, i32) {
    %c0_i32 = arith.constant 0 : i32
    %c0_i32_0 = arith.constant 0 : i32
    %c0_i32_1 = arith.constant 0 : i32
    return %c0_i32, %c0_i32_0 : i32, i32
  }
  func.func @transform_8(%arg0: i32) -> (i32, i32) {
    %c0_i32 = arith.constant 0 : i32
    %c0_i32_0 = arith.constant 0 : i32
    %c0_i32_1 = arith.constant 0 : i32
    return %c0_i32, %c0_i32_0 : i32, i32
  }
  func.func @transform_9(%arg0: i32) -> (i32, i32) {
    %c0_i32 = arith.constant 0 : i32
    %c0_i32_0 = arith.constant 0 : i32
    return %arg0, %c0_i32 : i32, i32
  }
  func.func @transform_10(%arg0: i32) -> (i32, i32) {
    %c0_i32 = arith.constant 0 : i32
    %c0_i32_0 = arith.constant 0 : i32
    return %arg0, %c0_i32 : i32, i32
  }
  func.func @transform_11(%arg0: i32) -> (i32, i32, i32) {
    %c0_i32 = arith.constant 0 : i32
    %c0_i32_0 = arith.constant 0 : i32
    %c0_i32_1 = arith.constant 0 : i32
    return %arg0, %c0_i32, %c0_i32_0 : i32, i32, i32
  }
}

</mosaic_0001>

<bundles_post_ra>
// kernel: _lambda_.20
= control target key start
LH: loop header
LB: loop body
LE: loop exit
PB: predicated region body
PF: predicated region fallthrough
CT: control target
= control target key end

     0   :  { %s598_s18 = smov 0   ;;  %s600_s19 = smov 0   ;;  %s658_s0 = inlined_call_operand.vmem [shape: bf16[2,64,32], index: 0, kind: input, shape index: {}]   ;;  %s659_s1 = inlined_call_operand.vmem [shape: f32[1,32], index: 1, kind: input, shape index: {}]   ;;  %s660_s2 = inlined_call_operand.vmem [shape: f32[1,32], index: 2, kind: input, shape index: {}]   ;;  %s661_s3 = inlined_call_operand.vmem [shape: f32[1,32], index: 3, kind: input, shape index: {}]   ;;  %s662_s4 = inlined_call_operand.vmem [shape: f32[1,32], index: 4, kind: input, shape index: {}]   ;;  %s663_s5 = inlined_call_operand.vmem [shape: bf16[2,64,32], index: 5, kind: output, shape index: {}]  }
   0x1   :  { %s602_s20 = smov 0  }
   0x2 LB: > { %s27_s21 = sadd.s32 1, %s562_s19  ;;  %p472_p0 = scmp.ge.s32.totalorder %s566_s20, 1  ;;  %s566_s20 = sphi %s602_s20, %s15_s20   ;;  %s562_s19 = sphi %s600_s19, %s665_s19   ;;  %s558_s18 = sphi %s598_s18, %s664_s18  }
   0x3   : > { %p29_p1 = scmp.ge.s32.totalorder %s27_s21, 2  ;;  %p208_p2 = scmp.lt.s32.totalorder %s566_s20, 3 }
   0x5   : > { %s667_s21 = smov (%p29_p1, %s27_s21), 0  ;;  %p209_p3 = pnand %p472_p0, %p208_p2 }
   0x6   : > { %p245_p4 = scmp.lt.s32.totalorder (!%p209_p3), %s558_s18, 1  ;;  %v477_v0 = vld [vmem:[%s659_s1] ss:$0 sm:$0xff] (!%p209_p3)  ;;  %vm372_vm0 = vcmask (!%p209_p3), 257024  }
   0x7   : > { %212 = sbr.rel (%p209_p3) target bundleno = 34 (0x22), region = 40  ;;  %v478_v9 = vld [vmem:[%s660_s2] ss:$0 sm:$0xff] (!%p209_p3) }
   0x8   : > { %v479_v18 = vld [vmem:[%s661_s3] ss:$0 sm:$0xff] (!%p209_p3) }
   0x9   : > { %v480_v27 = vld [vmem:[%s662_s4] ss:$0 sm:$0xff] (!%p209_p3) }
   0xe   : > { %s669_s18 = smov (!%p245_p4, %s558_s18), 1 }
   0xf   : > { %s491_s22 = sshll.u32 %s669_s18, 5 }
  0x10   : > { %s252_s25 = scalar_lea.vmem %s658_s0, %s491_s22  ;;  %s262_s11 = scalar_lea.vmem %s663_s5, %s491_s22 }
  0x11   : > { %v502_v1 = vld [vmem:[%s252_s25] sm:$0xff]   ;;  %v517_v2 = vld [vmem:[%s252_s25 + $0x8] sm:$0xff]   ;;  %v518_v3 = vld [vmem:[%s252_s25 + $0x10] sm:$0xff]  }
  0x12   : > { %v503_v4 = vunpack.c.l.bf16 %v502_v1  ;;  %v504_v5 = vunpack.c.h.bf16 %v502_v1  ;;  %v507_v6 = vunpack.c.l.bf16 %v517_v2  ;;  %v508_v7 = vunpack.c.h.bf16 %v517_v2  ;;  %v519_v8 = vld [vmem:[%s252_s25 + $0x18] sm:$0xff]  }
  0x13   : > { %v511_v10 = vunpack.c.l.bf16 %v518_v3  ;;  %v512_v11 = vunpack.c.h.bf16 %v518_v3  ;;  %v515_v12 = vunpack.c.l.bf16 %v519_v8  ;;  %v516_v13 = vunpack.c.h.bf16 %v519_v8 }
  0x14   : > { %v287_v14 = vsub.f32 %v503_v4, %v477_v0  ;;  %v288_v15 = vsub.f32 %v504_v5, %v477_v0  ;;  %v289_v16 = vsub.f32 %v507_v6, %v477_v0  ;;  %v290_v17 = vsub.f32 %v508_v7, %v477_v0 }
  0x15   : > { %v291_v19 = vsub.f32 %v511_v10, %v477_v0  ;;  %v292_v20 = vsub.f32 %v512_v11, %v477_v0  ;;  %v293_v21 = vsub.f32 %v515_v12, %v477_v0  ;;  %v294_v22 = vsub.f32 %v516_v13, %v477_v0 }
  0x16   : > { %v302_v23 = vmul.f32 %v478_v9, %v287_v14  ;;  %v303_v24 = vmul.f32 %v478_v9, %v288_v15  ;;  %v304_v25 = vmul.f32 %v478_v9, %v289_v16  ;;  %v305_v26 = vmul.f32 %v478_v9, %v290_v17 }
  0x17   : > { %v306_v28 = vmul.f32 %v478_v9, %v291_v19  ;;  %v307_v29 = vmul.f32 %v478_v9, %v292_v20  ;;  %v308_v30 = vmul.f32 %v478_v9, %v293_v21  ;;  %v309_v31 = vmul.f32 %v478_v9, %v294_v22 }
  0x18   : > { %v317_v32 = vmul.f32 %v479_v18, %v302_v23  ;;  %v318_v33 = vmul.f32 %v479_v18, %v303_v24  ;;  %v319_v34 = vmul.f32 %v479_v18, %v304_v25  ;;  %v320_v35 = vmul.f32 %v479_v18, %v305_v26 }
  0x19   : > { %v321_v36 = vmul.f32 %v479_v18, %v306_v28  ;;  %v322_v37 = vmul.f32 %v479_v18, %v307_v29  ;;  %v323_v38 = vmul.f32 %v479_v18, %v308_v30  ;;  %v324_v39 = vmul.f32 %v479_v18, %v309_v31 }
  0x1a   : > { %v332_v40 = vadd.f32 %v480_v27, %v317_v32  ;;  %v333_v41 = vadd.f32 %v480_v27, %v318_v33  ;;  %v334_v42 = vadd.f32 %v480_v27, %v319_v34  ;;  %v335_v43 = vadd.f32 %v480_v27, %v320_v35 }
  0x1b   : > { %v336_v44 = vadd.f32 %v480_v27, %v321_v36  ;;  %v337_v45 = vadd.f32 %v480_v27, %v322_v37  ;;  %v338_v46 = vadd.f32 %v480_v27, %v323_v38  ;;  %v339_v47 = vadd.f32 %v480_v27, %v324_v39 }
  0x1c   : > { %v493_v48 = vpack.c.bf16 %v332_v40, %v332_v40  ;;  %v494_v49 = vpack.c.bf16 %v333_v41, %v333_v41  ;;  %v495_v50 = vpack.c.bf16 %v334_v42, %v334_v42  ;;  %v496_v51 = vpack.c.bf16 %v335_v43, %v335_v43 }
  0x1d   : > { %v497_v52 = vpack.c.bf16 %v336_v44, %v336_v44  ;;  %v498_v53 = vpack.c.bf16 %v337_v45, %v337_v45  ;;  %v499_v54 = vpack.c.bf16 %v338_v46, %v338_v46  ;;  %v500_v55 = vpack.c.bf16 %v339_v47, %v339_v47 }
  0x1e   : > { %373 = vst.msk [vmem:[%s262_s11] sm:$0xf] %vm372_vm0, %v493_v48  ;;  %374 = vst.msk [vmem:[%s262_s11 + $0x4] sm:$0xf] %vm372_vm0, %v494_v49 }
  0x1f   : > { %375 = vst.msk [vmem:[%s262_s11 + $0x8] sm:$0xf] %vm372_vm0, %v495_v50  ;;  %376 = vst.msk [vmem:[%s262_s11 + $0xc] sm:$0xf] %vm372_vm0, %v496_v51 }
  0x20   : > { %377 = vst.msk [vmem:[%s262_s11 + $0x10] sm:$0xf] %vm372_vm0, %v497_v52  ;;  %378 = vst.msk [vmem:[%s262_s11 + $0x14] sm:$0xf] %vm372_vm0, %v498_v53 }
  0x21   : > { %379 = vst.msk [vmem:[%s262_s11 + $0x18] sm:$0xf] %vm372_vm0, %v499_v54  ;;  %380 = vst.msk [vmem:[%s262_s11 + $0x1c] sm:$0xf] %vm372_vm0, %v500_v55 }
  0x22 PF: > { %s15_s20 = sadd.s32 1, %s566_s20   ;;  %s664_s18 = smov %s562_s19 }
  0x23   : > { %p12_p5 = scmp.ge.s32.totalorder %s15_s20, 4   ;;  %s665_s19 = smov %s667_s21 }
  0x25   :  { %14 = sbr.rel (!%p12_p5) target bundleno = 2 (0x2), region = 70 }

// kernel: _lambda_.18
= control target key start
LH: loop header
LB: loop body
LE: loop exit
PB: predicated region body
PF: predicated region fallthrough
CT: control target
= control target key end

     0   :  { %s1491_s17 = smov 0   ;;  %s1493_s18 = smov 0   ;;  %s1663_s0 = inlined_call_operand.vmem [shape: bf16[2,11,8,32], index: 0, kind: input, shape index: {}, may-alias: {0,1,2,3}]   ;;  %s1664_s1 = inlined_call_operand.vmem [shape: bf16[2,11,8,32], index: 1, kind: input, shape index: {}, may-alias: {0,1,2,3}]   ;;  %s1665_s2 = inlined_call_operand.vmem [shape: bf16[2,11,8,32], index: 2, kind: input, shape index: {}, may-alias: {0,1,2,3}]   ;;  %s1666_s3 = inlined_call_operand.vmem [shape: bf16[2,11,8,32], index: 3, kind: input, shape index: {}, may-alias: {0,1,2,3}]   ;;  %s1667_s4 = inlined_call_operand.vmem [shape: bf16[2,8,8,64], index: 4, kind: input, shape index: {}]   ;;  %s1668_s5 = inlined_call_operand.vmem [shape: bf16[4,32,64], index: 5, kind: input, shape index: {}]   ;;  %s1669_s6 = inlined_call_operand.vmem [shape: bf16[64,64], index: 6, kind: input, shape index: {}]   ;;  %s1670_s7 = inlined_call_operand.vmem [shape: f32[1,64], index: 7, kind: input, shape index: {}]   ;;  %s1671_s8 = inlined_call_operand.vmem [shape: f32[2,1,64], index: 8, kind: input, shape index: {}]   ;;  %s1672_s9 = inlined_call_operand.vmem [shape: bf16[2,8,8,64], index: 9, kind: output, shape index: {0}]   ;;  %s1673_s10 = inlined_call_operand.vmem [shape: f32[2,8,1,32], index: 10, kind: output, shape index: {1}]   ;;  %s1674_s11 = inlined_call_operand.vmem [shape: f32[2,8,1,32], index: 11, kind: output, shape index: {2}]  }
   0x1   :  { %1676 = sst [smem:[#allocation3_spill]] %s1663_s0  ;;  %s1495_s19 = smov 0  }
   0x2   :  { %s1497_s20 = smov 0   ;;  %s1499_s21 = smov 0  }
   0x3 LB: > { %s31_s22 = sadd.s32 1, %s1419_s19  ;;  %s34_s23 = sadd.s32 1, %s1423_s20  ;;  %s1427_s21 = sphi %s1499_s21, %s22_s21   ;;  %s1423_s20 = sphi %s1497_s20, %s1684_s20   ;;  %s1419_s19 = sphi %s1495_s19, %s1683_s19   ;;  %s1415_s18 = sphi %s1493_s18, %s1682_s18   ;;  %s1411_s17 = sphi %s1491_s17, %s1681_s17  }
   0x4   : > { %p32_p0 = scmp.ge.s32.totalorder %s31_s22, 8  ;;  %p1229_p1 = scmp.ge.s32.totalorder %s1427_s21, 1 }
   0x5   : > { %p445_p2 = scmp.lt.s32.totalorder %s1427_s21, 17 }
   0x6   : > { %s1686_s22 = smov (%p32_p0, %s31_s22), 0  ;;  %s1688_s23 = smov (!%p32_p0, %s34_s23), %s1423_s20 }
   0x7   : > { %p446_p3 = pnand %p1229_p1, %p445_p2  ;;  %p36_p4 = scmp.ge.s32.totalorder %s1688_s23, 2 }
   0x8   : > { %v1377_v0 = vld [vmem:[%s1668_s5] sm:$0xff] (!%p446_p3)   ;;  %v1429_v1 = vmov (!%p446_p3), 0.0   ;;  %v1379_v3 = vld [vmem:[%s1668_s5 + $0x8] sm:$0xff] (!%p446_p3)   ;;  %vm1430_vm0 = vmmov (!%p446_p3), 0   ;;  %p543_p5 = scmp.lt.s32.totalorder (!%p446_p3), %s1415_s18, 1  ;;  %p545_p6 = scmp.lt.s32.totalorder (!%p446_p3), %s1411_s17, 10 }
   0x9   : > { %s1690_s23 = smov (%p36_p4, %s1688_s23), 0  ;;  %449 = sbr.rel (%p446_p3) target bundleno = 276 (0x114), region = 56 }
   0xa   : > { %1677 = sst [smem:[#allocation2_spill]] %s1690_s23  ;;  %1290 = vmatprep.subr.bf16.mxu0 (!%p446_p3), %v1429_v1  ;;  %1298 = vmatprep.subr.bf16.mxu1 (!%p446_p3), %v1429_v1  ;;  %v1378_v2 = vld [vmem:[%s1669_s6] sm:$0xff] (!%p446_p3)   ;;  %v1380_v4 = vld [vmem:[%s1669_s6 + $0x8] sm:$0xff] (!%p446_p3)   ;;  %v1381_v5 = vld [vmem:[%s1669_s6 + $0x10] sm:$0xff] (!%p446_p3)   ;;  %p583_p7 = scmp.lt.s32.totalorder (!%p446_p3), %s1411_s17, 7  ;;  %vm641_vm1 = vcmask (!%p446_p3), 261120  }
   0xb   : > { %1291 = vmatpush3.bf16.msra.mxu0 (!%p446_p3), %v1377_v0  ;;  %1294 = vmatprep.mubr.msk.bf16.mxu0 (!%p446_p3), %vm1430_vm0, %v1429_v1  ;;  %v1382_v6 = vld [vmem:[%s1668_s5 + $0x10] sm:$0xff] (!%p446_p3)   ;;  %s551_s29 = sadd.s32 (!%p446_p3), 1, %s1411_s17  ;;  %s1678_s0 = sld [smem:[#allocation3_spill]] (!%p446_p3)  ;;  %v1383_v8 = vld [vmem:[%s1669_s6 + $0x18] sm:$0xff] (!%p446_p3)   ;;  %vm709_vm2 = vcmask (!%p446_p3), 523264   ;;  %v1385_v12 = vld [vmem:[%s1668_s5 + $0x20] sm:$0xff] (!%p446_p3)  }
   0xc   : > { %1299 = vmatpush3.bf16.msra.mxu1 (!%p446_p3), %v1378_v2  ;;  %1292 = vmatprep.subr.bf16.mxu0 (!%p446_p3), %v1429_v1  ;;  %p554_p8 = scmp.lt.s32.totalorder (!%p446_p3), %s551_s29, 10  ;;  %v1384_v9 = vld [vmem:[%s1668_s5 + $0x18] sm:$0xff] (!%p446_p3)   ;;  %v1386_v10 = vld [vmem:[%s1668_s5 + $0x30] sm:$0xff] (!%p446_p3)   ;;  %v1387_v15 = vld [vmem:[%s1668_s5 + $0x28] sm:$0xff] (!%p446_p3)   ;;  %vm956_vm3 = vcmask (!%p446_p3), 519168   ;;  %vm965_vm4 = vcmask (!%p446_p3), 253952  }
   0xd   : > { %1300 = vmatprep.subr.bf16.mxu1 (!%p446_p3), %v1429_v1  ;;  %1306 = vmatprep.mubr.msk.bf16.mxu1 (!%p446_p3), %vm1430_vm0, %v1429_v1  ;;  %v1388_v14 = vld [vmem:[%s1668_s5 + $0x38] sm:$0xff] (!%p446_p3)   ;;  %v1269_v36 = vld [vmem:[%s1670_s7] ss:$0 sm:$0xff] (!%p446_p3) }
   0xf   : > { %1293 = vmatpush3.bf16.msra.mxu0 (!%p446_p3), %v1379_v3 }
  0x10   : > { %s1692_s18 = smov (!%p543_p5, %s1415_s18), 1  ;;  %1301 = vmatpush3.bf16.msra.mxu1 %v1380_v4  ;;  %1310 = vmatprep.subr.bf16.mxu0 %v1429_v1  ;;  %s1694_s29 = smov (!%p554_p8, %s551_s29), 10 }
  0x11   : > { %s546_s13 = scalar_select %p545_p6, %s1411_s17, 10  ;;  %1302 = vmatprep.subr.bf16.mxu1 %v1429_v1 }
  0x12   : > { %s1552_s14 = smul.u32 11, %s1692_s18  ;;  %s1234_s27 = sshll.u32 %s1692_s18, 3 }
  0x13   : > { %s584_s16 = scalar_select %p583_p7, %s1411_s17, 7 }
  0x14   : > { %s548_s24 = sadd.s32 %s1552_s14, %s546_s13  ;;  %1303 = vmatpush3.bf16.msra.mxu1 %v1381_v5  ;;  %s571_s13 = sadd.s32 3, %s1411_s17 }
  0x15   : > { %s1230_s28 = sshll.u32 %s548_s24, 2  ;;  %1304 = vmatprep.subr.bf16.mxu1 %v1429_v1  ;;  %p574_p10 = scmp.lt.s32.totalorder %s571_s13, 10 }
  0x16   : > { %s550_s23 = scalar_lea.vmem %s1678_s0, %s1230_s28  ;;  %s561_s28 = sadd.s32 2, %s1411_s17 }
  0x17   : > { %v624_v7 = vld [vmem:[%s550_s23] sm:$0xf]  ;;  %s1580_s23 = sadd.s32 %s1234_s27, %s584_s16  ;;  %s557_s27 = sadd.s32 %s1552_s14, %s1694_s29 }
  0x18   : > { %1295 = vmatmul.mubr.msk.bf16.vlgmr.msra.gmra.mrb[0].mxu0 %vm641_vm1, %v624_v7  ;;  %s1675_s26 = sshll.u32 %s1580_s23, 2  ;;  %1305 = vmatpush3.bf16.msra.mxu1 %v1383_v8  ;;  %s1231_s16 = sshll.u32 %s557_s27, 2 }
  0x19   : > { %1311 = vmatpush3.bf16.msra.mxu0 %v1382_v6  ;;  %1314 = vmatprep.mubr.msk.bf16.mxu0 %vm1430_vm0, %v1429_v1  ;;  %s588_s15 = scalar_lea.vmem %s1667_s4, %s1675_s26  ;;  %p564_p9 = scmp.lt.s32.totalorder %s561_s28, 10 }
  0x1a   : > { %1312 = vmatprep.subr.bf16.mxu0 %v1429_v1  ;;  %v615_v11 = vld [vmem:[%s588_s15] sm:$0xf]  ;;  %1326 = vmatprep.subr.bf16.mxu1 %v1429_v1  ;;  %s559_s26 = scalar_lea.vmem %s1664_s1, %s1231_s16  ;;  %s1698_s13 = smov (!%p574_p10, %s571_s13), 10 }
  0x1b   : > { %1307 = vmatmul.mubr.msk.bf16.vlgmr.msra.gmra.mrb[0].mxu1 %vm709_vm2, %v615_v11  ;;  %v753_v13 = vld [vmem:[%s559_s26] sm:$0xf]  ;;  %s1696_s28 = smov (!%p564_p9, %s561_s28), 10  ;;  %s577_s30 = sadd.s32 %s1552_s14, %s1698_s13 }
  0x1c   : > { %1327 = vmatpush3.bf16.msra.mxu1 %v1386_v10  ;;  %1330 = vmatprep.mubr.msk.bf16.mxu1 %vm1430_vm0, %v1429_v1  ;;  %s567_s17 = sadd.s32 %s1552_s14, %s1696_s28  ;;  %s1233_s12 = sshll.u32 %s577_s30, 2 }
  0x1d   : > { %1313 = vmatpush3.bf16.msra.mxu0 %v1384_v9  ;;  %1328 = vmatprep.subr.bf16.mxu1 %v1429_v1  ;;  %s1232_s26 = sshll.u32 %s567_s17, 2  ;;  %s579_s0 = scalar_lea.vmem %s1666_s3, %s1233_s12 }
  0x1e   : > { %1318 = vmatprep.subr.bf16.mxu0 %v1429_v1  ;;  %s569_s25 = scalar_lea.vmem %s1665_s2, %s1232_s26  ;;  %v877_v17 = vld [vmem:[%s579_s0] sm:$0xf]  ;;  %s591_s13 = scalar_lea.vmem %s1671_s8, %s1692_s18 }
  0x1f   : > { %v815_v16 = vld [vmem:[%s569_s25] sm:$0xf]  ;;  %s1679_s26 = sshll.u32 %s1580_s23, 2  ;;  %s606_s12 = scalar_lea.vmem %s1673_s10, %s1580_s23 }
  0x20   : > { %1315 = vmatmul.mubr.msk.bf16.vlgmr.msra.gmra.mrb[4].mxu0 %vm641_vm1, %v753_v13  ;;  %1329 = vmatpush3.bf16.msra.mxu1 %v1388_v14  ;;  %v1270_v41 = vld [vmem:[%s591_s13] ss:$0 sm:$0xff]  ;;  %s599_s18 = scalar_lea.vmem %s1672_s9, %s1679_s26  ;;  %s613_s0 = scalar_lea.vmem %s1674_s11, %s1580_s23 }
  0x21   : > { %1319 = vmatpush3.bf16.msra.mxu0 %v1385_v12  ;;  %1322 = vmatprep.mubr.msk.bf16.mxu0 %vm1430_vm0, %v1429_v1 }
  0x22   : > { %1320 = vmatprep.subr.bf16.mxu0 %v1429_v1 }
  0x23   : > { %1331 = vmatmul.mubr.msk.bf16.vlgmr.msra.gmra.mrb[4].mxu1 %vm641_vm1, %v877_v17 }
  0x25   : > { %1321 = vmatpush3.bf16.msra.mxu0 %v1387_v15 }
  0x28   : > { %1323 = vmatmul.mubr.msk.bf16.vlgmr.msra.gmra.mrb[8].mxu0 %vm641_vm1, %v815_v16 }
  0xeb   : > { %v679_v18 = vpop.f32.mrb[0].mxu0 }
  0xec   : > { %v1296_v19 = vpop.f32.mrb[1].mxu0 }
  0xed   : > { %v682_v20 = vpop.f32.mrb[2].mxu0 }
  0xee   : > { %v1297_v21 = vpop.f32.mrb[3].mxu0  ;;  %v747_v22 = vpop.f32.mrb[0].mxu1 }
  0xef   : > { %v748_v23 = vadd.f32 %v747_v22, %v679_v18  ;;  %v1308_v24 = vpop.f32.mrb[1].mxu1 }
  0xf0   : > { %v750_v26 = vpop.f32.mrb[2].mxu1 }
  0xf1   : > { %v1309_v29 = vpop.f32.mrb[3].mxu1 }
  0xf3   : > { %v808_v25 = vpop.f32.mrb[4].mxu0 }
  0xf4   : > { %v814_v27 = vadd.f32 %v808_v25, %v748_v23  ;;  %v1316_v28 = vpop.f32.mrb[5].mxu0 }
  0xf5   : > { %v811_v30 = vpop.f32.mrb[6].mxu0 }
  0xf6   : > { %v1317_v31 = vpop.f32.mrb[7].mxu0  ;;  %v932_v35 = vpop.f32.mrb[4].mxu1 }
  0xf7   : > { %v1332_v39 = vpop.f32.mrb[5].mxu1 }
  0xf8   : > { %v935_v42 = vpop.f32.mrb[6].mxu1 }
  0xf9   : > { %v1333_v44 = vpop.f32.mrb[7].mxu1 }
  0xfb   : > { %v870_v32 = vpop.f32.mrb[8].mxu0 }
  0xfc   : > { %v876_v33 = vadd.f32 %v870_v32, %v814_v27  ;;  %v1324_v34 = vpop.f32.mrb[9].mxu0 }
  0xfd   : > { %v873_v37 = vpop.f32.mrb[10].mxu0 }
  0xfe   : > { %v938_v38 = vadd.f32 %v932_v35, %v876_v33  ;;  %v1325_v40 = vpop.f32.mrb[11].mxu0 }
 0x100   : > { %v946_v43 = vadd.f32 %v1269_v36, %v938_v38 }
 0x102   : > { %v954_v45 = vadd.f32 %v1270_v41, %v946_v43 }
 0x104   : > { %v955_v46 = vpack.c.bf16 %v954_v45, %v954_v45  ;;  %v958_v47 = vsel %vm641_vm1, %v954_v45, 0.0  ;;  %v967_v48 = vmul.f32 %v954_v45, %v954_v45 }
 0x105   : > { %v959_v49 = vrot.slane %v958_v47, 4 }
 0x106   : > { %957 = vst.msk [vmem:[%s599_s18] sm:$0xf] %vm956_vm3, %v955_v46  ;;  %v968_v50 = vsel %vm641_vm1, %v967_v48, 0.0 }
 0x107   : > { %v960_v51 = vadd.f32 %v959_v49, %v958_v47  ;;  %v969_v52 = vrot.slane %v968_v50, 4 }
 0x109   : > { %v961_v53 = vrot.slane %v960_v51, 2  ;;  %v970_v54 = vadd.f32 %v969_v52, %v968_v50 }
 0x10b   : > { %v962_v55 = vadd.f32 %v961_v53, %v960_v51  ;;  %v971_v56 = vrot.slane %v970_v54, 2 }
 0x10d   : > { %v963_v57 = vrot.slane %v962_v55, 1  ;;  %v972_v58 = vadd.f32 %v971_v56, %v970_v54 }
 0x10f   : > { %v964_v59 = vadd.f32 %v963_v57, %v962_v55  ;;  %v973_v60 = vrot.slane %v972_v58, 1 }
 0x111   : > { %966 = vst.msk [vmem:[%s606_s12] sm:$0x1] %vm965_vm4, %v964_v59  ;;  %v974_v61 = vadd.f32 %v973_v60, %v972_v58 }
 0x113   : > { %975 = vst.msk [vmem:[%s613_s0] sm:$0x1] %vm965_vm4, %v974_v61 }
 0x114 PF: > { %s22_s21 = sadd.s32 1, %s1427_s21   ;;  %s1680_s14 = sld [smem:[#allocation2_spill]] }
 0x115   : > { %p19_p11 = scmp.ge.s32.totalorder %s22_s21, 18   ;;  %s1681_s17 = smov %s1419_s19 }
 0x116   : > { %s1682_s18 = smov %s1423_s20  ;;  %s1683_s19 = smov %s1686_s22 }
 0x117   :  { %21 = sbr.rel (!%p19_p11) target bundleno = 3 (0x3), region = 128 }
 0x11a   : > { %s1684_s20 = smov %s1680_s14 }

// kernel: _lambda_.19
= control target key start
LH: loop header
LB: loop body
LE: loop exit
PB: predicated region body
PF: predicated region fallthrough
CT: control target
= control target key end

     0   :  { %s1141_s30 = smov 0   ;;  %s1143_s10 = smov 0   ;;  %s1296_s0 = inlined_call_operand.vmem [shape: bf16[2,64,64], index: 0, kind: input, shape index: {}]   ;;  %s1297_s1 = inlined_call_operand.vmem [shape: f32[1,32], index: 1, kind: input, shape index: {}]   ;;  %s1298_s2 = inlined_call_operand.vmem [shape: f32[1,32], index: 2, kind: input, shape index: {}]   ;;  %s1299_s3 = inlined_call_operand.vmem [shape: f32[1,32], index: 3, kind: input, shape index: {}]   ;;  %s1300_s4 = inlined_call_operand.vmem [shape: f32[1,32], index: 4, kind: input, shape index: {}]   ;;  %s1301_s5 = inlined_call_operand.vmem [shape: bf16[32,32], index: 5, kind: input, shape index: {}]   ;;  %s1302_s6 = inlined_call_operand.vmem [shape: f32[1,32], index: 6, kind: input, shape index: {}]   ;;  %s1303_s7 = inlined_call_operand.vmem [shape: bf16[2,64,32], index: 7, kind: output, shape index: {0}]   ;;  %s1304_s8 = inlined_call_operand.vmem [shape: f32[2,1,1,32], index: 8, kind: output, shape index: {1}]   ;;  %s1305_s9 = inlined_call_operand.vmem [shape: f32[2,1,1,32], index: 9, kind: output, shape index: {2}]  }
   0x1   :  { %s1145_s11 = smov 0  }
   0x2 LB: > { %s32_s12 = sadd.s32 1, %s1084_s10  ;;  %p930_p0 = scmp.ge.s32.totalorder %s1088_s11, 1  ;;  %s1088_s11 = sphi %s1145_s11, %s20_s11   ;;  %s1084_s10 = sphi %s1143_s10, %s1307_s10   ;;  %s1080_s30 = sphi %s1141_s30, %s1306_s30  }
   0x3   : > { %p34_p1 = scmp.ge.s32.totalorder %s32_s12, 2  ;;  %p317_p2 = scmp.lt.s32.totalorder %s1088_s11, 3 }
   0x5   : > { %s1309_s12 = smov (%p34_p1, %s32_s12), 0  ;;  %p318_p3 = pnand %p930_p0, %p317_p2 }
   0x6   : > { %p374_p4 = scmp.lt.s32.totalorder (!%p318_p3), %s1080_s30, 1  ;;  %v1032_v33 = vld [vmem:[%s1301_s5] sm:$0xff] (!%p318_p3)   ;;  %v1033_v41 = vld [vmem:[%s1301_s5 + $0x8] sm:$0xff] (!%p318_p3)   ;;  %s1090_s21 = smov (!%p318_p3), 96   ;;  %vm597_vm0 = vcmask (!%p318_p3), 261120   ;;  %vm707_vm1 = vcmask (!%p318_p3), 257024  }
   0x7   : > { %321 = sbr.rel (%p318_p3) target bundleno = 421 (0x1a5), region = 48  ;;  %991 = vmatprep.subr.bf16.mxu0 (!%p318_p3), %v1032_v33  ;;  %1003 = vmatprep.subr.bf16.mxu1 (!%p318_p3), %v1032_v33  ;;  %v935_v54 = vld [vmem:[%s1297_s1] ss:$0 sm:$0xff] (!%p318_p3)  ;;  %vm737_vm2 = vcmask (!%p318_p3), 253952  }
   0x8   : > { %992 = vmatpush3.bf16.msra.mxu0 (!%p318_p3), %v1032_v33  ;;  %1005 = vmatpush3.bf16.msra.mxu1 (!%p318_p3), %v1032_v33  ;;  %v936_v57 = vld [vmem:[%s1298_s2] ss:$0 sm:$0xff] (!%p318_p3) }
   0x9   : > { %993 = vmatprep.subr.bf16.mxu0 (!%p318_p3), %v1033_v41  ;;  %1004 = vmatprep.subr.bf16.mxu1 (!%p318_p3), %v1033_v41  ;;  %v937_v63 = vld [vmem:[%s1299_s3] ss:$0 sm:$0xff] (!%p318_p3) }
   0xc   : > { %994 = vmatpush3.bf16.msra.mxu0 (!%p318_p3), %v1033_v41  ;;  %1006 = vmatpush3.bf16.msra.mxu1 (!%p318_p3), %v1033_v41 }
   0xe   : > { %s1311_s30 = smov (!%p374_p4, %s1080_s30), 1 }
   0xf   : > { %s956_s13 = sshll.u32 %s1311_s30, 5  ;;  %s398_s20 = scalar_lea.vmem %s1304_s8, %s1311_s30 }
  0x10   : > { %s381_s16 = scalar_lea.vmem %s1296_s0, %s956_s13  ;;  %s1245_s18 = scalar_lea.vmem %s1303_s7, %s956_s13 }
  0x11   : > { %v1167_v0 = vld [vmem:[%s381_s16 + $0x8] sm:$0xff]   ;;  %v1169_v1 = vld [vmem:[%s381_s16 + $0x10] sm:$0xff]   ;;  %v1171_v2 = vld [vmem:[%s381_s16 + $0x18] sm:$0xff]   ;;  %s404_s23 = scalar_lea.vmem %s1305_s9, %s1311_s30 }
  0x12   : > { %v972_v3 = vunpack.c.l.bf16 %v1167_v0  ;;  %v973_v4 = vunpack.c.h.bf16 %v1167_v0  ;;  %v976_v5 = vunpack.c.l.bf16 %v1169_v1  ;;  %v977_v6 = vunpack.c.h.bf16 %v1169_v1  ;;  %v1177_v7 = vld [vmem:[%s381_s16] sm:$0xff]  }
  0x13   : > { %v981_v8 = vunpack.c.h.bf16 %v1171_v2  ;;  %v968_v9 = vunpack.c.l.bf16 %v1177_v7  ;;  %v969_v10 = vunpack.c.h.bf16 %v1177_v7  ;;  %v980_v11 = vunpack.c.l.bf16 %v1171_v2 }
  0x14   : > { %v492_v12 = vsub.f32 0.0, %v972_v3  ;;  %v493_v13 = vsub.f32 0.0, %v973_v4  ;;  %v495_v14 = vsub.f32 0.0, %v977_v6  ;;  %v494_v17 = vsub.f32 0.0, %v976_v5 }
  0x15   : > { %v490_v15 = vsub.f32 0.0, %v968_v9  ;;  %v491_v16 = vsub.f32 0.0, %v969_v10  ;;  %v497_v20 = vsub.f32 0.0, %v981_v8  ;;  %v496_v24 = vsub.f32 0.0, %v980_v11 }
  0x16   : > { %v502_v18 = vmul.f32 1.442695, %v492_v12  ;;  %v504_v19 = vmul.f32 1.442695, %v493_v13  ;;  %v508_v23 = vmul.f32 1.442695, %v495_v14  ;;  %v431_v55 = vsub.f32 %v972_v3, %v935_v54 }
  0x17   : > { %v498_v21 = vmul.f32 1.442695, %v490_v15  ;;  %v500_v22 = vmul.f32 1.442695, %v491_v16  ;;  %v506_v25 = vmul.f32 1.442695, %v494_v17  ;;  %v432_v56 = vsub.f32 %v973_v4, %v935_v54 }
  0x18   : > { %1034 = vpow2.f32 %v502_v18  ;;  %v512_v26 = vmul.f32 1.442695, %v497_v20  ;;  %v510_v27 = vmul.f32 1.442695, %v496_v24  ;;  %v429_v58 = vsub.f32 %v968_v9, %v935_v54 }
  0x19   : > { %1036 = vpow2.f32 %v504_v19  ;;  %v430_v59 = vsub.f32 %v969_v10, %v935_v54  ;;  %v446_v60 = vmul.f32 %v936_v57, %v431_v55  ;;  %v447_v61 = vmul.f32 %v936_v57, %v432_v56  ;;  %v938_v10 = vld [vmem:[%s1300_s4] ss:$0 sm:$0xff] }
  0x1a   : > { %1038 = vpow2.f32 %v498_v21  ;;  %v434_v62 = vsub.f32 %v977_v6, %v935_v54  ;;  %v433_v0 = vsub.f32 %v976_v5, %v935_v54  ;;  %v444_v3 = vmul.f32 %v936_v57, %v429_v58 }
  0x1b   : > { %1040 = vpow2.f32 %v500_v22  ;;  %v445_v4 = vmul.f32 %v936_v57, %v430_v59  ;;  %v461_v12 = vmul.f32 %v937_v63, %v446_v60  ;;  %v462_v13 = vmul.f32 %v937_v63, %v447_v61 }
  0x1c   : > { %1042 = vpow2.f32 %v508_v23  ;;  %v449_v9 = vmul.f32 %v936_v57, %v434_v62  ;;  %v436_v7 = vsub.f32 %v981_v8, %v935_v54  ;;  %v448_v6 = vmul.f32 %v936_v57, %v433_v0 }
  0x1d   : > { %1044 = vpow2.f32 %v506_v25  ;;  %v459_v14 = vmul.f32 %v937_v63, %v444_v3  ;;  %v460_v15 = vmul.f32 %v937_v63, %v445_v4  ;;  %v435_v16 = vsub.f32 %v980_v11, %v935_v54  ;;  %v939_v54 = vld [vmem:[%s1302_s6] ss:$0 sm:$0xff] }
  0x1e   : > { %1046 = vpow2.f32 %v512_v26  ;;  %v476_v1 = vadd.f32 %v938_v10, %v461_v12  ;;  %v477_v5 = vadd.f32 %v938_v10, %v462_v13  ;;  %v464_v17 = vmul.f32 %v937_v63, %v449_v9 }
  0x1f   : > { %1048 = vpow2.f32 %v510_v27  ;;  %v451_v18 = vmul.f32 %v936_v57, %v436_v7  ;;  %v463_v19 = vmul.f32 %v937_v63, %v448_v6  ;;  %v474_v20 = vadd.f32 %v938_v10, %v459_v14 }
  0x20   : > { %v475_v21 = vadd.f32 %v938_v10, %v460_v15  ;;  %v450_v22 = vmul.f32 %v936_v57, %v435_v16  ;;  %v484_v8 = vmax.f32 %v476_v1, 0.0  ;;  %v485_v24 = vmax.f32 %v477_v5, 0.0 }
  0x21   : > { %v479_v25 = vadd.f32 %v938_v10, %v464_v17  ;;  %v466_v26 = vmul.f32 %v937_v63, %v451_v18 }
  0x22   : > { %v1035_v28 = vpop.eup %1034 }
  0x23   : > { %v1037_v29 = vpop.eup %1036  ;;  %v516_v30 = vadd.f32 1.0, %v1035_v28  ;;  %v478_v28 = vadd.f32 %v938_v10, %v463_v19  ;;  %v487_v33 = vmax.f32 %v479_v25, 0.0 }
  0x24   : > { %v1039_v31 = vpop.eup %1038  ;;  %v517_v32 = vadd.f32 1.0, %v1037_v29  ;;  %v482_v29 = vmax.f32 %v474_v20, 0.0 }
  0x25   : > { %v1041_v34 = vpop.eup %1040  ;;  %1050 = vrcp.f32 %v516_v30  ;;  %v514_v35 = vadd.f32 1.0, %v1039_v31  ;;  %v483_v30 = vmax.f32 %v475_v21, 0.0  ;;  %v465_v31 = vmul.f32 %v937_v63, %v450_v22 }
  0x26   : > { %v1043_v36 = vpop.eup %1042  ;;  %v515_v37 = vadd.f32 1.0, %v1041_v34  ;;  %1052 = vrcp.f32 %v517_v32  ;;  %v481_v34 = vadd.f32 %v938_v10, %v466_v26 }
  0x27   : > { %v1045_v38 = vpop.eup %1044  ;;  %1054 = vrcp.f32 %v514_v35  ;;  %v519_v39 = vadd.f32 1.0, %v1043_v36  ;;  %v486_v36 = vmax.f32 %v478_v28, 0.0 }
  0x28   : > { %v1047_v40 = vpop.eup %1046  ;;  %1056 = vrcp.f32 %v515_v37  ;;  %v518_v42 = vadd.f32 1.0, %v1045_v38 }
  0x29   : > { %v1049_v43 = vpop.eup %1048  ;;  %1058 = vrcp.f32 %v519_v39  ;;  %v521_v44 = vadd.f32 1.0, %v1047_v40  ;;  %v480_v40 = vadd.f32 %v938_v10, %v465_v31 }
  0x2a   : > { %1060 = vrcp.f32 %v518_v42  ;;  %v520_v45 = vadd.f32 1.0, %v1049_v43 }
  0x2b   : > { %1062 = vrcp.f32 %v521_v44  ;;  %v489_v44 = vmax.f32 %v481_v34, 0.0 }
  0x2c   : > { %1064 = vrcp.f32 %v520_v45 }
  0x2f   : > { %v1051_v46 = vpop.eup %1050 }
  0x30   : > { %v1053_v47 = vpop.eup %1052  ;;  %542 = vrot.lane.b32.xlu1 %v1051_v46, %s1090_s21 }
  0x31   : > { %v1055_v48 = vpop.eup %1054 }
  0x32   : > { %538 = vrot.lane.b32.xlu0 %v1055_v48, %s1090_s21  ;;  %v1057_v49 = vpop.eup %1056 }
  0x33   : > { %v1059_v50 = vpop.eup %1058 }
  0x34   : > { %544 = vrot.lane.b32.xlu1 %v1053_v47, %s1090_s21  ;;  %v1061_v51 = vpop.eup %1060  ;;  %v488_v47 = vmax.f32 %v480_v40, 0.0 }
  0x35   : > { %v1063_v52 = vpop.eup %1062 }
  0x36   : > { %540 = vrot.lane.b32.xlu0 %v1057_v49, %s1090_s21  ;;  %v1065_v53 = vpop.eup %1064 }
  0x38   : > { %548 = vrot.lane.b32.xlu1 %v1059_v50, %s1090_s21 }
  0x3a   : > { %546 = vrot.lane.b32.xlu0 %v1061_v51, %s1090_s21 }
  0x3c   : > { %552 = vrot.lane.b32.xlu1 %v1063_v52, %s1090_s21 }
  0x3e   : > { %550 = vrot.lane.b32.xlu0 %v1065_v53, %s1090_s21 }
  0xa2   : > { %v543_v23 = vpop.permute.xlu1 %542 }
  0xa3   : > { %v564_v11 = vmul.f32 %v543_v23, %v484_v8 }
  0xa4   : > { %v539_v27 = vpop.permute.xlu0 %538 }
  0xa5   : > { %v562_v37 = vmul.f32 %v539_v27, %v482_v29 }
  0xa6   : > { %v545_v2 = vpop.permute.xlu1 %544 }
  0xa7   : > { %v565_v32 = vmul.f32 %v545_v2, %v485_v24 }
  0xa8   : > { %v541_v35 = vpop.permute.xlu0 %540 }
  0xa9   : > { %v571_v38 = vpack.c.bf16 %v565_v32, %v564_v11  ;;  %v563_v39 = vmul.f32 %v541_v35, %v483_v30 }
  0xaa   : > { %v549_v41 = vpop.permute.xlu1 %548 }
  0xab   : > { %v567_v42 = vmul.f32 %v549_v41, %v487_v33  ;;  %v570_v43 = vpack.c.bf16 %v563_v39, %v562_v37 }
  0xac   : > { %v547_v45 = vpop.permute.xlu0 %546 }
  0xad   : > { %v566_v46 = vmul.f32 %v547_v45, %v486_v36  ;;  %995 = vmatprep.mubr.msk.bf16.mxu0 %vm597_vm0, %v570_v43 }
  0xae   : > { %996 = vmatmul.mubr.msk.bf16.vlgmr.msra.gmra.mrb[0].mxu0 %vm597_vm0, %v571_v38  ;;  %v553_v48 = vpop.permute.xlu1 %552 }
  0xaf   : > { %v569_v49 = vmul.f32 %v553_v48, %v489_v44  ;;  %v572_v50 = vpack.c.bf16 %v567_v42, %v566_v46 }
  0xb0   : > { %v551_v51 = vpop.permute.xlu0 %550 }
  0xb1   : > { %v568_v52 = vmul.f32 %v551_v51, %v488_v47  ;;  %999 = vmatprep.mubr.msk.bf16.mxu1 %vm597_vm0, %v572_v50 }
  0xb3   : > { %v573_v53 = vpack.c.bf16 %v569_v49, %v568_v52 }
  0xb5   : > { %1000 = vmatmul.mubr.msk.bf16.vlgmr.msra.gmra.mrb[0].mxu1 %vm597_vm0, %v573_v53 }
 0x181   : > { %v997_v55 = vpop.f32.mrb[0].mxu0 }
 0x182   : > { %v653_v56 = vadd.f32 %v997_v55, %v939_v54  ;;  %v644_v57 = vpop.f32.mrb[1].mxu0 }
 0x183   : > { %v645_v58 = vadd.f32 %v939_v54, %v644_v57  ;;  %v998_v59 = vpop.f32.mrb[2].mxu0 }
 0x184   : > { %v960_v60 = vpack.c.bf16 %v653_v56, %v653_v56  ;;  %v656_v61 = vadd.f32 %v998_v59, %v939_v54  ;;  %v647_v62 = vpop.f32.mrb[3].mxu0  ;;  %v741_v4 = vmul.f32 %v653_v56, %v653_v56  ;;  %v719_v6 = vsel %vm597_vm0, %v653_v56, 0.0 }
 0x185   : > { %v958_v63 = vpack.c.bf16 %v645_v58, %v645_v58  ;;  %v739_v0 = vmul.f32 %v645_v58, %v645_v58  ;;  %v648_v3 = vadd.f32 %v939_v54, %v647_v62  ;;  %v716_v13 = vsel %vm597_vm0, %v645_v58, 0.0 }
 0x186   : > { %710 = vst.msk [vmem:[%s1245_s18 + $0x8] sm:$0xf] %vm707_vm1, %v960_v60  ;;  %v961_v12 = vpack.c.bf16 %v656_v61, %v656_v61  ;;  %v742_v1 = vmul.f32 %v656_v61, %v656_v61  ;;  %v750_v23 = vsel %vm597_vm0, %v741_v4, 0.0  ;;  %v721_v8 = vsel %vm597_vm0, %v656_v61, 0.0 }
 0x187   : > { %708 = vst.msk [vmem:[%s1245_s18] sm:$0xf] %vm707_vm1, %v958_v63  ;;  %v959_v9 = vpack.c.bf16 %v648_v3, %v648_v3  ;;  %v717_v7 = vsel %vm597_vm0, %v648_v3, 0.0  ;;  %v740_v10 = vmul.f32 %v648_v3, %v648_v3  ;;  %v747_v16 = vsel %vm597_vm0, %v739_v0, 0.0 }
 0x188   : > { %711 = vst.msk [vmem:[%s1245_s18 + $0xc] sm:$0xf] %vm707_vm1, %v961_v12  ;;  %v718_v14 = vadd.f32 %v717_v7, %v716_v13  ;;  %v1001_v15 = vpop.f32.mrb[0].mxu1  ;;  %v752_v31 = vsel %vm597_vm0, %v742_v1, 0.0 }
 0x189   : > { %709 = vst.msk [vmem:[%s1245_s18 + $0x4] sm:$0xf] %vm707_vm1, %v959_v9  ;;  %v748_v5 = vsel %vm597_vm0, %v740_v10, 0.0  ;;  %v669_v17 = vadd.f32 %v1001_v15, %v939_v54  ;;  %v660_v18 = vpop.f32.mrb[1].mxu1 }
 0x18a   : > { %v720_v19 = vadd.f32 %v719_v6, %v718_v14  ;;  %v749_v20 = vadd.f32 %v748_v5, %v747_v16  ;;  %v661_v21 = vadd.f32 %v939_v54, %v660_v18  ;;  %v1002_v22 = vpop.f32.mrb[2].mxu1 }
 0x18b   : > { %v964_v24 = vpack.c.bf16 %v669_v17, %v669_v17  ;;  %v672_v25 = vadd.f32 %v1002_v22, %v939_v54  ;;  %v663_v26 = vpop.f32.mrb[3].mxu1  ;;  %v745_v39 = vmul.f32 %v669_v17, %v669_v17  ;;  %v727_v42 = vsel %vm597_vm0, %v669_v17, 0.0 }
 0x18c   : > { %v751_v27 = vadd.f32 %v750_v23, %v749_v20  ;;  %v962_v28 = vpack.c.bf16 %v661_v21, %v661_v21  ;;  %v722_v29 = vadd.f32 %v721_v8, %v720_v19  ;;  %v723_v30 = vsel %vm597_vm0, %v661_v21, 0.0 }
 0x18d   : > { %714 = vst.msk [vmem:[%s1245_s18 + $0x18] sm:$0xf] %vm707_vm1, %v964_v24  ;;  %v743_v2 = vmul.f32 %v661_v21, %v661_v21  ;;  %v965_v11 = vpack.c.bf16 %v672_v25, %v672_v25  ;;  %v664_v34 = vadd.f32 %v939_v54, %v663_v26  ;;  %v746_v43 = vmul.f32 %v672_v25, %v672_v25 }
 0x18e   : > { %712 = vst.msk [vmem:[%s1245_s18 + $0x10] sm:$0xf] %vm707_vm1, %v962_v28  ;;  %v724_v32 = vadd.f32 %v723_v30, %v722_v29  ;;  %v753_v33 = vadd.f32 %v752_v31, %v751_v27  ;;  %v729_v46 = vsel %vm597_vm0, %v672_v25, 0.0  ;;  %v758_v48 = vsel %vm597_vm0, %v745_v39, 0.0 }
 0x18f   : > { %v754_v35 = vsel %vm597_vm0, %v743_v2, 0.0  ;;  %715 = vst.msk [vmem:[%s1245_s18 + $0x1c] sm:$0xf] %vm707_vm1, %v965_v11  ;;  %v963_v37 = vpack.c.bf16 %v664_v34, %v664_v34  ;;  %v725_v38 = vsel %vm597_vm0, %v664_v34, 0.0  ;;  %v744_v41 = vmul.f32 %v664_v34, %v664_v34 }
 0x190   : > { %v755_v36 = vadd.f32 %v754_v35, %v753_v33  ;;  %v726_v40 = vadd.f32 %v725_v38, %v724_v32  ;;  %v760_v51 = vsel %vm597_vm0, %v746_v43, 0.0 }
 0x191   : > { %713 = vst.msk [vmem:[%s1245_s18 + $0x14] sm:$0xf] %vm707_vm1, %v963_v37  ;;  %v756_v45 = vsel %vm597_vm0, %v744_v41, 0.0 }
 0x192   : > { %v728_v44 = vadd.f32 %v727_v42, %v726_v40  ;;  %v757_v47 = vadd.f32 %v756_v45, %v755_v36 }
 0x194   : > { %v730_v49 = vadd.f32 %v729_v46, %v728_v44  ;;  %v759_v50 = vadd.f32 %v758_v48, %v757_v47 }
 0x196   : > { %v731_v52 = vrot.slane %v730_v49, 4  ;;  %v761_v53 = vadd.f32 %v760_v51, %v759_v50 }
 0x198   : > { %v732_v54 = vadd.f32 %v731_v52, %v730_v49  ;;  %v762_v55 = vrot.slane %v761_v53, 4 }
 0x19a   : > { %v733_v56 = vrot.slane %v732_v54, 2  ;;  %v763_v57 = vadd.f32 %v762_v55, %v761_v53 }
 0x19c   : > { %v734_v58 = vadd.f32 %v733_v56, %v732_v54  ;;  %v764_v59 = vrot.slane %v763_v57, 2 }
 0x19e   : > { %v735_v60 = vrot.slane %v734_v58, 1  ;;  %v765_v61 = vadd.f32 %v764_v59, %v763_v57 }
 0x1a0   : > { %v736_v62 = vadd.f32 %v735_v60, %v734_v58  ;;  %v766_v63 = vrot.slane %v765_v61, 1 }
 0x1a2   : > { %738 = vst.msk [vmem:[%s398_s20] sm:$0x1] %vm737_vm2, %v736_v62  ;;  %v767_v0 = vadd.f32 %v766_v63, %v765_v61 }
 0x1a4   : > { %768 = vst.msk [vmem:[%s404_s23] sm:$0x1] %vm737_vm2, %v767_v0 }
 0x1a5 PF: > { %s20_s11 = sadd.s32 1, %s1088_s11   ;;  %s1306_s30 = smov %s1084_s10 }
 0x1a6   : > { %p17_p5 = scmp.ge.s32.totalorder %s20_s11, 4   ;;  %s1307_s10 = smov %s1309_s12 }
 0x1a8   :  { %19 = sbr.rel (!%p17_p5) target bundleno = 2 (0x2), region = 102 }

// kernel: _lambda_.17
= control target key start
LH: loop header
LB: loop body
LE: loop exit
PB: predicated region body
PF: predicated region fallthrough
CT: control target
= control target key end

     0   :  { %s791_s21 = smov 0   ;;  %s793_s22 = smov 0   ;;  %s897_s0 = inlined_call_operand.vmem [shape: bf16[2,64,64], index: 0, kind: input, shape index: {}]   ;;  %s898_s1 = inlined_call_operand.vmem [shape: f32[2,1,64], index: 1, kind: input, shape index: {}]   ;;  %s899_s2 = inlined_call_operand.vmem [shape: f32[1,32], index: 2, kind: input, shape index: {}]   ;;  %s900_s3 = inlined_call_operand.vmem [shape: f32[1,32], index: 3, kind: input, shape index: {}]   ;;  %s901_s4 = inlined_call_operand.vmem [shape: f32[1,32], index: 4, kind: input, shape index: {}]   ;;  %s902_s5 = inlined_call_operand.vmem [shape: f32[1,32], index: 5, kind: input, shape index: {}]   ;;  %s903_s6 = inlined_call_operand.vmem [shape: bf16[2,64,32], index: 6, kind: output, shape index: {}]  }
   0x1   :  { %s795_s23 = smov 0  }
   0x2 LB: > { %s28_s24 = sadd.s32 1, %s749_s22  ;;  %p625_p0 = scmp.ge.s32.totalorder %s753_s23, 1  ;;  %s753_s23 = sphi %s795_s23, %s16_s23   ;;  %s749_s22 = sphi %s793_s22, %s905_s22   ;;  %s745_s21 = sphi %s791_s21, %s904_s21  }
   0x3   : > { %p30_p1 = scmp.ge.s32.totalorder %s28_s24, 2  ;;  %p241_p2 = scmp.lt.s32.totalorder %s753_s23, 3 }
   0x5   : > { %s907_s24 = smov (%p30_p1, %s28_s24), 0  ;;  %p242_p3 = pnand %p625_p0, %p241_p2 }
   0x6   : > { %p283_p4 = scmp.lt.s32.totalorder (!%p242_p3), %s745_s21, 1  ;;  %s755_s8 = smov (!%p242_p3), 96   ;;  %v631_v61 = vld [vmem:[%s899_s2] ss:$0 sm:$0xff] (!%p242_p3)  ;;  %vm516_vm0 = vcmask (!%p242_p3), 257024  }
   0x7   : > { %245 = sbr.rel (%p242_p3) target bundleno = 184 (0xb8), region = 44  ;;  %v632_v63 = vld [vmem:[%s900_s3] ss:$0 sm:$0xff] (!%p242_p3) }
   0xe   : > { %s909_s21 = smov (!%p283_p4, %s745_s21), 1 }
   0xf   : > { %s645_s25 = sshll.u32 %s909_s21, 5  ;;  %s294_s28 = scalar_lea.vmem %s898_s1, %s909_s21 }
  0x10   : > { %s290_s7 = scalar_lea.vmem %s897_s0, %s645_s25  ;;  %v630_v0 = vld [vmem:[%s294_s28] ss:$0 sm:$0xff]  ;;  %s870_s19 = scalar_lea.vmem %s903_s6, %s645_s25 }
  0x11   : > { %v671_v1 = vld [vmem:[%s290_s7 + $0x8] sm:$0xff]   ;;  %v672_v2 = vld [vmem:[%s290_s7 + $0x10] sm:$0xff]   ;;  %v673_v3 = vld [vmem:[%s290_s7 + $0x18] sm:$0xff]  }
  0x12   : > { %v661_v4 = vunpack.c.l.bf16 %v671_v1  ;;  %v662_v5 = vunpack.c.h.bf16 %v671_v1  ;;  %v665_v6 = vunpack.c.l.bf16 %v672_v2  ;;  %v666_v7 = vunpack.c.h.bf16 %v672_v2  ;;  %v656_v8 = vld [vmem:[%s290_s7] sm:$0xff]  }
  0x13   : > { %v669_v9 = vunpack.c.l.bf16 %v673_v3  ;;  %v670_v10 = vunpack.c.h.bf16 %v673_v3  ;;  %v657_v11 = vunpack.c.l.bf16 %v656_v8  ;;  %v658_v12 = vunpack.c.h.bf16 %v656_v8  ;;  %v633_v3 = vld [vmem:[%s901_s4] ss:$0 sm:$0xff] }
  0x14   : > { %v821_v13 = vadd.f32 %v661_v4, %v630_v0  ;;  %v823_v14 = vadd.f32 %v662_v5, %v630_v0  ;;  %v825_v15 = vadd.f32 %v666_v7, %v630_v0  ;;  %v827_v16 = vadd.f32 %v665_v6, %v630_v0 }
  0x15   : > { %v829_v17 = vadd.f32 %v657_v11, %v630_v0  ;;  %v831_v18 = vadd.f32 %v658_v12, %v630_v0  ;;  %v833_v19 = vadd.f32 %v670_v10, %v630_v0  ;;  %v838_v23 = vadd.f32 %v669_v9, %v630_v0  ;;  %v634_v9 = vld [vmem:[%s902_s5] ss:$0 sm:$0xff] }
  0x16   : > { %v398_v20 = vsub.f32 0.0, %v821_v13  ;;  %v399_v21 = vsub.f32 0.0, %v823_v14  ;;  %v401_v22 = vsub.f32 0.0, %v825_v15  ;;  %v400_v26 = vsub.f32 0.0, %v827_v16 }
  0x17   : > { %v396_v24 = vsub.f32 0.0, %v829_v17  ;;  %v397_v25 = vsub.f32 0.0, %v831_v18  ;;  %v403_v29 = vsub.f32 0.0, %v833_v19  ;;  %v402_v33 = vsub.f32 0.0, %v838_v23 }
  0x18   : > { %v408_v27 = vmul.f32 1.442695, %v398_v20  ;;  %v410_v28 = vmul.f32 1.442695, %v399_v21  ;;  %v414_v32 = vmul.f32 1.442695, %v401_v22  ;;  %v345_v62 = vsub.f32 %v821_v13, %v631_v61 }
  0x19   : > { %v404_v30 = vmul.f32 1.442695, %v396_v24  ;;  %v406_v31 = vmul.f32 1.442695, %v397_v25  ;;  %v412_v34 = vmul.f32 1.442695, %v400_v26  ;;  %v343_v0 = vsub.f32 %v829_v17, %v631_v61 }
  0x1a   : > { %699 = vpow2.f32 %v408_v27  ;;  %v418_v35 = vmul.f32 1.442695, %v403_v29  ;;  %v416_v36 = vmul.f32 1.442695, %v402_v33  ;;  %v360_v1 = vmul.f32 %v632_v63, %v345_v62 }
  0x1b   : > { %701 = vpow2.f32 %v410_v28  ;;  %v346_v2 = vsub.f32 %v823_v14, %v631_v61  ;;  %v344_v4 = vsub.f32 %v831_v18, %v631_v61  ;;  %v358_v5 = vmul.f32 %v632_v63, %v343_v0 }
  0x1c   : > { %703 = vpow2.f32 %v404_v30  ;;  %v375_v6 = vmul.f32 %v633_v3, %v360_v1  ;;  %v348_v8 = vsub.f32 %v825_v15, %v631_v61  ;;  %v347_v12 = vsub.f32 %v827_v16, %v631_v61 }
  0x1d   : > { %705 = vpow2.f32 %v406_v31  ;;  %v361_v7 = vmul.f32 %v632_v63, %v346_v2  ;;  %v359_v10 = vmul.f32 %v632_v63, %v344_v4  ;;  %v373_v11 = vmul.f32 %v633_v3, %v358_v5 }
  0x1e   : > { %707 = vpow2.f32 %v414_v32  ;;  %v390_v13 = vadd.f32 %v634_v9, %v375_v6  ;;  %v363_v17 = vmul.f32 %v632_v63, %v348_v8  ;;  %v350_v20 = vsub.f32 %v833_v19, %v631_v61 }
  0x1f   : > { %709 = vpow2.f32 %v412_v34  ;;  %v376_v14 = vmul.f32 %v633_v3, %v361_v7  ;;  %v374_v21 = vmul.f32 %v633_v3, %v359_v10  ;;  %v388_v18 = vadd.f32 %v634_v9, %v373_v11 }
  0x20   : > { %711 = vpow2.f32 %v418_v35  ;;  %v362_v22 = vmul.f32 %v632_v63, %v347_v12  ;;  %v349_v24 = vsub.f32 %v838_v23, %v631_v61  ;;  %v438_v15 = vmax.f32 %v390_v13, 0.0 }
  0x21   : > { %713 = vpow2.f32 %v416_v36  ;;  %v391_v25 = vadd.f32 %v634_v9, %v376_v14  ;;  %v378_v26 = vmul.f32 %v633_v3, %v363_v17  ;;  %v365_v27 = vmul.f32 %v632_v63, %v350_v20 }
  0x22   : > { %v389_v28 = vadd.f32 %v634_v9, %v374_v21  ;;  %v436_v29 = vmax.f32 %v388_v18, 0.0  ;;  %v377_v30 = vmul.f32 %v633_v3, %v362_v22  ;;  %v364_v31 = vmul.f32 %v632_v63, %v349_v24 }
  0x23   : > { %v439_v33 = vmax.f32 %v391_v25, 0.0  ;;  %v393_v34 = vadd.f32 %v634_v9, %v378_v26  ;;  %v380_v35 = vmul.f32 %v633_v3, %v365_v27 }
  0x24   : > { %v700_v37 = vpop.eup %699  ;;  %v437_v23 = vmax.f32 %v389_v28, 0.0 }
  0x25   : > { %v702_v38 = vpop.eup %701  ;;  %v422_v39 = vadd.f32 1.0, %v700_v37 }
  0x26   : > { %v704_v40 = vpop.eup %703  ;;  %v423_v41 = vadd.f32 1.0, %v702_v38  ;;  %v392_v38 = vadd.f32 %v634_v9, %v377_v30 }
  0x27   : > { %v706_v42 = vpop.eup %705  ;;  %715 = vrcp.f32 %v422_v39  ;;  %v420_v43 = vadd.f32 1.0, %v704_v40  ;;  %v379_v39 = vmul.f32 %v633_v3, %v364_v31 }
  0x28   : > { %v708_v44 = vpop.eup %707  ;;  %717 = vrcp.f32 %v423_v41  ;;  %v421_v45 = vadd.f32 1.0, %v706_v42 }
  0x29   : > { %v710_v46 = vpop.eup %709  ;;  %719 = vrcp.f32 %v420_v43  ;;  %v425_v47 = vadd.f32 1.0, %v708_v44  ;;  %v441_v43 = vmax.f32 %v393_v34, 0.0  ;;  %v395_v44 = vadd.f32 %v634_v9, %v380_v35 }
  0x2a   : > { %v712_v48 = vpop.eup %711  ;;  %721 = vrcp.f32 %v421_v45  ;;  %v424_v49 = vadd.f32 1.0, %v710_v46 }
  0x2b   : > { %v714_v50 = vpop.eup %713  ;;  %723 = vrcp.f32 %v425_v47  ;;  %v427_v51 = vadd.f32 1.0, %v712_v48  ;;  %v440_v48 = vmax.f32 %v392_v38, 0.0 }
  0x2c   : > { %725 = vrcp.f32 %v424_v49  ;;  %v426_v52 = vadd.f32 1.0, %v714_v50  ;;  %v394_v49 = vadd.f32 %v634_v9, %v379_v39 }
  0x2d   : > { %727 = vrcp.f32 %v427_v51 }
  0x2e   : > { %729 = vrcp.f32 %v426_v52 }
  0x31   : > { %v716_v53 = vpop.eup %715 }
  0x32   : > { %v718_v54 = vpop.eup %717  ;;  %456 = vrot.lane.b32.xlu1 %v716_v53, %s755_s8  ;;  %v443_v53 = vmax.f32 %v395_v44, 0.0 }
  0x33   : > { %v720_v55 = vpop.eup %719 }
  0x34   : > { %452 = vrot.lane.b32.xlu0 %v720_v55, %s755_s8  ;;  %v722_v56 = vpop.eup %721 }
  0x35   : > { %v724_v57 = vpop.eup %723 }
  0x36   : > { %458 = vrot.lane.b32.xlu1 %v718_v54, %s755_s8  ;;  %v726_v58 = vpop.eup %725 }
  0x37   : > { %v728_v59 = vpop.eup %727 }
  0x38   : > { %454 = vrot.lane.b32.xlu0 %v722_v56, %s755_s8  ;;  %v730_v60 = vpop.eup %729 }
  0x3a   : > { %462 = vrot.lane.b32.xlu1 %v724_v57, %s755_s8  ;;  %v442_v57 = vmax.f32 %v394_v49, 0.0 }
  0x3c   : > { %460 = vrot.lane.b32.xlu0 %v726_v58, %s755_s8 }
  0x3e   : > { %466 = vrot.lane.b32.xlu1 %v728_v59, %s755_s8 }
  0x40   : > { %464 = vrot.lane.b32.xlu0 %v730_v60, %s755_s8 }
  0xa4   : > { %v457_v16 = vpop.permute.xlu1 %456 }
  0xa5   : > { %v478_v32 = vmul.f32 %v457_v16, %v438_v15 }
  0xa6   : > { %v453_v19 = vpop.permute.xlu0 %452 }
  0xa7   : > { %v649_v36 = vpack.c.bf16 %v478_v32, %v478_v32  ;;  %v476_v37 = vmul.f32 %v453_v19, %v436_v29 }
  0xa8   : > { %v459_v40 = vpop.permute.xlu1 %458 }
  0xa9   : > { %519 = vst.msk [vmem:[%s870_s19 + $0x8] sm:$0xf] %vm516_vm0, %v649_v36  ;;  %v647_v41 = vpack.c.bf16 %v476_v37, %v476_v37  ;;  %v479_v42 = vmul.f32 %v459_v40, %v439_v33 }
  0xaa   : > { %v455_v45 = vpop.permute.xlu0 %454 }
  0xab   : > { %517 = vst.msk [vmem:[%s870_s19] sm:$0xf] %vm516_vm0, %v647_v41  ;;  %v650_v46 = vpack.c.bf16 %v479_v42, %v479_v42  ;;  %v477_v47 = vmul.f32 %v455_v45, %v437_v23 }
  0xac   : > { %v463_v50 = vpop.permute.xlu1 %462 }
  0xad   : > { %520 = vst.msk [vmem:[%s870_s19 + $0xc] sm:$0xf] %vm516_vm0, %v650_v46  ;;  %v648_v51 = vpack.c.bf16 %v477_v47, %v477_v47  ;;  %v481_v52 = vmul.f32 %v463_v50, %v441_v43 }
  0xae   : > { %v461_v54 = vpop.permute.xlu0 %460 }
  0xaf   : > { %518 = vst.msk [vmem:[%s870_s19 + $0x4] sm:$0xf] %vm516_vm0, %v648_v51  ;;  %v652_v55 = vpack.c.bf16 %v481_v52, %v481_v52  ;;  %v480_v56 = vmul.f32 %v461_v54, %v440_v48 }
  0xb0   : > { %v467_v58 = vpop.permute.xlu1 %466 }
  0xb1   : > { %522 = vst.msk [vmem:[%s870_s19 + $0x14] sm:$0xf] %vm516_vm0, %v652_v55  ;;  %v651_v59 = vpack.c.bf16 %v480_v56, %v480_v56  ;;  %v483_v60 = vmul.f32 %v467_v58, %v443_v53 }
  0xb2   : > { %v465_v61 = vpop.permute.xlu0 %464 }
  0xb3   : > { %521 = vst.msk [vmem:[%s870_s19 + $0x10] sm:$0xf] %vm516_vm0, %v651_v59  ;;  %v654_v62 = vpack.c.bf16 %v483_v60, %v483_v60  ;;  %v482_v63 = vmul.f32 %v465_v61, %v442_v57 }
  0xb5   : > { %524 = vst.msk [vmem:[%s870_s19 + $0x1c] sm:$0xf] %vm516_vm0, %v654_v62  ;;  %v653_v0 = vpack.c.bf16 %v482_v63, %v482_v63 }
  0xb7   : > { %523 = vst.msk [vmem:[%s870_s19 + $0x18] sm:$0xf] %vm516_vm0, %v653_v0 }
  0xb8 PF: > { %s16_s23 = sadd.s32 1, %s753_s23   ;;  %s904_s21 = smov %s749_s22 }
  0xb9   : > { %p13_p5 = scmp.ge.s32.totalorder %s16_s23, 4   ;;  %s905_s22 = smov %s907_s24 }
  0xbb   :  { %15 = sbr.rel (!%p13_p5) target bundleno = 2 (0x2), region = 77 }

// kernel: _lambda_.16
= control target key start
LH: loop header
LB: loop body
LE: loop exit
PB: predicated region body
PF: predicated region fallthrough
CT: control target
= control target key end

     0   :  { %s3793_s21 = smov 0   ;;  %s3795_s22 = smov 0   ;;  %s4323_s0 = inlined_call_operand.vmem [shape: bf16[2,14,11,32], index: 0, kind: input, shape index: {}, may-alias: {0,1,2,3,4,5,6}]   ;;  %s4324_s1 = inlined_call_operand.vmem [shape: bf16[2,14,11,32], index: 1, kind: input, shape index: {}, may-alias: {0,1,2,3,4,5,6}]   ;;  %s4325_s2 = inlined_call_operand.vmem [shape: bf16[2,14,11,32], index: 2, kind: input, shape index: {}, may-alias: {0,1,2,3,4,5,6}]   ;;  %s4326_s3 = inlined_call_operand.vmem [shape: bf16[2,14,11,32], index: 3, kind: input, shape index: {}, may-alias: {0,1,2,3,4,5,6}]   ;;  %s4327_s4 = inlined_call_operand.vmem [shape: bf16[2,14,11,32], index: 4, kind: input, shape index: {}, may-alias: {0,1,2,3,4,5,6}]   ;;  %s4328_s5 = inlined_call_operand.vmem [shape: bf16[2,14,11,32], index: 5, kind: input, shape index: {}, may-alias: {0,1,2,3,4,5,6}]   ;;  %s4329_s6 = inlined_call_operand.vmem [shape: bf16[2,14,11,32], index: 6, kind: input, shape index: {}, may-alias: {0,1,2,3,4,5,6}]   ;;  %s4330_s7 = inlined_call_operand.vmem [shape: bf16[28,32,64], index: 7, kind: input, shape index: {}]   ;;  %s4331_s8 = inlined_call_operand.vmem [shape: f32[1,64], index: 8, kind: input, shape index: {}]   ;;  %s4332_s9 = inlined_call_operand.vmem [shape: f32[2,1,64], index: 9, kind: input, shape index: {}]   ;;  %s4333_s10 = inlined_call_operand.vmem [shape: bf16[2,8,8,64], index: 10, kind: output, shape index: {0}]   ;;  %s4334_s11 = inlined_call_operand.vmem [shape: f32[2,8,1,32], index: 11, kind: output, shape index: {1}]   ;;  %s4335_s12 = inlined_call_operand.vmem [shape: f32[2,8,1,32], index: 12, kind: output, shape index: {2}]  }
   0x1   :  { %4336 = sst [smem:[#allocation2_spill]] %s4323_s0  ;;  %s3797_s23 = smov 0  }
   0x2   :  { %s3799_s24 = smov 0   ;;  %s3801_s25 = smov 0  }
   0x3 LB: > { %s32_s26 = sadd.s32 1, %s3716_s23  ;;  %s35_s27 = sadd.s32 1, %s3720_s24  ;;  %s3724_s25 = sphi %s3801_s25, %s23_s25   ;;  %s3720_s24 = sphi %s3799_s24, %s4344_s24   ;;  %s3716_s23 = sphi %s3797_s23, %s4343_s23   ;;  %s3712_s22 = sphi %s3795_s22, %s4342_s22   ;;  %s3708_s21 = sphi %s3793_s21, %s4341_s21  }
   0x4   : > { %p33_p0 = scmp.ge.s32.totalorder %s32_s26, 8  ;;  %p3022_p1 = scmp.ge.s32.totalorder %s3724_s25, 1 }
   0x5   : > { %p519_p2 = scmp.lt.s32.totalorder %s3724_s25, 17 }
   0x6   : > { %s4346_s26 = smov (%p33_p0, %s32_s26), 0  ;;  %s4348_s27 = smov (!%p33_p0, %s35_s27), %s3720_s24 }
   0x7   : > { %p520_p3 = pnand %p3022_p1, %p519_p2  ;;  %p37_p4 = scmp.ge.s32.totalorder %s4348_s27, 2 }
   0x8   : > { %v3609_v0 = vld [vmem:[%s4330_s7 + $0x70] sm:$0xff] (!%p520_p3)   ;;  %v3726_v1 = vmov (!%p520_p3), 0.0   ;;  %v3610_v2 = vld [vmem:[%s4330_s7] sm:$0xff] (!%p520_p3)   ;;  %v3611_v3 = vld [vmem:[%s4330_s7 + $0x78] sm:$0xff] (!%p520_p3)   ;;  %vm3727_vm0 = vmmov (!%p520_p3), 0   ;;  %p645_p5 = scmp.lt.s32.totalorder (!%p520_p3), %s3712_s22, 1 }
   0x9   : > { %s4350_s27 = smov (%p37_p4, %s4348_s27), 0  ;;  %523 = sbr.rel (%p520_p3) target bundleno = 372 (0x174), region = 60 }
   0xa   : > { %3342 = vmatprep.subr.bf16.mxu0 (!%p520_p3), %v3726_v1  ;;  %3350 = vmatprep.subr.bf16.mxu1 (!%p520_p3), %v3726_v1  ;;  %v3612_v4 = vld [vmem:[%s4330_s7 + $0x8] sm:$0xff] (!%p520_p3)   ;;  %p647_p6 = scmp.lt.s32.totalorder (!%p520_p3), %s3708_s21, 13  ;;  %vm781_vm1 = vcmask (!%p520_p3), 261120   ;;  %s654_s29 = sadd.s32 (!%p520_p3), 1, %s3708_s21  ;;  %v3617_v5 = vld [vmem:[%s4330_s7 + $0x150] sm:$0xff] (!%p520_p3)   ;;  %v3619_v12 = vld [vmem:[%s4330_s7 + $0x158] sm:$0xff] (!%p520_p3)  }
   0xb   : > { %3343 = vmatpush3.bf16.msra.mxu0 (!%p520_p3), %v3609_v0  ;;  %3354 = vmatprep.mubr.msk.bf16.mxu1 (!%p520_p3), %vm3727_vm0, %v3726_v1  ;;  %s4337_s0 = sld [smem:[#allocation2_spill]] (!%p520_p3)  ;;  %p657_p7 = scmp.lt.s32.totalorder (!%p520_p3), %s654_s29, 13  ;;  %v3616_v20 = vld [vmem:[%s4330_s7 + $0xe0] sm:$0xff] (!%p520_p3)   ;;  %v3618_v30 = vld [vmem:[%s4330_s7 + $0xe8] sm:$0xff] (!%p520_p3)   ;;  %v3620_v34 = vld [vmem:[%s4330_s7 + $0x10] sm:$0xff] (!%p520_p3)   ;;  %vm2684_vm2 = vcmask (!%p520_p3), 519168  }
   0xc   : > { %3351 = vmatpush3.bf16.msra.mxu1 (!%p520_p3), %v3610_v2  ;;  %3344 = vmatprep.subr.bf16.mxu0 (!%p520_p3), %v3726_v1  ;;  %v3621_v22 = vld [vmem:[%s4330_s7 + $0x80] sm:$0xff] (!%p520_p3)   ;;  %v3623_v35 = vld [vmem:[%s4330_s7 + $0x88] sm:$0xff] (!%p520_p3)   ;;  %v3622_v42 = vld [vmem:[%s4330_s7 + $0x18] sm:$0xff] (!%p520_p3)   ;;  %p725_p13 = scmp.lt.s32.totalorder (!%p520_p3), %s3708_s21, 7  ;;  %vm2701_vm3 = vcmask (!%p520_p3), 253952  }
   0xd   : > { %3352 = vmatprep.subr.bf16.mxu1 (!%p520_p3), %v3726_v1  ;;  %3346 = vmatprep.mubr.msk.bf16.mxu0 (!%p520_p3), %vm3727_vm0, %v3726_v1  ;;  %v3626_v41 = vld [vmem:[%s4330_s7 + $0x160] sm:$0xff] (!%p520_p3)   ;;  %v3625_v45 = vld [vmem:[%s4330_s7 + $0xf0] sm:$0xff] (!%p520_p3)   ;;  %v3628_v46 = vld [vmem:[%s4330_s7 + $0x168] sm:$0xff] (!%p520_p3)  }
   0xe   : > { %v3632_v54 = vld [vmem:[%s4330_s7 + $0x90] sm:$0xff] (!%p520_p3)   ;;  %v3627_v56 = vld [vmem:[%s4330_s7 + $0xf8] sm:$0xff] (!%p520_p3)   ;;  %v3631_v63 = vld [vmem:[%s4330_s7 + $0x20] sm:$0xff] (!%p520_p3)  }
   0xf   : > { %3345 = vmatpush3.bf16.msra.mxu0 (!%p520_p3), %v3611_v3  ;;  %v3634_v58 = vld [vmem:[%s4330_s7 + $0x98] sm:$0xff] (!%p520_p3)   ;;  %v3637_v0 = vld [vmem:[%s4330_s7 + $0x170] sm:$0xff] (!%p520_p3)  }
  0x10   : > { %s4352_s22 = smov (!%p645_p5, %s3712_s22), 1  ;;  %3353 = vmatpush3.bf16.msra.mxu1 %v3612_v4  ;;  %3358 = vmatprep.subr.bf16.mxu0 %v3726_v1  ;;  %s4354_s29 = smov (!%p657_p7, %s654_s29), 13 }
  0x11   : > { %s648_s18 = scalar_select %p647_p6, %s3708_s21, 13  ;;  %3366 = vmatprep.subr.bf16.mxu1 %v3726_v1 }
  0x12   : > { %s3854_s19 = smul.u32 28, %s4352_s22 }
  0x13   : > { %s3023_s20 = sshll.u32 %s648_s18, 1 }
  0x14   : > { %s651_s28 = sadd.s32 %s3854_s19, %s3023_s20 }
  0x15   : > { %s3024_s30 = sshll.u32 %s651_s28, 2  ;;  %s3025_s28 = sshll.u32 %s4354_s29, 1 }
  0x16   : > { %s653_s17 = scalar_lea.vmem %s4337_s0, %s3024_s30  ;;  %s661_s30 = sadd.s32 %s3854_s19, %s3025_s28 }
  0x17   : > { %v746_v6 = vld [vmem:[%s653_s17] sm:$0xf]  ;;  %v751_v7 = vld [vmem:[%s653_s17 + $0x4] sm:$0x1]  ;;  %s3026_s13 = sshll.u32 %s661_s30, 2  ;;  %s676_s28 = sadd.s32 3, %s3708_s21 }
  0x18   : > { %v880_v8 = vld [vmem:[%s653_s17] sm:$0xe]  ;;  %v3045_v9 = vcombine.low %v746_v6, %v751_v7  ;;  %3355 = vmatmul.mubr.msk.bf16.vlgmr.msra.gmra.mrb[0].mxu1 %vm781_vm1, %v746_v6  ;;  %v946_v10 = vld [vmem:[%s653_s17 + $0x4] sm:$0x3]  ;;  %s3880_s18 = scalar_lea.vmem %s4324_s1, %s3026_s13  ;;  %s665_s13 = sadd.s32 2, %s3708_s21 }
  0x19   : > { %v3064_v11 = vcombine.low %v880_v8, %v946_v10  ;;  %3367 = vmatpush3.bf16.msra.mxu1 %v3617_v5  ;;  %3370 = vmatprep.mubr.msk.bf16.mxu1 %vm3727_vm0, %v3726_v1  ;;  %v1081_v23 = vld [vmem:[%s3880_s18] sm:$0xf]  ;;  %v3888_v24 = vld [vmem:[%s3880_s18 + $0x4] sm:$0x1]  ;;  %v3056_v28 = vcombine.low %v880_v8, %v751_v7  ;;  %p668_p8 = scmp.lt.s32.totalorder %s665_s13, 13  ;;  %p3929_p9 = scmp.lt.s32.totalorder %s676_s28, 13 }
  0x1a   : > { %v763_v13 = vshrl.u32 %v3045_v9, 16  ;;  %v765_v14 = vshll.u32 %v3045_v9, 16  ;;  %3368 = vmatprep.subr.bf16.mxu1 %v3726_v1  ;;  %v3079_v26 = vcombine.low %v1081_v23, %v3888_v24  ;;  %v3892_v27 = vld [vmem:[%s3880_s18] sm:$0xe]  ;;  %v1222_v29 = vld [vmem:[%s3880_s18 + $0x4] sm:$0x3] }
  0x1b   : > { %v956_v15 = vshrl.u32 %v3064_v11, 16  ;;  %v959_v16 = vshll.u32 %v3064_v11, 16  ;;  %v3095_v32 = vcombine.low %v3892_v27, %v1222_v29  ;;  %v889_v37 = vrot.slane %v3056_v28, 1  ;;  %s4356_s13 = smov (!%p668_p8, %s665_s13), 13  ;;  %v1019_v47 = vld [vmem:[%s3880_s18] sm:$0xf] }
  0x1c   : > { %v767_v17 = vrot.slane %v765_v14, 1  ;;  %v1096_v31 = vshll.u32 %v3079_v26, 16  ;;  %v1094_v33 = vshrl.u32 %v3079_v26, 16  ;;  %s3027_s15 = sshll.u32 %s4356_s13, 1  ;;  %s4358_s28 = smov (!%p3929_p9, %s676_s28), 13  ;;  %v3087_v57 = vcombine.low %v3892_v27, %v3888_v24  ;;  %v3633_v7 = vld [vmem:[%s4330_s7 + $0x28] sm:$0xff]  }
  0x1d   : > { %v958_v18 = vrot.slane %v956_v15, 1  ;;  %v961_v19 = vrot.slane %v959_v16, 2  ;;  %3369 = vmatpush3.bf16.msra.mxu1 %v3619_v12  ;;  %v1232_v38 = vshrl.u32 %v3095_v32, 16  ;;  %v1235_v39 = vshll.u32 %v3095_v32, 16  ;;  %s672_s16 = sadd.s32 %s3854_s19, %s3027_s15  ;;  %s3029_s29 = sshll.u32 %s4358_s28, 1  ;;  %v3636_v12 = vld [vmem:[%s4330_s7 + $0x100] sm:$0xff]  }
  0x1e   : > { %v768_v21 = vor.u32 %v767_v17, %v763_v13  ;;  %3382 = vmatprep.subr.bf16.mxu1 %v3726_v1  ;;  %v1098_v36 = vrot.slane %v1096_v31, 1  ;;  %s3028_s17 = sshll.u32 %s672_s16, 2  ;;  %s683_s14 = sadd.s32 %s3854_s19, %s3029_s29  ;;  %v1165_v62 = vrot.slane %v3087_v57, 1  ;;  %v3639_v13 = vld [vmem:[%s4330_s7 + $0x178] sm:$0xff]   ;;  %v3645_v24 = vld [vmem:[%s4330_s7 + $0xa8] sm:$0xff]   ;;  %v3642_v26 = vld [vmem:[%s4330_s7 + $0x30] sm:$0xff]  }
  0x1f   : > { %v962_v25 = vor.u32 %v961_v19, %v958_v18  ;;  %v1234_v43 = vrot.slane %v1232_v38, 1  ;;  %v1237_v44 = vrot.slane %v1235_v39, 2  ;;  %s3944_s16 = scalar_lea.vmem %s4325_s2, %s3028_s17  ;;  %s3030_s15 = sshll.u32 %s683_s14, 2  ;;  %v3643_v18 = vld [vmem:[%s4330_s7 + $0xa0] sm:$0xff]   ;;  %v3647_v39 = vld [vmem:[%s4330_s7 + $0x110] sm:$0xff]  }
  0x20   : > { %3347 = vmatmul.mubr.msk.bf16.vlgmr.msra.gmra.mrb[0].mxu0 %vm781_vm1, %v768_v21  ;;  %v1099_v40 = vor.u32 %v1098_v36, %v1094_v33  ;;  %v1357_v48 = vld [vmem:[%s3944_s16] sm:$0xf]  ;;  %v3950_v49 = vld [vmem:[%s3944_s16 + $0x4] sm:$0x1]  ;;  %s687_s0 = sadd.s32 4, %s3708_s21  ;;  %s3986_s17 = scalar_lea.vmem %s4326_s3, %s3030_s15  ;;  %v3638_v21 = vld [vmem:[%s4330_s7 + $0x108] sm:$0xff]  }
  0x21   : > { %3359 = vmatpush3.bf16.msra.mxu0 %v3616_v20  ;;  %3362 = vmatprep.mubr.msk.bf16.mxu0 %vm3727_vm0, %v3726_v1  ;;  %v3110_v50 = vcombine.low %v1357_v48, %v3950_v49  ;;  %v3954_v51 = vld [vmem:[%s3944_s16] sm:$0xe]  ;;  %v1498_v52 = vld [vmem:[%s3944_s16 + $0x4] sm:$0x3]  ;;  %v1238_v53 = vor.u32 %v1237_v44, %v1234_v43  ;;  %p690_p10 = scmp.lt.s32.totalorder %s687_s0, 13  ;;  %s698_s28 = sadd.s32 5, %s3708_s21 }
  0x22   : > { %3360 = vmatprep.subr.bf16.mxu0 %v3726_v1  ;;  %3371 = vmatmul.mubr.msk.bf16.vlgmr.msra.gmra.mrb[4].mxu1 %vm781_vm1, %v962_v25  ;;  %v3126_v59 = vcombine.low %v3954_v51, %v1498_v52  ;;  %v1633_v5 = vld [vmem:[%s3986_s17] sm:$0xf]  ;;  %v3997_v6 = vld [vmem:[%s3986_s17 + $0x4] sm:$0x1]  ;;  %v3118_v19 = vcombine.low %v3954_v51, %v3950_v49  ;;  %p4046_p11 = scmp.lt.s32.totalorder %s698_s28, 13  ;;  %v3644_v33 = vld [vmem:[%s4330_s7 + $0x38] sm:$0xff]   ;;  %s722_s14 = scalar_lea.vmem %s4332_s9, %s4352_s22 }
  0x23   : > { %3383 = vmatpush3.bf16.msra.mxu1 %v3621_v22  ;;  %3386 = vmatprep.mubr.msk.bf16.mxu1 %vm3727_vm0, %v3726_v1  ;;  %v1372_v55 = vshll.u32 %v3110_v50, 16  ;;  %v1370_v60 = vshrl.u32 %v3110_v50, 16  ;;  %s4360_s0 = smov (!%p690_p10, %s687_s0), 13  ;;  %v3141_v10 = vcombine.low %v1633_v5, %v3997_v6  ;;  %v1295_v11 = vld [vmem:[%s3944_s16] sm:$0xf]  ;;  %v3649_v43 = vld [vmem:[%s4330_s7 + $0x118] sm:$0xff]  }
  0x24   : > { %3384 = vmatprep.subr.bf16.mxu1 %v3726_v1  ;;  %v1508_v2 = vshrl.u32 %v3126_v59, 16  ;;  %v1511_v4 = vshll.u32 %v3126_v59, 16  ;;  %s3031_s30 = sshll.u32 %s4360_s0, 1  ;;  %v4020_v14 = vld [vmem:[%s3986_s17] sm:$0xe]  ;;  %v1441_v25 = vrot.slane %v3118_v19, 1 }
  0x25   : > { %3361 = vmatpush3.bf16.msra.mxu0 %v3618_v30  ;;  %v1374_v61 = vrot.slane %v1372_v55, 1  ;;  %s694_s13 = sadd.s32 %s3854_s19, %s3031_s30  ;;  %v1774_v15 = vld [vmem:[%s3986_s17 + $0x4] sm:$0x3]  ;;  %v1648_v17 = vshll.u32 %v3141_v10, 16  ;;  %v1646_v22 = vshrl.u32 %v3141_v10, 16  ;;  %s4362_s28 = smov (!%p4046_p11, %s698_s28), 13 }
  0x26   : > { %3374 = vmatprep.subr.bf16.mxu0 %v3726_v1  ;;  %v1510_v8 = vrot.slane %v1508_v2, 1  ;;  %v1513_v9 = vrot.slane %v1511_v4, 2  ;;  %s3032_s15 = sshll.u32 %s694_s13, 2  ;;  %v3157_v20 = vcombine.low %v4020_v14, %v1774_v15  ;;  %v3648_v28 = vld [vmem:[%s4330_s7 + $0x180] sm:$0xff]   ;;  %s3033_s13 = sshll.u32 %s4362_s28, 1  ;;  %v3656_v50 = vld [vmem:[%s4330_s7 + $0xb8] sm:$0xff]  }
  0x27   : > { %3385 = vmatpush3.bf16.msra.mxu1 %v3623_v35  ;;  %v1375_v3 = vor.u32 %v1374_v61, %v1370_v60  ;;  %v1650_v23 = vrot.slane %v1648_v17, 1  ;;  %s4044_s30 = scalar_lea.vmem %s4327_s4, %s3032_s15  ;;  %v1571_v38 = vld [vmem:[%s3986_s17] sm:$0xf]  ;;  %s705_s20 = sadd.s32 %s3854_s19, %s3033_s13  ;;  %v3655_v59 = vld [vmem:[%s4330_s7 + $0x48] sm:$0xff]   ;;  %v3664_v15 = vld [vmem:[%s4330_s7 + $0x50] sm:$0xff]  }
  0x28   : > { %3363 = vmatmul.mubr.msk.bf16.vlgmr.msra.gmra.mrb[4].mxu0 %vm781_vm1, %v889_v37  ;;  %3398 = vmatprep.subr.bf16.mxu1 %v3726_v1  ;;  %v1514_v16 = vor.u32 %v1513_v9, %v1510_v8  ;;  %v1784_v27 = vshrl.u32 %v3157_v20, 16  ;;  %v1909_v29 = vld [vmem:[%s4044_s30] sm:$0xf]  ;;  %v1787_v31 = vshll.u32 %v3157_v20, 16  ;;  %v4067_v32 = vld [vmem:[%s4044_s30 + $0x4] sm:$0x1] }
  0x29   : > { %3375 = vmatpush3.bf16.msra.mxu0 %v3620_v34  ;;  %3378 = vmatprep.mubr.msk.bf16.mxu0 %vm3727_vm0, %v3726_v1  ;;  %v1651_v30 = vor.u32 %v1650_v23, %v1646_v22  ;;  %v3172_v36 = vcombine.low %v1909_v29, %v4067_v32  ;;  %v3650_v37 = vld [vmem:[%s4330_s7 + $0x188] sm:$0xff]   ;;  %v4098_v44 = vld [vmem:[%s4044_s30] sm:$0xe]  ;;  %s3034_s17 = sshll.u32 %s705_s20, 2  ;;  %s709_s13 = sadd.s32 6, %s3708_s21  ;;  %v3666_v22 = vld [vmem:[%s4330_s7 + $0x58] sm:$0xff]  }
  0x2a   : > { %3376 = vmatprep.subr.bf16.mxu0 %v3726_v1  ;;  %3387 = vmatmul.mubr.msk.bf16.vlgmr.msra.gmra.mrb[8].mxu1 %vm781_vm1, %v1099_v40  ;;  %v1786_v34 = vrot.slane %v1784_v27, 1  ;;  %v1789_v35 = vrot.slane %v1787_v31, 2  ;;  %p4116_p12 = scmp.lt.s32.totalorder %s709_s13, 13  ;;  %s4124_s29 = scalar_lea.vmem %s4328_s5, %s3034_s17  ;;  %v3653_v52 = vld [vmem:[%s4330_s7 + $0x40] sm:$0xff]   ;;  %v3180_v8 = vcombine.low %v4098_v44, %v4067_v32  ;;  %v3660_v9 = vld [vmem:[%s4330_s7 + $0x128] sm:$0xff]   ;;  %v3676_v31 = vld [vmem:[%s4330_s7 + $0xd0] sm:$0xff]  }
  0x2b   : > { %3399 = vmatpush3.bf16.msra.mxu1 %v3626_v41  ;;  %3402 = vmatprep.mubr.msk.bf16.mxu1 %vm3727_vm0, %v3726_v1  ;;  %v3654_v41 = vld [vmem:[%s4330_s7 + $0xb0] sm:$0xff]   ;;  %v2185_v57 = vld [vmem:[%s4124_s29] sm:$0xf]  ;;  %s4366_s21 = smov (!%p725_p13, %s3708_s21), 7 }
  0x2c   : > { %3400 = vmatprep.subr.bf16.mxu1 %v3726_v1  ;;  %v1790_v40 = vor.u32 %v1789_v35, %v1786_v34  ;;  %s4364_s13 = smov (!%p4116_p12, %s709_s13), 13  ;;  %v3658_v2 = vld [vmem:[%s4330_s7 + $0x120] sm:$0xff]   ;;  %v3671_v35 = vld [vmem:[%s4330_s7 + $0x138] sm:$0xff]  }
  0x2d   : > { %3377 = vmatpush3.bf16.msra.mxu0 %v3622_v42  ;;  %v1924_v42 = vshll.u32 %v3172_v36, 16  ;;  %s3035_s16 = sshll.u32 %s4364_s13, 1  ;;  %v3665_v5 = vld [vmem:[%s4330_s7 + $0xc0] sm:$0xff]  }
  0x2e   : > { %3390 = vmatprep.subr.bf16.mxu0 %v3726_v1  ;;  %s716_s18 = sadd.s32 %s3854_s19, %s3035_s16  ;;  %v3670_v19 = vld [vmem:[%s4330_s7 + $0x1a0] sm:$0xff]  }
  0x2f   : > { %3401 = vmatpush3.bf16.msra.mxu1 %v3628_v46  ;;  %v3149_v46 = vcombine.low %v4020_v14, %v3997_v6  ;;  %v1926_v48 = vrot.slane %v1924_v42, 1  ;;  %v4165_v6 = vld [vmem:[%s4124_s29] sm:$0xe]  ;;  %s3036_s19 = sshll.u32 %s716_s18, 2  ;;  %v1993_v14 = vrot.slane %v3180_v8, 1 }
  0x30   : > { %3379 = vmatmul.mubr.msk.bf16.vlgmr.msra.gmra.mrb[8].mxu0 %vm781_vm1, %v1019_v47  ;;  %3414 = vmatprep.subr.bf16.mxu1 %v3726_v1  ;;  %v1922_v47 = vshrl.u32 %v3172_v36, 16  ;;  %s4189_s0 = scalar_lea.vmem %s4329_s6, %s3036_s19  ;;  %v2123_v27 = vld [vmem:[%s4124_s29] sm:$0xf] }
  0x31   : > { %3391 = vmatpush3.bf16.msra.mxu0 %v3625_v45  ;;  %3394 = vmatprep.mubr.msk.bf16.mxu0 %vm3727_vm0, %v3726_v1  ;;  %v2050_v45 = vld [vmem:[%s4044_s30 + $0x4] sm:$0x3]  ;;  %v1717_v51 = vrot.slane %v3149_v46, 1  ;;  %v2461_v20 = vld [vmem:[%s4189_s0] sm:$0xf]  ;;  %v3677_v46 = vld [vmem:[%s4330_s7 + $0x68] sm:$0xff]  }
  0x32   : > { %3392 = vmatprep.subr.bf16.mxu0 %v3726_v1  ;;  %3403 = vmatmul.mubr.msk.bf16.vlgmr.msra.gmra.mrb[12].mxu1 %vm781_vm1, %v1238_v53  ;;  %v3188_v49 = vcombine.low %v4098_v44, %v2050_v45  ;;  %v1927_v53 = vor.u32 %v1926_v48, %v1922_v47  ;;  %v2536_v32 = vld [vmem:[%s4189_s0] sm:$0xe]  ;;  %v3681_v45 = vld [vmem:[%s4330_s7 + $0x1b0] sm:$0xff]  }
  0x33   : > { %3415 = vmatpush3.bf16.msra.mxu1 %v3632_v54  ;;  %3418 = vmatprep.mubr.msk.bf16.mxu1 %vm3727_vm0, %v3726_v1 }
  0x34   : > { %3416 = vmatprep.subr.bf16.mxu1 %v3726_v1  ;;  %v2060_v54 = vshrl.u32 %v3188_v49, 16  ;;  %v2063_v55 = vshll.u32 %v3188_v49, 16  ;;  %v3683_v49 = vld [vmem:[%s4330_s7 + $0x1b8] sm:$0xff]  }
  0x35   : > { %3393 = vmatpush3.bf16.msra.mxu0 %v3627_v56  ;;  %v3659_v56 = vld [vmem:[%s4330_s7 + $0x190] sm:$0xff]  }
  0x36   : > { %3406 = vmatprep.subr.bf16.mxu0 %v3726_v1  ;;  %v2062_v60 = vrot.slane %v2060_v54, 1  ;;  %v2065_v61 = vrot.slane %v2063_v55, 2  ;;  %v3682_v54 = vld [vmem:[%s4330_s7 + $0x148] sm:$0xff]  }
  0x37   : > { %3417 = vmatpush3.bf16.msra.mxu1 %v3634_v58  ;;  %v4135_v58 = vld [vmem:[%s4124_s29 + $0x4] sm:$0x1] }
  0x38   : > { %3395 = vmatmul.mubr.msk.bf16.vlgmr.msra.gmra.mrb[12].mxu0 %vm781_vm1, %v1165_v62  ;;  %3430 = vmatprep.subr.bf16.mxu1 %v3726_v1  ;;  %v3203_v62 = vcombine.low %v2185_v57, %v4135_v58  ;;  %v3211_v34 = vcombine.low %v4165_v6, %v4135_v58 }
  0x39   : > { %3407 = vmatpush3.bf16.msra.mxu0 %v3631_v63  ;;  %3410 = vmatprep.mubr.msk.bf16.mxu0 %vm3727_vm0, %v3726_v1  ;;  %v3661_v63 = vld [vmem:[%s4330_s7 + $0x198] sm:$0xff]  }
  0x3a   : > { %3408 = vmatprep.subr.bf16.mxu0 %v3726_v1  ;;  %3419 = vmatmul.mubr.msk.bf16.vlgmr.msra.gmra.mrb[16].mxu1 %vm781_vm1, %v1375_v3  ;;  %v2066_v3 = vor.u32 %v2065_v61, %v2062_v60  ;;  %v2200_v4 = vshll.u32 %v3203_v62, 16  ;;  %v2198_v10 = vshrl.u32 %v3203_v62, 16 }
  0x3b   : > { %3431 = vmatpush3.bf16.msra.mxu1 %v3637_v0  ;;  %3434 = vmatprep.mubr.msk.bf16.mxu1 %vm3727_vm0, %v3726_v1  ;;  %v1847_v0 = vld [vmem:[%s4044_s30] sm:$0xf] }
  0x3c   : > { %3432 = vmatprep.subr.bf16.mxu1 %v3726_v1 }
  0x3d   : > { %3409 = vmatpush3.bf16.msra.mxu0 %v3633_v7  ;;  %v2326_v7 = vld [vmem:[%s4124_s29 + $0x4] sm:$0x3] }
  0x3e   : > { %3422 = vmatprep.subr.bf16.mxu0 %v3726_v1 }
  0x3f   : > { %3433 = vmatpush3.bf16.msra.mxu1 %v3639_v13  ;;  %v3667_v13 = vld [vmem:[%s4330_s7 + $0xc8] sm:$0xff]  }
  0x40   : > { %3411 = vmatmul.mubr.msk.bf16.vlgmr.msra.gmra.mrb[16].mxu0 %vm781_vm1, %v1295_v11  ;;  %3446 = vmatprep.subr.bf16.mxu1 %v3726_v1  ;;  %v2202_v11 = vrot.slane %v2200_v4, 1 }
  0x41   : > { %3423 = vmatpush3.bf16.msra.mxu0 %v3636_v12  ;;  %3426 = vmatprep.mubr.msk.bf16.mxu0 %vm3727_vm0, %v3726_v1  ;;  %v3219_v12 = vcombine.low %v4165_v6, %v2326_v7 }
  0x42   : > { %3424 = vmatprep.subr.bf16.mxu0 %v3726_v1  ;;  %3435 = vmatmul.mubr.msk.bf16.vlgmr.msra.gmra.mrb[20].mxu1 %vm781_vm1, %v1514_v16  ;;  %v2203_v16 = vor.u32 %v2202_v11, %v2198_v10 }
  0x43   : > { %3447 = vmatpush3.bf16.msra.mxu1 %v3643_v18  ;;  %3450 = vmatprep.mubr.msk.bf16.mxu1 %vm3727_vm0, %v3726_v1  ;;  %v2336_v17 = vshrl.u32 %v3219_v12, 16  ;;  %v2339_v18 = vshll.u32 %v3219_v12, 16 }
  0x44   : > { %3448 = vmatprep.subr.bf16.mxu1 %v3726_v1 }
  0x45   : > { %3425 = vmatpush3.bf16.msra.mxu0 %v3638_v21  ;;  %v4200_v21 = vld [vmem:[%s4189_s0 + $0x4] sm:$0x1]  ;;  %v2338_v23 = vrot.slane %v2336_v17, 1 }
  0x46   : > { %3438 = vmatprep.subr.bf16.mxu0 %v3726_v1 }
  0x47   : > { %3449 = vmatpush3.bf16.msra.mxu1 %v3645_v24  ;;  %v2341_v24 = vrot.slane %v2339_v18, 2 }
  0x48   : > { %3427 = vmatmul.mubr.msk.bf16.vlgmr.msra.gmra.mrb[20].mxu0 %vm781_vm1, %v1441_v25  ;;  %3462 = vmatprep.subr.bf16.mxu1 %v3726_v1  ;;  %v3234_v25 = vcombine.low %v2461_v20, %v4200_v21 }
  0x49   : > { %3439 = vmatpush3.bf16.msra.mxu0 %v3642_v26  ;;  %3442 = vmatprep.mubr.msk.bf16.mxu0 %vm3727_vm0, %v3726_v1  ;;  %v3672_v26 = vld [vmem:[%s4330_s7 + $0x1a8] sm:$0xff]   ;;  %v2342_v29 = vor.u32 %v2341_v24, %v2338_v23 }
  0x4a   : > { %3440 = vmatprep.subr.bf16.mxu0 %v3726_v1  ;;  %3451 = vmatmul.mubr.msk.bf16.vlgmr.msra.gmra.mrb[24].mxu1 %vm781_vm1, %v1651_v30  ;;  %v2476_v30 = vshll.u32 %v3234_v25, 16  ;;  %v2474_v36 = vshrl.u32 %v3234_v25, 16 }
  0x4b   : > { %3463 = vmatpush3.bf16.msra.mxu1 %v3648_v28  ;;  %3466 = vmatprep.mubr.msk.bf16.mxu1 %vm3727_vm0, %v3726_v1  ;;  %v3669_v28 = vld [vmem:[%s4330_s7 + $0x130] sm:$0xff]  }
  0x4c   : > { %3464 = vmatprep.subr.bf16.mxu1 %v3726_v1 }
  0x4d   : > { %3441 = vmatpush3.bf16.msra.mxu0 %v3644_v33  ;;  %v2602_v33 = vld [vmem:[%s4189_s0 + $0x4] sm:$0x3] }
  0x4e   : > { %3454 = vmatprep.subr.bf16.mxu0 %v3726_v1 }
  0x4f   : > { %3465 = vmatpush3.bf16.msra.mxu1 %v3650_v37  ;;  %v2478_v37 = vrot.slane %v2476_v30, 1 }
  0x50   : > { %3443 = vmatmul.mubr.msk.bf16.vlgmr.msra.gmra.mrb[24].mxu0 %vm781_vm1, %v1571_v38  ;;  %3478 = vmatprep.subr.bf16.mxu1 %v3726_v1  ;;  %v3250_v38 = vcombine.low %v2536_v32, %v2602_v33 }
  0x51   : > { %3455 = vmatpush3.bf16.msra.mxu0 %v3647_v39  ;;  %3458 = vmatprep.mubr.msk.bf16.mxu0 %vm3727_vm0, %v3726_v1  ;;  %v3678_v39 = vld [vmem:[%s4330_s7 + $0xd8] sm:$0xff]   ;;  %v2479_v42 = vor.u32 %v2478_v37, %v2474_v36 }
  0x52   : > { %3456 = vmatprep.subr.bf16.mxu0 %v3726_v1  ;;  %3467 = vmatmul.mubr.msk.bf16.vlgmr.msra.gmra.mrb[28].mxu1 %vm781_vm1, %v1790_v40  ;;  %v2269_v40 = vrot.slane %v3211_v34, 1  ;;  %v2615_v44 = vshll.u32 %v3250_v38, 16 }
  0x53   : > { %3479 = vmatpush3.bf16.msra.mxu1 %v3654_v41  ;;  %3482 = vmatprep.mubr.msk.bf16.mxu1 %vm3727_vm0, %v3726_v1  ;;  %v3675_v41 = vld [vmem:[%s4330_s7 + $0x60] sm:$0xff]  }
  0x54   : > { %3480 = vmatprep.subr.bf16.mxu1 %v3726_v1  ;;  %v2617_v48 = vrot.slane %v2615_v44, 2 }
  0x55   : > { %3457 = vmatpush3.bf16.msra.mxu0 %v3649_v43  ;;  %v2612_v43 = vshrl.u32 %v3250_v38, 16 }
  0x56   : > { %3470 = vmatprep.subr.bf16.mxu0 %v3726_v1 }
  0x57   : > { %3481 = vmatpush3.bf16.msra.mxu1 %v3656_v50  ;;  %v2614_v47 = vrot.slane %v2612_v43, 1  ;;  %v2399_v50 = vld [vmem:[%s4189_s0] sm:$0xf]  ;;  %s3037_s0 = sshll.u32 %s4352_s22, 3 }
  0x58   : > { %3459 = vmatmul.mubr.msk.bf16.vlgmr.msra.gmra.mrb[28].mxu0 %vm781_vm1, %v1717_v51  ;;  %3494 = vmatprep.subr.bf16.mxu1 %v3726_v1  ;;  %v3680_v51 = vld [vmem:[%s4330_s7 + $0x140] sm:$0xff]   ;;  %s4285_s15 = sadd.s32 %s3037_s0, %s4366_s21 }
  0x59   : > { %3471 = vmatpush3.bf16.msra.mxu0 %v3653_v52  ;;  %3474 = vmatprep.mubr.msk.bf16.mxu0 %vm3727_vm0, %v3726_v1  ;;  %v2618_v52 = vor.u32 %v2617_v48, %v2614_v47  ;;  %s3038_s29 = sshll.u32 %s4285_s15, 2  ;;  %s737_s19 = scalar_lea.vmem %s4334_s11, %s4285_s15 }
  0x5a   : > { %3472 = vmatprep.subr.bf16.mxu0 %v3726_v1  ;;  %3483 = vmatmul.mubr.msk.bf16.vlgmr.msra.gmra.mrb[32].mxu1 %vm781_vm1, %v1927_v53  ;;  %v3242_v53 = vcombine.low %v2536_v32, %v4200_v21  ;;  %s730_s30 = scalar_lea.vmem %s4333_s10, %s3038_s29  ;;  %s744_s16 = scalar_lea.vmem %s4335_s12, %s4285_s15 }
  0x5b   : > { %3495 = vmatpush3.bf16.msra.mxu1 %v3659_v56  ;;  %3498 = vmatprep.mubr.msk.bf16.mxu1 %vm3727_vm0, %v3726_v1 }
  0x5c   : > { %3496 = vmatprep.subr.bf16.mxu1 %v3726_v1  ;;  %v2545_v55 = vrot.slane %v3242_v53, 1 }
  0x5d   : > { %3473 = vmatpush3.bf16.msra.mxu0 %v3655_v59 }
  0x5e   : > { %3486 = vmatprep.subr.bf16.mxu0 %v3726_v1 }
  0x5f   : > { %3497 = vmatpush3.bf16.msra.mxu1 %v3661_v63 }
  0x60   : > { %3475 = vmatmul.mubr.msk.bf16.vlgmr.msra.gmra.mrb[32].mxu0 %vm781_vm1, %v1847_v0  ;;  %3510 = vmatprep.subr.bf16.mxu1 %v3726_v1 }
  0x61   : > { %3487 = vmatpush3.bf16.msra.mxu0 %v3658_v2  ;;  %3490 = vmatprep.mubr.msk.bf16.mxu0 %vm3727_vm0, %v3726_v1 }
  0x62   : > { %3488 = vmatprep.subr.bf16.mxu0 %v3726_v1  ;;  %3499 = vmatmul.mubr.msk.bf16.vlgmr.msra.gmra.mrb[36].mxu1 %vm781_vm1, %v2066_v3 }
  0x63   : > { %3511 = vmatpush3.bf16.msra.mxu1 %v3665_v5  ;;  %3514 = vmatprep.mubr.msk.bf16.mxu1 %vm3727_vm0, %v3726_v1 }
  0x64   : > { %3512 = vmatprep.subr.bf16.mxu1 %v3726_v1 }
  0x65   : > { %3489 = vmatpush3.bf16.msra.mxu0 %v3660_v9 }
  0x66   : > { %3502 = vmatprep.subr.bf16.mxu0 %v3726_v1 }
  0x67   : > { %3513 = vmatpush3.bf16.msra.mxu1 %v3667_v13 }
  0x68   : > { %3491 = vmatmul.mubr.msk.bf16.vlgmr.msra.gmra.mrb[36].mxu0 %vm781_vm1, %v1993_v14  ;;  %3526 = vmatprep.subr.bf16.mxu1 %v3726_v1 }
  0x69   : > { %3503 = vmatpush3.bf16.msra.mxu0 %v3664_v15  ;;  %3506 = vmatprep.mubr.msk.bf16.mxu0 %vm3727_vm0, %v3726_v1 }
  0x6a   : > { %3504 = vmatprep.subr.bf16.mxu0 %v3726_v1  ;;  %3515 = vmatmul.mubr.msk.bf16.vlgmr.msra.gmra.mrb[40].mxu1 %vm781_vm1, %v2203_v16 }
  0x6b   : > { %3527 = vmatpush3.bf16.msra.mxu1 %v3670_v19  ;;  %3530 = vmatprep.mubr.msk.bf16.mxu1 %vm3727_vm0, %v3726_v1 }
  0x6c   : > { %3528 = vmatprep.subr.bf16.mxu1 %v3726_v1 }
  0x6d   : > { %3505 = vmatpush3.bf16.msra.mxu0 %v3666_v22 }
  0x6e   : > { %3518 = vmatprep.subr.bf16.mxu0 %v3726_v1 }
  0x6f   : > { %3529 = vmatpush3.bf16.msra.mxu1 %v3672_v26 }
  0x70   : > { %3507 = vmatmul.mubr.msk.bf16.vlgmr.msra.gmra.mrb[40].mxu0 %vm781_vm1, %v2123_v27  ;;  %3542 = vmatprep.subr.bf16.mxu1 %v3726_v1 }
  0x71   : > { %3519 = vmatpush3.bf16.msra.mxu0 %v3669_v28  ;;  %3522 = vmatprep.mubr.msk.bf16.mxu0 %vm3727_vm0, %v3726_v1 }
  0x72   : > { %3520 = vmatprep.subr.bf16.mxu0 %v3726_v1  ;;  %3531 = vmatmul.mubr.msk.bf16.vlgmr.msra.gmra.mrb[44].mxu1 %vm781_vm1, %v2342_v29 }
  0x73   : > { %3543 = vmatpush3.bf16.msra.mxu1 %v3676_v31  ;;  %3546 = vmatprep.mubr.msk.bf16.mxu1 %vm3727_vm0, %v3726_v1 }
  0x74   : > { %3544 = vmatprep.subr.bf16.mxu1 %v3726_v1 }
  0x75   : > { %3521 = vmatpush3.bf16.msra.mxu0 %v3671_v35 }
  0x76   : > { %3534 = vmatprep.subr.bf16.mxu0 %v3726_v1 }
  0x77   : > { %3545 = vmatpush3.bf16.msra.mxu1 %v3678_v39 }
  0x78   : > { %3523 = vmatmul.mubr.msk.bf16.vlgmr.msra.gmra.mrb[44].mxu0 %vm781_vm1, %v2269_v40  ;;  %3558 = vmatprep.subr.bf16.mxu1 %v3726_v1 }
  0x79   : > { %3535 = vmatpush3.bf16.msra.mxu0 %v3675_v41  ;;  %3538 = vmatprep.mubr.msk.bf16.mxu0 %vm3727_vm0, %v3726_v1 }
  0x7a   : > { %3536 = vmatprep.subr.bf16.mxu0 %v3726_v1  ;;  %3547 = vmatmul.mubr.msk.bf16.vlgmr.msra.gmra.mrb[48].mxu1 %vm781_vm1, %v2479_v42 }
  0x7b   : > { %3559 = vmatpush3.bf16.msra.mxu1 %v3681_v45  ;;  %3562 = vmatprep.mubr.msk.bf16.mxu1 %vm3727_vm0, %v3726_v1 }
  0x7c   : > { %3560 = vmatprep.subr.bf16.mxu1 %v3726_v1 }
  0x7d   : > { %3537 = vmatpush3.bf16.msra.mxu0 %v3677_v46 }
  0x7e   : > { %3550 = vmatprep.subr.bf16.mxu0 %v3726_v1 }
  0x7f   : > { %3561 = vmatpush3.bf16.msra.mxu1 %v3683_v49 }
  0x80   : > { %3539 = vmatmul.mubr.msk.bf16.vlgmr.msra.gmra.mrb[48].mxu0 %vm781_vm1, %v2399_v50 }
  0x81   : > { %3551 = vmatpush3.bf16.msra.mxu0 %v3680_v51  ;;  %3554 = vmatprep.mubr.msk.bf16.mxu0 %vm3727_vm0, %v3726_v1 }
  0x82   : > { %3552 = vmatprep.subr.bf16.mxu0 %v3726_v1  ;;  %3563 = vmatmul.mubr.msk.bf16.vlgmr.msra.gmra.mrb[52].mxu1 %vm781_vm1, %v2618_v52 }
  0x85   : > { %3553 = vmatpush3.bf16.msra.mxu0 %v3682_v54 }
  0x88   : > { %3555 = vmatmul.mubr.msk.bf16.vlgmr.msra.gmra.mrb[52].mxu0 %vm781_vm1, %v2545_v55 }
  0xeb   : > { %v874_v56 = vpop.f32.mrb[0].mxu1 }
  0xec   : > { %v3356_v57 = vpop.f32.mrb[1].mxu1 }
  0xed   : > { %v877_v58 = vpop.f32.mrb[2].mxu1 }
  0xee   : > { %v3357_v59 = vpop.f32.mrb[3].mxu1 }
  0xf3   : > { %v819_v60 = vpop.f32.mrb[0].mxu0 }
  0xf4   : > { %v875_v61 = vadd.f32 %v874_v56, %v819_v60  ;;  %v3348_v62 = vpop.f32.mrb[1].mxu0 }
  0xf5   : > { %v822_v63 = vpop.f32.mrb[2].mxu0  ;;  %v1012_v0 = vpop.f32.mrb[4].mxu1 }
  0xf6   : > { %v3349_v2 = vpop.f32.mrb[3].mxu0  ;;  %v3372_v3 = vpop.f32.mrb[5].mxu1 }
  0xf7   : > { %v1015_v4 = vpop.f32.mrb[6].mxu1 }
  0xf8   : > { %v3373_v5 = vpop.f32.mrb[7].mxu1 }
  0xfb   : > { %v939_v1 = vpop.f32.mrb[4].mxu0 }
  0xfc   : > { %v945_v6 = vadd.f32 %v939_v1, %v875_v61  ;;  %v3364_v7 = vpop.f32.mrb[5].mxu0 }
  0xfd   : > { %v942_v8 = vpop.f32.mrb[6].mxu0  ;;  %v1149_v9 = vpop.f32.mrb[8].mxu1 }
  0xfe   : > { %v3365_v10 = vpop.f32.mrb[7].mxu0  ;;  %v1018_v11 = vadd.f32 %v1012_v0, %v945_v6  ;;  %v3388_v12 = vpop.f32.mrb[9].mxu1 }
  0xff   : > { %v1152_v13 = vpop.f32.mrb[10].mxu1 }
 0x100   : > { %v3389_v14 = vpop.f32.mrb[11].mxu1 }
 0x103   : > { %v1074_v15 = vpop.f32.mrb[8].mxu0 }
 0x104   : > { %v1080_v16 = vadd.f32 %v1074_v15, %v1018_v11  ;;  %v3380_v17 = vpop.f32.mrb[9].mxu0 }
 0x105   : > { %v1077_v18 = vpop.f32.mrb[10].mxu0  ;;  %v1288_v19 = vpop.f32.mrb[12].mxu1 }
 0x106   : > { %v3381_v20 = vpop.f32.mrb[11].mxu0  ;;  %v1155_v21 = vadd.f32 %v1149_v9, %v1080_v16  ;;  %v3404_v22 = vpop.f32.mrb[13].mxu1 }
 0x107   : > { %v1291_v23 = vpop.f32.mrb[14].mxu1 }
 0x108   : > { %v3405_v24 = vpop.f32.mrb[15].mxu1 }
 0x10b   : > { %v1215_v25 = vpop.f32.mrb[12].mxu0 }
 0x10c   : > { %v1221_v26 = vadd.f32 %v1215_v25, %v1155_v21  ;;  %v3396_v27 = vpop.f32.mrb[13].mxu0 }
 0x10d   : > { %v1218_v28 = vpop.f32.mrb[14].mxu0  ;;  %v1425_v29 = vpop.f32.mrb[16].mxu1 }
 0x10e   : > { %v3397_v30 = vpop.f32.mrb[15].mxu0  ;;  %v1294_v31 = vadd.f32 %v1288_v19, %v1221_v26  ;;  %v3420_v32 = vpop.f32.mrb[17].mxu1 }
 0x10f   : > { %v1428_v33 = vpop.f32.mrb[18].mxu1 }
 0x110   : > { %v3421_v34 = vpop.f32.mrb[19].mxu1 }
 0x113   : > { %v1350_v35 = vpop.f32.mrb[16].mxu0 }
 0x114   : > { %v1356_v36 = vadd.f32 %v1350_v35, %v1294_v31  ;;  %v3412_v37 = vpop.f32.mrb[17].mxu0 }
 0x115   : > { %v1353_v38 = vpop.f32.mrb[18].mxu0  ;;  %v1564_v39 = vpop.f32.mrb[20].mxu1 }
 0x116   : > { %v3413_v40 = vpop.f32.mrb[19].mxu0  ;;  %v1431_v41 = vadd.f32 %v1425_v29, %v1356_v36  ;;  %v3436_v42 = vpop.f32.mrb[21].mxu1 }
 0x117   : > { %v1567_v43 = vpop.f32.mrb[22].mxu1 }
 0x118   : > { %v3437_v44 = vpop.f32.mrb[23].mxu1 }
 0x11b   : > { %v1491_v45 = vpop.f32.mrb[20].mxu0 }
 0x11c   : > { %v1497_v46 = vadd.f32 %v1491_v45, %v1431_v41  ;;  %v3428_v47 = vpop.f32.mrb[21].mxu0 }
 0x11d   : > { %v1494_v48 = vpop.f32.mrb[22].mxu0  ;;  %v1701_v49 = vpop.f32.mrb[24].mxu1 }
 0x11e   : > { %v3429_v50 = vpop.f32.mrb[23].mxu0  ;;  %v1570_v51 = vadd.f32 %v1564_v39, %v1497_v46  ;;  %v3452_v52 = vpop.f32.mrb[25].mxu1 }
 0x11f   : > { %v1704_v53 = vpop.f32.mrb[26].mxu1 }
 0x120   : > { %v3453_v54 = vpop.f32.mrb[27].mxu1 }
 0x123   : > { %v1626_v55 = vpop.f32.mrb[24].mxu0 }
 0x124   : > { %v1632_v56 = vadd.f32 %v1626_v55, %v1570_v51  ;;  %v3444_v57 = vpop.f32.mrb[25].mxu0 }
 0x125   : > { %v1629_v58 = vpop.f32.mrb[26].mxu0  ;;  %v1840_v59 = vpop.f32.mrb[28].mxu1 }
 0x126   : > { %v3445_v60 = vpop.f32.mrb[27].mxu0  ;;  %v1707_v61 = vadd.f32 %v1701_v49, %v1632_v56  ;;  %v3468_v62 = vpop.f32.mrb[29].mxu1 }
 0x127   : > { %v1843_v63 = vpop.f32.mrb[30].mxu1 }
 0x128   : > { %v3469_v0 = vpop.f32.mrb[31].mxu1 }
 0x129   : > { %v3254_v0 = vld [vmem:[%s4331_s8] ss:$0 sm:$0xff] }
 0x12b   : > { %v1767_v2 = vpop.f32.mrb[28].mxu0 }
 0x12c   : > { %v1773_v3 = vadd.f32 %v1767_v2, %v1707_v61  ;;  %v3460_v4 = vpop.f32.mrb[29].mxu0 }
 0x12d   : > { %v1770_v5 = vpop.f32.mrb[30].mxu0  ;;  %v1977_v1 = vpop.f32.mrb[32].mxu1 }
 0x12e   : > { %v3461_v6 = vpop.f32.mrb[31].mxu0  ;;  %v1846_v7 = vadd.f32 %v1840_v59, %v1773_v3  ;;  %v3484_v8 = vpop.f32.mrb[33].mxu1  ;;  %v3255_v5 = vld [vmem:[%s722_s14] ss:$0 sm:$0xff] }
 0x12f   : > { %v1980_v9 = vpop.f32.mrb[34].mxu1 }
 0x130   : > { %v3485_v10 = vpop.f32.mrb[35].mxu1 }
 0x133   : > { %v1902_v11 = vpop.f32.mrb[32].mxu0 }
 0x134   : > { %v1908_v12 = vadd.f32 %v1902_v11, %v1846_v7  ;;  %v3476_v13 = vpop.f32.mrb[33].mxu0 }
 0x135   : > { %v1905_v14 = vpop.f32.mrb[34].mxu0  ;;  %v2116_v15 = vpop.f32.mrb[36].mxu1 }
 0x136   : > { %v3477_v16 = vpop.f32.mrb[35].mxu0  ;;  %v1983_v17 = vadd.f32 %v1977_v1, %v1908_v12  ;;  %v3500_v18 = vpop.f32.mrb[37].mxu1 }
 0x137   : > { %v2119_v19 = vpop.f32.mrb[38].mxu1 }
 0x138   : > { %v3501_v20 = vpop.f32.mrb[39].mxu1 }
 0x13b   : > { %v2043_v21 = vpop.f32.mrb[36].mxu0 }
 0x13c   : > { %v2049_v22 = vadd.f32 %v2043_v21, %v1983_v17  ;;  %v3492_v23 = vpop.f32.mrb[37].mxu0 }
 0x13d   : > { %v2046_v24 = vpop.f32.mrb[38].mxu0  ;;  %v2253_v25 = vpop.f32.mrb[40].mxu1 }
 0x13e   : > { %v3493_v26 = vpop.f32.mrb[39].mxu0  ;;  %v2122_v27 = vadd.f32 %v2116_v15, %v2049_v22  ;;  %v3516_v28 = vpop.f32.mrb[41].mxu1 }
 0x13f   : > { %v2256_v29 = vpop.f32.mrb[42].mxu1 }
 0x140   : > { %v3517_v30 = vpop.f32.mrb[43].mxu1 }
 0x143   : > { %v2178_v31 = vpop.f32.mrb[40].mxu0 }
 0x144   : > { %v2184_v32 = vadd.f32 %v2178_v31, %v2122_v27  ;;  %v3508_v33 = vpop.f32.mrb[41].mxu0 }
 0x145   : > { %v2181_v34 = vpop.f32.mrb[42].mxu0  ;;  %v2392_v35 = vpop.f32.mrb[44].mxu1 }
 0x146   : > { %v3509_v36 = vpop.f32.mrb[43].mxu0  ;;  %v2259_v37 = vadd.f32 %v2253_v25, %v2184_v32  ;;  %v3532_v38 = vpop.f32.mrb[45].mxu1 }
 0x147   : > { %v2395_v39 = vpop.f32.mrb[46].mxu1 }
 0x148   : > { %v3533_v40 = vpop.f32.mrb[47].mxu1 }
 0x14b   : > { %v2319_v41 = vpop.f32.mrb[44].mxu0 }
 0x14c   : > { %v2325_v42 = vadd.f32 %v2319_v41, %v2259_v37  ;;  %v3524_v43 = vpop.f32.mrb[45].mxu0 }
 0x14d   : > { %v2322_v44 = vpop.f32.mrb[46].mxu0  ;;  %v2529_v45 = vpop.f32.mrb[48].mxu1 }
 0x14e   : > { %v3525_v46 = vpop.f32.mrb[47].mxu0  ;;  %v2398_v47 = vadd.f32 %v2392_v35, %v2325_v42  ;;  %v3548_v48 = vpop.f32.mrb[49].mxu1 }
 0x14f   : > { %v2532_v49 = vpop.f32.mrb[50].mxu1 }
 0x150   : > { %v3549_v50 = vpop.f32.mrb[51].mxu1 }
 0x153   : > { %v2454_v51 = vpop.f32.mrb[48].mxu0 }
 0x154   : > { %v2460_v52 = vadd.f32 %v2454_v51, %v2398_v47  ;;  %v3540_v53 = vpop.f32.mrb[49].mxu0 }
 0x155   : > { %v2457_v54 = vpop.f32.mrb[50].mxu0  ;;  %v2668_v55 = vpop.f32.mrb[52].mxu1 }
 0x156   : > { %v3541_v56 = vpop.f32.mrb[51].mxu0  ;;  %v2535_v57 = vadd.f32 %v2529_v45, %v2460_v52  ;;  %v3564_v58 = vpop.f32.mrb[53].mxu1 }
 0x157   : > { %v2671_v59 = vpop.f32.mrb[54].mxu1 }
 0x158   : > { %v3565_v60 = vpop.f32.mrb[55].mxu1 }
 0x15b   : > { %v2595_v61 = vpop.f32.mrb[52].mxu0 }
 0x15c   : > { %v2601_v62 = vadd.f32 %v2595_v61, %v2535_v57  ;;  %v3556_v63 = vpop.f32.mrb[53].mxu0 }
 0x15d   : > { %v2598_v2 = vpop.f32.mrb[54].mxu0 }
 0x15e   : > { %v2674_v3 = vadd.f32 %v2668_v55, %v2601_v62  ;;  %v3557_v4 = vpop.f32.mrb[55].mxu0 }
 0x160   : > { %v2682_v1 = vadd.f32 %v3254_v0, %v2674_v3 }
 0x162   : > { %v2683_v6 = vpack.c.bf16 %v2682_v1, %v2682_v1  ;;  %v2693_v7 = vadd.f32 %v3255_v5, %v2682_v1 }
 0x164   : > { %2685 = vst.msk [vmem:[%s730_s30] sm:$0xf] %vm2684_vm2, %v2683_v6  ;;  %v2694_v8 = vsel %vm781_vm1, %v2693_v7, 0.0  ;;  %v2703_v9 = vmul.f32 %v2693_v7, %v2693_v7 }
 0x165   : > { %v2695_v10 = vrot.slane %v2694_v8, 4 }
 0x166   : > { %v2704_v11 = vsel %vm781_vm1, %v2703_v9, 0.0 }
 0x167   : > { %v2696_v12 = vadd.f32 %v2695_v10, %v2694_v8  ;;  %v2705_v13 = vrot.slane %v2704_v11, 4 }
 0x169   : > { %v2697_v14 = vrot.slane %v2696_v12, 2  ;;  %v2706_v15 = vadd.f32 %v2705_v13, %v2704_v11 }
 0x16b   : > { %v2698_v16 = vadd.f32 %v2697_v14, %v2696_v12  ;;  %v2707_v17 = vrot.slane %v2706_v15, 2 }
 0x16d   : > { %v2699_v18 = vrot.slane %v2698_v16, 1  ;;  %v2708_v19 = vadd.f32 %v2707_v17, %v2706_v15 }
 0x16f   : > { %v2700_v20 = vadd.f32 %v2699_v18, %v2698_v16  ;;  %v2709_v21 = vrot.slane %v2708_v19, 1 }
 0x171   : > { %2702 = vst.msk [vmem:[%s737_s19] sm:$0x1] %vm2701_vm3, %v2700_v20  ;;  %v2710_v22 = vadd.f32 %v2709_v21, %v2708_v19 }
 0x173   : > { %2711 = vst.msk [vmem:[%s744_s16] sm:$0x1] %vm2701_vm3, %v2710_v22 }
 0x174 PF: > { %s23_s25 = sadd.s32 1, %s3724_s25   ;;  %s4341_s21 = smov %s3716_s23 }
 0x175   : > { %p20_p0 = scmp.ge.s32.totalorder %s23_s25, 18   ;;  %s4342_s22 = smov %s3720_s24 }
 0x176   : > { %s4343_s23 = smov %s4346_s26  ;;  %s4344_s24 = smov %s4350_s27 }
 0x177   :  { %22 = sbr.rel (!%p20_p0) target bundleno = 3 (0x3), region = 162 }

// kernel: _lambda_.21
= control target key start
LH: loop header
LB: loop body
LE: loop exit
PB: predicated region body
PF: predicated region fallthrough
CT: control target
= control target key end

     0   :  { %s1412_s27 = smov 0   ;;  %s1414_s28 = smov 0   ;;  %s1580_s0 = inlined_call_operand.vmem [shape: bf16[2,10,9,32], index: 0, kind: input, shape index: {}, may-alias: {0,1,2}]   ;;  %s1581_s1 = inlined_call_operand.vmem [shape: bf16[2,10,9,32], index: 1, kind: input, shape index: {}, may-alias: {0,1,2}]   ;;  %s1582_s2 = inlined_call_operand.vmem [shape: bf16[2,10,9,32], index: 2, kind: input, shape index: {}, may-alias: {0,1,2}]   ;;  %s1583_s3 = inlined_call_operand.vmem [shape: bf16[6,32,64], index: 3, kind: input, shape index: {}]   ;;  %s1584_s4 = inlined_call_operand.vmem [shape: f32[1,64], index: 4, kind: input, shape index: {}]   ;;  %s1585_s5 = inlined_call_operand.vmem [shape: f32[2,1,64], index: 5, kind: input, shape index: {}]   ;;  %s1586_s6 = inlined_call_operand.vmem [shape: bf16[2,8,8,64], index: 6, kind: output, shape index: {0}]   ;;  %s1587_s7 = inlined_call_operand.vmem [shape: f32[2,8,1,32], index: 7, kind: output, shape index: {1}]   ;;  %s1588_s8 = inlined_call_operand.vmem [shape: f32[2,8,1,32], index: 8, kind: output, shape index: {2}]  }
   0x1   :  { %s1416_s29 = smov 0   ;;  %s1418_s30 = smov 0  }
   0x2   :  { %s1420_s9 = smov 0  }
   0x3 LB: > { %s28_s10 = sadd.s32 1, %s1355_s29  ;;  %s31_s11 = sadd.s32 1, %s1359_s30  ;;  %s1363_s9 = sphi %s1420_s9, %s19_s9   ;;  %s1359_s30 = sphi %s1418_s30, %s1592_s30   ;;  %s1355_s29 = sphi %s1416_s29, %s1591_s29   ;;  %s1351_s28 = sphi %s1414_s28, %s1590_s28   ;;  %s1347_s27 = sphi %s1412_s27, %s1589_s27  }
   0x4   : > { %p29_p0 = scmp.ge.s32.totalorder %s28_s10, 8  ;;  %p1145_p1 = scmp.ge.s32.totalorder %s1363_s9, 1 }
   0x5   : > { %p339_p2 = scmp.lt.s32.totalorder %s1363_s9, 17 }
   0x6   : > { %s1594_s10 = smov (%p29_p0, %s28_s10), 0  ;;  %s1596_s11 = smov (!%p29_p0, %s31_s11), %s1359_s30 }
   0x7   : > { %p340_p3 = pnand %p1145_p1, %p339_p2  ;;  %p33_p4 = scmp.ge.s32.totalorder %s1596_s11, 2 }
   0x8   : > { %v1310_v0 = vld [vmem:[%s1583_s3 + $0x30] sm:$0xff] (!%p340_p3)   ;;  %v1365_v1 = vmov (!%p340_p3), 0.0   ;;  %v1311_v2 = vld [vmem:[%s1583_s3] sm:$0xff] (!%p340_p3)   ;;  %v1312_v3 = vld [vmem:[%s1583_s3 + $0x38] sm:$0xff] (!%p340_p3)   ;;  %vm1366_vm0 = vmmov (!%p340_p3), 0   ;;  %p417_p5 = scmp.lt.s32.totalorder (!%p340_p3), %s1351_s28, 1 }
   0x9   : > { %s1598_s11 = smov (%p33_p4, %s1596_s11), 0  ;;  %343 = sbr.rel (%p340_p3) target bundleno = 284 (0x11c), region = 44 }
   0xa   : > { %1219 = vmatprep.subr.bf16.mxu0 (!%p340_p3), %v1365_v1  ;;  %1227 = vmatprep.subr.bf16.mxu1 (!%p340_p3), %v1365_v1  ;;  %v1313_v4 = vld [vmem:[%s1583_s3 + $0x8] sm:$0xff] (!%p340_p3)   ;;  %p419_p6 = scmp.lt.s32.totalorder (!%p340_p3), %s1347_s27, 9  ;;  %s426_s22 = sadd.s32 (!%p340_p3), 1, %s1347_s27  ;;  %vm509_vm1 = vcmask (!%p340_p3), 261120   ;;  %v1316_v5 = vld [vmem:[%s1583_s3 + $0x40] sm:$0xff] (!%p340_p3)   ;;  %v1315_v13 = vld [vmem:[%s1583_s3 + $0x10] sm:$0xff] (!%p340_p3)  }
   0xb   : > { %1220 = vmatpush3.bf16.msra.mxu0 (!%p340_p3), %v1310_v0  ;;  %1231 = vmatprep.mubr.msk.bf16.mxu1 (!%p340_p3), %vm1366_vm0, %v1365_v1  ;;  %p429_p7 = scmp.lt.s32.totalorder (!%p340_p3), %s426_s22, 9  ;;  %s437_s25 = sadd.s32 (!%p340_p3), 2, %s1347_s27  ;;  %v1318_v9 = vld [vmem:[%s1583_s3 + $0x48] sm:$0xff] (!%p340_p3)   ;;  %v1317_v19 = vld [vmem:[%s1583_s3 + $0x18] sm:$0xff] (!%p340_p3)   ;;  %v1321_v22 = vld [vmem:[%s1583_s3 + $0x50] sm:$0xff] (!%p340_p3)   ;;  %vm891_vm2 = vcmask (!%p340_p3), 519168  }
   0xc   : > { %1228 = vmatpush3.bf16.msra.mxu1 (!%p340_p3), %v1311_v2  ;;  %1221 = vmatprep.subr.bf16.mxu0 (!%p340_p3), %v1365_v1  ;;  %p440_p8 = scmp.lt.s32.totalorder (!%p340_p3), %s437_s25, 9  ;;  %v1320_v25 = vld [vmem:[%s1583_s3 + $0x20] sm:$0xff] (!%p340_p3)   ;;  %v1323_v28 = vld [vmem:[%s1583_s3 + $0x58] sm:$0xff] (!%p340_p3)   ;;  %v1322_v29 = vld [vmem:[%s1583_s3 + $0x28] sm:$0xff] (!%p340_p3)   ;;  %p453_p9 = scmp.lt.s32.totalorder (!%p340_p3), %s1347_s27, 7  ;;  %vm908_vm3 = vcmask (!%p340_p3), 253952  }
   0xd   : > { %1229 = vmatprep.subr.bf16.mxu1 (!%p340_p3), %v1365_v1  ;;  %1223 = vmatprep.mubr.msk.bf16.mxu0 (!%p340_p3), %vm1366_vm0, %v1365_v1  ;;  %v1197_v58 = vld [vmem:[%s1584_s4] ss:$0 sm:$0xff] (!%p340_p3) }
   0xf   : > { %1222 = vmatpush3.bf16.msra.mxu0 (!%p340_p3), %v1312_v3 }
  0x10   : > { %s1600_s28 = smov (!%p417_p5, %s1351_s28), 1  ;;  %1230 = vmatpush3.bf16.msra.mxu1 %v1313_v4  ;;  %1235 = vmatprep.subr.bf16.mxu0 %v1365_v1  ;;  %s1602_s22 = smov (!%p429_p7, %s426_s22), 9 }
  0x11   : > { %s420_s20 = scalar_select %p419_p6, %s1347_s27, 9  ;;  %1243 = vmatprep.subr.bf16.mxu1 %v1365_v1 }
  0x12   : > { %s1473_s21 = smul.u32 20, %s1600_s28  ;;  %s1604_s25 = smov (!%p440_p8, %s437_s25), 9 }
  0x13   : > { %s1146_s23 = sshll.u32 %s420_s20, 1  ;;  %s1148_s17 = sshll.u32 %s1602_s22, 1 }
  0x14   : > { %s423_s24 = sadd.s32 %s1473_s21, %s1146_s23  ;;  %s433_s20 = sadd.s32 %s1473_s21, %s1148_s17 }
  0x15   : > { %s1147_s26 = sshll.u32 %s423_s24, 2  ;;  %s1150_s23 = sshll.u32 %s1604_s25, 1 }
  0x16   : > { %s425_s16 = scalar_lea.vmem %s1580_s0, %s1147_s26  ;;  %s1149_s24 = sshll.u32 %s433_s20, 2 }
  0x17   : > { %v474_v6 = vld [vmem:[%s425_s16] sm:$0xf]  ;;  %v479_v7 = vld [vmem:[%s425_s16 + $0x4] sm:$0x1]  ;;  %s444_s26 = sadd.s32 %s1473_s21, %s1150_s23  ;;  %s435_s22 = scalar_lea.vmem %s1581_s1, %s1149_s24 }
  0x18   : > { %v1160_v8 = vcombine.low %v474_v6, %v479_v7  ;;  %1232 = vmatmul.mubr.msk.bf16.vlgmr.msra.gmra.mrb[0].mxu1 %vm509_vm1, %v474_v6  ;;  %s1151_s14 = sshll.u32 %s444_s26, 2  ;;  %v1319_v14 = vld [vmem:[%s435_s22] sm:$0x1f]   ;;  %s1606_s27 = smov (!%p453_p9, %s1347_s27), 7 }
  0x19   : > { %1244 = vmatpush3.bf16.msra.mxu1 %v1316_v5  ;;  %1247 = vmatprep.mubr.msk.bf16.mxu1 %vm1366_vm0, %v1365_v1  ;;  %s1504_s25 = scalar_lea.vmem %s1582_s2, %s1151_s14  ;;  %v683_v16 = vshrl.u32 %v1319_v14, 16  ;;  %v685_v17 = vshll.u32 %v1319_v14, 16  ;;  %v608_v24 = vld [vmem:[%s435_s22] sm:$0xf]  ;;  %s1152_s15 = sshll.u32 %s1600_s28, 3 }
  0x1a   : > { %v491_v10 = vshrl.u32 %v1160_v8, 16  ;;  %v493_v11 = vshll.u32 %v1160_v8, 16  ;;  %1245 = vmatprep.subr.bf16.mxu1 %v1365_v1  ;;  %v1324_v18 = vld [vmem:[%s1504_s25] sm:$0x1f]   ;;  %s1542_s16 = sadd.s32 %s1152_s15, %s1606_s27 }
  0x1b   : > { %v687_v20 = vrot.slane %v685_v17, 1  ;;  %v822_v21 = vshll.u32 %v1324_v18, 16  ;;  %v820_v26 = vshrl.u32 %v1324_v18, 16  ;;  %v745_v31 = vld [vmem:[%s1504_s25] sm:$0xf]  ;;  %s450_s25 = scalar_lea.vmem %s1585_s5, %s1600_s28  ;;  %s1153_s20 = sshll.u32 %s1542_s16, 2 }
  0x1c   : > { %v495_v12 = vrot.slane %v493_v11, 1  ;;  %v1198_v62 = vld [vmem:[%s450_s25] ss:$0 sm:$0xff]  ;;  %s458_s24 = scalar_lea.vmem %s1586_s6, %s1153_s20  ;;  %s465_s12 = scalar_lea.vmem %s1587_s7, %s1542_s16 }
  0x1d   : > { %1246 = vmatpush3.bf16.msra.mxu1 %v1318_v9  ;;  %v688_v23 = vor.u32 %v687_v20, %v683_v16  ;;  %v824_v27 = vrot.slane %v822_v21, 1  ;;  %s472_s14 = scalar_lea.vmem %s1588_s8, %s1542_s16 }
  0x1e   : > { %v496_v15 = vor.u32 %v495_v12, %v491_v10  ;;  %1259 = vmatprep.subr.bf16.mxu1 %v1365_v1 }
  0x1f   : > { %v825_v30 = vor.u32 %v824_v27, %v820_v26 }
  0x20   : > { %1224 = vmatmul.mubr.msk.bf16.vlgmr.msra.gmra.mrb[0].mxu0 %vm509_vm1, %v496_v15  ;;  %1248 = vmatmul.mubr.msk.bf16.vlgmr.msra.gmra.mrb[4].mxu1 %vm509_vm1, %v688_v23 }
  0x21   : > { %1236 = vmatpush3.bf16.msra.mxu0 %v1315_v13  ;;  %1239 = vmatprep.mubr.msk.bf16.mxu0 %vm1366_vm0, %v1365_v1 }
  0x22   : > { %1237 = vmatprep.subr.bf16.mxu0 %v1365_v1  ;;  %1260 = vmatpush3.bf16.msra.mxu1 %v1321_v22 }
  0x23   : > { %1261 = vmatprep.subr.bf16.mxu1 %v1365_v1  ;;  %1263 = vmatprep.mubr.msk.bf16.mxu1 %vm1366_vm0, %v1365_v1 }
  0x25   : > { %1238 = vmatpush3.bf16.msra.mxu0 %v1317_v19 }
  0x26   : > { %1251 = vmatprep.subr.bf16.mxu0 %v1365_v1  ;;  %1262 = vmatpush3.bf16.msra.mxu1 %v1323_v28 }
  0x28   : > { %1240 = vmatmul.mubr.msk.bf16.vlgmr.msra.gmra.mrb[4].mxu0 %vm509_vm1, %v608_v24 }
  0x29   : > { %1252 = vmatpush3.bf16.msra.mxu0 %v1320_v25  ;;  %1255 = vmatprep.mubr.msk.bf16.mxu0 %vm1366_vm0, %v1365_v1 }
  0x2a   : > { %1253 = vmatprep.subr.bf16.mxu0 %v1365_v1  ;;  %1264 = vmatmul.mubr.msk.bf16.vlgmr.msra.gmra.mrb[8].mxu1 %vm509_vm1, %v825_v30 }
  0x2d   : > { %1254 = vmatpush3.bf16.msra.mxu0 %v1322_v29 }
  0x30   : > { %1256 = vmatmul.mubr.msk.bf16.vlgmr.msra.gmra.mrb[8].mxu0 %vm509_vm1, %v745_v31 }
  0xeb   : > { %v602_v32 = vpop.f32.mrb[0].mxu1 }
  0xec   : > { %v1233_v33 = vpop.f32.mrb[1].mxu1 }
  0xed   : > { %v605_v34 = vpop.f32.mrb[2].mxu1 }
  0xee   : > { %v1234_v35 = vpop.f32.mrb[3].mxu1 }
  0xf3   : > { %v547_v36 = vpop.f32.mrb[0].mxu0  ;;  %v738_v41 = vpop.f32.mrb[4].mxu1 }
  0xf4   : > { %v603_v37 = vadd.f32 %v602_v32, %v547_v36  ;;  %v1225_v38 = vpop.f32.mrb[1].mxu0  ;;  %v1249_v42 = vpop.f32.mrb[5].mxu1 }
  0xf5   : > { %v550_v39 = vpop.f32.mrb[2].mxu0  ;;  %v741_v43 = vpop.f32.mrb[6].mxu1 }
  0xf6   : > { %v1226_v40 = vpop.f32.mrb[3].mxu0  ;;  %v1250_v45 = vpop.f32.mrb[7].mxu1 }
  0xfb   : > { %v663_v44 = vpop.f32.mrb[4].mxu0 }
  0xfc   : > { %v669_v46 = vadd.f32 %v663_v44, %v603_v37  ;;  %v1241_v47 = vpop.f32.mrb[5].mxu0 }
  0xfd   : > { %v666_v48 = vpop.f32.mrb[6].mxu0  ;;  %v875_v51 = vpop.f32.mrb[8].mxu1 }
  0xfe   : > { %v1242_v49 = vpop.f32.mrb[7].mxu0  ;;  %v744_v50 = vadd.f32 %v738_v41, %v669_v46  ;;  %v1265_v52 = vpop.f32.mrb[9].mxu1 }
  0xff   : > { %v878_v53 = vpop.f32.mrb[10].mxu1 }
 0x100   : > { %v1266_v55 = vpop.f32.mrb[11].mxu1 }
 0x103   : > { %v800_v54 = vpop.f32.mrb[8].mxu0 }
 0x104   : > { %v806_v56 = vadd.f32 %v800_v54, %v744_v50  ;;  %v1257_v57 = vpop.f32.mrb[9].mxu0 }
 0x105   : > { %v803_v59 = vpop.f32.mrb[10].mxu0 }
 0x106   : > { %v881_v60 = vadd.f32 %v875_v51, %v806_v56  ;;  %v1258_v61 = vpop.f32.mrb[11].mxu0 }
 0x108   : > { %v889_v63 = vadd.f32 %v1197_v58, %v881_v60 }
 0x10a   : > { %v890_v0 = vpack.c.bf16 %v889_v63, %v889_v63  ;;  %v900_v1 = vadd.f32 %v1198_v62, %v889_v63 }
 0x10c   : > { %892 = vst.msk [vmem:[%s458_s24] sm:$0xf] %vm891_vm2, %v890_v0  ;;  %v901_v2 = vsel %vm509_vm1, %v900_v1, 0.0  ;;  %v910_v3 = vmul.f32 %v900_v1, %v900_v1 }
 0x10d   : > { %v902_v4 = vrot.slane %v901_v2, 4 }
 0x10e   : > { %v911_v5 = vsel %vm509_vm1, %v910_v3, 0.0 }
 0x10f   : > { %v903_v6 = vadd.f32 %v902_v4, %v901_v2  ;;  %v912_v7 = vrot.slane %v911_v5, 4 }
 0x111   : > { %v904_v8 = vrot.slane %v903_v6, 2  ;;  %v913_v9 = vadd.f32 %v912_v7, %v911_v5 }
 0x113   : > { %v905_v10 = vadd.f32 %v904_v8, %v903_v6  ;;  %v914_v11 = vrot.slane %v913_v9, 2 }
 0x115   : > { %v906_v12 = vrot.slane %v905_v10, 1  ;;  %v915_v13 = vadd.f32 %v914_v11, %v913_v9 }
 0x117   : > { %v907_v14 = vadd.f32 %v906_v12, %v905_v10  ;;  %v916_v15 = vrot.slane %v915_v13, 1 }
 0x119   : > { %909 = vst.msk [vmem:[%s465_s12] sm:$0x1] %vm908_vm3, %v907_v14  ;;  %v917_v16 = vadd.f32 %v916_v15, %v915_v13 }
 0x11b   : > { %918 = vst.msk [vmem:[%s472_s14] sm:$0x1] %vm908_vm3, %v917_v16 }
 0x11c PF: > { %s19_s9 = sadd.s32 1, %s1363_s9   ;;  %s1589_s27 = smov %s1355_s29 }
 0x11d   : > { %p16_p10 = scmp.ge.s32.totalorder %s19_s9, 18   ;;  %s1590_s28 = smov %s1359_s30 }
 0x11e   : > { %s1591_s29 = smov %s1594_s10  ;;  %s1592_s30 = smov %s1598_s11 }
 0x11f   :  { %18 = sbr.rel (!%p16_p10) target bundleno = 3 (0x3), region = 112 }

// kernel: _lambda_.23
= control target key start
LH: loop header
LB: loop body
LE: loop exit
PB: predicated region body
PF: predicated region fallthrough
CT: control target
= control target key end

     0   :  { %s1149_s30 = smov 0   ;;  %s1151_s10 = smov 0   ;;  %s1278_s0 = inlined_call_operand.vmem [shape: bf16[2,9,8,32], index: 0, kind: input, shape index: {}, may-alias: {0,1}]   ;;  %s1279_s1 = inlined_call_operand.vmem [shape: bf16[2,9,8,32], index: 1, kind: input, shape index: {}, may-alias: {0,1}]   ;;  %s1280_s2 = inlined_call_operand.vmem [shape: bf16[2,8,8,64], index: 2, kind: input, shape index: {}]   ;;  %s1281_s3 = inlined_call_operand.vmem [shape: bf16[2,32,64], index: 3, kind: input, shape index: {}]   ;;  %s1282_s4 = inlined_call_operand.vmem [shape: bf16[64,64], index: 4, kind: input, shape index: {}]   ;;  %s1283_s5 = inlined_call_operand.vmem [shape: f32[1,64], index: 5, kind: input, shape index: {}]   ;;  %s1284_s6 = inlined_call_operand.vmem [shape: f32[2,1,64], index: 6, kind: input, shape index: {}]   ;;  %s1285_s7 = inlined_call_operand.vmem [shape: bf16[2,8,8,64], index: 7, kind: output, shape index: {0}]   ;;  %s1286_s8 = inlined_call_operand.vmem [shape: f32[2,8,1,32], index: 8, kind: output, shape index: {1}]   ;;  %s1287_s9 = inlined_call_operand.vmem [shape: f32[2,8,1,32], index: 9, kind: output, shape index: {2}]  }
   0x1   :  { %s1153_s11 = smov 0   ;;  %s1155_s12 = smov 0  }
   0x2   :  { %s1157_s13 = smov 0  }
   0x3 LB: > { %s29_s14 = sadd.s32 1, %s1087_s11  ;;  %s32_s15 = sadd.s32 1, %s1091_s12  ;;  %s1095_s13 = sphi %s1157_s13, %s20_s13   ;;  %s1091_s12 = sphi %s1155_s12, %s1291_s12   ;;  %s1087_s11 = sphi %s1153_s11, %s1290_s11   ;;  %s1083_s10 = sphi %s1151_s10, %s1289_s10   ;;  %s1079_s30 = sphi %s1149_s30, %s1288_s30  }
   0x4   : > { %p30_p0 = scmp.ge.s32.totalorder %s29_s14, 8  ;;  %p939_p1 = scmp.ge.s32.totalorder %s1095_s13, 1 }
   0x5   : > { %p357_p2 = scmp.lt.s32.totalorder %s1095_s13, 17 }
   0x6   : > { %s1293_s14 = smov (%p30_p0, %s29_s14), 0  ;;  %s1295_s15 = smov (!%p30_p0, %s32_s15), %s1091_s12 }
   0x7   : > { %p358_p3 = pnand %p939_p1, %p357_p2  ;;  %p34_p4 = scmp.ge.s32.totalorder %s1295_s15, 2 }
   0x8   : > { %v1049_v0 = vld [vmem:[%s1281_s3] sm:$0xff] (!%p358_p3)   ;;  %v1097_v1 = vmov (!%p358_p3), 0.0   ;;  %v1051_v3 = vld [vmem:[%s1281_s3 + $0x8] sm:$0xff] (!%p358_p3)   ;;  %vm1098_vm0 = vmmov (!%p358_p3), 0   ;;  %p433_p5 = scmp.lt.s32.totalorder (!%p358_p3), %s1083_s10, 1  ;;  %p435_p6 = scmp.lt.s32.totalorder (!%p358_p3), %s1079_s30, 8 }
   0x9   : > { %s1297_s15 = smov (%p34_p4, %s1295_s15), 0  ;;  %361 = sbr.rel (%p358_p3) target bundleno = 266 (0x10a), region = 48 }
   0xa   : > { %978 = vmatprep.subr.bf16.mxu0 (!%p358_p3), %v1097_v1  ;;  %986 = vmatprep.subr.bf16.mxu1 (!%p358_p3), %v1097_v1  ;;  %v1050_v2 = vld [vmem:[%s1282_s4] sm:$0xff] (!%p358_p3)   ;;  %v1052_v4 = vld [vmem:[%s1282_s4 + $0x8] sm:$0xff] (!%p358_p3)   ;;  %v1053_v5 = vld [vmem:[%s1282_s4 + $0x10] sm:$0xff] (!%p358_p3)   ;;  %p453_p7 = scmp.lt.s32.totalorder (!%p358_p3), %s1079_s30, 7  ;;  %vm511_vm1 = vcmask (!%p358_p3), 261120   ;;  %s441_s19 = sadd.s32 (!%p358_p3), 1, %s1079_s30 }
   0xb   : > { %979 = vmatpush3.bf16.msra.mxu0 (!%p358_p3), %v1049_v0  ;;  %982 = vmatprep.mubr.msk.bf16.mxu0 (!%p358_p3), %vm1098_vm0, %v1097_v1  ;;  %v1054_v6 = vld [vmem:[%s1281_s3 + $0x10] sm:$0xff] (!%p358_p3)   ;;  %p444_p8 = scmp.lt.s32.totalorder (!%p358_p3), %s441_s19, 8  ;;  %v1055_v8 = vld [vmem:[%s1282_s4 + $0x18] sm:$0xff] (!%p358_p3)   ;;  %vm579_vm2 = vcmask (!%p358_p3), 523264   ;;  %v963_v20 = vld [vmem:[%s1283_s5] ss:$0 sm:$0xff] (!%p358_p3) }
   0xc   : > { %987 = vmatpush3.bf16.msra.mxu1 (!%p358_p3), %v1050_v2  ;;  %980 = vmatprep.subr.bf16.mxu0 (!%p358_p3), %v1097_v1  ;;  %v1056_v9 = vld [vmem:[%s1281_s3 + $0x18] sm:$0xff] (!%p358_p3)   ;;  %vm702_vm3 = vcmask (!%p358_p3), 519168   ;;  %vm711_vm4 = vcmask (!%p358_p3), 253952  }
   0xd   : > { %988 = vmatprep.subr.bf16.mxu1 (!%p358_p3), %v1097_v1  ;;  %994 = vmatprep.mubr.msk.bf16.mxu1 (!%p358_p3), %vm1098_vm0, %v1097_v1 }
   0xf   : > { %981 = vmatpush3.bf16.msra.mxu0 (!%p358_p3), %v1051_v3 }
  0x10   : > { %s1299_s10 = smov (!%p433_p5, %s1083_s10), 1  ;;  %989 = vmatpush3.bf16.msra.mxu1 %v1052_v4  ;;  %998 = vmatprep.subr.bf16.mxu0 %v1097_v1  ;;  %s1303_s19 = smov (!%p444_p8, %s441_s19), 8 }
  0x11   : > { %s436_s24 = scalar_select %p435_p6, %s1079_s30, 8  ;;  %990 = vmatprep.subr.bf16.mxu1 %v1097_v1 }
  0x12   : > { %s1006_s25 = smul.u32 9, %s1299_s10  ;;  %s942_s29 = sshll.u32 %s1299_s10, 3 }
  0x13   : > { %s1301_s30 = smov (!%p453_p7, %s1079_s30), 7 }
  0x14   : > { %s438_s28 = sadd.s32 %s1006_s25, %s436_s24  ;;  %991 = vmatpush3.bf16.msra.mxu1 %v1053_v5  ;;  %s447_s21 = sadd.s32 %s1006_s25, %s1303_s19 }
  0x15   : > { %s940_s16 = sshll.u32 %s438_s28, 2  ;;  %992 = vmatprep.subr.bf16.mxu1 %v1097_v1  ;;  %s1227_s28 = sadd.s32 %s942_s29, %s1301_s30 }
  0x16   : > { %s440_s22 = scalar_lea.vmem %s1278_s0, %s940_s16  ;;  %s943_s16 = sshll.u32 %s1227_s28, 2 }
  0x17   : > { %v494_v7 = vld [vmem:[%s440_s22] sm:$0xf]  ;;  %s458_s20 = scalar_lea.vmem %s1280_s2, %s943_s16  ;;  %s941_s22 = sshll.u32 %s447_s21, 2 }
  0x18   : > { %983 = vmatmul.mubr.msk.bf16.vlgmr.msra.gmra.mrb[0].mxu0 %vm511_vm1, %v494_v7  ;;  %993 = vmatpush3.bf16.msra.mxu1 %v1055_v8  ;;  %v485_v10 = vld [vmem:[%s458_s20] sm:$0xf]  ;;  %s449_s23 = scalar_lea.vmem %s1279_s1, %s941_s22  ;;  %s461_s25 = scalar_lea.vmem %s1284_s6, %s1299_s10 }
  0x19   : > { %999 = vmatpush3.bf16.msra.mxu0 %v1054_v6  ;;  %1002 = vmatprep.mubr.msk.bf16.mxu0 %vm1098_vm0, %v1097_v1  ;;  %v623_v11 = vld [vmem:[%s449_s23] sm:$0xf]  ;;  %s469_s10 = scalar_lea.vmem %s1285_s7, %s943_s16  ;;  %s476_s21 = scalar_lea.vmem %s1286_s8, %s1227_s28 }
  0x1a   : > { %1000 = vmatprep.subr.bf16.mxu0 %v1097_v1  ;;  %v964_v25 = vld [vmem:[%s461_s25] ss:$0 sm:$0xff]  ;;  %s483_s29 = scalar_lea.vmem %s1287_s9, %s1227_s28 }
  0x1b   : > { %995 = vmatmul.mubr.msk.bf16.vlgmr.msra.gmra.mrb[0].mxu1 %vm579_vm2, %v485_v10 }
  0x1d   : > { %1001 = vmatpush3.bf16.msra.mxu0 %v1056_v9 }
  0x20   : > { %1003 = vmatmul.mubr.msk.bf16.vlgmr.msra.gmra.mrb[4].mxu0 %vm511_vm1, %v623_v11 }
  0xeb   : > { %v549_v12 = vpop.f32.mrb[0].mxu0 }
  0xec   : > { %v984_v13 = vpop.f32.mrb[1].mxu0 }
  0xed   : > { %v552_v14 = vpop.f32.mrb[2].mxu0 }
  0xee   : > { %v985_v15 = vpop.f32.mrb[3].mxu0  ;;  %v617_v16 = vpop.f32.mrb[0].mxu1 }
  0xef   : > { %v618_v17 = vadd.f32 %v617_v16, %v549_v12  ;;  %v996_v18 = vpop.f32.mrb[1].mxu1 }
  0xf0   : > { %v620_v21 = vpop.f32.mrb[2].mxu1 }
  0xf1   : > { %v997_v24 = vpop.f32.mrb[3].mxu1 }
  0xf3   : > { %v678_v19 = vpop.f32.mrb[4].mxu0 }
  0xf4   : > { %v684_v22 = vadd.f32 %v678_v19, %v618_v17  ;;  %v1004_v23 = vpop.f32.mrb[5].mxu0 }
  0xf5   : > { %v681_v26 = vpop.f32.mrb[6].mxu0 }
  0xf6   : > { %v692_v27 = vadd.f32 %v963_v20, %v684_v22  ;;  %v1005_v28 = vpop.f32.mrb[7].mxu0 }
  0xf8   : > { %v700_v29 = vadd.f32 %v964_v25, %v692_v27 }
  0xfa   : > { %v701_v30 = vpack.c.bf16 %v700_v29, %v700_v29  ;;  %v704_v31 = vsel %vm511_vm1, %v700_v29, 0.0  ;;  %v713_v32 = vmul.f32 %v700_v29, %v700_v29 }
  0xfb   : > { %v705_v33 = vrot.slane %v704_v31, 4 }
  0xfc   : > { %703 = vst.msk [vmem:[%s469_s10] sm:$0xf] %vm702_vm3, %v701_v30  ;;  %v714_v34 = vsel %vm511_vm1, %v713_v32, 0.0 }
  0xfd   : > { %v706_v35 = vadd.f32 %v705_v33, %v704_v31  ;;  %v715_v36 = vrot.slane %v714_v34, 4 }
  0xff   : > { %v707_v37 = vrot.slane %v706_v35, 2  ;;  %v716_v38 = vadd.f32 %v715_v36, %v714_v34 }
 0x101   : > { %v708_v39 = vadd.f32 %v707_v37, %v706_v35  ;;  %v717_v40 = vrot.slane %v716_v38, 2 }
 0x103   : > { %v709_v41 = vrot.slane %v708_v39, 1  ;;  %v718_v42 = vadd.f32 %v717_v40, %v716_v38 }
 0x105   : > { %v710_v43 = vadd.f32 %v709_v41, %v708_v39  ;;  %v719_v44 = vrot.slane %v718_v42, 1 }
 0x107   : > { %712 = vst.msk [vmem:[%s476_s21] sm:$0x1] %vm711_vm4, %v710_v43  ;;  %v720_v45 = vadd.f32 %v719_v44, %v718_v42 }
 0x109   : > { %721 = vst.msk [vmem:[%s483_s29] sm:$0x1] %vm711_vm4, %v720_v45 }
 0x10a PF: > { %s20_s13 = sadd.s32 1, %s1095_s13   ;;  %s1288_s30 = smov %s1087_s11 }
 0x10b   : > { %p17_p9 = scmp.ge.s32.totalorder %s20_s13, 18   ;;  %s1289_s10 = smov %s1091_s12 }
 0x10c   : > { %s1290_s11 = smov %s1293_s14  ;;  %s1291_s12 = smov %s1297_s15 }
 0x10d   :  { %19 = sbr.rel (!%p17_p9) target bundleno = 3 (0x3), region = 112 }

// kernel: _lambda_.25
= control target key start
LH: loop header
LB: loop body
LE: loop exit
PB: predicated region body
PF: predicated region fallthrough
CT: control target
= control target key end

     0   :  { %s730_s21 = smov 0   ;;  %s732_s22 = smov 0   ;;  %s791_s0 = inlined_call_operand.vmem [shape: bf16[2,64,32], index: 0, kind: input, shape index: {}]   ;;  %s792_s1 = inlined_call_operand.vmem [shape: bf16[2,64,32], index: 1, kind: input, shape index: {}]   ;;  %s793_s2 = inlined_call_operand.vmem [shape: f32[1,32], index: 2, kind: input, shape index: {}]   ;;  %s794_s3 = inlined_call_operand.vmem [shape: f32[1,32], index: 3, kind: input, shape index: {}]   ;;  %s795_s4 = inlined_call_operand.vmem [shape: f32[1,32], index: 4, kind: input, shape index: {}]   ;;  %s796_s5 = inlined_call_operand.vmem [shape: f32[1,32], index: 5, kind: input, shape index: {}]   ;;  %s797_s6 = inlined_call_operand.vmem [shape: bf16[2,64,32], index: 6, kind: output, shape index: {}]  }
   0x1   :  { %s734_s23 = smov 0  }
   0x2 LB: > { %s28_s24 = sadd.s32 1, %s689_s22  ;;  %p577_p0 = scmp.ge.s32.totalorder %s693_s23, 1  ;;  %s693_s23 = sphi %s734_s23, %s16_s23   ;;  %s689_s22 = sphi %s732_s22, %s799_s22   ;;  %s685_s21 = sphi %s730_s21, %s798_s21  }
   0x3   : > { %p30_p1 = scmp.ge.s32.totalorder %s28_s24, 2  ;;  %p250_p2 = scmp.lt.s32.totalorder %s693_s23, 3 }
   0x5   : > { %s801_s24 = smov (%p30_p1, %s28_s24), 0  ;;  %p251_p3 = pnand %p577_p0, %p250_p2 }
   0x6   : > { %p298_p4 = scmp.lt.s32.totalorder (!%p251_p3), %s685_s21, 1  ;;  %v584_v0 = vld [vmem:[%s793_s2] ss:$0 sm:$0xff] (!%p251_p3)  ;;  %vm459_vm0 = vcmask (!%p251_p3), 257024  }
   0x7   : > { %254 = sbr.rel (%p251_p3) target bundleno = 40 (0x28), region = 44  ;;  %v585_v11 = vld [vmem:[%s794_s3] ss:$0 sm:$0xff] (!%p251_p3) }
   0x8   : > { %v586_v22 = vld [vmem:[%s795_s4] ss:$0 sm:$0xff] (!%p251_p3) }
   0x9   : > { %v587_v31 = vld [vmem:[%s796_s5] ss:$0 sm:$0xff] (!%p251_p3) }
   0xe   : > { %s803_s21 = smov (!%p298_p4, %s685_s21), 1 }
   0xf   : > { %s748_s25 = sshll.u32 %s803_s21, 5 }
  0x10   : > { %s305_s28 = scalar_lea.vmem %s791_s0, %s748_s25  ;;  %s315_s7 = scalar_lea.vmem %s792_s1, %s748_s25 }
  0x11   : > { %v610_v1 = vld [vmem:[%s305_s28] sm:$0xff]   ;;  %v641_v3 = vld [vmem:[%s305_s28 + $0x8] sm:$0xff]   ;;  %v642_v9 = vld [vmem:[%s305_s28 + $0x10] sm:$0xff]   ;;  %s325_s18 = scalar_lea.vmem %s797_s6, %s748_s25 }
  0x12   : > { %v626_v2 = vld [vmem:[%s315_s7] sm:$0xff]   ;;  %v611_v4 = vunpack.c.l.bf16 %v610_v1  ;;  %v612_v6 = vunpack.c.h.bf16 %v610_v1  ;;  %v644_v8 = vld [vmem:[%s315_s7 + $0x8] sm:$0xff]   ;;  %v645_v10 = vld [vmem:[%s315_s7 + $0x10] sm:$0xff]   ;;  %v615_v12 = vunpack.c.l.bf16 %v641_v3  ;;  %v616_v14 = vunpack.c.h.bf16 %v641_v3 }
  0x13   : > { %v627_v5 = vunpack.c.l.bf16 %v626_v2  ;;  %v628_v7 = vunpack.c.h.bf16 %v626_v2  ;;  %v631_v13 = vunpack.c.l.bf16 %v644_v8  ;;  %v632_v15 = vunpack.c.h.bf16 %v644_v8  ;;  %v643_v16 = vld [vmem:[%s305_s28 + $0x18] sm:$0xff]  }
  0x14   : > { %v350_v17 = vsub.f32 %v611_v4, %v584_v0  ;;  %v351_v18 = vsub.f32 %v612_v6, %v584_v0  ;;  %v619_v19 = vunpack.c.l.bf16 %v642_v9  ;;  %v635_v20 = vunpack.c.l.bf16 %v645_v10  ;;  %v646_v21 = vld [vmem:[%s315_s7 + $0x18] sm:$0xff]  }
  0x15   : > { %v352_v23 = vsub.f32 %v615_v12, %v584_v0  ;;  %v353_v24 = vsub.f32 %v616_v14, %v584_v0  ;;  %v620_v25 = vunpack.c.h.bf16 %v642_v9  ;;  %v636_v26 = vunpack.c.h.bf16 %v645_v10 }
  0x16   : > { %v365_v27 = vmul.f32 %v585_v11, %v350_v17  ;;  %v366_v28 = vmul.f32 %v585_v11, %v351_v18  ;;  %v354_v29 = vsub.f32 %v619_v19, %v584_v0  ;;  %v623_v30 = vunpack.c.l.bf16 %v643_v16 }
  0x17   : > { %v367_v32 = vmul.f32 %v585_v11, %v352_v23  ;;  %v368_v33 = vmul.f32 %v585_v11, %v353_v24  ;;  %v355_v34 = vsub.f32 %v620_v25, %v584_v0  ;;  %v639_v35 = vunpack.c.l.bf16 %v646_v21 }
  0x18   : > { %v380_v36 = vmul.f32 %v586_v22, %v365_v27  ;;  %v381_v37 = vmul.f32 %v586_v22, %v366_v28  ;;  %v369_v38 = vmul.f32 %v585_v11, %v354_v29  ;;  %v356_v39 = vsub.f32 %v623_v30, %v584_v0 }
  0x19   : > { %v382_v40 = vmul.f32 %v586_v22, %v367_v32  ;;  %v383_v41 = vmul.f32 %v586_v22, %v368_v33  ;;  %v370_v42 = vmul.f32 %v585_v11, %v355_v34  ;;  %v624_v43 = vunpack.c.h.bf16 %v643_v16 }
  0x1a   : > { %v395_v44 = vadd.f32 %v587_v31, %v380_v36  ;;  %v396_v45 = vadd.f32 %v587_v31, %v381_v37  ;;  %v384_v46 = vmul.f32 %v586_v22, %v369_v38  ;;  %v371_v47 = vmul.f32 %v585_v11, %v356_v39 }
  0x1b   : > { %v397_v48 = vadd.f32 %v587_v31, %v382_v40  ;;  %v398_v49 = vadd.f32 %v587_v31, %v383_v41  ;;  %v385_v50 = vmul.f32 %v586_v22, %v370_v42  ;;  %v357_v51 = vsub.f32 %v624_v43, %v584_v0 }
  0x1c   : > { %v419_v52 = vadd.f32 %v627_v5, %v395_v44  ;;  %v420_v53 = vadd.f32 %v628_v7, %v396_v45  ;;  %v399_v54 = vadd.f32 %v587_v31, %v384_v46  ;;  %v386_v55 = vmul.f32 %v586_v22, %v371_v47 }
  0x1d   : > { %v421_v56 = vadd.f32 %v631_v13, %v397_v48  ;;  %v422_v57 = vadd.f32 %v632_v15, %v398_v49  ;;  %v400_v58 = vadd.f32 %v587_v31, %v385_v50  ;;  %v372_v59 = vmul.f32 %v585_v11, %v357_v51 }
  0x1e   : > { %v601_v60 = vpack.c.bf16 %v419_v52, %v419_v52  ;;  %v602_v61 = vpack.c.bf16 %v420_v53, %v420_v53  ;;  %v423_v62 = vadd.f32 %v635_v20, %v399_v54  ;;  %v401_v63 = vadd.f32 %v587_v31, %v386_v55 }
  0x1f   : > { %v603_v1 = vpack.c.bf16 %v421_v56, %v421_v56  ;;  %v604_v2 = vpack.c.bf16 %v422_v57, %v422_v57  ;;  %v424_v3 = vadd.f32 %v636_v26, %v400_v58  ;;  %v387_v0 = vmul.f32 %v586_v22, %v372_v59 }
  0x20   : > { %460 = vst.msk [vmem:[%s325_s18] sm:$0xf] %vm459_vm0, %v601_v60  ;;  %461 = vst.msk [vmem:[%s325_s18 + $0x4] sm:$0xf] %vm459_vm0, %v602_v61  ;;  %v605_v4 = vpack.c.bf16 %v423_v62, %v423_v62  ;;  %v425_v5 = vadd.f32 %v639_v35, %v401_v63  ;;  %v640_v6 = vunpack.c.h.bf16 %v646_v21 }
  0x21   : > { %462 = vst.msk [vmem:[%s325_s18 + $0x8] sm:$0xf] %vm459_vm0, %v603_v1  ;;  %463 = vst.msk [vmem:[%s325_s18 + $0xc] sm:$0xf] %vm459_vm0, %v604_v2  ;;  %v606_v7 = vpack.c.bf16 %v424_v3, %v424_v3  ;;  %v402_v8 = vadd.f32 %v587_v31, %v387_v0 }
  0x22   : > { %464 = vst.msk [vmem:[%s325_s18 + $0x10] sm:$0xf] %vm459_vm0, %v605_v4  ;;  %v607_v9 = vpack.c.bf16 %v425_v5, %v425_v5 }
  0x23   : > { %465 = vst.msk [vmem:[%s325_s18 + $0x14] sm:$0xf] %vm459_vm0, %v606_v7  ;;  %v426_v10 = vadd.f32 %v640_v6, %v402_v8 }
  0x24   : > { %466 = vst.msk [vmem:[%s325_s18 + $0x18] sm:$0xf] %vm459_vm0, %v607_v9 }
  0x25   : > { %v608_v11 = vpack.c.bf16 %v426_v10, %v426_v10 }
  0x27   : > { %467 = vst.msk [vmem:[%s325_s18 + $0x1c] sm:$0xf] %vm459_vm0, %v608_v11 }
  0x28 PF: > { %s16_s23 = sadd.s32 1, %s693_s23   ;;  %s798_s21 = smov %s689_s22 }
  0x29   : > { %p13_p5 = scmp.ge.s32.totalorder %s16_s23, 4   ;;  %s799_s22 = smov %s801_s24 }
  0x2b   :  { %15 = sbr.rel (!%p13_p5) target bundleno = 2 (0x2), region = 77 }

// kernel: _lambda_.26
= control target key start
LH: loop header
LB: loop body
LE: loop exit
PB: predicated region body
PF: predicated region fallthrough
CT: control target
= control target key end

     0   :  { %s1821_s0 = inlined_call_operand.vmem [shape: bf16[2,10,9,32], index: 0, kind: input, shape index: {}, may-alias: {0,1,2}]   ;;  %s1822_s1 = inlined_call_operand.vmem [shape: bf16[2,10,9,32], index: 1, kind: input, shape index: {}, may-alias: {0,1,2}]   ;;  %s1823_s2 = inlined_call_operand.vmem [shape: bf16[2,10,9,32], index: 2, kind: input, shape index: {}, may-alias: {0,1,2}]   ;;  %s1824_s3 = inlined_call_operand.vmem [shape: bf16[6,32,64], index: 3, kind: input, shape index: {}]   ;;  %s1825_s4 = inlined_call_operand.vmem [shape: f32[1,64], index: 4, kind: input, shape index: {}]   ;;  %s1826_s5 = inlined_call_operand.vmem [shape: f32[2,1,64], index: 5, kind: input, shape index: {}]   ;;  %s1827_s6 = inlined_call_operand.vmem [shape: bf16[2,8,8,64], index: 6, kind: output, shape index: {0}]   ;;  %s1828_s7 = inlined_call_operand.hbm [shape: f32[2,8,1,32], index: 7, kind: output, shape index: {1}]   ;;  %s1829_s8 = inlined_call_operand.hbm [shape: f32[2,8,1,32], index: 8, kind: output, shape index: {2}]  }
   0x1   :  { %1835 = sst [smem:[#allocation14_spill]] %s1821_s0 }
   0x2   :  { %14 = vsyncpa [#allocation3], 0 }
   0x3   :  { %16 = vsyncpa [#allocation3 + $0x1], 0 }
   0x4   :  { %17 = vsyncpa [#allocation5], 0 }
   0x5   :  { %19 = vsyncpa [#allocation5 + $0x1], 0  ;;  %s1543_s27 = smov 0   ;;  %s1545_s28 = smov 0  }
   0x6   :  { %s1547_s29 = smov 0   ;;  %s1549_s30 = smov 0  }
   0x7   :  { %s1551_s9 = smov 0   ;;  %s1553_s10 = smov 0  }
   0x8   :  { %s1555_s11 = smov 0   ;;  %s1557_s12 = smov 0  }
   0x9 LB: > { %1836 = sst [smem:[#allocation8_spill]] %s1472_s29  ;;  %s1144_s13 = sadd.s32 4294967295, %s1492_s12   ;;  %s1492_s12 = sphi %s1557_s12, %s25_s12   ;;  %s1488_s11 = sphi %s1555_s11, %s1850_s11   ;;  %s1484_s10 = sphi %s1553_s10, %s1849_s10   ;;  %s1480_s9 = sphi %s1551_s9, %s1848_s9   ;;  %s1476_s30 = sphi %s1549_s30, %s1847_s30   ;;  %s1472_s29 = sphi %s1547_s29, %s1846_s29   ;;  %s1468_s28 = sphi %s1545_s28, %s1852_s28   ;;  %s1464_s27 = sphi %s1543_s27, %s1851_s27  }
   0xa   : > { %1837 = sst [smem:[#allocation9_spill]] %s1484_s10  ;;  %s1145_s14 = sadd.s32 4294967294, %s1492_s12  }
   0xb   : > { %1838 = sst [smem:[#allocation10_spill]] %s1488_s11  ;;  %s34_s15 = sadd.s32 1, %s1484_s10 }
   0xc   : > { %p35_p0 = scmp.ge.s32.totalorder %s34_s15, 8  ;;  %s37_s16 = sadd.s32 1, %s1488_s11 }
   0xd   : > { %p240_p1 = scmp.ne.s32.totalorder %s1472_s29, %s1468_s28  ;;  %p241_p2 = scmp.eq.s32.totalorder %s1144_s13, 15 }
   0xe   : > { %s1854_s15 = smov (%p35_p0, %s34_s15), 0  ;;  %s1856_s16 = smov (!%p35_p0, %s37_s16), %s1488_s11 }
   0xf   : > { %1839 = sst [smem:[#allocation11_spill]] %s1854_s15  ;;  %s226_s17 = ssub.s32 %s1484_s10, %s1854_s15 }
  0x10   : > { %p1594_p3 = por %p241_p2, %p240_p1  ;;  %p39_p4 = scmp.ge.s32.totalorder %s1856_s16, 2 }
  0x11   : > { %p246_p5 = scmp.ne.s32.totalorder %s1468_s28, %s1464_s27  ;;  %p247_p6 = scmp.eq.s32.totalorder %s1145_s14, 15 }
  0x12   : > { %p1148_p7 = scmp.ge.s32.totalorder %s1492_s12, 1  ;;  %s1858_s16 = smov (%p39_p4, %s1856_s16), 0 }
  0x13   : > { %1841 = sst [smem:[#allocation12_spill]] %s1858_s16  ;;  %p1603_p8 = por %p247_p6, %p246_p5 }
  0x14   : > { %p345_p9 = scmp.lt.s32.totalorder %s1492_s12, 17  ;;  %s225_s20 = ssub.s32 %s1488_s11, %s1858_s16 }
  0x15   : > { %s230_s21 = sadd.s32 1, %s1472_s29  ;;  %s227_s22 = sor.u32 %s226_s17, %s225_s20 }
  0x16   : > { %p346_p10 = pnand %p1148_p7, %p345_p9  ;;  %p228_p11 = scmp.eq.s32.totalorder %s227_s22, 0 }
  0x17   : > { %v1351_v0 = vld [vmem:[%s1824_s3 + $0x30] sm:$0xff] (!%p346_p10)   ;;  %v1494_v1 = vmov (!%p346_p10), 0.0   ;;  %v1352_v2 = vld [vmem:[%s1824_s3] sm:$0xff] (!%p346_p10)   ;;  %v1353_v3 = vld [vmem:[%s1824_s3 + $0x38] sm:$0xff] (!%p346_p10)   ;;  %vm1495_vm0 = vmmov (!%p346_p10), 0   ;;  %p417_p12 = scmp.lt.s32.totalorder (!%p346_p10), %s1480_s9, 1 }
  0x18   : > { %s1612_s23 = scalar_select %p228_p11, %s1472_s29, %s230_s21  }
  0x19   : > { %349 = sbr.rel (%p346_p10) target bundleno = 334 (0x14e), region = 44  ;;  %1224 = vmatprep.subr.bf16.mxu0 (!%p346_p10), %v1494_v1  ;;  %1232 = vmatprep.subr.bf16.mxu1 (!%p346_p10), %v1494_v1  ;;  %v1354_v4 = vld [vmem:[%s1824_s3 + $0x8] sm:$0xff] (!%p346_p10)   ;;  %p419_p13 = scmp.lt.s32.totalorder (!%p346_p10), %s1476_s30, 9  ;;  %vm495_vm1 = vcmask (!%p346_p10), 261120   ;;  %v1357_v5 = vld [vmem:[%s1824_s3 + $0x40] sm:$0xff] (!%p346_p10)   ;;  %v1356_v13 = vld [vmem:[%s1824_s3 + $0x10] sm:$0xff] (!%p346_p10)  }
  0x1a   : > { %1843 = sst [smem:[#allocation13_spill]] %s1612_s23  ;;  %1225 = vmatpush3.bf16.msra.mxu0 (!%p346_p10), %v1351_v0  ;;  %1236 = vmatprep.mubr.msk.bf16.mxu1 (!%p346_p10), %vm1495_vm0, %v1494_v1  ;;  %s426_s26 = sadd.s32 (!%p346_p10), 1, %s1476_s30  ;;  %v1359_v9 = vld [vmem:[%s1824_s3 + $0x48] sm:$0xff] (!%p346_p10)   ;;  %v1358_v19 = vld [vmem:[%s1824_s3 + $0x18] sm:$0xff] (!%p346_p10)   ;;  %v1362_v22 = vld [vmem:[%s1824_s3 + $0x50] sm:$0xff] (!%p346_p10)   ;;  %vm877_vm2 = vcmask (!%p346_p10), 519168  }
  0x1b   : > { %1233 = vmatpush3.bf16.msra.mxu1 (!%p346_p10), %v1352_v2  ;;  %1226 = vmatprep.subr.bf16.mxu0 (!%p346_p10), %v1494_v1  ;;  %p429_p0 = scmp.lt.s32.totalorder (!%p346_p10), %s426_s26, 9  ;;  %s437_s17 = sadd.s32 (!%p346_p10), 2, %s1476_s30  ;;  %v1361_v25 = vld [vmem:[%s1824_s3 + $0x20] sm:$0xff] (!%p346_p10)   ;;  %v1364_v28 = vld [vmem:[%s1824_s3 + $0x58] sm:$0xff] (!%p346_p10)   ;;  %v1363_v29 = vld [vmem:[%s1824_s3 + $0x28] sm:$0xff] (!%p346_p10)   ;;  %vm894_vm3 = vcmask (!%p346_p10), 253952  }
  0x1c   : > { %1234 = vmatprep.subr.bf16.mxu1 (!%p346_p10), %v1494_v1  ;;  %1228 = vmatprep.mubr.msk.bf16.mxu0 (!%p346_p10), %vm1495_vm0, %v1494_v1  ;;  %p440_p1 = scmp.lt.s32.totalorder (!%p346_p10), %s437_s17, 9  ;;  %s1844_s0 = sld [smem:[#allocation14_spill]] (!%p346_p10)  ;;  %v1198_v58 = vld [vmem:[%s1825_s4] ss:$0 sm:$0xff] (!%p346_p10) }
  0x1d   : > { %p453_p2 = scmp.lt.s32.totalorder (!%p346_p10), %s1476_s30, 7 }
  0x1e   : > { %1227 = vmatpush3.bf16.msra.mxu0 (!%p346_p10), %v1353_v3 }
  0x1f   : > { %1235 = vmatpush3.bf16.msra.mxu1 (!%p346_p10), %v1354_v4  ;;  %1240 = vmatprep.subr.bf16.mxu0 (!%p346_p10), %v1494_v1 }
  0x20   : > { %s1637_s22 = scalar_select %p417_p12, %s1480_s9, 1  ;;  %1248 = vmatprep.subr.bf16.mxu1 %v1494_v1 }
  0x21   : > { %s420_s24 = scalar_select %p419_p13, %s1476_s30, 9 }
  0x22   : > { %s1641_s25 = smul.u32 20, %s1637_s22  ;;  %s1860_s26 = smov (!%p429_p0, %s426_s26), 9 }
  0x23   : > { %s1149_s13 = sshll.u32 %s420_s24, 1  ;;  %s1862_s17 = smov (!%p440_p1, %s437_s17), 9 }
  0x24   : > { %s423_s14 = sadd.s32 %s1641_s25, %s1149_s13  ;;  %s1151_s24 = sshll.u32 %s1860_s26, 1 }
  0x25   : > { %s1150_s20 = sshll.u32 %s423_s14, 2  ;;  %s433_s16 = sadd.s32 %s1641_s25, %s1151_s24 }
  0x26   : > { %s425_s10 = scalar_lea.vmem %s1844_s0, %s1150_s20  ;;  %s1153_s11 = sshll.u32 %s1862_s17, 1 }
  0x27   : > { %v460_v6 = vld [vmem:[%s425_s10] sm:$0xf]  ;;  %v465_v7 = vld [vmem:[%s425_s10 + $0x4] sm:$0x1]  ;;  %s1152_s10 = sshll.u32 %s433_s16, 2  ;;  %s444_s15 = sadd.s32 %s1641_s25, %s1153_s11 }
  0x28   : > { %v1161_v8 = vcombine.low %v460_v6, %v465_v7  ;;  %1237 = vmatmul.mubr.msk.bf16.vlgmr.msra.gmra.mrb[0].mxu1 %vm495_vm1, %v460_v6  ;;  %s435_s26 = scalar_lea.vmem %s1822_s1, %s1152_s10  ;;  %s1154_s0 = sshll.u32 %s444_s15, 2 }
  0x29   : > { %1249 = vmatpush3.bf16.msra.mxu1 %v1357_v5  ;;  %1252 = vmatprep.mubr.msk.bf16.mxu1 %vm1495_vm0, %v1494_v1  ;;  %s1672_s17 = scalar_lea.vmem %s1823_s2, %s1154_s0  ;;  %v1360_v14 = vld [vmem:[%s435_s26] sm:$0x1f]   ;;  %s450_s25 = scalar_lea.vmem %s1826_s5, %s1637_s22 }
  0x2a   : > { %v477_v10 = vshrl.u32 %v1161_v8, 16  ;;  %v479_v11 = vshll.u32 %v1161_v8, 16  ;;  %1250 = vmatprep.subr.bf16.mxu1 %v1494_v1  ;;  %v669_v16 = vshrl.u32 %v1360_v14, 16  ;;  %v671_v17 = vshll.u32 %v1360_v14, 16  ;;  %v1365_v18 = vld [vmem:[%s1672_s17] sm:$0x1f]  }
  0x2b   : > { %v808_v21 = vshll.u32 %v1365_v18, 16  ;;  %v594_v24 = vld [vmem:[%s435_s26] sm:$0xf]  ;;  %v806_v26 = vshrl.u32 %v1365_v18, 16  ;;  %s454_s21 = scalar_select %p453_p2, %s1476_s30, 7 }
  0x2c   : > { %v481_v12 = vrot.slane %v479_v11, 1  ;;  %v673_v20 = vrot.slane %v671_v17, 1  ;;  %v731_v31 = vld [vmem:[%s1672_s17] sm:$0xf]  ;;  %s1155_s26 = sshll.u32 %s1637_s22, 3  ;;  %s1723_s22 = sand.u32 1, %s1468_s28  }
  0x2d   : > { %1251 = vmatpush3.bf16.msra.mxu1 %v1359_v9  ;;  %v810_v27 = vrot.slane %v808_v21, 1  ;;  %s456_s13 = sadd.s32 %s1155_s26, %s454_s21  ;;  %v1199_v62 = vld [vmem:[%s450_s25] ss:$0 sm:$0xff]  ;;  %s1200_s10 = sshll.u32 %s1480_s9, 3 }
  0x2e   : > { %v482_v15 = vor.u32 %v481_v12, %v477_v10  ;;  %1264 = vmatprep.subr.bf16.mxu1 %v1494_v1  ;;  %v674_v23 = vor.u32 %v673_v20, %v669_v16  ;;  %s1156_s29 = sshll.u32 %s456_s13, 2  ;;  %s931_s15 = sadd.s32 %s1476_s30, %s1200_s10 }
  0x2f   : > { %v811_v30 = vor.u32 %v810_v27, %v806_v26  ;;  %s458_s11 = scalar_lea.vmem %s1827_s6, %s1156_s29  ;;  %s1201_s20 = sshll.u32 %s931_s15, 4 }
  0x30   : > { %1229 = vmatmul.mubr.msk.bf16.vlgmr.msra.gmra.mrb[0].mxu0 %vm495_vm1, %v482_v15  ;;  %1253 = vmatmul.mubr.msk.bf16.vlgmr.msra.gmra.mrb[4].mxu1 %vm495_vm1, %v674_v23  ;;  %s410_s21 = scalar_lea.vmem [#allocation2], %s1723_s22  ;;  %s416_s13 = scalar_lea.vmem [#allocation4], %s1723_s22 }
  0x31   : > { %1241 = vmatpush3.bf16.msra.mxu0 %v1356_v13  ;;  %1244 = vmatprep.mubr.msk.bf16.mxu0 %vm1495_vm0, %v1494_v1  ;;  %s935_s26 = sshll.u32 %s410_s21, 4  ;;  %s950_s14 = sshll.u32 %s416_s13, 4  ;;  %s1736_s26 = int_to_ptr.vmem [resolvable:$true] %s935_s26  ;;  %s1744_s14 = int_to_ptr.vmem [resolvable:$true] %s950_s14 }
  0x32   : > { %1242 = vmatprep.subr.bf16.mxu0 %v1494_v1  ;;  %1265 = vmatpush3.bf16.msra.mxu1 %v1362_v22  ;;  %s1734_s25 = scalar_lea.hbm %s1828_s7, %s1201_s20  ;;  %s1742_s0 = scalar_lea.hbm %s1829_s8, %s1201_s20 }
  0x33   : > { %1266 = vmatprep.subr.bf16.mxu1 %v1494_v1  ;;  %1268 = vmatprep.mubr.msk.bf16.mxu1 %vm1495_vm0, %v1494_v1  ;;  %s914_s29 = scalar_lea.sflag [#allocation3], %s1723_s22  ;;  %s1366_s24 = scalar_lea.vmem %s1736_s26, 16 }
  0x34   : > { %p1367_p4 = scmp.ne.s32.totalorder %s1736_s26, %s1366_s24  ;;  %s1496_s16 = smov [#allocation2]  }
  0x35   : > { %1243 = vmatpush3.bf16.msra.mxu0 %v1358_v19 }
  0x36   : > { %1256 = vmatprep.subr.bf16.mxu0 %v1494_v1  ;;  %1267 = vmatpush3.bf16.msra.mxu1 %v1364_v28  ;;  %p1368_p5 = pnand %p1367_p4, %p1594_p3 }
  0x38   : > { %1245 = vmatmul.mubr.msk.bf16.vlgmr.msra.gmra.mrb[4].mxu0 %vm495_vm1, %v594_v24  ;;  %p1369_p6 = pneg %p1368_p5 }
  0x39   : > { %1257 = vmatpush3.bf16.msra.mxu0 %v1361_v25  ;;  %1260 = vmatprep.mubr.msk.bf16.mxu0 %vm1495_vm0, %v1494_v1 }
  0x3a   : > { %1258 = vmatprep.subr.bf16.mxu0 %v1494_v1  ;;  %1269 = vmatmul.mubr.msk.bf16.vlgmr.msra.gmra.mrb[8].mxu1 %vm495_vm1, %v811_v30 }
  0x3d   : > { %1259 = vmatpush3.bf16.msra.mxu0 %v1363_v29 }
  0x40   : > { %1261 = vmatmul.mubr.msk.bf16.vlgmr.msra.gmra.mrb[8].mxu0 %vm495_vm1, %v731_v31 }
  0xfb   : > { %v588_v32 = vpop.f32.mrb[0].mxu1 }
  0xfc   : > { %v1238_v33 = vpop.f32.mrb[1].mxu1 }
  0xfd   : > { %v591_v34 = vpop.f32.mrb[2].mxu1 }
  0xfe   : > { %v1239_v35 = vpop.f32.mrb[3].mxu1 }
 0x103   : > { %v533_v36 = vpop.f32.mrb[0].mxu0  ;;  %v724_v41 = vpop.f32.mrb[4].mxu1 }
 0x104   : > { %v589_v37 = vadd.f32 %v588_v32, %v533_v36  ;;  %v1230_v38 = vpop.f32.mrb[1].mxu0  ;;  %v1254_v42 = vpop.f32.mrb[5].mxu1 }
 0x105   : > { %v536_v39 = vpop.f32.mrb[2].mxu0  ;;  %v727_v43 = vpop.f32.mrb[6].mxu1 }
 0x106   : > { %v1231_v40 = vpop.f32.mrb[3].mxu0  ;;  %v1255_v45 = vpop.f32.mrb[7].mxu1 }
 0x10b   : > { %v649_v44 = vpop.f32.mrb[4].mxu0 }
 0x10c   : > { %v655_v46 = vadd.f32 %v649_v44, %v589_v37  ;;  %v1246_v47 = vpop.f32.mrb[5].mxu0 }
 0x10d   : > { %v652_v48 = vpop.f32.mrb[6].mxu0  ;;  %v861_v51 = vpop.f32.mrb[8].mxu1 }
 0x10e   : > { %v1247_v49 = vpop.f32.mrb[7].mxu0  ;;  %v730_v50 = vadd.f32 %v724_v41, %v655_v46  ;;  %v1270_v52 = vpop.f32.mrb[9].mxu1 }
 0x10f   : > { %v864_v53 = vpop.f32.mrb[10].mxu1 }
 0x110   : > { %v1271_v55 = vpop.f32.mrb[11].mxu1 }
 0x113   : > { %v786_v54 = vpop.f32.mrb[8].mxu0 }
 0x114   : > { %v792_v56 = vadd.f32 %v786_v54, %v730_v50  ;;  %v1262_v57 = vpop.f32.mrb[9].mxu0 }
 0x115   : > { %v789_v59 = vpop.f32.mrb[10].mxu0 }
 0x116   : > { %v867_v60 = vadd.f32 %v861_v51, %v792_v56  ;;  %v1263_v61 = vpop.f32.mrb[11].mxu0 }
 0x118   : > { %v875_v63 = vadd.f32 %v1198_v58, %v867_v60 }
 0x11a   : > { %v876_v0 = vpack.c.bf16 %v875_v63, %v875_v63  ;;  %v886_v1 = vadd.f32 %v1199_v62, %v875_v63 }
 0x11c   : > { %878 = vst.msk [vmem:[%s458_s11] sm:$0xf] %vm877_vm2, %v876_v0  ;;  %v887_v2 = vsel %vm495_vm1, %v886_v1, 0.0  ;;  %v896_v3 = vmul.f32 %v886_v1, %v886_v1  ;;  %s1370_s11 = sshll.u32 %s1496_s16, 4  ;;  %s1371_s11 = int_to_ptr.vmem [resolvable:$false] %s1370_s11 }
 0x11d   : > { %v888_v4 = vrot.slane %v887_v2, 4  ;;  %s1372_s10 = scalar_lea.vmem %s1371_s11, 32  ;;  %p1373_p7 = scmp.lt.s32.totalorder %s1736_s26, %s1371_s11 }
 0x11e   : > { %v897_v5 = vsel %vm495_vm1, %v896_v3, 0.0  ;;  %p1374_p9 = scmp.lt.s32.totalorder %s1372_s10, %s1366_s24 }
 0x11f   : > { %v889_v6 = vadd.f32 %v888_v4, %v887_v2  ;;  %v898_v7 = vrot.slane %v897_v5, 4 }
 0x120   : > { %p1375_p10 = por %p1374_p9, %p1373_p7 }
 0x121   : > { %v890_v8 = vrot.slane %v889_v6, 2  ;;  %v899_v9 = vadd.f32 %v898_v7, %v897_v5 }
 0x122   : > { %p1376_p11 = pnand %p1375_p10, %p1369_p6 }
 0x123   : > { %v891_v10 = vadd.f32 %v890_v8, %v889_v6  ;;  %v900_v11 = vrot.slane %v899_v9, 2 }
 0x125   : > { %v892_v12 = vrot.slane %v891_v10, 1  ;;  %v901_v13 = vadd.f32 %v900_v11, %v899_v9 }
 0x127   : > { %v893_v14 = vadd.f32 %v892_v12, %v891_v10  ;;  %v902_v15 = vrot.slane %v901_v13, 1 }
 0x129   : > { %895 = vst.msk [vmem:[%s410_s21] sm:$0x1] %vm894_vm3, %v893_v14  ;;  %v903_v16 = vadd.f32 %v902_v15, %v901_v13 }
 0x12a   : > { %1379 = shalt.err (!%p1376_p11)
}
 0x12b   : > { %s1380_s15 = scalar_lea.hbm %s1734_s25, 16  ;;  %s1384_s9 = scalar_lea.hbm %s1828_s7, 256 }
 0x12c   : > { %p1381_p12 = scmp.ne.s32.totalorder %s1734_s25, %s1380_s15  ;;  %p1385_p1 = scmp.lt.u32.totalorder %s1734_s25, %s1828_s7 }
 0x12d   : > { %p1386_p2 = scmp.lt.u32.totalorder %s1384_s9, %s1380_s15  ;;  %p1388_p5 = scmp.lt.u32.totalorder %s1380_s15, %s1734_s25 }
 0x12e   : > { %p1382_p13 = pnand %p1381_p12, %p1594_p3 }
 0x12f   : > { %p1387_p4 = por %p1386_p2, %p1385_p1 }
 0x130   : > { %p1383_p0 = pneg %p1382_p13 }
 0x131   : > { %p1389_p6 = por %p1388_p5, %p1387_p4 }
 0x133   : > { %p1390_p7 = pnand %p1389_p6, %p1383_p0 }
 0x135   : > { %1393 = shalt.err (!%p1390_p7)
}
 0x136   : > { %1273 = dma.vmem_to_hbm [thread:$0]  (%p1594_p3), %s1736_s26, 16, %s1734_s25, %s914_s29   ;;  %904 = vst.msk [vmem:[%s416_s13] sm:$0x1] %vm894_vm3, %v903_v16 }
 0x137   : > { %s918_s23 = scalar_lea.sflag [#allocation5], %s1723_s22  ;;  %s1394_s24 = scalar_lea.vmem %s1744_s14, 16 }
 0x138   : > { %p1395_p9 = scmp.ne.s32.totalorder %s1744_s14, %s1394_s24  ;;  %s1497_s16 = smov [#allocation4]  }
 0x139   : > { %s1398_s11 = sshll.u32 %s1497_s16, 4  ;;  %s1399_s11 = int_to_ptr.vmem [resolvable:$false] %s1398_s11 }
 0x13a   : > { %p1396_p10 = pnand %p1395_p9, %p1594_p3  ;;  %s1400_s10 = scalar_lea.vmem %s1399_s11, 32 }
 0x13b   : > { %p1401_p12 = scmp.lt.s32.totalorder %s1744_s14, %s1399_s11  ;;  %p1402_p13 = scmp.lt.s32.totalorder %s1400_s10, %s1394_s24 }
 0x13c   : > { %p1397_p11 = pneg %p1396_p10 }
 0x13d   : > { %p1403_p0 = por %p1402_p13, %p1401_p12 }
 0x13f   : > { %p1404_p1 = pnand %p1403_p0, %p1397_p11 }
 0x141   : > { %1407 = shalt.err (!%p1404_p1)
}
 0x142   : > { %s1408_s22 = scalar_lea.hbm %s1742_s0, 16  ;;  %s1412_s25 = scalar_lea.hbm %s1829_s8, 256 }
 0x143   : > { %p1409_p2 = scmp.ne.s32.totalorder %s1742_s0, %s1408_s22  ;;  %p1413_p6 = scmp.lt.u32.totalorder %s1742_s0, %s1829_s8 }
 0x144   : > { %p1414_p7 = scmp.lt.u32.totalorder %s1412_s25, %s1408_s22  ;;  %p1416_p10 = scmp.lt.u32.totalorder %s1408_s22, %s1742_s0 }
 0x145   : > { %p1410_p4 = pnand %p1409_p2, %p1594_p3 }
 0x146   : > { %p1415_p9 = por %p1414_p7, %p1413_p6 }
 0x147   : > { %p1411_p5 = pneg %p1410_p4 }
 0x148   : > { %p1417_p11 = por %p1416_p10, %p1415_p9 }
 0x14a   : > { %p1418_p12 = pnand %p1417_p11, %p1411_p5 }
 0x14c   : > { %1421 = shalt.err (!%p1418_p12)
}
 0x14d   : > { %1274 = dma.vmem_to_hbm [thread:$0]  (%p1594_p3), %s1744_s14, 16, %s1742_s0, %s918_s23  }
 0x14e PF: > { %p1284_p13 = scmp.ge.s32.totalorder %s1492_s12, 2  ;;  %s973_s20 = sand.u32 1, %s1464_s27  }
 0x14f   : > { %s974_s21 = scalar_lea.sflag [#allocation3], %s973_s20 }
 0x150   : > { %p1278_p0 = pnand %p1284_p13, %p1603_p8 }
 0x152   : > { %1455 = dma.done.wait (!%p1278_p0), %s974_s21, 16  }
 0x153   : > { %1457 = vsyncadd (!%p1278_p0), %s974_s21, 4294967280  ;;  %s982_s9 = scalar_lea.sflag [#allocation5], %s973_s20 }
 0x154   : > { %1459 = dma.done.wait (!%p1278_p0), %s982_s9, 16  }
 0x155   : > { %1461 = vsyncadd (!%p1278_p0), %s982_s9, 4294967280  ;;  %s25_s12 = sadd.s32 1, %s1492_s12   ;;  %s1845_s18 = sld [smem:[#allocation8_spill]] }
 0x156   : > { %p22_p1 = scmp.ge.s32.totalorder %s25_s12, 18   ;;  %s1846_s29 = sld [smem:[#allocation13_spill]] }
 0x157   : > { %s1847_s30 = sld [smem:[#allocation9_spill]]  ;;  %s1848_s9 = sld [smem:[#allocation10_spill]] }
 0x158   : > { %s1849_s10 = sld [smem:[#allocation11_spill]]  ;;  %s1850_s11 = sld [smem:[#allocation12_spill]] }
 0x159   : > { %s1851_s27 = smov %s1468_s28  ;;  %24 = sbr.rel (!%p22_p1) target bundleno = 9 (0x9), region = 122 }
 0x15b   : > { %s1852_s28 = smov %s1845_s18 }
 0x160   :  { %986 = vsyncpa [#allocation3], 1 }
 0x161   :  { %988 = vsyncpa [#allocation3 + $0x1], 1 }
 0x162   :  { %989 = vsyncpa [#allocation5], 1 }
 0x163   :  { %991 = vsyncpa [#allocation5 + $0x1], 1 }

// kernel: _lambda_.30
= control target key start
LH: loop header
LB: loop body
LE: loop exit
PB: predicated region body
PF: predicated region fallthrough
CT: control target
= control target key end

     0   :  { %v752_v1 = vmov 0   ;;  %vm143_vm0 = vcmask 261120   ;;  %v43_v17 = vlaneseq  ;;  %v753_v28 = vmov 1966171168   ;;  %s934_s1 = inlined_call_operand.vmem [shape: bf16[32,512], index: 1, kind: input, shape index: {}]   ;;  %s935_s0 = inlined_call_operand.vmem [shape: bf16[128,32], index: 0, kind: input, shape index: {}]   ;;  %s936_s2 = inlined_call_operand.vmem [shape: f32[1,512], index: 2, kind: input, shape index: {}]   ;;  %s937_s3 = inlined_call_operand.vmem [shape: f32[1,1,512], index: 3, kind: output, shape index: {0}]   ;;  %s938_s4 = inlined_call_operand.vmem [shape: f32[1,1,512], index: 4, kind: output, shape index: {1}]  }
   0x1   :  { %v732_v0 = vld [vmem:[%s934_s1 + $0x4] ss:$16 sps:$4 sm:$0xff]   ;;  %200 = vmatprep.mubr.bf16.mxu0 %v752_v1  ;;  %313 = vmatprep.mubr.bf16.mxu1 %v752_v1  ;;  %v734_v2 = vld [vmem:[%s934_s1 + $0xc] ss:$16 sps:$4 sm:$0xff]   ;;  %v736_v3 = vld [vmem:[%s934_s1] ss:$16 sps:$4 sm:$0xff]   ;;  %v485_v29 = vunpack.c.l.s4 %v753_v28 }
   0x2   :  { %168 = vmatprep.subr.bf16.mxu0 %v732_v0  ;;  %v737_v4 = vld [vmem:[%s934_s1 + $0x8] ss:$16 sps:$4 sm:$0xff]   ;;  %281 = vmatprep.subr.bf16.mxu1 %v734_v2  ;;  %v738_v5 = vld [vmem:[%s934_s1 + $0x24] ss:$16 sps:$4 sm:$0xff]   ;;  %v740_v6 = vld [vmem:[%s934_s1 + $0x2c] ss:$16 sps:$4 sm:$0xff]  }
   0x3   :  { %169 = vmatpush1.bf16.msra.mxu0 %v736_v3  ;;  %282 = vmatpush1.bf16.msra.mxu1 %v737_v4  ;;  %v742_v7 = vld [vmem:[%s934_s1 + $0x20] ss:$16 sps:$4 sm:$0xff]   ;;  %v743_v8 = vld [vmem:[%s934_s1 + $0x28] ss:$16 sps:$4 sm:$0xff]   ;;  %v44_v18 = vshrl.u32 %v43_v17, 7  ;;  %v486_v40 = vunpack.c.0.s8 %v485_v29  ;;  %vm509_vm1 = vcmp.lt.s32.totalorder %v43_v17, 512 }
   0x4   :  { %170 = vmatprep.subr.bf16.mxu0 %v738_v5  ;;  %283 = vmatprep.subr.bf16.mxu1 %v740_v6  ;;  %v744_v9 = vld [vmem:[%s935_s0] sm:$0xff]   ;;  %v745_v10 = vld [vmem:[%s935_s0 + $0x8] sm:$0xff]   ;;  %v746_v11 = vld [vmem:[%s935_s0 + $0x10] sm:$0xff]  }
   0x5   :  { %v747_v12 = vld [vmem:[%s935_s0 + $0x18] sm:$0xff]   ;;  %v748_v13 = vld [vmem:[%s935_s0 + $0x20] sm:$0xff]   ;;  %v749_v14 = vld [vmem:[%s935_s0 + $0x28] sm:$0xff]   ;;  %v45_v19 = vsub.s32 0, %v44_v18  ;;  %v53_v20 = vsub.s32 2, %v44_v18  ;;  %v49_v22 = vsub.s32 1, %v44_v18 }
   0x6   :  { %v750_v15 = vld [vmem:[%s935_s0 + $0x30] sm:$0xff]   ;;  %v751_v16 = vld [vmem:[%s935_s0 + $0x38] sm:$0xff]   ;;  %v41_v21 = vld [vmem:[%s936_s2] sm:$0xf]  ;;  %v57_v23 = vsub.s32 3, %v44_v18 }
   0x7   :  { %171 = vmatpush1.bf16.msra.mxu0 %v742_v7  ;;  %284 = vmatpush1.bf16.msra.mxu1 %v743_v8  ;;  %v847_v24 = vrot.slane %v41_v21, %v45_v19  ;;  %v849_v25 = vrot.slane %v41_v21, %v53_v20  ;;  %v851_v26 = vrot.slane %v41_v21, %v49_v22 }
   0x8   :  { %v853_v27 = vrot.slane %v41_v21, %v57_v23 }
   0xa   :  { %714 = vmatmul.mubr.msk.bf16.vlgmr.msra.gmra.mrb[0].mxu0 %vm143_vm0, %v744_v9  ;;  %722 = vmatmul.mubr.msk.bf16.vlgmr.msra.gmra.mrb[0].mxu1 %vm143_vm0, %v744_v9  ;;  %v867_v9 = vsub.s32 %v486_v40, %v44_v18 }
   0xb   :  { %210 = vmatprep.mubr.bf16.mxu0 %v752_v1  ;;  %323 = vmatprep.mubr.bf16.mxu1 %v752_v1 }
  0x12   :  { %715 = vmatmul.mubr.msk.bf16.gmra.mrb[4].mxu0 %vm143_vm0, %v745_v10  ;;  %723 = vmatmul.mubr.msk.bf16.gmra.mrb[4].mxu1 %vm143_vm0, %v745_v10 }
  0x13   :  { %220 = vmatprep.mubr.bf16.mxu0 %v752_v1  ;;  %333 = vmatprep.mubr.bf16.mxu1 %v752_v1 }
  0x1a   :  { %716 = vmatmul.mubr.msk.bf16.gmra.mrb[8].mxu0 %vm143_vm0, %v746_v11  ;;  %724 = vmatmul.mubr.msk.bf16.gmra.mrb[8].mxu1 %vm143_vm0, %v746_v11 }
  0x1b   :  { %230 = vmatprep.mubr.bf16.mxu0 %v752_v1  ;;  %343 = vmatprep.mubr.bf16.mxu1 %v752_v1 }
  0x22   :  { %717 = vmatmul.mubr.msk.bf16.gmra.mrb[12].mxu0 %vm143_vm0, %v747_v12  ;;  %725 = vmatmul.mubr.msk.bf16.gmra.mrb[12].mxu1 %vm143_vm0, %v747_v12 }
  0x23   :  { %240 = vmatprep.mubr.bf16.mxu0 %v752_v1  ;;  %353 = vmatprep.mubr.bf16.mxu1 %v752_v1 }
  0x2a   :  { %718 = vmatmul.mubr.msk.bf16.gmra.mrb[16].mxu0 %vm143_vm0, %v748_v13  ;;  %726 = vmatmul.mubr.msk.bf16.gmra.mrb[16].mxu1 %vm143_vm0, %v748_v13 }
  0x2b   :  { %250 = vmatprep.mubr.bf16.mxu0 %v752_v1  ;;  %363 = vmatprep.mubr.bf16.mxu1 %v752_v1 }
  0x32   :  { %719 = vmatmul.mubr.msk.bf16.gmra.mrb[20].mxu0 %vm143_vm0, %v749_v14  ;;  %727 = vmatmul.mubr.msk.bf16.gmra.mrb[20].mxu1 %vm143_vm0, %v749_v14 }
  0x33   :  { %260 = vmatprep.mubr.bf16.mxu0 %v752_v1  ;;  %373 = vmatprep.mubr.bf16.mxu1 %v752_v1 }
  0x3a   :  { %720 = vmatmul.mubr.msk.bf16.gmra.mrb[24].mxu0 %vm143_vm0, %v750_v15  ;;  %728 = vmatmul.mubr.msk.bf16.gmra.mrb[24].mxu1 %vm143_vm0, %v750_v15 }
  0x3b   :  { %270 = vmatprep.mubr.bf16.mxu0 %v752_v1  ;;  %383 = vmatprep.mubr.bf16.mxu1 %v752_v1 }
  0x42   :  { %721 = vmatmul.mubr.msk.bf16.gmra.mrb[28].mxu0 %vm143_vm0, %v751_v16  ;;  %729 = vmatmul.mubr.msk.bf16.gmra.mrb[28].mxu1 %vm143_vm0, %v751_v16 }
  0xdd   :  { %v202_v30 = vpop.f32.mrb[0].mxu0  ;;  %v315_v31 = vpop.f32.mrb[0].mxu1 }
  0xde   :  { %v203_v32 = vadd.f32 %v202_v30, %v847_v24  ;;  %v316_v33 = vadd.f32 %v315_v31, %v849_v25  ;;  %v204_v34 = vpop.f32.mrb[1].mxu0  ;;  %v317_v35 = vpop.f32.mrb[1].mxu1 }
  0xdf   :  { %v205_v36 = vadd.f32 %v204_v34, %v851_v26  ;;  %v318_v37 = vadd.f32 %v317_v35, %v853_v27  ;;  %v206_v38 = vpop.f32.mrb[2].mxu0  ;;  %v319_v39 = vpop.f32.mrb[2].mxu1 }
  0xe0   :  { %v512_v41 = vmul.f32 %v203_v32, %v203_v32  ;;  %v514_v42 = vmul.f32 %v316_v33, %v316_v33  ;;  %v207_v43 = vadd.f32 %v206_v38, %v847_v24  ;;  %v320_v44 = vadd.f32 %v319_v39, %v849_v25  ;;  %v208_v45 = vpop.f32.mrb[3].mxu0  ;;  %v321_v46 = vpop.f32.mrb[3].mxu1 }
  0xe1   :  { %v513_v47 = vmul.f32 %v205_v36, %v205_v36  ;;  %v515_v48 = vmul.f32 %v318_v37, %v318_v37  ;;  %v209_v49 = vadd.f32 %v208_v45, %v851_v26  ;;  %v322_v50 = vadd.f32 %v321_v46, %v853_v27 }
  0xe2   :  { %v394_v51 = vadd.f32 %v207_v43, %v203_v32  ;;  %v516_v52 = vmul.f32 %v207_v43, %v207_v43  ;;  %v436_v53 = vadd.f32 %v320_v44, %v316_v33  ;;  %v518_v54 = vmul.f32 %v320_v44, %v320_v44 }
  0xe3   :  { %v415_v55 = vadd.f32 %v209_v49, %v205_v36  ;;  %v517_v56 = vmul.f32 %v209_v49, %v209_v49  ;;  %v457_v57 = vadd.f32 %v322_v50, %v318_v37  ;;  %v519_v58 = vmul.f32 %v322_v50, %v322_v50 }
  0xe4   :  { %v576_v59 = vadd.f32 %v516_v52, %v512_v41  ;;  %v618_v60 = vadd.f32 %v518_v54, %v514_v42 }
  0xe5   :  { %v597_v61 = vadd.f32 %v517_v56, %v513_v47  ;;  %v639_v62 = vadd.f32 %v519_v58, %v515_v48  ;;  %v212_v63 = vpop.f32.mrb[4].mxu0  ;;  %v325_v0 = vpop.f32.mrb[4].mxu1 }
  0xe6   :  { %v213_v1 = vadd.f32 %v212_v63, %v847_v24  ;;  %v326_v2 = vadd.f32 %v325_v0, %v849_v25  ;;  %v214_v3 = vpop.f32.mrb[5].mxu0  ;;  %v327_v4 = vpop.f32.mrb[5].mxu1 }
  0xe7   :  { %v215_v5 = vadd.f32 %v214_v3, %v851_v26  ;;  %v328_v6 = vadd.f32 %v327_v4, %v853_v27  ;;  %v216_v7 = vpop.f32.mrb[6].mxu0  ;;  %v329_v8 = vpop.f32.mrb[6].mxu1 }
  0xe8   :  { %v395_v10 = vadd.f32 %v394_v51, %v213_v1  ;;  %v520_v11 = vmul.f32 %v213_v1, %v213_v1  ;;  %v437_v12 = vadd.f32 %v436_v53, %v326_v2  ;;  %v522_v13 = vmul.f32 %v326_v2, %v326_v2  ;;  %v218_v14 = vpop.f32.mrb[7].mxu0  ;;  %v331_v15 = vpop.f32.mrb[7].mxu1 }
  0xe9   :  { %v416_v16 = vadd.f32 %v415_v55, %v215_v5  ;;  %v521_v19 = vmul.f32 %v215_v5, %v215_v5  ;;  %v458_v20 = vadd.f32 %v457_v57, %v328_v6  ;;  %v523_v21 = vmul.f32 %v328_v6, %v328_v6 }
  0xea   :  { %v577_v22 = vadd.f32 %v576_v59, %v520_v11  ;;  %v619_v23 = vadd.f32 %v618_v60, %v522_v13  ;;  %v217_v28 = vadd.f32 %v216_v7, %v847_v24  ;;  %v330_v29 = vadd.f32 %v329_v8, %v849_v25 }
  0xeb   :  { %v598_v30 = vadd.f32 %v597_v61, %v521_v19  ;;  %v640_v31 = vadd.f32 %v639_v62, %v523_v21  ;;  %v219_v18 = vadd.f32 %v218_v14, %v851_v26  ;;  %v332_v32 = vadd.f32 %v331_v15, %v853_v27 }
  0xec   :  { %v396_v33 = vadd.f32 %v395_v10, %v217_v28  ;;  %v524_v34 = vmul.f32 %v217_v28, %v217_v28  ;;  %v438_v35 = vadd.f32 %v437_v12, %v330_v29  ;;  %v526_v36 = vmul.f32 %v330_v29, %v330_v29 }
  0xed   :  { %v417_v37 = vadd.f32 %v416_v16, %v219_v18  ;;  %v525_v38 = vmul.f32 %v219_v18, %v219_v18  ;;  %v459_v39 = vadd.f32 %v458_v20, %v332_v32  ;;  %v527_v40 = vmul.f32 %v332_v32, %v332_v32  ;;  %v222_v41 = vpop.f32.mrb[8].mxu0  ;;  %v335_v42 = vpop.f32.mrb[8].mxu1 }
  0xee   :  { %v578_v43 = vadd.f32 %v577_v22, %v524_v34  ;;  %v620_v44 = vadd.f32 %v619_v23, %v526_v36  ;;  %v223_v45 = vadd.f32 %v222_v41, %v847_v24  ;;  %v336_v46 = vadd.f32 %v335_v42, %v849_v25  ;;  %v224_v47 = vpop.f32.mrb[9].mxu0  ;;  %v337_v48 = vpop.f32.mrb[9].mxu1 }
  0xef   :  { %v599_v49 = vadd.f32 %v598_v30, %v525_v38  ;;  %v641_v50 = vadd.f32 %v640_v31, %v527_v40  ;;  %v225_v51 = vadd.f32 %v224_v47, %v851_v26  ;;  %v338_v52 = vadd.f32 %v337_v48, %v853_v27  ;;  %v226_v53 = vpop.f32.mrb[10].mxu0  ;;  %v339_v54 = vpop.f32.mrb[10].mxu1 }
  0xf0   :  { %v397_v55 = vadd.f32 %v396_v33, %v223_v45  ;;  %v528_v56 = vmul.f32 %v223_v45, %v223_v45  ;;  %v439_v57 = vadd.f32 %v438_v35, %v336_v46  ;;  %v530_v58 = vmul.f32 %v336_v46, %v336_v46  ;;  %v228_v59 = vpop.f32.mrb[11].mxu0  ;;  %v341_v60 = vpop.f32.mrb[11].mxu1 }
  0xf1   :  { %v418_v61 = vadd.f32 %v417_v37, %v225_v51  ;;  %v529_v62 = vmul.f32 %v225_v51, %v225_v51  ;;  %v460_v63 = vadd.f32 %v459_v39, %v338_v52  ;;  %v531_v0 = vmul.f32 %v338_v52, %v338_v52 }
  0xf2   :  { %v579_v1 = vadd.f32 %v578_v43, %v528_v56  ;;  %v621_v2 = vadd.f32 %v620_v44, %v530_v58  ;;  %v227_v3 = vadd.f32 %v226_v53, %v847_v24  ;;  %v340_v4 = vadd.f32 %v339_v54, %v849_v25 }
  0xf3   :  { %v600_v5 = vadd.f32 %v599_v49, %v529_v62  ;;  %v642_v6 = vadd.f32 %v641_v50, %v531_v0  ;;  %v229_v7 = vadd.f32 %v228_v59, %v851_v26  ;;  %v342_v8 = vadd.f32 %v341_v60, %v853_v27 }
  0xf4   :  { %v398_v10 = vadd.f32 %v397_v55, %v227_v3  ;;  %v532_v11 = vmul.f32 %v227_v3, %v227_v3  ;;  %v440_v12 = vadd.f32 %v439_v57, %v340_v4  ;;  %v534_v13 = vmul.f32 %v340_v4, %v340_v4 }
  0xf5   :  { %v419_v14 = vadd.f32 %v418_v61, %v229_v7  ;;  %v533_v15 = vmul.f32 %v229_v7, %v229_v7  ;;  %v461_v16 = vadd.f32 %v460_v63, %v342_v8  ;;  %v535_v19 = vmul.f32 %v342_v8, %v342_v8  ;;  %v232_v20 = vpop.f32.mrb[12].mxu0  ;;  %v345_v21 = vpop.f32.mrb[12].mxu1 }
  0xf6   :  { %v580_v22 = vadd.f32 %v579_v1, %v532_v11  ;;  %v622_v23 = vadd.f32 %v621_v2, %v534_v13  ;;  %v233_v28 = vadd.f32 %v232_v20, %v847_v24  ;;  %v346_v29 = vadd.f32 %v345_v21, %v849_v25  ;;  %v234_v30 = vpop.f32.mrb[13].mxu0  ;;  %v347_v31 = vpop.f32.mrb[13].mxu1 }
  0xf7   :  { %v601_v18 = vadd.f32 %v600_v5, %v533_v15  ;;  %v643_v32 = vadd.f32 %v642_v6, %v535_v19  ;;  %v235_v33 = vadd.f32 %v234_v30, %v851_v26  ;;  %v348_v34 = vadd.f32 %v347_v31, %v853_v27  ;;  %v236_v35 = vpop.f32.mrb[14].mxu0  ;;  %v349_v36 = vpop.f32.mrb[14].mxu1 }
  0xf8   :  { %v399_v37 = vadd.f32 %v398_v10, %v233_v28  ;;  %v536_v38 = vmul.f32 %v233_v28, %v233_v28  ;;  %v441_v39 = vadd.f32 %v440_v12, %v346_v29  ;;  %v538_v40 = vmul.f32 %v346_v29, %v346_v29  ;;  %v238_v41 = vpop.f32.mrb[15].mxu0  ;;  %v351_v42 = vpop.f32.mrb[15].mxu1 }
  0xf9   :  { %v420_v43 = vadd.f32 %v419_v14, %v235_v33  ;;  %v537_v44 = vmul.f32 %v235_v33, %v235_v33  ;;  %v462_v45 = vadd.f32 %v461_v16, %v348_v34  ;;  %v539_v46 = vmul.f32 %v348_v34, %v348_v34 }
  0xfa   :  { %v581_v47 = vadd.f32 %v580_v22, %v536_v38  ;;  %v623_v48 = vadd.f32 %v622_v23, %v538_v40  ;;  %v237_v49 = vadd.f32 %v236_v35, %v847_v24  ;;  %v350_v50 = vadd.f32 %v349_v36, %v849_v25 }
  0xfb   :  { %v602_v51 = vadd.f32 %v601_v18, %v537_v44  ;;  %v644_v52 = vadd.f32 %v643_v32, %v539_v46  ;;  %v239_v53 = vadd.f32 %v238_v41, %v851_v26  ;;  %v352_v54 = vadd.f32 %v351_v42, %v853_v27 }
  0xfc   :  { %v400_v55 = vadd.f32 %v399_v37, %v237_v49  ;;  %v540_v56 = vmul.f32 %v237_v49, %v237_v49  ;;  %v442_v57 = vadd.f32 %v441_v39, %v350_v50  ;;  %v542_v58 = vmul.f32 %v350_v50, %v350_v50 }
  0xfd   :  { %v421_v59 = vadd.f32 %v420_v43, %v239_v53  ;;  %v541_v60 = vmul.f32 %v239_v53, %v239_v53  ;;  %v463_v61 = vadd.f32 %v462_v45, %v352_v54  ;;  %v543_v62 = vmul.f32 %v352_v54, %v352_v54  ;;  %v242_v63 = vpop.f32.mrb[16].mxu0  ;;  %v355_v0 = vpop.f32.mrb[16].mxu1 }
  0xfe   :  { %v582_v1 = vadd.f32 %v581_v47, %v540_v56  ;;  %v624_v2 = vadd.f32 %v623_v48, %v542_v58  ;;  %v243_v3 = vadd.f32 %v242_v63, %v847_v24  ;;  %v356_v4 = vadd.f32 %v355_v0, %v849_v25  ;;  %v244_v5 = vpop.f32.mrb[17].mxu0  ;;  %v357_v6 = vpop.f32.mrb[17].mxu1 }
  0xff   :  { %v603_v7 = vadd.f32 %v602_v51, %v541_v60  ;;  %v645_v8 = vadd.f32 %v644_v52, %v543_v62  ;;  %v245_v10 = vadd.f32 %v244_v5, %v851_v26  ;;  %v358_v11 = vadd.f32 %v357_v6, %v853_v27  ;;  %v246_v12 = vpop.f32.mrb[18].mxu0  ;;  %v359_v13 = vpop.f32.mrb[18].mxu1 }
 0x100   :  { %v401_v14 = vadd.f32 %v400_v55, %v243_v3  ;;  %v544_v15 = vmul.f32 %v243_v3, %v243_v3  ;;  %v443_v16 = vadd.f32 %v442_v57, %v356_v4  ;;  %v546_v19 = vmul.f32 %v356_v4, %v356_v4  ;;  %v248_v20 = vpop.f32.mrb[19].mxu0  ;;  %v361_v21 = vpop.f32.mrb[19].mxu1 }
 0x101   :  { %v422_v22 = vadd.f32 %v421_v59, %v245_v10  ;;  %v545_v23 = vmul.f32 %v245_v10, %v245_v10  ;;  %v464_v28 = vadd.f32 %v463_v61, %v358_v11  ;;  %v547_v29 = vmul.f32 %v358_v11, %v358_v11 }
 0x102   :  { %v583_v30 = vadd.f32 %v582_v1, %v544_v15  ;;  %v625_v31 = vadd.f32 %v624_v2, %v546_v19  ;;  %v247_v18 = vadd.f32 %v246_v12, %v847_v24  ;;  %v360_v32 = vadd.f32 %v359_v13, %v849_v25 }
 0x103   :  { %v604_v33 = vadd.f32 %v603_v7, %v545_v23  ;;  %v646_v34 = vadd.f32 %v645_v8, %v547_v29  ;;  %v249_v35 = vadd.f32 %v248_v20, %v851_v26  ;;  %v362_v36 = vadd.f32 %v361_v21, %v853_v27 }
 0x104   :  { %v402_v37 = vadd.f32 %v401_v14, %v247_v18  ;;  %v548_v38 = vmul.f32 %v247_v18, %v247_v18  ;;  %v444_v39 = vadd.f32 %v443_v16, %v360_v32  ;;  %v550_v40 = vmul.f32 %v360_v32, %v360_v32 }
 0x105   :  { %v423_v41 = vadd.f32 %v422_v22, %v249_v35  ;;  %v549_v42 = vmul.f32 %v249_v35, %v249_v35  ;;  %v465_v43 = vadd.f32 %v464_v28, %v362_v36  ;;  %v551_v44 = vmul.f32 %v362_v36, %v362_v36  ;;  %v252_v45 = vpop.f32.mrb[20].mxu0  ;;  %v365_v46 = vpop.f32.mrb[20].mxu1 }
 0x106   :  { %v584_v47 = vadd.f32 %v583_v30, %v548_v38  ;;  %v626_v48 = vadd.f32 %v625_v31, %v550_v40  ;;  %v253_v49 = vadd.f32 %v252_v45, %v847_v24  ;;  %v366_v50 = vadd.f32 %v365_v46, %v849_v25  ;;  %v254_v51 = vpop.f32.mrb[21].mxu0  ;;  %v367_v52 = vpop.f32.mrb[21].mxu1 }
 0x107   :  { %v605_v53 = vadd.f32 %v604_v33, %v549_v42  ;;  %v647_v54 = vadd.f32 %v646_v34, %v551_v44  ;;  %v255_v55 = vadd.f32 %v254_v51, %v851_v26  ;;  %v368_v56 = vadd.f32 %v367_v52, %v853_v27  ;;  %v256_v57 = vpop.f32.mrb[22].mxu0  ;;  %v369_v58 = vpop.f32.mrb[22].mxu1 }
 0x108   :  { %v403_v59 = vadd.f32 %v402_v37, %v253_v49  ;;  %v552_v60 = vmul.f32 %v253_v49, %v253_v49  ;;  %v445_v61 = vadd.f32 %v444_v39, %v366_v50  ;;  %v554_v62 = vmul.f32 %v366_v50, %v366_v50  ;;  %v258_v63 = vpop.f32.mrb[23].mxu0  ;;  %v371_v0 = vpop.f32.mrb[23].mxu1 }
 0x109   :  { %v424_v1 = vadd.f32 %v423_v41, %v255_v55  ;;  %v553_v2 = vmul.f32 %v255_v55, %v255_v55  ;;  %v466_v3 = vadd.f32 %v465_v43, %v368_v56  ;;  %v555_v4 = vmul.f32 %v368_v56, %v368_v56 }
 0x10a   :  { %v585_v5 = vadd.f32 %v584_v47, %v552_v60  ;;  %v627_v6 = vadd.f32 %v626_v48, %v554_v62  ;;  %v257_v7 = vadd.f32 %v256_v57, %v847_v24  ;;  %v370_v8 = vadd.f32 %v369_v58, %v849_v25 }
 0x10b   :  { %v606_v10 = vadd.f32 %v605_v53, %v553_v2  ;;  %v648_v11 = vadd.f32 %v647_v54, %v555_v4  ;;  %v259_v12 = vadd.f32 %v258_v63, %v851_v26  ;;  %v372_v13 = vadd.f32 %v371_v0, %v853_v27 }
 0x10c   :  { %v404_v14 = vadd.f32 %v403_v59, %v257_v7  ;;  %v556_v15 = vmul.f32 %v257_v7, %v257_v7  ;;  %v446_v16 = vadd.f32 %v445_v61, %v370_v8  ;;  %v558_v19 = vmul.f32 %v370_v8, %v370_v8 }
 0x10d   :  { %v425_v20 = vadd.f32 %v424_v1, %v259_v12  ;;  %v557_v21 = vmul.f32 %v259_v12, %v259_v12  ;;  %v467_v22 = vadd.f32 %v466_v3, %v372_v13  ;;  %v559_v23 = vmul.f32 %v372_v13, %v372_v13  ;;  %v262_v28 = vpop.f32.mrb[24].mxu0  ;;  %v375_v29 = vpop.f32.mrb[24].mxu1 }
 0x10e   :  { %v586_v30 = vadd.f32 %v585_v5, %v556_v15  ;;  %v628_v31 = vadd.f32 %v627_v6, %v558_v19  ;;  %v263_v18 = vadd.f32 %v262_v28, %v847_v24  ;;  %v376_v32 = vadd.f32 %v375_v29, %v849_v25  ;;  %v264_v33 = vpop.f32.mrb[25].mxu0  ;;  %v377_v34 = vpop.f32.mrb[25].mxu1 }
 0x10f   :  { %v607_v35 = vadd.f32 %v606_v10, %v557_v21  ;;  %v649_v36 = vadd.f32 %v648_v11, %v559_v23  ;;  %v265_v37 = vadd.f32 %v264_v33, %v851_v26  ;;  %v378_v38 = vadd.f32 %v377_v34, %v853_v27  ;;  %v266_v39 = vpop.f32.mrb[26].mxu0  ;;  %v379_v40 = vpop.f32.mrb[26].mxu1 }
 0x110   :  { %v405_v41 = vadd.f32 %v404_v14, %v263_v18  ;;  %v560_v42 = vmul.f32 %v263_v18, %v263_v18  ;;  %v447_v43 = vadd.f32 %v446_v16, %v376_v32  ;;  %v562_v44 = vmul.f32 %v376_v32, %v376_v32  ;;  %v268_v45 = vpop.f32.mrb[27].mxu0  ;;  %v381_v46 = vpop.f32.mrb[27].mxu1 }
 0x111   :  { %v426_v47 = vadd.f32 %v425_v20, %v265_v37  ;;  %v561_v48 = vmul.f32 %v265_v37, %v265_v37  ;;  %v468_v49 = vadd.f32 %v467_v22, %v378_v38  ;;  %v563_v50 = vmul.f32 %v378_v38, %v378_v38 }
 0x112   :  { %v587_v51 = vadd.f32 %v586_v30, %v560_v42  ;;  %v629_v52 = vadd.f32 %v628_v31, %v562_v44  ;;  %v267_v53 = vadd.f32 %v266_v39, %v847_v24  ;;  %v380_v54 = vadd.f32 %v379_v40, %v849_v25 }
 0x113   :  { %v608_v55 = vadd.f32 %v607_v35, %v561_v48  ;;  %v650_v56 = vadd.f32 %v649_v36, %v563_v50  ;;  %v269_v57 = vadd.f32 %v268_v45, %v851_v26  ;;  %v382_v58 = vadd.f32 %v381_v46, %v853_v27 }
 0x114   :  { %v406_v59 = vadd.f32 %v405_v41, %v267_v53  ;;  %v564_v60 = vmul.f32 %v267_v53, %v267_v53  ;;  %v448_v61 = vadd.f32 %v447_v43, %v380_v54  ;;  %v566_v62 = vmul.f32 %v380_v54, %v380_v54 }
 0x115   :  { %v427_v63 = vadd.f32 %v426_v47, %v269_v57  ;;  %v565_v0 = vmul.f32 %v269_v57, %v269_v57  ;;  %v469_v1 = vadd.f32 %v468_v49, %v382_v58  ;;  %v567_v2 = vmul.f32 %v382_v58, %v382_v58  ;;  %v272_v3 = vpop.f32.mrb[28].mxu0  ;;  %v385_v4 = vpop.f32.mrb[28].mxu1 }
 0x116   :  { %v588_v5 = vadd.f32 %v587_v51, %v564_v60  ;;  %v630_v6 = vadd.f32 %v629_v52, %v566_v62  ;;  %v273_v7 = vadd.f32 %v272_v3, %v847_v24  ;;  %v386_v8 = vadd.f32 %v385_v4, %v849_v25  ;;  %v274_v10 = vpop.f32.mrb[29].mxu0  ;;  %v387_v11 = vpop.f32.mrb[29].mxu1 }
 0x117   :  { %v609_v12 = vadd.f32 %v608_v55, %v565_v0  ;;  %v651_v13 = vadd.f32 %v650_v56, %v567_v2  ;;  %v275_v14 = vadd.f32 %v274_v10, %v851_v26  ;;  %v388_v15 = vadd.f32 %v387_v11, %v853_v27  ;;  %v276_v16 = vpop.f32.mrb[30].mxu0  ;;  %v389_v19 = vpop.f32.mrb[30].mxu1 }
 0x118   :  { %v407_v20 = vadd.f32 %v406_v59, %v273_v7  ;;  %v568_v21 = vmul.f32 %v273_v7, %v273_v7  ;;  %v449_v22 = vadd.f32 %v448_v61, %v386_v8  ;;  %v570_v23 = vmul.f32 %v386_v8, %v386_v8  ;;  %v278_v28 = vpop.f32.mrb[31].mxu0  ;;  %v391_v29 = vpop.f32.mrb[31].mxu1 }
 0x119   :  { %v428_v30 = vadd.f32 %v427_v63, %v275_v14  ;;  %v569_v31 = vmul.f32 %v275_v14, %v275_v14  ;;  %v470_v18 = vadd.f32 %v469_v1, %v388_v15  ;;  %v571_v32 = vmul.f32 %v388_v15, %v388_v15 }
 0x11a   :  { %v589_v33 = vadd.f32 %v588_v5, %v568_v21  ;;  %v631_v34 = vadd.f32 %v630_v6, %v570_v23  ;;  %v277_v35 = vadd.f32 %v276_v16, %v847_v24  ;;  %v390_v36 = vadd.f32 %v389_v19, %v849_v25 }
 0x11b   :  { %v610_v37 = vadd.f32 %v609_v12, %v569_v31  ;;  %v652_v38 = vadd.f32 %v651_v13, %v571_v32  ;;  %v279_v39 = vadd.f32 %v278_v28, %v851_v26  ;;  %v392_v40 = vadd.f32 %v391_v29, %v853_v27 }
 0x11c   :  { %v408_v41 = vadd.f32 %v407_v20, %v277_v35  ;;  %v572_v42 = vmul.f32 %v277_v35, %v277_v35  ;;  %v450_v43 = vadd.f32 %v449_v22, %v390_v36  ;;  %v574_v44 = vmul.f32 %v390_v36, %v390_v36 }
 0x11d   :  { %v429_v45 = vadd.f32 %v428_v30, %v279_v39  ;;  %v573_v46 = vmul.f32 %v279_v39, %v279_v39  ;;  %v471_v47 = vadd.f32 %v470_v18, %v392_v40  ;;  %v575_v48 = vmul.f32 %v392_v40, %v392_v40 }
 0x11e   :  { %v409_v49 = vrot.slane %v408_v41, 4  ;;  %v590_v50 = vadd.f32 %v589_v33, %v572_v42  ;;  %v451_v51 = vrot.slane %v450_v43, 4  ;;  %v632_v24 = vadd.f32 %v631_v34, %v574_v44 }
 0x11f   :  { %v430_v52 = vrot.slane %v429_v45, 4  ;;  %v611_v25 = vadd.f32 %v610_v37, %v573_v46  ;;  %v472_v53 = vrot.slane %v471_v47, 4  ;;  %v653_v54 = vadd.f32 %v652_v38, %v575_v48 }
 0x120   :  { %v410_v55 = vadd.f32 %v409_v49, %v408_v41  ;;  %v591_v26 = vrot.slane %v590_v50, 4  ;;  %v452_v56 = vadd.f32 %v451_v51, %v450_v43  ;;  %v633_v27 = vrot.slane %v632_v24, 4 }
 0x121   :  { %v431_v57 = vadd.f32 %v430_v52, %v429_v45  ;;  %v612_v58 = vrot.slane %v611_v25, 4  ;;  %v473_v59 = vadd.f32 %v472_v53, %v471_v47  ;;  %v654_v60 = vrot.slane %v653_v54, 4 }
 0x122   :  { %v411_v61 = vrot.slane %v410_v55, 2  ;;  %v592_v62 = vadd.f32 %v591_v26, %v590_v50  ;;  %v453_v63 = vrot.slane %v452_v56, 2  ;;  %v634_v0 = vadd.f32 %v633_v27, %v632_v24 }
 0x123   :  { %v432_v1 = vrot.slane %v431_v57, 2  ;;  %v613_v2 = vadd.f32 %v612_v58, %v611_v25  ;;  %v474_v3 = vrot.slane %v473_v59, 2  ;;  %v655_v4 = vadd.f32 %v654_v60, %v653_v54 }
 0x124   :  { %v412_v5 = vadd.f32 %v411_v61, %v410_v55  ;;  %v593_v6 = vrot.slane %v592_v62, 2  ;;  %v454_v7 = vadd.f32 %v453_v63, %v452_v56  ;;  %v635_v8 = vrot.slane %v634_v0, 2 }
 0x125   :  { %v433_v10 = vadd.f32 %v432_v1, %v431_v57  ;;  %v614_v11 = vrot.slane %v613_v2, 2  ;;  %v475_v12 = vadd.f32 %v474_v3, %v473_v59  ;;  %v656_v13 = vrot.slane %v655_v4, 2 }
 0x126   :  { %v413_v14 = vrot.slane %v412_v5, 1  ;;  %v594_v15 = vadd.f32 %v593_v6, %v592_v62  ;;  %v455_v16 = vrot.slane %v454_v7, 1  ;;  %v636_v19 = vadd.f32 %v635_v8, %v634_v0 }
 0x127   :  { %v434_v20 = vrot.slane %v433_v10, 1  ;;  %v615_v21 = vadd.f32 %v614_v11, %v613_v2  ;;  %v476_v22 = vrot.slane %v475_v12, 1  ;;  %v657_v23 = vadd.f32 %v656_v13, %v655_v4 }
 0x128   :  { %v414_v28 = vadd.f32 %v413_v14, %v412_v5  ;;  %v595_v29 = vrot.slane %v594_v15, 1  ;;  %v456_v30 = vadd.f32 %v455_v16, %v454_v7  ;;  %v637_v31 = vrot.slane %v636_v19, 1 }
 0x129   :  { %v435_v18 = vadd.f32 %v434_v20, %v433_v10  ;;  %v616_v32 = vrot.slane %v615_v21, 1  ;;  %v477_v33 = vadd.f32 %v476_v22, %v475_v12  ;;  %v658_v34 = vrot.slane %v657_v23, 1 }
 0x12a   :  { %v596_v35 = vadd.f32 %v595_v29, %v594_v15  ;;  %v638_v36 = vadd.f32 %v637_v31, %v636_v19 }
 0x12b   :  { %v482_v37 = vcombine.low %v414_v28, %v435_v18  ;;  %v617_v38 = vadd.f32 %v616_v32, %v615_v21  ;;  %v483_v39 = vcombine.low %v456_v30, %v477_v33  ;;  %v659_v40 = vadd.f32 %v658_v34, %v657_v23 }
 0x12d   :  { %v490_v41 = vrot.slane %v482_v37, %v867_v9  ;;  %v664_v42 = vcombine.low %v596_v35, %v617_v38  ;;  %v497_v43 = vrot.slane %v483_v39, %v867_v9  ;;  %v665_v44 = vcombine.low %v638_v36, %v659_v40 }
 0x12f   :  { %v672_v45 = vrot.slane %v664_v42, %v867_v9  ;;  %v498_v46 = vcombine.low %v490_v41, %v497_v43  ;;  %v679_v47 = vrot.slane %v665_v44, %v867_v9 }
 0x131   :  { %v505_v48 = vrot.slane %v498_v46, %v867_v9  ;;  %v680_v49 = vcombine.low %v672_v45, %v679_v47 }
 0x133   :  { %511 = vst.msk [vmem:[%s937_s3] sm:$0xf] %vm509_vm1, %v505_v48  ;;  %v687_v50 = vrot.slane %v680_v49, %v867_v9 }
 0x135   :  { %689 = vst.msk [vmem:[%s938_s4] sm:$0xf] %vm509_vm1, %v687_v50 }

// kernel: _lambda_.31
= control target key start
LH: loop header
LB: loop body
LE: loop exit
PB: predicated region body
PF: predicated region fallthrough
CT: control target
= control target key end

     0   :  { %v2062_v2 = vmov 0   ;;  %vm165_vm0 = vcmask 261120   ;;  %s3323_s0 = inlined_call_operand.vmem [shape: bf16[128,32], index: 0, kind: input, shape index: {}]   ;;  %s3324_s1 = inlined_call_operand.vmem [shape: bf16[32,512], index: 1, kind: input, shape index: {}]   ;;  %s3325_s2 = inlined_call_operand.vmem [shape: f32[1,512], index: 2, kind: input, shape index: {}]   ;;  %s3326_s3 = inlined_call_operand.vmem [shape: f32[1,512], index: 3, kind: input, shape index: {}]   ;;  %s3327_s4 = inlined_call_operand.vmem [shape: f32[1,512], index: 4, kind: input, shape index: {}]   ;;  %s3328_s5 = inlined_call_operand.vmem [shape: f32[1,512], index: 5, kind: input, shape index: {}]   ;;  %s3329_s6 = inlined_call_operand.vmem [shape: f32[1,512], index: 6, kind: input, shape index: {}]   ;;  %s3330_s7 = inlined_call_operand.vmem [shape: bf16[512,64], index: 7, kind: input, shape index: {}]   ;;  %s3331_s8 = inlined_call_operand.vmem [shape: f32[1,64], index: 8, kind: input, shape index: {}]   ;;  %s3332_s9 = inlined_call_operand.vmem [shape: s32[128,1], index: 9, kind: input, shape index: {}]   ;;  %s3333_s10 = inlined_call_operand.vmem [shape: f32[128,64], index: 10, kind: output, shape index: {0}]   ;;  %s3334_s11 = inlined_call_operand.hbm [shape: f32[1,1,1], index: 11, kind: output, shape index: {1}]  }
   0x1   :  { %v1922_v0 = vld [vmem:[%s3324_s1 + $0x4] ss:$16 sps:$4 sm:$0xff]   ;;  %v1924_v1 = vld [vmem:[%s3324_s1 + $0xc] ss:$16 sps:$4 sm:$0xff]   ;;  %222 = vmatprep.mubr.bf16.mxu0 %v2062_v2  ;;  %335 = vmatprep.mubr.bf16.mxu1 %v2062_v2  ;;  %v1926_v3 = vld [vmem:[%s3324_s1] ss:$16 sps:$4 sm:$0xff]  }
   0x2   :  { %190 = vmatprep.subr.bf16.mxu0 %v1922_v0  ;;  %v1927_v4 = vld [vmem:[%s3324_s1 + $0x8] ss:$16 sps:$4 sm:$0xff]   ;;  %1920 = vset.pattern.permute.xlu0 %v2062_v2  ;;  %v1928_v5 = vld [vmem:[%s3324_s1 + $0x24] ss:$16 sps:$4 sm:$0xff]   ;;  %v1930_v6 = vld [vmem:[%s3324_s1 + $0x2c] ss:$16 sps:$4 sm:$0xff]  }
   0x3   :  { %303 = vmatprep.subr.bf16.mxu1 %v1924_v1  ;;  %1921 = vset.pattern.permute.xlu1 %v2062_v2  ;;  %v1932_v7 = vld [vmem:[%s3324_s1 + $0x20] ss:$16 sps:$4 sm:$0xff]   ;;  %v1933_v8 = vld [vmem:[%s3324_s1 + $0x28] ss:$16 sps:$4 sm:$0xff]  }
   0x4   :  { %191 = vmatpush1.bf16.msra.mxu0 %v1926_v3  ;;  %304 = vmatpush1.bf16.msra.mxu1 %v1927_v4  ;;  %v1934_v9 = vld [vmem:[%s3323_s0] sm:$0xff]   ;;  %v1935_v10 = vld [vmem:[%s3323_s0 + $0x8] sm:$0xff]   ;;  %v1936_v18 = vld [vmem:[%s3323_s0 + $0x10] sm:$0xff]  }
   0x5   :  { %192 = vmatprep.subr.bf16.mxu0 %v1928_v5  ;;  %305 = vmatprep.subr.bf16.mxu1 %v1930_v6  ;;  %v1942_v11 = vld [vmem:[%s3330_s7 + $0x40] sm:$0xff]   ;;  %v1946_v15 = vld [vmem:[%s3330_s7 + $0x48] sm:$0xff]   ;;  %v1950_v20 = vld [vmem:[%s3330_s7 + $0x50] sm:$0xff]  }
   0x6   :  { %v1943_v12 = vld [vmem:[%s3330_s7] sm:$0xff]   ;;  %v1947_v16 = vld [vmem:[%s3330_s7 + $0x8] sm:$0xff]   ;;  %v1951_v21 = vld [vmem:[%s3330_s7 + $0x10] sm:$0xff]  }
   0x7   :  { %v1944_v13 = vld [vmem:[%s3330_s7 + $0xc0] sm:$0xff]   ;;  %v1948_v17 = vld [vmem:[%s3330_s7 + $0xc8] sm:$0xff]   ;;  %v1952_v22 = vld [vmem:[%s3330_s7 + $0xd0] sm:$0xff]  }
   0x8   :  { %193 = vmatpush1.bf16.msra.mxu0 %v1932_v7  ;;  %306 = vmatpush1.bf16.msra.mxu1 %v1933_v8  ;;  %v1945_v14 = vld [vmem:[%s3330_s7 + $0x80] sm:$0xff]   ;;  %v1949_v19 = vld [vmem:[%s3330_s7 + $0x88] sm:$0xff]   ;;  %v1953_v23 = vld [vmem:[%s3330_s7 + $0x90] sm:$0xff]  }
   0x9   :  { %1790 = vmatprep.subr.bf16.mxu0 %v1942_v11  ;;  %1854 = vmatprep.subr.bf16.mxu1 %v1944_v13  ;;  %v1954_v24 = vld [vmem:[%s3330_s7 + $0x58] sm:$0xff]   ;;  %v1958_v29 = vld [vmem:[%s3330_s7 + $0x60] sm:$0xff]   ;;  %v1962_v33 = vld [vmem:[%s3330_s7 + $0x68] sm:$0xff]  }
   0xa   :  { %v1955_v25 = vld [vmem:[%s3330_s7 + $0x18] sm:$0xff]   ;;  %v1959_v30 = vld [vmem:[%s3330_s7 + $0x20] sm:$0xff]   ;;  %v1963_v34 = vld [vmem:[%s3330_s7 + $0x28] sm:$0xff]  }
   0xb   :  { %1741 = vmatmul.mubr.msk.bf16.vlgmr.msra.gmra.mrb[0].mxu0 %vm165_vm0, %v1934_v9  ;;  %1749 = vmatmul.mubr.msk.bf16.vlgmr.msra.gmra.mrb[0].mxu1 %vm165_vm0, %v1934_v9  ;;  %v1956_v26 = vld [vmem:[%s3330_s7 + $0xd8] sm:$0xff]   ;;  %v1960_v31 = vld [vmem:[%s3330_s7 + $0xe0] sm:$0xff]   ;;  %v1964_v35 = vld [vmem:[%s3330_s7 + $0xe8] sm:$0xff]  }
   0xc   :  { %232 = vmatprep.mubr.bf16.mxu0 %v2062_v2  ;;  %345 = vmatprep.mubr.bf16.mxu1 %v2062_v2  ;;  %v1937_v27 = vld [vmem:[%s3323_s0 + $0x18] sm:$0xff]   ;;  %v1961_v32 = vld [vmem:[%s3330_s7 + $0xa0] sm:$0xff]   ;;  %v1965_v37 = vld [vmem:[%s3330_s7 + $0xa8] sm:$0xff]  }
   0xd   :  { %1791 = vmatpush3.bf16.msra.mxu0 %v1943_v12  ;;  %1855 = vmatpush3.bf16.msra.mxu1 %v1945_v14  ;;  %v1957_v28 = vld [vmem:[%s3330_s7 + $0x98] sm:$0xff]   ;;  %v1938_v36 = vld [vmem:[%s3323_s0 + $0x20] sm:$0xff]  }
   0xe   :  { %1792 = vmatprep.subr.bf16.mxu0 %v1946_v15  ;;  %1856 = vmatprep.subr.bf16.mxu1 %v1948_v17 }
  0x11   :  { %1793 = vmatpush3.bf16.msra.mxu0 %v1947_v16  ;;  %1857 = vmatpush3.bf16.msra.mxu1 %v1949_v19 }
  0x12   :  { %1794 = vmatprep.subr.bf16.mxu0 %v1950_v20  ;;  %1858 = vmatprep.subr.bf16.mxu1 %v1952_v22 }
  0x13   :  { %1742 = vmatmul.mubr.msk.bf16.gmra.mrb[4].mxu0 %vm165_vm0, %v1935_v10  ;;  %1750 = vmatmul.mubr.msk.bf16.gmra.mrb[4].mxu1 %vm165_vm0, %v1935_v10 }
  0x14   :  { %242 = vmatprep.mubr.bf16.mxu0 %v2062_v2  ;;  %355 = vmatprep.mubr.bf16.mxu1 %v2062_v2 }
  0x15   :  { %1795 = vmatpush3.bf16.msra.mxu0 %v1951_v21  ;;  %1859 = vmatpush3.bf16.msra.mxu1 %v1953_v23 }
  0x16   :  { %1796 = vmatprep.subr.bf16.mxu0 %v1954_v24  ;;  %1860 = vmatprep.subr.bf16.mxu1 %v1956_v26 }
  0x19   :  { %1797 = vmatpush3.bf16.msra.mxu0 %v1955_v25  ;;  %1861 = vmatpush3.bf16.msra.mxu1 %v1957_v28 }
  0x1a   :  { %1798 = vmatprep.subr.bf16.mxu0 %v1958_v29  ;;  %1862 = vmatprep.subr.bf16.mxu1 %v1960_v31 }
  0x1b   :  { %1743 = vmatmul.mubr.msk.bf16.gmra.mrb[8].mxu0 %vm165_vm0, %v1936_v18  ;;  %1751 = vmatmul.mubr.msk.bf16.gmra.mrb[8].mxu1 %vm165_vm0, %v1936_v18 }
  0x1c   :  { %252 = vmatprep.mubr.bf16.mxu0 %v2062_v2  ;;  %365 = vmatprep.mubr.bf16.mxu1 %v2062_v2 }
  0x1d   :  { %1799 = vmatpush3.bf16.msra.mxu0 %v1959_v30  ;;  %1863 = vmatpush3.bf16.msra.mxu1 %v1961_v32 }
  0x1e   :  { %1800 = vmatprep.subr.bf16.mxu0 %v1962_v33  ;;  %1864 = vmatprep.subr.bf16.mxu1 %v1964_v35 }
  0x21   :  { %1801 = vmatpush3.bf16.msra.mxu0 %v1963_v34  ;;  %1865 = vmatpush3.bf16.msra.mxu1 %v1965_v37 }
  0x23   :  { %1744 = vmatmul.mubr.msk.bf16.gmra.mrb[12].mxu0 %vm165_vm0, %v1937_v27  ;;  %1752 = vmatmul.mubr.msk.bf16.gmra.mrb[12].mxu1 %vm165_vm0, %v1937_v27 }
  0x24   :  { %262 = vmatprep.mubr.bf16.mxu0 %v2062_v2  ;;  %375 = vmatprep.mubr.bf16.mxu1 %v2062_v2 }
  0x2b   :  { %1745 = vmatmul.mubr.msk.bf16.gmra.mrb[16].mxu0 %vm165_vm0, %v1938_v36  ;;  %1753 = vmatmul.mubr.msk.bf16.gmra.mrb[16].mxu1 %vm165_vm0, %v1938_v36 }
  0x2c   :  { %17 = vsyncpa [#allocation3], 0  ;;  %272 = vmatprep.mubr.bf16.mxu0 %v2062_v2  ;;  %385 = vmatprep.mubr.bf16.mxu1 %v2062_v2  ;;  %v1939_v38 = vld [vmem:[%s3323_s0 + $0x28] sm:$0xff]   ;;  %v1940_v39 = vld [vmem:[%s3323_s0 + $0x30] sm:$0xff]   ;;  %v3335_v49 = vlaneseq  ;;  %vm1313_vm1 = vcmask 523264  }
  0x2d   :  { %v1941_v40 = vld [vmem:[%s3323_s0 + $0x38] sm:$0xff]   ;;  %v1966_v41 = vld [vmem:[%s3330_s7 + $0x70] sm:$0xff]   ;;  %v1524_v50 = vld [vmem:[%s3332_s9] sm:$0xff] }
  0x2e   :  { %v1968_v42 = vld [vmem:[%s3330_s7 + $0xf0] sm:$0xff]   ;;  %1802 = vmatprep.subr.bf16.mxu0 %v1966_v41  ;;  %v1970_v45 = vld [vmem:[%s3330_s7 + $0x78] sm:$0xff]   ;;  %v1525_v51 = vld [vmem:[%s3332_s9 + $0x8] sm:$0xff]  ;;  %v66_v52 = vshrl.u32 %v3335_v49, 7  ;;  %1541 = vperm.xlu0 %1920, %v1524_v50  }
  0x2f   :  { %v1967_v43 = vld [vmem:[%s3330_s7 + $0x30] sm:$0xff]   ;;  %1866 = vmatprep.subr.bf16.mxu1 %v1968_v42  ;;  %v1972_v46 = vld [vmem:[%s3330_s7 + $0xf8] sm:$0xff]   ;;  %1544 = vperm.xlu1 %1921, %v1525_v51   ;;  %v1533_v54 = vld [vmem:[%s3332_s9 + $0x48] sm:$0xff] }
  0x30   :  { %v1969_v44 = vld [vmem:[%s3330_s7 + $0xb0] sm:$0xff]   ;;  %1803 = vmatpush3.bf16.msra.mxu0 %v1967_v43  ;;  %v1971_v47 = vld [vmem:[%s3330_s7 + $0x38] sm:$0xff]   ;;  %v63_v55 = vld [vmem:[%s3325_s2] sm:$0xf]  ;;  %v67_v56 = vsub.s32 0, %v66_v52  ;;  %v75_v57 = vsub.s32 2, %v66_v52 }
  0x31   :  { %1867 = vmatpush3.bf16.msra.mxu1 %v1969_v44  ;;  %1804 = vmatprep.subr.bf16.mxu0 %v1970_v45  ;;  %v1973_v48 = vld [vmem:[%s3330_s7 + $0xb8] sm:$0xff]   ;;  %v1526_v53 = vld [vmem:[%s3332_s9 + $0x10] sm:$0xff]  ;;  %v71_v58 = vsub.s32 1, %v66_v52  ;;  %v79_v59 = vsub.s32 3, %v66_v52  ;;  %v416_v62 = vld [vmem:[%s3326_s3] sm:$0xf] }
  0x32   :  { %1868 = vmatprep.subr.bf16.mxu1 %v1972_v46  ;;  %1568 = vperm.xlu0 %1920, %v1533_v54   ;;  %v1527_v60 = vld [vmem:[%s3332_s9 + $0x18] sm:$0xff]  ;;  %v502_v63 = vld [vmem:[%s3327_s4] sm:$0xf]  ;;  %v2330_v0 = vrot.slane %v63_v55, %v67_v56  ;;  %v2340_v4 = vrot.slane %v63_v55, %v75_v57  ;;  %v1537_v8 = vld [vmem:[%s3332_s9 + $0x68] sm:$0xff]  ;;  %v2354_v10 = vrot.slane %v416_v62, %v75_v57 }
  0x33   :  { %1746 = vmatmul.mubr.msk.bf16.gmra.mrb[20].mxu0 %vm165_vm0, %v1939_v38  ;;  %1754 = vmatmul.mubr.msk.bf16.gmra.mrb[20].mxu1 %vm165_vm0, %v1939_v38  ;;  %v1535_v61 = vld [vmem:[%s3332_s9 + $0x58] sm:$0xff]  ;;  %v588_v1 = vld [vmem:[%s3328_s5] sm:$0xf]  ;;  %v2342_v5 = vrot.slane %v63_v55, %v71_v58  ;;  %v2344_v6 = vrot.slane %v63_v55, %v79_v59  ;;  %v2352_v9 = vrot.slane %v502_v63, %v67_v56  ;;  %v1529_v28 = vld [vmem:[%s3332_s9 + $0x28] sm:$0xff] }
  0x34   :  { %282 = vmatprep.mubr.bf16.mxu0 %v2062_v2  ;;  %395 = vmatprep.mubr.bf16.mxu1 %v2062_v2  ;;  %v674_v3 = vld [vmem:[%s3329_s6] sm:$0xf]  ;;  %v2356_v11 = vrot.slane %v416_v62, %v71_v58  ;;  %v2358_v12 = vrot.slane %v416_v62, %v79_v59  ;;  %v2360_v13 = vrot.slane %v588_v1, %v67_v56  ;;  %v1530_v50 = vld [vmem:[%s3332_s9 + $0x30] sm:$0xff] }
  0x35   :  { %1805 = vmatpush3.bf16.msra.mxu0 %v1971_v47  ;;  %1869 = vmatpush3.bf16.msra.mxu1 %v1973_v48  ;;  %v1528_v7 = vld [vmem:[%s3332_s9 + $0x20] sm:$0xff]  ;;  %v2362_v14 = vrot.slane %v502_v63, %v75_v57  ;;  %v2364_v15 = vrot.slane %v502_v63, %v71_v58  ;;  %v2366_v16 = vrot.slane %v502_v63, %v79_v59 }
  0x36   :  { %1547 = vperm.xlu1 %1921, %v1526_v53   ;;  %1574 = vperm.xlu0 %1920, %v1535_v61   ;;  %v2368_v18 = vrot.slane %v674_v3, %v67_v56  ;;  %v2370_v20 = vrot.slane %v588_v1, %v75_v57  ;;  %v2372_v21 = vrot.slane %v588_v1, %v71_v58 }
  0x37   :  { %v2376_v24 = vrot.slane %v674_v3, %v75_v57  ;;  %v2378_v27 = vrot.slane %v588_v1, %v79_v59  ;;  %v2385_v33 = vrot.slane %v674_v3, %v71_v58  ;;  %v2387_v34 = vrot.slane %v674_v3, %v79_v59 }
  0x3a   :  { %1550 = vperm.xlu1 %1921, %v1527_v60   ;;  %1580 = vperm.xlu0 %1920, %v1537_v8  }
  0x3b   :  { %1747 = vmatmul.mubr.msk.bf16.gmra.mrb[24].mxu0 %vm165_vm0, %v1940_v39  ;;  %1755 = vmatmul.mubr.msk.bf16.gmra.mrb[24].mxu1 %vm165_vm0, %v1940_v39 }
  0x3c   :  { %292 = vmatprep.mubr.bf16.mxu0 %v2062_v2  ;;  %405 = vmatprep.mubr.bf16.mxu1 %v2062_v2  ;;  %v2335_v2 = vrot.slane %v416_v62, %v67_v56 }
  0x3e   :  { %1553 = vperm.xlu1 %1921, %v1528_v7  }
  0x42   :  { %1556 = vperm.xlu1 %1921, %v1529_v28  }
  0x43   :  { %1748 = vmatmul.mubr.msk.bf16.gmra.mrb[28].mxu0 %vm165_vm0, %v1941_v40  ;;  %1756 = vmatmul.mubr.msk.bf16.gmra.mrb[28].mxu1 %vm165_vm0, %v1941_v40 }
  0x46   :  { %1559 = vperm.xlu1 %1921, %v1530_v50  }
  0xde   :  { %v224_v17 = vpop.f32.mrb[0].mxu0  ;;  %v337_v19 = vpop.f32.mrb[0].mxu1 }
  0xdf   :  { %v225_v22 = vadd.f32 %v224_v17, %v2330_v0  ;;  %v338_v23 = vadd.f32 %v337_v19, %v2340_v4  ;;  %v226_v25 = vpop.f32.mrb[1].mxu0  ;;  %v339_v26 = vpop.f32.mrb[1].mxu1 }
  0xe0   :  { %v227_v29 = vadd.f32 %v226_v25, %v2342_v5  ;;  %v340_v30 = vadd.f32 %v339_v26, %v2344_v6  ;;  %v228_v31 = vpop.f32.mrb[2].mxu0  ;;  %v341_v32 = vpop.f32.mrb[2].mxu1 }
  0xe1   :  { %v438_v35 = vsub.f32 %v225_v22, %v2335_v2  ;;  %v440_v36 = vsub.f32 %v338_v23, %v2354_v10  ;;  %v229_v37 = vadd.f32 %v228_v31, %v2330_v0  ;;  %v342_v38 = vadd.f32 %v341_v32, %v2340_v4  ;;  %v230_v39 = vpop.f32.mrb[3].mxu0  ;;  %v343_v40 = vpop.f32.mrb[3].mxu1  ;;  %v1531_v23 = vld [vmem:[%s3332_s9 + $0x38] sm:$0xff] }
  0xe2   :  { %v439_v41 = vsub.f32 %v227_v29, %v2356_v11  ;;  %v441_v42 = vsub.f32 %v340_v30, %v2358_v12  ;;  %v231_v43 = vadd.f32 %v230_v39, %v2342_v5  ;;  %v344_v44 = vadd.f32 %v343_v40, %v2344_v6  ;;  %1562 = vperm.xlu1 %1921, %v1531_v23  }
  0xe3   :  { %v524_v45 = vmul.f32 %v2352_v9, %v438_v35  ;;  %v526_v46 = vmul.f32 %v2362_v14, %v440_v36  ;;  %v442_v47 = vsub.f32 %v229_v37, %v2335_v2  ;;  %v444_v48 = vsub.f32 %v342_v38, %v2354_v10 }
  0xe4   :  { %v525_v51 = vmul.f32 %v2364_v15, %v439_v41  ;;  %v527_v52 = vmul.f32 %v2366_v16, %v441_v42  ;;  %v443_v53 = vsub.f32 %v231_v43, %v2356_v11  ;;  %v445_v54 = vsub.f32 %v344_v44, %v2358_v12 }
  0xe5   :  { %v610_v55 = vmul.f32 %v2360_v13, %v524_v45  ;;  %v612_v56 = vmul.f32 %v2370_v20, %v526_v46  ;;  %v528_v57 = vmul.f32 %v2352_v9, %v442_v47  ;;  %v530_v58 = vmul.f32 %v2362_v14, %v444_v48  ;;  %v1532_v48 = vld [vmem:[%s3332_s9 + $0x40] sm:$0xff] }
  0xe6   :  { %v2413_v59 = vmul.f32 %v2372_v21, %v525_v51  ;;  %v2416_v60 = vmul.f32 %v2378_v27, %v527_v52  ;;  %v529_v61 = vmul.f32 %v2364_v15, %v443_v53  ;;  %v531_v62 = vmul.f32 %v2366_v16, %v445_v54  ;;  %v234_v63 = vpop.f32.mrb[4].mxu0  ;;  %v347_v1 = vpop.f32.mrb[4].mxu1  ;;  %1565 = vperm.xlu1 %1921, %v1532_v48  }
  0xe7   :  { %v696_v3 = vadd.f32 %v2368_v18, %v610_v55  ;;  %v698_v7 = vadd.f32 %v2376_v24, %v612_v56  ;;  %v614_v8 = vmul.f32 %v2360_v13, %v528_v57  ;;  %v616_v17 = vmul.f32 %v2370_v20, %v530_v58  ;;  %v236_v19 = vpop.f32.mrb[5].mxu0  ;;  %v349_v22 = vpop.f32.mrb[5].mxu1 }
  0xe8   :  { %v2428_v25 = vmul.f32 %v2372_v21, %v529_v61  ;;  %v2431_v26 = vmul.f32 %v2378_v27, %v531_v62  ;;  %v235_v28 = vadd.f32 %v234_v63, %v2330_v0  ;;  %v348_v29 = vadd.f32 %v347_v1, %v2340_v4  ;;  %v238_v30 = vpop.f32.mrb[6].mxu0  ;;  %v351_v31 = vpop.f32.mrb[6].mxu1 }
  0xe9   :  { %v760_v32 = vmax.f32 %v696_v3, 0.0  ;;  %v762_v35 = vmax.f32 %v698_v7, 0.0  ;;  %v700_v36 = vadd.f32 %v2368_v18, %v614_v8  ;;  %v702_v37 = vadd.f32 %v2376_v24, %v616_v17  ;;  %v240_v38 = vpop.f32.mrb[7].mxu0  ;;  %v353_v39 = vpop.f32.mrb[7].mxu1 }
  0xea   :  { %v446_v40 = vsub.f32 %v235_v28, %v2335_v2  ;;  %v448_v41 = vsub.f32 %v348_v29, %v2354_v10  ;;  %v237_v42 = vadd.f32 %v236_v19, %v2342_v5  ;;  %v350_v43 = vadd.f32 %v349_v22, %v2344_v6  ;;  %v1534_v28 = vld [vmem:[%s3332_s9 + $0x50] sm:$0xff] }
  0xeb   :  { %v764_v44 = vmax.f32 %v700_v36, 0.0  ;;  %v766_v45 = vmax.f32 %v702_v37, 0.0  ;;  %v239_v46 = vadd.f32 %v238_v30, %v2330_v0  ;;  %v352_v47 = vadd.f32 %v351_v31, %v2340_v4  ;;  %1571 = vperm.xlu1 %1921, %v1534_v28  }
  0xec   :  { %v532_v50 = vmul.f32 %v2352_v9, %v446_v40  ;;  %v534_v51 = vmul.f32 %v2362_v14, %v448_v41  ;;  %v447_v52 = vsub.f32 %v237_v42, %v2356_v11  ;;  %v449_v53 = vsub.f32 %v350_v43, %v2358_v12 }
  0xed   :  { %v2450_v54 = vpack.c.bf16 %v764_v44, %v760_v32  ;;  %v2452_v55 = vpack.c.bf16 %v766_v45, %v762_v35  ;;  %v450_v56 = vsub.f32 %v239_v46, %v2335_v2  ;;  %v452_v57 = vsub.f32 %v352_v47, %v2354_v10 }
  0xee   :  { %v2457_v58 = vmul.f32 %v2360_v13, %v532_v50  ;;  %v2460_v61 = vmul.f32 %v2370_v20, %v534_v51  ;;  %v533_v62 = vmul.f32 %v2364_v15, %v447_v52  ;;  %v535_v63 = vmul.f32 %v2366_v16, %v449_v53  ;;  %v244_v1 = vpop.f32.mrb[8].mxu0  ;;  %v357_v3 = vpop.f32.mrb[8].mxu1  ;;  %v1536_v52 = vld [vmem:[%s3332_s9 + $0x60] sm:$0xff] }
  0xef   :  { %v536_v7 = vmul.f32 %v2352_v9, %v450_v56  ;;  %v538_v8 = vmul.f32 %v2362_v14, %v452_v57  ;;  %v241_v17 = vadd.f32 %v240_v38, %v2342_v5  ;;  %v354_v19 = vadd.f32 %v353_v39, %v2344_v6  ;;  %v246_v22 = vpop.f32.mrb[9].mxu0  ;;  %v359_v23 = vpop.f32.mrb[9].mxu1  ;;  %1577 = vperm.xlu1 %1921, %v1536_v52  }
  0xf0   :  { %v2472_v29 = vmul.f32 %v2372_v21, %v533_v62  ;;  %v2475_v30 = vmul.f32 %v2378_v27, %v535_v63  ;;  %v245_v31 = vadd.f32 %v244_v1, %v2330_v0  ;;  %v358_v32 = vadd.f32 %v357_v3, %v2340_v4  ;;  %v248_v35 = vpop.f32.mrb[10].mxu0  ;;  %v361_v36 = vpop.f32.mrb[10].mxu1 }
  0xf1   :  { %v2480_v37 = vmul.f32 %v2360_v13, %v536_v7  ;;  %v2483_v38 = vmul.f32 %v2370_v20, %v538_v8  ;;  %v451_v39 = vsub.f32 %v241_v17, %v2356_v11  ;;  %v453_v40 = vsub.f32 %v354_v19, %v2358_v12  ;;  %v250_v41 = vpop.f32.mrb[11].mxu0  ;;  %v363_v42 = vpop.f32.mrb[11].mxu1 }
  0xf2   :  { %v454_v43 = vsub.f32 %v245_v31, %v2335_v2  ;;  %v456_v44 = vsub.f32 %v358_v32, %v2354_v10  ;;  %v247_v45 = vadd.f32 %v246_v22, %v2342_v5  ;;  %v360_v46 = vadd.f32 %v359_v23, %v2344_v6 }
  0xf3   :  { %v537_v47 = vmul.f32 %v2364_v15, %v451_v39  ;;  %v539_v48 = vmul.f32 %v2366_v16, %v453_v40  ;;  %v249_v50 = vadd.f32 %v248_v35, %v2330_v0  ;;  %v362_v51 = vadd.f32 %v361_v36, %v2340_v4 }
  0xf4   :  { %v540_v53 = vmul.f32 %v2352_v9, %v454_v43  ;;  %v542_v56 = vmul.f32 %v2362_v14, %v456_v44  ;;  %v455_v57 = vsub.f32 %v247_v45, %v2356_v11  ;;  %v457_v62 = vsub.f32 %v360_v46, %v2358_v12 }
  0xf5   :  { %v2503_v63 = vmul.f32 %v2372_v21, %v537_v47  ;;  %v2506_v1 = vmul.f32 %v2378_v27, %v539_v48  ;;  %v458_v3 = vsub.f32 %v249_v50, %v2335_v2  ;;  %v460_v7 = vsub.f32 %v362_v51, %v2354_v10 }
  0xf6   :  { %v2511_v8 = vmul.f32 %v2360_v13, %v540_v53  ;;  %v2514_v17 = vmul.f32 %v2370_v20, %v542_v56  ;;  %v541_v19 = vmul.f32 %v2364_v15, %v455_v57  ;;  %v543_v22 = vmul.f32 %v2366_v16, %v457_v62  ;;  %v254_v23 = vpop.f32.mrb[12].mxu0  ;;  %v367_v28 = vpop.f32.mrb[12].mxu1 }
  0xf7   :  { %v544_v31 = vmul.f32 %v2352_v9, %v458_v3  ;;  %v546_v32 = vmul.f32 %v2362_v14, %v460_v7  ;;  %v697_v35 = vadd.f32 %v2385_v33, %v2413_v59  ;;  %v701_v36 = vadd.f32 %v2385_v33, %v2428_v25  ;;  %v256_v39 = vpop.f32.mrb[13].mxu0  ;;  %v369_v40 = vpop.f32.mrb[13].mxu1 }
  0xf8   :  { %v2525_v43 = vmul.f32 %v2372_v21, %v541_v19  ;;  %v2528_v44 = vmul.f32 %v2378_v27, %v543_v22  ;;  %v699_v45 = vadd.f32 %v2387_v34, %v2416_v60  ;;  %v703_v46 = vadd.f32 %v2387_v34, %v2431_v26  ;;  %v258_v47 = vpop.f32.mrb[14].mxu0  ;;  %v371_v48 = vpop.f32.mrb[14].mxu1 }
  0xf9   :  { %v2535_v59 = vmul.f32 %v2360_v13, %v544_v31  ;;  %v2538_v25 = vmul.f32 %v2370_v20, %v546_v32  ;;  %v761_v50 = vmax.f32 %v697_v35, 0.0  ;;  %v765_v51 = vmax.f32 %v701_v36, 0.0  ;;  %v260_v52 = vpop.f32.mrb[15].mxu0  ;;  %v373_v53 = vpop.f32.mrb[15].mxu1 }
  0xfa   :  { %v763_v56 = vmax.f32 %v699_v45, 0.0  ;;  %v767_v57 = vmax.f32 %v703_v46, 0.0  ;;  %v251_v62 = vadd.f32 %v250_v41, %v2342_v5  ;;  %v364_v60 = vadd.f32 %v363_v42, %v2344_v6 }
  0xfb   :  { %v825_v3 = vpack.c.bf16 %v765_v51, %v761_v50  ;;  %v255_v26 = vadd.f32 %v254_v23, %v2330_v0  ;;  %v368_v7 = vadd.f32 %v367_v28, %v2340_v4  ;;  %v257_v19 = vadd.f32 %v256_v39, %v2342_v5 }
  0xfc   :  { %v827_v22 = vpack.c.bf16 %v767_v57, %v763_v56  ;;  %v459_v31 = vsub.f32 %v251_v62, %v2356_v11  ;;  %v461_v32 = vsub.f32 %v364_v60, %v2358_v12  ;;  %v370_v35 = vadd.f32 %v369_v40, %v2344_v6 }
  0xfd   :  { %1151 = vmatprep.mubr.bf16.mxu0 %v825_v3  ;;  %v462_v36 = vsub.f32 %v255_v26, %v2335_v2  ;;  %v464_v41 = vsub.f32 %v368_v7, %v2354_v10  ;;  %v463_v42 = vsub.f32 %v257_v19, %v2356_v11  ;;  %v259_v23 = vadd.f32 %v258_v47, %v2330_v0 }
  0xfe   :  { %1248 = vmatprep.mubr.bf16.mxu1 %v827_v22  ;;  %v545_v28 = vmul.f32 %v2364_v15, %v459_v31  ;;  %v547_v39 = vmul.f32 %v2366_v16, %v461_v32  ;;  %1152 = vmatmul.mubr.bf16.vlgmr.msra.gmra.mrb[32].mxu0 %v2450_v54  ;;  %v465_v45 = vsub.f32 %v370_v35, %v2358_v12  ;;  %v264_v46 = vpop.f32.mrb[16].mxu0  ;;  %v377_v40 = vpop.f32.mrb[16].mxu1 }
  0xff   :  { %1249 = vmatmul.mubr.bf16.vlgmr.msra.gmra.mrb[32].mxu1 %v2452_v55  ;;  %v548_v50 = vmul.f32 %v2352_v9, %v462_v36  ;;  %v550_v51 = vmul.f32 %v2362_v14, %v464_v41  ;;  %v549_v56 = vmul.f32 %v2364_v15, %v463_v42  ;;  %v466_v47 = vsub.f32 %v259_v23, %v2335_v2  ;;  %v266_v57 = vpop.f32.mrb[17].mxu0  ;;  %v379_v62 = vpop.f32.mrb[17].mxu1 }
 0x100   :  { %v2562_v60 = vmul.f32 %v2372_v21, %v545_v28  ;;  %v2565_v54 = vmul.f32 %v2378_v27, %v547_v39  ;;  %v551_v3 = vmul.f32 %v2366_v16, %v465_v45  ;;  %v372_v55 = vadd.f32 %v371_v48, %v2340_v4  ;;  %v268_v26 = vpop.f32.mrb[18].mxu0  ;;  %v381_v7 = vpop.f32.mrb[18].mxu1 }
 0x101   :  { %v2570_v19 = vmul.f32 %v2360_v13, %v548_v50  ;;  %v2573_v22 = vmul.f32 %v2370_v20, %v550_v51  ;;  %v2576_v31 = vmul.f32 %v2372_v21, %v549_v56  ;;  %v552_v32 = vmul.f32 %v2352_v9, %v466_v47  ;;  %v2579_v35 = vpop.f32.mrb[19].mxu0  ;;  %v2581_v36 = vpop.f32.mrb[19].mxu1 }
 0x102   :  { %v2584_v41 = vmul.f32 %v2378_v27, %v551_v3  ;;  %v468_v48 = vsub.f32 %v372_v55, %v2354_v10  ;;  %v705_v42 = vadd.f32 %v2385_v33, %v2472_v29  ;;  %v709_v23 = vadd.f32 %v2385_v33, %v2503_v63 }
 0x103   :  { %3336 = vst [vmem:[#allocation5_spill] sm:$0xff] %v2573_v22  ;;  %v2592_v28 = vmul.f32 %v2360_v13, %v552_v32  ;;  %v707_v39 = vadd.f32 %v2387_v34, %v2475_v30  ;;  %v711_v45 = vadd.f32 %v2387_v34, %v2506_v1  ;;  %v261_v50 = vadd.f32 %v260_v52, %v2342_v5 }
 0x104   :  { %v554_v51 = vmul.f32 %v2362_v14, %v468_v48  ;;  %v769_v56 = vmax.f32 %v705_v42, 0.0  ;;  %v773_v47 = vmax.f32 %v709_v23, 0.0  ;;  %v374_v29 = vadd.f32 %v373_v53, %v2344_v6 }
 0x105   :  { %3337 = vst [vmem:[#allocation6_spill] sm:$0xff] %v2592_v28  ;;  %v771_v3 = vmax.f32 %v707_v39, 0.0  ;;  %v775_v55 = vmax.f32 %v711_v45, 0.0  ;;  %v467_v63 = vsub.f32 %v261_v50, %v2356_v11  ;;  %v704_v32 = vadd.f32 %v2368_v18, %v2457_v58 }
 0x106   :  { %v2605_v30 = vmul.f32 %v2370_v20, %v554_v51  ;;  %v829_v49 = vpack.c.bf16 %v773_v47, %v769_v56  ;;  %v469_v1 = vsub.f32 %v374_v29, %v2358_v12  ;;  %v708_v52 = vadd.f32 %v2368_v18, %v2480_v37  ;;  %v2610_v48 = vpop.f32.mrb[20].mxu0  ;;  %v2612_v42 = vpop.f32.mrb[20].mxu1 }
 0x107   :  { %v831_v53 = vpack.c.bf16 %v775_v55, %v771_v3  ;;  %v553_v23 = vmul.f32 %v2364_v15, %v467_v63  ;;  %v768_v39 = vmax.f32 %v704_v32, 0.0  ;;  %v706_v58 = vadd.f32 %v2376_v24, %v2460_v61  ;;  %v2617_v45 = vpop.f32.mrb[21].mxu0  ;;  %v2619_v50 = vpop.f32.mrb[21].mxu1 }
 0x108   :  { %3338 = vst [vmem:[#allocation7_spill] sm:$0xff] %v2605_v30  ;;  %1159 = vmatprep.mubr.bf16.mxu0 %v829_v49  ;;  %v555_v51 = vmul.f32 %v2366_v16, %v469_v1  ;;  %v772_v56 = vmax.f32 %v708_v52, 0.0  ;;  %v710_v37 = vadd.f32 %v2376_v24, %v2483_v38  ;;  %v265_v47 = vadd.f32 %v264_v46, %v2330_v0  ;;  %v2625_v29 = vpop.f32.mrb[22].mxu0  ;;  %v2627_v3 = vpop.f32.mrb[22].mxu1 }
 0x109   :  { %1256 = vmatprep.mubr.bf16.mxu1 %v831_v53  ;;  %v2630_v61 = vmul.f32 %v2372_v21, %v553_v23  ;;  %v770_v55 = vmax.f32 %v706_v58, 0.0  ;;  %v378_v63 = vadd.f32 %v377_v40, %v2340_v4  ;;  %v267_v49 = vadd.f32 %v266_v57, %v2342_v5  ;;  %v2634_v32 = vpop.f32.mrb[23].mxu0  ;;  %v2636_v1 = vpop.f32.mrb[23].mxu1 }
 0x10a   :  { %v2639_v38 = vmul.f32 %v2378_v27, %v555_v51  ;;  %v828_v46 = vpack.c.bf16 %v772_v56, %v768_v39  ;;  %v774_v52 = vmax.f32 %v710_v37, 0.0  ;;  %v470_v30 = vsub.f32 %v265_v47, %v2335_v2 }
 0x10b   :  { %v472_v53 = vsub.f32 %v378_v63, %v2354_v10  ;;  %v471_v23 = vsub.f32 %v267_v49, %v2356_v11  ;;  %v380_v58 = vadd.f32 %v379_v62, %v2344_v6  ;;  %v269_v40 = vadd.f32 %v268_v26, %v2330_v0 }
 0x10c   :  { %1160 = vmatmul.mubr.bf16.gmra.mrb[36].mxu0 %v828_v46  ;;  %v830_v57 = vpack.c.bf16 %v774_v52, %v770_v55  ;;  %v556_v22 = vmul.f32 %v2352_v9, %v470_v30  ;;  %v382_v28 = vadd.f32 %v381_v7, %v2340_v4  ;;  %v713_v39 = vadd.f32 %v2385_v33, %v2525_v43 }
 0x10d   :  { %v558_v51 = vmul.f32 %v2362_v14, %v472_v53  ;;  %v557_v56 = vmul.f32 %v2364_v15, %v471_v23  ;;  %v473_v37 = vsub.f32 %v380_v58, %v2358_v12  ;;  %v474_v47 = vsub.f32 %v269_v40, %v2335_v2 }
 0x10e   :  { %1257 = vmatmul.mubr.bf16.gmra.mrb[36].mxu1 %v830_v57  ;;  %v2655_v62 = vmul.f32 %v2360_v13, %v556_v22  ;;  %v476_v26 = vsub.f32 %v382_v28, %v2354_v10  ;;  %v717_v7 = vadd.f32 %v2385_v33, %v2562_v60  ;;  %v777_v30 = vmax.f32 %v713_v39, 0.0  ;;  %v2660_v55 = vpop.f32.mrb[24].mxu0  ;;  %v2662_v43 = vpop.f32.mrb[24].mxu1 }
 0x10f   :  { %v2665_v63 = vmul.f32 %v2370_v20, %v558_v51  ;;  %v2668_v49 = vmul.f32 %v2372_v21, %v557_v56  ;;  %v559_v46 = vmul.f32 %v2366_v16, %v473_v37  ;;  %v560_v22 = vmul.f32 %v2352_v9, %v474_v47  ;;  %v2672_v52 = vpop.f32.mrb[25].mxu0  ;;  %v2674_v28 = vpop.f32.mrb[25].mxu1 }
 0x110   :  { %3339 = vst [vmem:[#allocation8_spill] sm:$0xff] %v2655_v62  ;;  %v562_v60 = vmul.f32 %v2362_v14, %v476_v26  ;;  %v781_v53 = vmax.f32 %v717_v7, 0.0  ;;  %v715_v23 = vadd.f32 %v2387_v34, %v2528_v44  ;;  %v719_v58 = vadd.f32 %v2387_v34, %v2565_v54  ;;  %v2681_v40 = vpop.f32.mrb[26].mxu0  ;;  %v2683_v57 = vpop.f32.mrb[26].mxu1 }
 0x111   :  { %3340 = vst [vmem:[#allocation9_spill] sm:$0xff] %v2665_v63  ;;  %v2686_v39 = vmul.f32 %v2378_v27, %v559_v46  ;;  %v2689_v51 = vmul.f32 %v2360_v13, %v560_v22  ;;  %v271_v56 = vadd.f32 %v2579_v35, %v2342_v5  ;;  %v384_v37 = vadd.f32 %v2581_v36, %v2344_v6  ;;  %v2695_v44 = vpop.f32.mrb[27].mxu0  ;;  %v2697_v47 = vpop.f32.mrb[27].mxu1 }
 0x112   :  { %v2700_v54 = vmul.f32 %v2370_v20, %v562_v60  ;;  %v833_v26 = vpack.c.bf16 %v781_v53, %v777_v30  ;;  %v779_v7 = vmax.f32 %v715_v23, 0.0  ;;  %v783_v46 = vmax.f32 %v719_v58, 0.0 }
 0x113   :  { %3341 = vst [vmem:[#allocation10_spill] sm:$0xff] %v2689_v51  ;;  %v475_v63 = vsub.f32 %v271_v56, %v2356_v11  ;;  %v477_v22 = vsub.f32 %v384_v37, %v2358_v12  ;;  %v712_v35 = vadd.f32 %v2368_v18, %v2511_v8  ;;  %v716_v36 = vadd.f32 %v2368_v18, %v2535_v59 }
 0x114   :  { %1167 = vmatprep.mubr.bf16.mxu0 %v833_v26  ;;  %v835_v51 = vpack.c.bf16 %v783_v46, %v779_v7  ;;  %v714_v62 = vadd.f32 %v2376_v24, %v2514_v17  ;;  %v718_v30 = vadd.f32 %v2376_v24, %v2538_v25  ;;  %v275_v60 = vadd.f32 %v2610_v48, %v2330_v0 }
 0x115   :  { %v561_v53 = vmul.f32 %v2364_v15, %v475_v63  ;;  %v563_v23 = vmul.f32 %v2366_v16, %v477_v22  ;;  %v776_v58 = vmax.f32 %v712_v35, 0.0  ;;  %v780_v8 = vmax.f32 %v716_v36, 0.0 }
 0x116   :  { %1264 = vmatprep.mubr.bf16.mxu1 %v835_v51  ;;  %v778_v56 = vmax.f32 %v714_v62, 0.0  ;;  %v782_v59 = vmax.f32 %v718_v30, 0.0  ;;  %v478_v37 = vsub.f32 %v275_v60, %v2335_v2  ;;  %v388_v17 = vadd.f32 %v2612_v42, %v2340_v4  ;;  %v2719_v26 = vpop.f32.mrb[28].mxu0  ;;  %v2721_v25 = vpop.f32.mrb[28].mxu1 }
 0x117   :  { %v2724_v48 = vmul.f32 %v2372_v21, %v561_v53  ;;  %v2727_v63 = vmul.f32 %v2378_v27, %v563_v23  ;;  %v832_v7 = vpack.c.bf16 %v780_v8, %v776_v58  ;;  %v277_v62 = vadd.f32 %v2617_v45, %v2342_v5  ;;  %v2731_v51 = vpop.f32.mrb[29].mxu0  ;;  %v2733_v46 = vpop.f32.mrb[29].mxu1 }
 0x118   :  { %v834_v22 = vpack.c.bf16 %v782_v59, %v778_v56  ;;  %v564_v42 = vmul.f32 %v2352_v9, %v478_v37  ;;  %v480_v35 = vsub.f32 %v388_v17, %v2354_v10  ;;  %v390_v36 = vadd.f32 %v2619_v50, %v2344_v6  ;;  %v2739_v30 = vpop.f32.mrb[30].mxu0  ;;  %v2741_v60 = vpop.f32.mrb[30].mxu1 }
 0x119   :  { %1168 = vmatmul.mubr.bf16.gmra.mrb[40].mxu0 %v832_v7  ;;  %v479_v53 = vsub.f32 %v277_v62, %v2356_v11  ;;  %v279_v45 = vadd.f32 %v2625_v29, %v2330_v0  ;;  %v392_v23 = vadd.f32 %v2627_v3, %v2340_v4  ;;  %v721_v58 = vadd.f32 %v2385_v33, %v2576_v31  ;;  %v2750_v8 = vpop.f32.mrb[31].mxu0  ;;  %v2752_v56 = vpop.f32.mrb[31].mxu1 }
 0x11a   :  { %1265 = vmatmul.mubr.bf16.gmra.mrb[40].mxu1 %v834_v22  ;;  %v2755_v50 = vmul.f32 %v2360_v13, %v564_v42  ;;  %v566_v59 = vmul.f32 %v2362_v14, %v480_v35  ;;  %v481_v37 = vsub.f32 %v390_v36, %v2358_v12  ;;  %v725_v29 = vadd.f32 %v2385_v33, %v2630_v61 }
 0x11b   :  { %v565_v3 = vmul.f32 %v2364_v15, %v479_v53  ;;  %v482_v17 = vsub.f32 %v279_v45, %v2335_v2  ;;  %v484_v31 = vsub.f32 %v392_v23, %v2354_v10  ;;  %v785_v7 = vmax.f32 %v721_v58, 0.0 }
 0x11c   :  { %v2765_v62 = vmul.f32 %v2370_v20, %v566_v59  ;;  %v567_v22 = vmul.f32 %v2366_v16, %v481_v37  ;;  %v789_v42 = vmax.f32 %v725_v29, 0.0  ;;  %v723_v35 = vadd.f32 %v2387_v34, %v2584_v41 }
 0x11d   :  { %v2771_v36 = vmul.f32 %v2372_v21, %v565_v3  ;;  %v568_v61 = vmul.f32 %v2352_v9, %v482_v17  ;;  %v570_v53 = vmul.f32 %v2362_v14, %v484_v31  ;;  %v727_v45 = vadd.f32 %v2387_v34, %v2639_v38 }
 0x11e   :  { %3342 = vst [vmem:[#allocation11_spill] sm:$0xff] %v2765_v62  ;;  %v2778_v23 = vmul.f32 %v2378_v27, %v567_v22  ;;  %v837_v58 = vpack.c.bf16 %v789_v42, %v785_v7  ;;  %v787_v59 = vmax.f32 %v723_v35, 0.0  ;;  %v281_v37 = vadd.f32 %v2634_v32, %v2342_v5  ;;  %v3344_v7 = vld [vmem:[#allocation6_spill] sm:$0xff]  ;;  %v3345_v32 = vld [vmem:[#allocation5_spill] sm:$0xff] }
 0x11f   :  { %v2783_v41 = vmul.f32 %v2360_v13, %v568_v61  ;;  %v2786_v29 = vmul.f32 %v2370_v20, %v570_v53  ;;  %v791_v3 = vmax.f32 %v727_v45, 0.0  ;;  %v394_v17 = vadd.f32 %v2636_v1, %v2344_v6  ;;  %v3346_v53 = vld [vmem:[#allocation7_spill] sm:$0xff] }
 0x120   :  { %1175 = vmatprep.mubr.bf16.mxu0 %v837_v58  ;;  %v483_v38 = vsub.f32 %v281_v37, %v2356_v11  ;;  %v720_v31 = vadd.f32 %v2368_v18, %v2570_v19  ;;  %v724_v22 = vadd.f32 %v2368_v18, %v3344_v7  ;;  %v722_v42 = vadd.f32 %v2376_v24, %v3345_v32 }
 0x121   :  { %3343 = vst [vmem:[#allocation12_spill] sm:$0xff] %v2786_v29  ;;  %v839_v35 = vpack.c.bf16 %v791_v3, %v787_v59  ;;  %v485_v61 = vsub.f32 %v394_v17, %v2358_v12  ;;  %v726_v45 = vadd.f32 %v2376_v24, %v3346_v53  ;;  %v285_v1 = vadd.f32 %v2660_v55, %v2330_v0 }
 0x122   :  { %v569_v58 = vmul.f32 %v2364_v15, %v483_v38  ;;  %v784_v37 = vmax.f32 %v720_v31, 0.0  ;;  %v788_v29 = vmax.f32 %v724_v22, 0.0  ;;  %v786_v19 = vmax.f32 %v722_v42, 0.0 }
 0x123   :  { %1272 = vmatprep.mubr.bf16.mxu1 %v839_v35  ;;  %v571_v7 = vmul.f32 %v2366_v16, %v485_v61  ;;  %v790_v62 = vmax.f32 %v726_v45, 0.0  ;;  %v486_v32 = vsub.f32 %v285_v1, %v2335_v2  ;;  %v398_v59 = vadd.f32 %v2662_v43, %v2340_v4 }
 0x124   :  { %v2808_v3 = vmul.f32 %v2372_v21, %v569_v58  ;;  %v836_v17 = vpack.c.bf16 %v788_v29, %v784_v37  ;;  %v287_v55 = vadd.f32 %v2672_v52, %v2342_v5  ;;  %v400_v38 = vadd.f32 %v2674_v28, %v2344_v6 }
 0x125   :  { %v2815_v31 = vmul.f32 %v2378_v27, %v571_v7  ;;  %v838_v22 = vpack.c.bf16 %v790_v62, %v786_v19  ;;  %v572_v42 = vmul.f32 %v2352_v9, %v486_v32  ;;  %v488_v35 = vsub.f32 %v398_v59, %v2354_v10 }
 0x126   :  { %1176 = vmatmul.mubr.bf16.gmra.mrb[44].mxu0 %v836_v17  ;;  %v487_v43 = vsub.f32 %v287_v55, %v2356_v11  ;;  %v489_v61 = vsub.f32 %v400_v38, %v2358_v12  ;;  %v289_v29 = vadd.f32 %v2681_v40, %v2330_v0  ;;  %v402_v52 = vadd.f32 %v2683_v57, %v2340_v4 }
 0x127   :  { %1273 = vmatmul.mubr.bf16.gmra.mrb[44].mxu1 %v838_v22  ;;  %v2826_v28 = vmul.f32 %v2360_v13, %v572_v42  ;;  %v574_v62 = vmul.f32 %v2362_v14, %v488_v35  ;;  %v729_v53 = vadd.f32 %v2385_v33, %v2668_v49  ;;  %v733_v45 = vadd.f32 %v2385_v33, %v2724_v48 }
 0x128   :  { %v573_v1 = vmul.f32 %v2364_v15, %v487_v43  ;;  %v575_v58 = vmul.f32 %v2366_v16, %v489_v61  ;;  %v490_v40 = vsub.f32 %v289_v29, %v2335_v2  ;;  %v492_v57 = vsub.f32 %v402_v52, %v2354_v10  ;;  %v3347_v61 = vld [vmem:[#allocation8_spill] sm:$0xff] }
 0x129   :  { %v2838_v37 = vmul.f32 %v2370_v20, %v574_v62  ;;  %v793_v19 = vmax.f32 %v729_v53, 0.0  ;;  %v797_v7 = vmax.f32 %v733_v45, 0.0  ;;  %v731_v32 = vadd.f32 %v2387_v34, %v2686_v39  ;;  %v3348_v62 = vld [vmem:[#allocation10_spill] sm:$0xff] }
 0x12a   :  { %v2843_v49 = vmul.f32 %v2372_v21, %v573_v1  ;;  %v2846_v48 = vmul.f32 %v2378_v27, %v575_v58  ;;  %v576_v59 = vmul.f32 %v2352_v9, %v490_v40  ;;  %v578_v17 = vmul.f32 %v2362_v14, %v492_v57 }
 0x12b   :  { %v841_v55 = vpack.c.bf16 %v797_v7, %v793_v19  ;;  %v735_v38 = vadd.f32 %v2387_v34, %v2727_v63  ;;  %v795_v22 = vmax.f32 %v731_v32, 0.0  ;;  %v291_v42 = vadd.f32 %v2695_v44, %v2342_v5  ;;  %v3349_v44 = vld [vmem:[#allocation9_spill] sm:$0xff] }
 0x12c   :  { %v2855_v39 = vmul.f32 %v2360_v13, %v576_v59  ;;  %v2858_v35 = vmul.f32 %v2370_v20, %v578_v17  ;;  %v404_v43 = vadd.f32 %v2697_v47, %v2344_v6  ;;  %v728_v29 = vadd.f32 %v2368_v18, %v3347_v61 }
 0x12d   :  { %1183 = vmatprep.mubr.bf16.mxu0 %v841_v55  ;;  %v799_v52 = vmax.f32 %v735_v38, 0.0  ;;  %v491_v63 = vsub.f32 %v291_v42, %v2356_v11  ;;  %v732_v53 = vadd.f32 %v2368_v18, %v3348_v62  ;;  %v730_v45 = vadd.f32 %v2376_v24, %v3349_v44 }
 0x12e   :  { %v493_v1 = vsub.f32 %v404_v43, %v2358_v12  ;;  %v792_v58 = vmax.f32 %v728_v29, 0.0  ;;  %v734_v40 = vadd.f32 %v2376_v24, %v2700_v54  ;;  %v295_v47 = vadd.f32 %v2719_v26, %v2330_v0 }
 0x12f   :  { %v843_v57 = vpack.c.bf16 %v799_v52, %v795_v22  ;;  %v577_v19 = vmul.f32 %v2364_v15, %v491_v63  ;;  %v796_v7 = vmax.f32 %v732_v53, 0.0  ;;  %v794_v32 = vmax.f32 %v730_v45, 0.0 }
 0x130   :  { %v579_v59 = vmul.f32 %v2366_v16, %v493_v1  ;;  %v798_v17 = vmax.f32 %v734_v40, 0.0  ;;  %v494_v55 = vsub.f32 %v295_v47, %v2335_v2  ;;  %v408_v38 = vadd.f32 %v2721_v25, %v2340_v4 }
 0x131   :  { %1280 = vmatprep.mubr.bf16.mxu1 %v843_v57  ;;  %v663_v42 = vmul.f32 %v2372_v21, %v577_v19  ;;  %v840_v54 = vpack.c.bf16 %v796_v7, %v792_v58  ;;  %v297_v26 = vadd.f32 %v2731_v51, %v2342_v5  ;;  %v410_v22 = vadd.f32 %v2733_v46, %v2344_v6 }
 0x132   :  { %v665_v43 = vmul.f32 %v2378_v27, %v579_v59  ;;  %v842_v61 = vpack.c.bf16 %v798_v17, %v794_v32  ;;  %v580_v29 = vmul.f32 %v2352_v9, %v494_v55  ;;  %v496_v52 = vsub.f32 %v408_v38, %v2354_v10  ;;  %v3350_v38 = vld [vmem:[#allocation11_spill] sm:$0xff] }
 0x133   :  { %1184 = vmatmul.mubr.bf16.gmra.mrb[48].mxu0 %v840_v54  ;;  %v495_v25 = vsub.f32 %v297_v26, %v2356_v11  ;;  %v497_v63 = vsub.f32 %v410_v22, %v2358_v12  ;;  %v299_v62 = vadd.f32 %v2739_v30, %v2330_v0  ;;  %v412_v51 = vadd.f32 %v2741_v60, %v2340_v4 }
 0x134   :  { %1281 = vmatmul.mubr.bf16.gmra.mrb[48].mxu1 %v842_v61  ;;  %v2894_v46 = vmul.f32 %v2360_v13, %v580_v29  ;;  %v582_v53 = vmul.f32 %v2362_v14, %v496_v52  ;;  %v737_v44 = vadd.f32 %v2385_v33, %v2771_v36  ;;  %v741_v45 = vadd.f32 %v2385_v33, %v2808_v3 }
 0x135   :  { %v581_v1 = vmul.f32 %v2364_v15, %v495_v25  ;;  %v583_v58 = vmul.f32 %v2366_v16, %v497_v63  ;;  %v498_v0 = vsub.f32 %v299_v62, %v2335_v2  ;;  %v500_v4 = vsub.f32 %v412_v51, %v2354_v10 }
 0x136   :  { %v2906_v30 = vmul.f32 %v2370_v20, %v582_v53  ;;  %v801_v60 = vmax.f32 %v737_v44, 0.0  ;;  %v805_v40 = vmax.f32 %v741_v45, 0.0  ;;  %v739_v47 = vadd.f32 %v2387_v34, %v2778_v23 }
 0x137   :  { %v667_v36 = vmul.f32 %v2372_v21, %v581_v1  ;;  %v669_v3 = vmul.f32 %v2378_v27, %v583_v58  ;;  %v584_v57 = vmul.f32 %v2352_v9, %v498_v0  ;;  %v586_v19 = vmul.f32 %v2362_v14, %v500_v4 }
 0x138   :  { %v845_v7 = vpack.c.bf16 %v805_v40, %v801_v60  ;;  %v743_v2 = vadd.f32 %v2387_v34, %v2815_v31  ;;  %v803_v10 = vmax.f32 %v739_v47, 0.0  ;;  %v301_v32 = vadd.f32 %v2750_v8, %v2342_v5 }
 0x139   :  { %v670_v59 = vmul.f32 %v2360_v13, %v584_v57  ;;  %v672_v23 = vmul.f32 %v2370_v20, %v586_v19  ;;  %v414_v17 = vadd.f32 %v2752_v56, %v2344_v6  ;;  %v736_v9 = vadd.f32 %v2368_v18, %v2755_v50  ;;  %v3351_v20 = vld [vmem:[#allocation12_spill] sm:$0xff] }
 0x13a   :  { %1191 = vmatprep.mubr.bf16.mxu0 %v845_v7  ;;  %v807_v14 = vmax.f32 %v743_v2, 0.0  ;;  %v499_v55 = vsub.f32 %v301_v32, %v2356_v11  ;;  %v740_v31 = vadd.f32 %v2368_v18, %v2783_v41  ;;  %v738_v5 = vadd.f32 %v2376_v24, %v3350_v38 }
 0x13b   :  { %v501_v13 = vsub.f32 %v414_v17, %v2358_v12  ;;  %v800_v8 = vmax.f32 %v736_v9, 0.0  ;;  %v742_v54 = vadd.f32 %v2376_v24, %v3351_v20  ;;  %v745_v6 = vadd.f32 %v2385_v33, %v2843_v49 }
 0x13c   :  { %v847_v56 = vpack.c.bf16 %v807_v14, %v803_v10  ;;  %v585_v50 = vmul.f32 %v2364_v15, %v499_v55  ;;  %v804_v26 = vmax.f32 %v740_v31, 0.0  ;;  %v802_v11 = vmax.f32 %v738_v5, 0.0 }
 0x13d   :  { %v587_v22 = vmul.f32 %v2366_v16, %v501_v13  ;;  %v806_v41 = vmax.f32 %v742_v54, 0.0  ;;  %v749_v61 = vadd.f32 %v2385_v33, %v663_v42  ;;  %v809_v29 = vmax.f32 %v745_v6, 0.0 }
 0x13e   :  { %1288 = vmatprep.mubr.bf16.mxu1 %v847_v56  ;;  %v671_v12 = vmul.f32 %v2372_v21, %v585_v50  ;;  %v844_v52 = vpack.c.bf16 %v804_v26, %v800_v8  ;;  %v747_v25 = vadd.f32 %v2387_v34, %v2846_v48  ;;  %v751_v49 = vadd.f32 %v2387_v34, %v665_v43 }
 0x13f   :  { %v673_v63 = vmul.f32 %v2378_v27, %v587_v22  ;;  %v846_v15 = vpack.c.bf16 %v806_v41, %v802_v11  ;;  %v813_v62 = vmax.f32 %v749_v61, 0.0  ;;  %v744_v16 = vadd.f32 %v2368_v18, %v2826_v28 }
 0x140   :  { %1192 = vmatmul.mubr.bf16.gmra.mrb[52].mxu0 %v844_v52  ;;  %v811_v51 = vmax.f32 %v747_v25, 0.0  ;;  %v815_v42 = vmax.f32 %v751_v49, 0.0  ;;  %v748_v53 = vadd.f32 %v2368_v18, %v2855_v39  ;;  %v746_v21 = vadd.f32 %v2376_v24, %v2838_v37 }
 0x141   :  { %1289 = vmatmul.mubr.bf16.gmra.mrb[52].mxu1 %v846_v15  ;;  %v849_v48 = vpack.c.bf16 %v813_v62, %v809_v29  ;;  %v808_v44 = vmax.f32 %v744_v16, 0.0  ;;  %v750_v27 = vadd.f32 %v2376_v24, %v2858_v35  ;;  %v753_v43 = vadd.f32 %v2385_v33, %v667_v36 }
 0x142   :  { %v851_v45 = vpack.c.bf16 %v815_v42, %v811_v51  ;;  %v812_v1 = vmax.f32 %v748_v53, 0.0  ;;  %v810_v28 = vmax.f32 %v746_v21, 0.0  ;;  %v757_v58 = vadd.f32 %v2385_v33, %v671_v12 }
 0x143   :  { %1199 = vmatprep.mubr.bf16.mxu0 %v849_v48  ;;  %v814_v0 = vmax.f32 %v750_v27, 0.0  ;;  %v817_v4 = vmax.f32 %v753_v43, 0.0  ;;  %v755_v39 = vadd.f32 %v2387_v34, %v669_v3  ;;  %v759_v37 = vadd.f32 %v2387_v34, %v673_v63 }
 0x144   :  { %1296 = vmatprep.mubr.bf16.mxu1 %v851_v45  ;;  %v848_v60 = vpack.c.bf16 %v812_v1, %v808_v44  ;;  %v821_v40 = vmax.f32 %v757_v58, 0.0  ;;  %v752_v35 = vadd.f32 %v2368_v18, %v2894_v46  ;;  %v756_v47 = vadd.f32 %v2368_v18, %v670_v59 }
 0x145   :  { %v850_v36 = vpack.c.bf16 %v814_v0, %v810_v28  ;;  %v819_v57 = vmax.f32 %v755_v39, 0.0  ;;  %v823_v19 = vmax.f32 %v759_v37, 0.0  ;;  %v754_v33 = vadd.f32 %v2376_v24, %v2906_v30  ;;  %v2963_v30 = vld [vmem:[%s3331_s8] ss:$0 sm:$0xff] }
 0x146   :  { %v853_v7 = vpack.c.bf16 %v821_v40, %v817_v4  ;;  %v816_v2 = vmax.f32 %v752_v35, 0.0  ;;  %v820_v10 = vmax.f32 %v756_v47, 0.0  ;;  %v758_v3 = vadd.f32 %v2376_v24, %v672_v23 }
 0x147   :  { %v855_v34 = vpack.c.bf16 %v823_v19, %v819_v57  ;;  %v818_v32 = vmax.f32 %v754_v33, 0.0 }
 0x148   :  { %1200 = vmatmul.mubr.bf16.gmra.mrb[56].mxu0 %v848_v60  ;;  %v852_v17 = vpack.c.bf16 %v820_v10, %v816_v2  ;;  %v822_v9 = vmax.f32 %v758_v3, 0.0 }
 0x149   :  { %1297 = vmatmul.mubr.bf16.gmra.mrb[56].mxu1 %v850_v36  ;;  %1207 = vmatprep.mubr.bf16.mxu0 %v853_v7 }
 0x14a   :  { %1304 = vmatprep.mubr.bf16.mxu1 %v855_v34  ;;  %v854_v18 = vpack.c.bf16 %v822_v9, %v818_v32 }
 0x150   :  { %1208 = vmatmul.mubr.bf16.gmra.mrb[60].mxu0 %v852_v17 }
 0x151   :  { %1305 = vmatmul.mubr.bf16.gmra.mrb[60].mxu1 %v854_v18 }
 0x1d1   :  { %v1806_v46 = vpop.f32.mrb[32].mxu0 }
 0x1d2   :  { %v1870_v59 = vpop.f32.mrb[32].mxu1  ;;  %v1807_v14 = vpop.f32.mrb[33].mxu0 }
 0x1d3   :  { %v1808_v24 = vadd.f32 %v1807_v14, %v1806_v46  ;;  %v1871_v23 = vpop.f32.mrb[33].mxu1  ;;  %v1809_v55 = vpop.f32.mrb[34].mxu0 }
 0x1d4   :  { %v1872_v31 = vadd.f32 %v1871_v23, %v1870_v59  ;;  %v1873_v38 = vpop.f32.mrb[34].mxu1  ;;  %v1810_v5 = vpop.f32.mrb[35].mxu0 }
 0x1d5   :  { %v1154_v13 = vadd.f32 %v1808_v24, %v2963_v30  ;;  %v1811_v8 = vadd.f32 %v1810_v5, %v1809_v55  ;;  %v1874_v20 = vpop.f32.mrb[35].mxu1 }
 0x1d6   :  { %v1875_v54 = vadd.f32 %v1874_v20, %v1873_v38 }
 0x1d7   :  { %v2966_v6 = vadd.f32 %v1872_v31, %v1154_v13  ;;  %v1157_v56 = vadd.f32 %v1811_v8, %v2963_v30 }
 0x1d9   :  { %1314 = vst.msk [vmem:[%s3333_s10] sm:$0xff] %vm1313_vm1, %v2966_v6  ;;  %v2974_v50 = vadd.f32 %v1875_v54, %v1157_v56  ;;  %v1330_v26 = vsel %vm1313_vm1, %v2966_v6, -inf }
 0x1da   :  { %1331 = vmax.xlane.f32.xlu0 %v1330_v26 }
 0x1db   :  { %1315 = vst.msk [vmem:[%s3333_s10 + $0x8] sm:$0xff] %vm1313_vm1, %v2974_v50  ;;  %v1333_v11 = vsel %vm1313_vm1, %v2974_v50, -inf }
 0x1de   :  { %1334 = vmax.xlane.f32.xlu0 %v1333_v11 }
 0x1df   :  { %v1812_v22 = vpop.f32.mrb[36].mxu0 }
 0x1e0   :  { %v1813_v41 = vpop.f32.mrb[37].mxu0 }
 0x1e1   :  { %v1876_v61 = vpop.f32.mrb[36].mxu1  ;;  %v1814_v29 = vadd.f32 %v1813_v41, %v1812_v22  ;;  %v1815_v12 = vpop.f32.mrb[38].mxu0 }
 0x1e2   :  { %v1877_v52 = vpop.f32.mrb[37].mxu1  ;;  %v1816_v25 = vpop.f32.mrb[39].mxu0 }
 0x1e3   :  { %v1162_v49 = vadd.f32 %v1814_v29, %v2963_v30  ;;  %v1878_v63 = vadd.f32 %v1877_v52, %v1876_v61  ;;  %v1879_v15 = vpop.f32.mrb[38].mxu1  ;;  %v1817_v62 = vadd.f32 %v1816_v25, %v1815_v12 }
 0x1e4   :  { %v1880_v16 = vpop.f32.mrb[39].mxu1 }
 0x1e5   :  { %v2986_v51 = vadd.f32 %v1878_v63, %v1162_v49  ;;  %v1165_v42 = vadd.f32 %v1817_v62, %v2963_v30  ;;  %v1881_v53 = vadd.f32 %v1880_v16, %v1879_v15 }
 0x1e7   :  { %1316 = vst.msk [vmem:[%s3333_s10 + $0x10] sm:$0xff] %vm1313_vm1, %v2986_v51  ;;  %v2994_v21 = vadd.f32 %v1881_v53, %v1165_v42  ;;  %v1336_v48 = vsel %vm1313_vm1, %v2986_v51, -inf }
 0x1e8   :  { %1337 = vmax.xlane.f32.xlu1 %v1336_v48 }
 0x1e9   :  { %1317 = vst.msk [vmem:[%s3333_s10 + $0x18] sm:$0xff] %vm1313_vm1, %v2994_v21  ;;  %v1339_v44 = vsel %vm1313_vm1, %v2994_v21, -inf }
 0x1ec   :  { %v1818_v27 = vpop.f32.mrb[40].mxu0  ;;  %1340 = vmax.xlane.f32.xlu1 %v1339_v44 }
 0x1ed   :  { %v1882_v43 = vpop.f32.mrb[40].mxu1  ;;  %v1819_v45 = vpop.f32.mrb[41].mxu0 }
 0x1ee   :  { %v1820_v1 = vadd.f32 %v1819_v45, %v1818_v27  ;;  %v1883_v28 = vpop.f32.mrb[41].mxu1  ;;  %v1821_v58 = vpop.f32.mrb[42].mxu0 }
 0x1ef   :  { %v1884_v0 = vadd.f32 %v1883_v28, %v1882_v43  ;;  %v1885_v4 = vpop.f32.mrb[42].mxu1  ;;  %v1822_v39 = vpop.f32.mrb[43].mxu0 }
 0x1f0   :  { %v1170_v37 = vadd.f32 %v1820_v1, %v2963_v30  ;;  %v1823_v60 = vadd.f32 %v1822_v39, %v1821_v58  ;;  %v1886_v40 = vpop.f32.mrb[43].mxu1 }
 0x1f1   :  { %v1887_v35 = vadd.f32 %v1886_v40, %v1885_v4 }
 0x1f2   :  { %v3006_v47 = vadd.f32 %v1884_v0, %v1170_v37  ;;  %v1173_v36 = vadd.f32 %v1823_v60, %v2963_v30 }
 0x1f4   :  { %1318 = vst.msk [vmem:[%s3333_s10 + $0x20] sm:$0xff] %vm1313_vm1, %v3006_v47  ;;  %v3014_v57 = vadd.f32 %v1887_v35, %v1173_v36  ;;  %v1342_v19 = vsel %vm1313_vm1, %v3006_v47, -inf }
 0x1f5   :  { %1343 = vmax.xlane.f32.xlu0 %v1342_v19 }
 0x1f6   :  { %1319 = vst.msk [vmem:[%s3333_s10 + $0x28] sm:$0xff] %vm1313_vm1, %v3014_v57  ;;  %v1345_v33 = vsel %vm1313_vm1, %v3014_v57, -inf }
 0x1f7   :  { %1346 = vmax.xlane.f32.xlu1 %v1345_v33 }
 0x1f9   :  { %v1824_v7 = vpop.f32.mrb[44].mxu0 }
 0x1fa   :  { %v1888_v2 = vpop.f32.mrb[44].mxu1  ;;  %v1825_v10 = vpop.f32.mrb[45].mxu0 }
 0x1fb   :  { %v1826_v3 = vadd.f32 %v1825_v10, %v1824_v7  ;;  %v1889_v34 = vpop.f32.mrb[45].mxu1  ;;  %v1827_v32 = vpop.f32.mrb[46].mxu0 }
 0x1fc   :  { %v1890_v17 = vadd.f32 %v1889_v34, %v1888_v2  ;;  %v1891_v9 = vpop.f32.mrb[46].mxu1  ;;  %v1828_v18 = vpop.f32.mrb[47].mxu0 }
 0x1fd   :  { %v1178_v46 = vadd.f32 %v1826_v3, %v2963_v30  ;;  %v1829_v59 = vadd.f32 %v1828_v18, %v1827_v32  ;;  %v1892_v14 = vpop.f32.mrb[47].mxu1 }
 0x1fe   :  { %v1893_v24 = vadd.f32 %v1892_v14, %v1891_v9 }
 0x1ff   :  { %v3026_v23 = vadd.f32 %v1890_v17, %v1178_v46  ;;  %v1181_v55 = vadd.f32 %v1829_v59, %v2963_v30 }
 0x201   :  { %1320 = vst.msk [vmem:[%s3333_s10 + $0x30] sm:$0xff] %vm1313_vm1, %v3026_v23  ;;  %v3034_v31 = vadd.f32 %v1893_v24, %v1181_v55  ;;  %v1348_v38 = vsel %vm1313_vm1, %v3026_v23, -inf }
 0x202   :  { %1349 = vmax.xlane.f32.xlu0 %v1348_v38 }
 0x203   :  { %1321 = vst.msk [vmem:[%s3333_s10 + $0x38] sm:$0xff] %vm1313_vm1, %v3034_v31  ;;  %v1351_v5 = vsel %vm1313_vm1, %v3034_v31, -inf }
 0x204   :  { %1352 = vmax.xlane.f32.xlu1 %v1351_v5 }
 0x206   :  { %v1830_v13 = vpop.f32.mrb[48].mxu0 }
 0x207   :  { %v1894_v8 = vpop.f32.mrb[48].mxu1  ;;  %v1831_v20 = vpop.f32.mrb[49].mxu0 }
 0x208   :  { %v1832_v54 = vadd.f32 %v1831_v20, %v1830_v13  ;;  %v1895_v56 = vpop.f32.mrb[49].mxu1  ;;  %v1833_v26 = vpop.f32.mrb[50].mxu0 }
 0x209   :  { %v1896_v11 = vadd.f32 %v1895_v56, %v1894_v8  ;;  %v1897_v22 = vpop.f32.mrb[50].mxu1  ;;  %v1834_v41 = vpop.f32.mrb[51].mxu0 }
 0x20a   :  { %v1186_v61 = vadd.f32 %v1832_v54, %v2963_v30  ;;  %v1835_v29 = vadd.f32 %v1834_v41, %v1833_v26  ;;  %v1898_v12 = vpop.f32.mrb[51].mxu1 }
 0x20b   :  { %v1899_v52 = vadd.f32 %v1898_v12, %v1897_v22 }
 0x20c   :  { %v3046_v25 = vadd.f32 %v1896_v11, %v1186_v61  ;;  %v1189_v49 = vadd.f32 %v1835_v29, %v2963_v30 }
 0x20e   :  { %1322 = vst.msk [vmem:[%s3333_s10 + $0x40] sm:$0xff] %vm1313_vm1, %v3046_v25  ;;  %v3054_v63 = vadd.f32 %v1899_v52, %v1189_v49  ;;  %v1354_v15 = vsel %vm1313_vm1, %v3046_v25, -inf }
 0x20f   :  { %1355 = vmax.xlane.f32.xlu0 %v1354_v15 }
 0x210   :  { %1323 = vst.msk [vmem:[%s3333_s10 + $0x48] sm:$0xff] %vm1313_vm1, %v3054_v63  ;;  %v1357_v62 = vsel %vm1313_vm1, %v3054_v63, -inf }
 0x211   :  { %1358 = vmax.xlane.f32.xlu1 %v1357_v62 }
 0x213   :  { %v1836_v16 = vpop.f32.mrb[52].mxu0 }
 0x214   :  { %v1900_v42 = vpop.f32.mrb[52].mxu1  ;;  %v1837_v53 = vpop.f32.mrb[53].mxu0 }
 0x215   :  { %v1838_v48 = vadd.f32 %v1837_v53, %v1836_v16  ;;  %v1901_v44 = vpop.f32.mrb[53].mxu1  ;;  %v1839_v27 = vpop.f32.mrb[54].mxu0  ;;  %v1538_v16 = vld [vmem:[%s3332_s9 + $0x70] sm:$0xff] }
 0x216   :  { %v1902_v43 = vadd.f32 %v1901_v44, %v1900_v42  ;;  %v1903_v45 = vpop.f32.mrb[54].mxu1  ;;  %v1840_v1 = vpop.f32.mrb[55].mxu0  ;;  %v1539_v42 = vld [vmem:[%s3332_s9 + $0x78] sm:$0xff]  ;;  %s2063_s9 = smov [#allocation2]  }
 0x217   :  { %v1194_v28 = vadd.f32 %v1838_v48, %v2963_v30  ;;  %v1841_v58 = vadd.f32 %v1840_v1, %v1839_v27  ;;  %v1904_v0 = vpop.f32.mrb[55].mxu1  ;;  %v1545_v53 = vpop.permute.xlu1 %1544 }
 0x218   :  { %v1905_v4 = vadd.f32 %v1904_v0, %v1903_v45  ;;  %v3352_v45 = vlaneseq }
 0x219   :  { %v3066_v39 = vadd.f32 %v1902_v43, %v1194_v28  ;;  %v1197_v37 = vadd.f32 %v1841_v58, %v2963_v30  ;;  %v1542_v43 = vpop.permute.xlu0 %1541 }
 0x21a   :  { %v3132_v1 = vand.u32 127, %v3352_v45 }
 0x21b   :  { %1324 = vst.msk [vmem:[%s3333_s10 + $0x50] sm:$0xff] %vm1313_vm1, %v3066_v39  ;;  %v3074_v60 = vadd.f32 %v1905_v4, %v1197_v37  ;;  %v1842_v40 = vpop.f32.mrb[56].mxu0  ;;  %v1360_v35 = vsel %vm1313_vm1, %v3066_v39, -inf  ;;  %v1548_v48 = vpop.permute.xlu1 %1547 }
 0x21c   :  { %v1906_v36 = vpop.f32.mrb[56].mxu1  ;;  %v1843_v19 = vpop.f32.mrb[57].mxu0  ;;  %1361 = vmax.xlane.f32.xlu0 %v1360_v35  ;;  %vm1589_vm2 = vcmp.eq.s32.totalorder %v3132_v1, %v1545_v53  ;;  %vm1588_vm3 = vcmp.eq.s32.totalorder %v3132_v1, %v1542_v43  ;;  %vm1590_vm4 = vcmp.eq.s32.totalorder %v3132_v1, %v1548_v48 }
 0x21d   :  { %1325 = vst.msk [vmem:[%s3333_s10 + $0x58] sm:$0xff] %vm1313_vm1, %v3074_v60  ;;  %v1844_v33 = vadd.f32 %v1843_v19, %v1842_v40  ;;  %v1907_v7 = vpop.f32.mrb[57].mxu1  ;;  %v1845_v2 = vpop.f32.mrb[58].mxu0  ;;  %v1363_v10 = vsel %vm1313_vm1, %v3074_v60, -inf  ;;  %v1605_v0 = vsel %vm1589_vm2, %v2974_v50, 0.0  ;;  %v1604_v40 = vsel %vm1588_vm3, %v2966_v6, 0.0 }
 0x21e   :  { %v1908_v3 = vadd.f32 %v1907_v7, %v1906_v36  ;;  %v1909_v34 = vpop.f32.mrb[58].mxu1  ;;  %v1846_v32 = vpop.f32.mrb[59].mxu0  ;;  %1364 = vmax.xlane.f32.xlu1 %v1363_v10  ;;  %v1623_v35 = vsel %vm1313_vm1, %v1605_v0, 0.0  ;;  %v1606_v36 = vsel %vm1590_vm4, %v2986_v51, 0.0  ;;  %v1620_v19 = vsel %vm1313_vm1, %v1604_v40, 0.0 }
 0x21f   :  { %v1202_v17 = vadd.f32 %v1844_v33, %v2963_v30  ;;  %v1847_v9 = vadd.f32 %v1846_v32, %v1845_v2  ;;  %v1910_v18 = vpop.f32.mrb[59].mxu1  ;;  %v1551_v44 = vpop.permute.xlu1 %1550  ;;  %v1626_v7 = vsel %vm1313_vm1, %v1606_v36, 0.0 }
 0x220   :  { %v1911_v46 = vadd.f32 %v1910_v18, %v1909_v34  ;;  %v3137_v58 = vpop.permute.xlu0 %1568  ;;  %vm1591_vm5 = vcmp.eq.s32.totalorder %v3132_v1, %v1551_v44 }
 0x221   :  { %v3086_v59 = vadd.f32 %v1908_v3, %v1202_v17  ;;  %v1205_v14 = vadd.f32 %v1847_v9, %v2963_v30  ;;  %v1607_v10 = vsel %vm1591_vm5, %v2994_v21, 0.0  ;;  %vm1597_vm14 = vcmp.eq.s32.totalorder %v3132_v1, %v3137_v58 }
 0x222   :  { %v1629_v34 = vsel %vm1313_vm1, %v1607_v10, 0.0 }
 0x223   :  { %1326 = vst.msk [vmem:[%s3333_s10 + $0x60] sm:$0xff] %vm1313_vm1, %v3086_v59  ;;  %v3094_v24 = vadd.f32 %v1911_v46, %v1205_v14  ;;  %v1848_v55 = vpop.f32.mrb[60].mxu0  ;;  %v1366_v38 = vsel %vm1313_vm1, %v3086_v59, -inf  ;;  %v1554_v27 = vpop.permute.xlu1 %1553 }
 0x224   :  { %v1912_v5 = vpop.f32.mrb[60].mxu1  ;;  %v1849_v13 = vpop.f32.mrb[61].mxu0  ;;  %1367 = vmax.xlane.f32.xlu0 %v1366_v38  ;;  %vm1592_vm6 = vcmp.eq.s32.totalorder %v3132_v1, %v1554_v27 }
 0x225   :  { %1327 = vst.msk [vmem:[%s3333_s10 + $0x68] sm:$0xff] %vm1313_vm1, %v3094_v24  ;;  %v1850_v8 = vadd.f32 %v1849_v13, %v1848_v55  ;;  %v1913_v20 = vpop.f32.mrb[61].mxu1  ;;  %v1851_v54 = vpop.f32.mrb[62].mxu0  ;;  %v1369_v56 = vsel %vm1313_vm1, %v3094_v24, -inf  ;;  %v1608_v9 = vsel %vm1592_vm6, %v3006_v47, 0.0 }
 0x226   :  { %v1914_v26 = vadd.f32 %v1913_v20, %v1912_v5  ;;  %v1915_v11 = vpop.f32.mrb[62].mxu1  ;;  %v1852_v22 = vpop.f32.mrb[63].mxu0  ;;  %1370 = vmax.xlane.f32.xlu1 %v1369_v56  ;;  %v1632_v14 = vsel %vm1313_vm1, %v1608_v9, 0.0 }
 0x227   :  { %v1210_v41 = vadd.f32 %v1850_v8, %v2963_v30  ;;  %v1853_v61 = vadd.f32 %v1852_v22, %v1851_v54  ;;  %v1916_v29 = vpop.f32.mrb[63].mxu1  ;;  %v3134_v28 = vpop.permute.xlu1 %1556 }
 0x228   :  { %v1917_v12 = vadd.f32 %v1916_v29, %v1915_v11  ;;  %v3144_v37 = vpop.permute.xlu0 %1574  ;;  %vm1593_vm7 = vcmp.eq.s32.totalorder %v3132_v1, %v3134_v28 }
 0x229   :  { %v3106_v52 = vadd.f32 %v1914_v26, %v1210_v41  ;;  %v1213_v49 = vadd.f32 %v1853_v61, %v2963_v30  ;;  %vm1599_vm15 = vcmp.eq.s32.totalorder %v3132_v1, %v3144_v37 }
 0x22b   :  { %1328 = vst.msk [vmem:[%s3333_s10 + $0x70] sm:$0xff] %vm1313_vm1, %v3106_v52  ;;  %v3114_v15 = vadd.f32 %v1917_v12, %v1213_v49  ;;  %v1372_v62 = vsel %vm1313_vm1, %v3106_v52, -inf  ;;  %v3142_v4 = vpop.permute.xlu1 %1559 }
 0x22c   :  { %1373 = vmax.xlane.f32.xlu0 %v1372_v62  ;;  %v3151_v33 = vpop.permute.xlu0 %1580  ;;  %vm1594_vm8 = vcmp.eq.s32.totalorder %v3132_v1, %v3142_v4 }
 0x22d   :  { %1329 = vst.msk [vmem:[%s3333_s10 + $0x78] sm:$0xff] %vm1313_vm1, %v3114_v15  ;;  %v1375_v30 = vsel %vm1313_vm1, %v3114_v15, -inf  ;;  %vm1601_vm0 = vcmp.eq.s32.totalorder %v3132_v1, %v3151_v33  ;;  %s1715_s10 = sshll.u32 %s2063_s9, 4  ;;  %s1716_s10 = int_to_ptr.vmem [resolvable:$true] %s1715_s10 }
 0x22e   :  { %1376 = vmax.xlane.f32.xlu1 %v1375_v30  ;;  %v1617_v58 = vsel %vm1601_vm0, %v3094_v24, 0.0  ;;  %s2038_s29 = scalar_lea.vmem %s1716_s10, 16  ;;  %s2042_s30 = scalar_lea.vmem %s1716_s10, 32 }
 0x22f   :  { %v3154_v2 = vpop.permute.xlu1 %1562  ;;  %p2039_p0 = scmp.ne.s32.totalorder %s1716_s10, %s2038_s29  ;;  %p2043_p1 = scmp.lt.s32.totalorder %s1716_s10, %s1716_s10 }
 0x230   :  { %vm1595_vm9 = vcmp.eq.s32.totalorder %v3132_v1, %v3154_v2  ;;  %p2044_p2 = scmp.lt.s32.totalorder %s2042_s30, %s2038_s29 }
 0x232   :  { %p2045_p3 = por %p2044_p2, %p2043_p1 }
 0x233   :  { %v3163_v17 = vpop.permute.xlu1 %1565 }
 0x234   :  { %vm1596_vm10 = vcmp.eq.s32.totalorder %v3132_v1, %v3163_v17  ;;  %p2046_p4 = pnand %p2045_p3, %p2039_p0 }
 0x237   :  { %v3171_v38 = vpop.permute.xlu1 %1571 }
 0x238   :  { %vm1598_vm11 = vcmp.eq.s32.totalorder %v3132_v1, %v3171_v38 }
 0x23f   :  { %1583 = vperm.xlu1 %1921, %v1538_v16  }
 0x242   :  { %1586 = vperm.xlu0 %1920, %v1539_v42  }
 0x261   :  { %1624 = vadd.xlane.f32.xlu0 %v1623_v35 }
 0x263   :  { %1621 = vadd.xlane.f32.xlu1 %v1620_v19 }
 0x265   :  { %1627 = vadd.xlane.f32.xlu0 %v1626_v7 }
 0x267   :  { %v3158_v3 = vpop.xlane.xlu0 %1331 }
 0x268   :  { %v1378_v32 = vsub.f32 %v2966_v6, %v3158_v3  ;;  %v3173_v6 = vpop.permute.xlu1 %1577 }
 0x269   :  { %1630 = vadd.xlane.f32.xlu0 %v1629_v34  ;;  %vm1600_vm12 = vcmp.eq.s32.totalorder %v3132_v1, %v3173_v6 }
 0x26a   :  { %v1394_v18 = vmul.f32 1.442695, %v1378_v32 }
 0x26b   :  { %v3166_v46 = vpop.xlane.xlu0 %1334 }
 0x26c   :  { %1974 = vpow2.f32 %v1394_v18  ;;  %v1379_v55 = vsub.f32 %v2974_v50, %v3166_v46 }
 0x26d   :  { %1633 = vadd.xlane.f32.xlu0 %v1632_v14 }
 0x26e   :  { %v1396_v5 = vmul.f32 1.442695, %v1379_v55 }
 0x270   :  { %1976 = vpow2.f32 %v1396_v5 }
 0x275   :  { %v3175_v13 = vpop.xlane.xlu1 %1337 }
 0x276   :  { %v1975_v8 = vpop.eup %1974  ;;  %v1380_v20 = vsub.f32 %v2986_v51, %v3175_v13 }
 0x277   :  { %v1426_v54 = vsel %vm1313_vm1, %v1975_v8, 0.0 }
 0x278   :  { %v1398_v56 = vmul.f32 1.442695, %v1380_v20  ;;  %1427 = vadd.xlane.f32.xlu1 %v1426_v54 }
 0x279   :  { %v3180_v26 = vpop.xlane.xlu1 %1340 }
 0x27a   :  { %v1977_v50 = vpop.eup %1976  ;;  %1978 = vpow2.f32 %v1398_v56  ;;  %v1381_v11 = vsub.f32 %v2994_v21, %v3180_v26 }
 0x27b   :  { %v1429_v22 = vsel %vm1313_vm1, %v1977_v50, 0.0 }
 0x27c   :  { %v1400_v41 = vmul.f32 1.442695, %v1381_v11  ;;  %1430 = vadd.xlane.f32.xlu0 %v1429_v22 }
 0x27e   :  { %1980 = vpow2.f32 %v1400_v41  ;;  %v1609_v41 = vsel %vm1593_vm7, %v3014_v57, 0.0 }
 0x282   :  { %v3185_v61 = vpop.xlane.xlu0 %1343 }
 0x283   :  { %v1382_v51 = vsub.f32 %v3006_v47, %v3185_v61 }
 0x284   :  { %v1979_v29 = vpop.eup %1978  ;;  %v3189_v12 = vpop.xlane.xlu1 %1346 }
 0x285   :  { %v1402_v49 = vmul.f32 1.442695, %v1382_v51  ;;  %v1383_v62 = vsub.f32 %v3014_v57, %v3189_v12  ;;  %v1432_v30 = vsel %vm1313_vm1, %v1979_v29, 0.0  ;;  %v1635_v29 = vsel %vm1313_vm1, %v1609_v41, 0.0 }
 0x286   :  { %1433 = vadd.xlane.f32.xlu0 %v1432_v30 }
 0x287   :  { %1982 = vpow2.f32 %v1402_v49  ;;  %v1404_v21 = vmul.f32 1.442695, %v1383_v62  ;;  %v1610_v62 = vsel %vm1594_vm8, %v3026_v23, 0.0 }
 0x288   :  { %v1981_v16 = vpop.eup %1980 }
 0x289   :  { %1984 = vpow2.f32 %v1404_v21  ;;  %v1435_v42 = vsel %vm1313_vm1, %v1981_v16, 0.0  ;;  %v1638_v16 = vsel %vm1313_vm1, %v1610_v62, 0.0 }
 0x28a   :  { %1436 = vadd.xlane.f32.xlu1 %v1435_v42  ;;  %v1611_v42 = vsel %vm1595_vm9, %v3034_v31, 0.0 }
 0x28f   :  { %v3195_v53 = vpop.xlane.xlu0 %1349 }
 0x290   :  { %v1384_v47 = vsub.f32 %v3026_v23, %v3195_v53 }
 0x291   :  { %v1983_v48 = vpop.eup %1982  ;;  %v3199_v44 = vpop.xlane.xlu1 %1352 }
 0x292   :  { %v1406_v27 = vmul.f32 1.442695, %v1384_v47  ;;  %v1385_v43 = vsub.f32 %v3034_v31, %v3199_v44  ;;  %v1438_v45 = vsel %vm1313_vm1, %v1983_v48, 0.0  ;;  %v1641_v47 = vsel %vm1313_vm1, %v1611_v42, 0.0 }
 0x293   :  { %v1985_v0 = vpop.eup %1984  ;;  %1439 = vadd.xlane.f32.xlu0 %v1438_v45 }
 0x294   :  { %1986 = vpow2.f32 %v1406_v27  ;;  %v1408_v40 = vmul.f32 1.442695, %v1385_v43  ;;  %v1441_v35 = vsel %vm1313_vm1, %v1985_v0, 0.0  ;;  %v1612_v43 = vsel %vm1596_vm10, %v3046_v25, 0.0 }
 0x295   :  { %1442 = vadd.xlane.f32.xlu1 %v1441_v35  ;;  %v1644_v35 = vsel %vm1313_vm1, %v1612_v43, 0.0 }
 0x296   :  { %1988 = vpow2.f32 %v1408_v40 }
 0x29c   :  { %v3205_v36 = vpop.xlane.xlu0 %1355 }
 0x29d   :  { %v1386_v19 = vsub.f32 %v3046_v25, %v3205_v36  ;;  %v1614_v25 = vsel %vm1598_vm11, %v3066_v39, 0.0 }
 0x29e   :  { %v1987_v7 = vpop.eup %1986  ;;  %v3209_v10 = vpop.xlane.xlu1 %1358 }
 0x29f   :  { %v1410_v34 = vmul.f32 1.442695, %v1386_v19  ;;  %v1387_v32 = vsub.f32 %v3054_v63, %v3209_v10  ;;  %v1444_v9 = vsel %vm1313_vm1, %v1987_v7, 0.0 }
 0x2a0   :  { %v1989_v18 = vpop.eup %1988  ;;  %1445 = vadd.xlane.f32.xlu0 %v1444_v9 }
 0x2a1   :  { %1990 = vpow2.f32 %v1410_v34  ;;  %v1412_v14 = vmul.f32 1.442695, %v1387_v32  ;;  %v1447_v55 = vsel %vm1313_vm1, %v1989_v18, 0.0  ;;  %v1650_v32 = vsel %vm1313_vm1, %v1614_v25, 0.0 }
 0x2a2   :  { %1448 = vadd.xlane.f32.xlu1 %v1447_v55  ;;  %v1616_v18 = vsel %vm1600_vm12, %v3086_v59, 0.0 }
 0x2a3   :  { %1992 = vpow2.f32 %v1412_v14 }
 0x2a9   :  { %v3215_v5 = vpop.xlane.xlu0 %1361 }
 0x2aa   :  { %v1388_v8 = vsub.f32 %v3066_v39, %v3215_v5  ;;  %v1656_v39 = vsel %vm1313_vm1, %v1616_v18, 0.0 }
 0x2ab   :  { %v1991_v20 = vpop.eup %1990  ;;  %v3221_v54 = vpop.xlane.xlu1 %1364 }
 0x2ac   :  { %v1414_v56 = vmul.f32 1.442695, %v1388_v8  ;;  %v1389_v50 = vsub.f32 %v3074_v60, %v3221_v54  ;;  %v1450_v11 = vsel %vm1313_vm1, %v1991_v20, 0.0 }
 0x2ad   :  { %v1993_v22 = vpop.eup %1992  ;;  %1451 = vadd.xlane.f32.xlu0 %v1450_v11  ;;  %v1613_v11 = vsel %vm1597_vm14, %v3054_v63, 0.0  ;;  %v1659_v63 = vsel %vm1313_vm1, %v1617_v58, 0.0 }
 0x2ae   :  { %1994 = vpow2.f32 %v1414_v56  ;;  %v1416_v28 = vmul.f32 1.442695, %v1389_v50  ;;  %v1453_v51 = vsel %vm1313_vm1, %v1993_v22, 0.0  ;;  %v1615_v22 = vsel %vm1599_vm15, %v3074_v60, 0.0 }
 0x2af   :  { %1454 = vadd.xlane.f32.xlu1 %v1453_v51 }
 0x2b0   :  { %1996 = vpow2.f32 %v1416_v28  ;;  %v1653_v28 = vsel %vm1313_vm1, %v1615_v22, 0.0 }
 0x2b1   :  { %v3231_v49 = vpop.xlane.xlu0 %1367  ;;  %1636 = vadd.xlane.f32.xlu0 %v1635_v29 }
 0x2b2   :  { %v1390_v57 = vsub.f32 %v3086_v59, %v3231_v49 }
 0x2b3   :  { %v3238_v4 = vpop.xlane.xlu1 %1370 }
 0x2b4   :  { %v1418_v30 = vmul.f32 1.442695, %v1390_v57  ;;  %v1391_v21 = vsub.f32 %v3094_v24, %v3238_v4 }
 0x2b5   :  { %1639 = vadd.xlane.f32.xlu0 %v1638_v16 }
 0x2b6   :  { %1998 = vpow2.f32 %v1418_v30  ;;  %v1420_v23 = vmul.f32 1.442695, %v1391_v21 }
 0x2b8   :  { %v1995_v2 = vpop.eup %1994  ;;  %2000 = vpow2.f32 %v1420_v23 }
 0x2b9   :  { %v3247_v48 = vpop.xlane.xlu0 %1373  ;;  %v1456_v27 = vsel %vm1313_vm1, %v1995_v2, 0.0  ;;  %1642 = vadd.xlane.f32.xlu0 %v1641_v47 }
 0x2ba   :  { %v1997_v45 = vpop.eup %1996  ;;  %v1392_v31 = vsub.f32 %v3106_v52, %v3247_v48  ;;  %1457 = vadd.xlane.f32.xlu1 %v1456_v27 }
 0x2bb   :  { %v3255_v17 = vpop.xlane.xlu1 %1376  ;;  %v1459_v19 = vsel %vm1313_vm1, %v1997_v45, 0.0 }
 0x2bc   :  { %v1422_v0 = vmul.f32 1.442695, %v1392_v31  ;;  %v1393_v40 = vsub.f32 %v3114_v15, %v3255_v17 }
 0x2bd   :  { %1645 = vadd.xlane.f32.xlu0 %v1644_v35 }
 0x2be   :  { %2002 = vpow2.f32 %v1422_v0  ;;  %v1424_v38 = vmul.f32 1.442695, %v1393_v40  ;;  %1460 = vadd.xlane.f32.xlu1 %v1459_v19 }
 0x2bf   :  { %v1584_v7 = vpop.permute.xlu1 %1583 }
 0x2c0   :  { %v1999_v34 = vpop.eup %1998  ;;  %2004 = vpow2.f32 %v1424_v38  ;;  %vm1602_vm13 = vcmp.eq.s32.totalorder %v3132_v1, %v1584_v7 }
 0x2c1   :  { %v1462_v9 = vsel %vm1313_vm1, %v1999_v34, 0.0  ;;  %1651 = vadd.xlane.f32.xlu0 %v1650_v32  ;;  %v1618_v55 = vsel %vm1602_vm13, %v3106_v52, 0.0  ;;  %v1647_v52 = vsel %vm1313_vm1, %v1613_v11, 0.0  ;;  %v1587_v41 = vpop.permute.xlu0 %1586 }
 0x2c2   :  { %v2001_v14 = vpop.eup %2000  ;;  %1463 = vadd.xlane.f32.xlu1 %v1462_v9  ;;  %v1662_v20 = vsel %vm1313_vm1, %v1618_v55, 0.0  ;;  %vm1603_vm2 = vcmp.eq.s32.totalorder %v3132_v1, %v1587_v41 }
 0x2c3   :  { %v1465_v6 = vsel %vm1313_vm1, %v2001_v14, 0.0  ;;  %v1619_v37 = vsel %vm1603_vm2, %v3114_v15, 0.0 }
 0x2c4   :  { %v1665_v51 = vsel %vm1313_vm1, %v1619_v37, 0.0 }
 0x2c5   :  { %1657 = vadd.xlane.f32.xlu0 %v1656_v39 }
 0x2c6   :  { %1466 = vadd.xlane.f32.xlu1 %v1465_v6 }
 0x2c8   :  { %v2003_v8 = vpop.eup %2002 }
 0x2c9   :  { %v1468_v56 = vsel %vm1313_vm1, %v2003_v8, 0.0  ;;  %1663 = vadd.xlane.f32.xlu0 %v1662_v20 }
 0x2ca   :  { %v2005_v50 = vpop.eup %2004  ;;  %1469 = vadd.xlane.f32.xlu1 %v1468_v56 }
 0x2cb   :  { %v1471_v59 = vsel %vm1313_vm1, %v2005_v50, 0.0  ;;  %vm1705_vm1 = vcmask 0  }
 0x2ce   :  { %1472 = vadd.xlane.f32.xlu1 %v1471_v59 }
 0x2d2   :  { %1648 = vadd.xlane.f32.xlu1 %v1647_v52 }
 0x2d6   :  { %1654 = vadd.xlane.f32.xlu1 %v1653_v28 }
 0x2da   :  { %1660 = vadd.xlane.f32.xlu1 %v1659_v63 }
 0x2de   :  { %1666 = vadd.xlane.f32.xlu1 %v1665_v51 }
 0x2ee   :  { %v1625_v60 = vpop.xlane.xlu0 %1624 }
 0x2f0   :  { %v1622_v30 = vpop.xlane.xlu1 %1621 }
 0x2f2   :  { %v1628_v29 = vpop.xlane.xlu0 %1627 }
 0x2f6   :  { %v3289_v62 = vpop.xlane.xlu0 %1630 }
 0x2fa   :  { %v3291_v33 = vpop.xlane.xlu0 %1633 }
 0x305   :  { %v1428_v21 = vpop.xlane.xlu1 %1427 }
 0x309   :  { %v1431_v57 = vpop.xlane.xlu0 %1430 }
 0x30a   :  { %2006 = vlog2.f32 %v1431_v57 }
 0x30b   :  { %2008 = vlog2.f32 %v1428_v21 }
 0x313   :  { %v1434_v24 = vpop.xlane.xlu0 %1433 }
 0x314   :  { %2010 = vlog2.f32 %v1434_v24  ;;  %v2007_v47 = vpop.eup %2006 }
 0x315   :  { %v2009_v27 = vpop.eup %2008  ;;  %v1477_v31 = vmul.f32 0.6931472, %v2007_v47 }
 0x316   :  { %v1475_v35 = vmul.f32 0.6931472, %v2009_v27 }
 0x317   :  { %v1437_v16 = vpop.xlane.xlu1 %1436  ;;  %v1507_v7 = vadd.f32 %v1477_v31, %v3166_v46 }
 0x318   :  { %2012 = vlog2.f32 %v1437_v16  ;;  %v1506_v32 = vadd.f32 %v1475_v35, %v3158_v3 }
 0x319   :  { %v1669_v8 = vsub.f32 %v1507_v7, %v1625_v60 }
 0x31a   :  { %v1668_v56 = vsub.f32 %v1506_v32, %v1622_v30 }
 0x31c   :  { %v1684_v22 = vadd.f32 %v1669_v8, %v1668_v56 }
 0x31e   :  { %v2011_v45 = vpop.eup %2010 }
 0x31f   :  { %v1479_v19 = vmul.f32 0.6931472, %v2011_v45 }
 0x320   :  { %v1440_v1 = vpop.xlane.xlu0 %1439 }
 0x321   :  { %2014 = vlog2.f32 %v1440_v1  ;;  %v1508_v9 = vadd.f32 %v1479_v19, %v3175_v13 }
 0x322   :  { %v1443_v42 = vpop.xlane.xlu1 %1442  ;;  %v2013_v40 = vpop.eup %2012 }
 0x323   :  { %2016 = vlog2.f32 %v1443_v42  ;;  %v1481_v34 = vmul.f32 0.6931472, %v2013_v40  ;;  %v1670_v50 = vsub.f32 %v1508_v9, %v1628_v29 }
 0x325   :  { %v1509_v20 = vadd.f32 %v1481_v34, %v3180_v26  ;;  %v1685_v63 = vadd.f32 %v1684_v22, %v1670_v50 }
 0x327   :  { %v1671_v41 = vsub.f32 %v1509_v20, %v3289_v62 }
 0x329   :  { %v1686_v29 = vadd.f32 %v1685_v63, %v1671_v41 }
 0x32b   :  { %v2015_v38 = vpop.eup %2014 }
 0x32c   :  { %v1483_v18 = vmul.f32 0.6931472, %v2015_v38 }
 0x32d   :  { %v1446_v15 = vpop.xlane.xlu0 %1445  ;;  %v2017_v6 = vpop.eup %2016 }
 0x32e   :  { %2018 = vlog2.f32 %v1446_v15  ;;  %v1510_v59 = vadd.f32 %v1483_v18, %v3185_v61  ;;  %v1485_v52 = vmul.f32 0.6931472, %v2017_v6 }
 0x32f   :  { %v1449_v23 = vpop.xlane.xlu1 %1448 }
 0x330   :  { %2020 = vlog2.f32 %v1449_v23  ;;  %v1672_v58 = vsub.f32 %v1510_v59, %v3291_v33  ;;  %v1511_v60 = vadd.f32 %v1485_v52, %v3189_v12 }
 0x332   :  { %v1687_v24 = vadd.f32 %v1686_v29, %v1672_v58 }
 0x338   :  { %v2019_v55 = vpop.eup %2018 }
 0x339   :  { %v1487_v3 = vmul.f32 0.6931472, %v2019_v55 }
 0x33a   :  { %v1452_v2 = vpop.xlane.xlu0 %1451  ;;  %v2021_v11 = vpop.eup %2020 }
 0x33b   :  { %2022 = vlog2.f32 %v1452_v2  ;;  %v1489_v37 = vmul.f32 0.6931472, %v2021_v11  ;;  %v1512_v61 = vadd.f32 %v1487_v3, %v3195_v53 }
 0x33c   :  { %v1455_v43 = vpop.xlane.xlu1 %1454 }
 0x33d   :  { %v1513_v42 = vadd.f32 %v1489_v37, %v3199_v44 }
 0x33e   :  { %v1637_v0 = vpop.xlane.xlu0 %1636 }
 0x33f   :  { %v1673_v30 = vsub.f32 %v1511_v60, %v1637_v0 }
 0x341   :  { %v1688_v12 = vadd.f32 %v1687_v24, %v1673_v30 }
 0x342   :  { %v1640_v14 = vpop.xlane.xlu0 %1639 }
 0x343   :  { %v1674_v1 = vsub.f32 %v1512_v61, %v1640_v14 }
 0x345   :  { %v2023_v13 = vpop.eup %2022 }
 0x346   :  { %v1643_v28 = vpop.xlane.xlu0 %1642  ;;  %v1491_v51 = vmul.f32 0.6931472, %v2023_v13 }
 0x347   :  { %v1458_v25 = vpop.xlane.xlu1 %1457  ;;  %v1675_v47 = vsub.f32 %v1513_v42, %v1643_v28 }
 0x348   :  { %2024 = vlog2.f32 %v1458_v25  ;;  %v1514_v33 = vadd.f32 %v1491_v51, %v3205_v36 }
 0x349   :  { %2026 = vlog2.f32 %v1455_v43  ;;  %v1689_v43 = vadd.f32 %v1688_v12, %v1674_v1 }
 0x34a   :  { %v1646_v16 = vpop.xlane.xlu0 %1645 }
 0x34b   :  { %v1461_v39 = vpop.xlane.xlu1 %1460  ;;  %v1676_v45 = vsub.f32 %v1514_v33, %v1646_v16  ;;  %v1690_v35 = vadd.f32 %v1689_v43, %v1675_v47 }
 0x34c   :  { %2028 = vlog2.f32 %v1461_v39 }
 0x34d   :  { %v1691_v38 = vadd.f32 %v1690_v35, %v1676_v45 }
 0x34e   :  { %v1652_v0 = vpop.xlane.xlu0 %1651 }
 0x34f   :  { %v1464_v46 = vpop.xlane.xlu1 %1463 }
 0x350   :  { %2030 = vlog2.f32 %v1464_v46 }
 0x352   :  { %v2025_v57 = vpop.eup %2024 }
 0x353   :  { %v1467_v26 = vpop.xlane.xlu1 %1466  ;;  %v2027_v21 = vpop.eup %2026  ;;  %v1495_v15 = vmul.f32 0.6931472, %v2025_v57 }
 0x354   :  { %2032 = vlog2.f32 %v1467_v26  ;;  %v1493_v2 = vmul.f32 0.6931472, %v2027_v21 }
 0x355   :  { %v1516_v31 = vadd.f32 %v1495_v15, %v3215_v5  ;;  %v1658_v5 = vpop.xlane.xlu0 %1657 }
 0x356   :  { %v2029_v23 = vpop.eup %2028  ;;  %v1515_v44 = vadd.f32 %v1493_v2, %v3209_v10 }
 0x357   :  { %v1470_v62 = vpop.xlane.xlu1 %1469  ;;  %v1497_v40 = vmul.f32 0.6931472, %v2029_v23  ;;  %v1678_v34 = vsub.f32 %v1516_v31, %v1652_v0 }
 0x358   :  { %2034 = vlog2.f32 %v1470_v62 }
 0x359   :  { %v1517_v39 = vadd.f32 %v1497_v40, %v3221_v54 }
 0x35a   :  { %v2031_v53 = vpop.eup %2030 }
 0x35b   :  { %v1473_v27 = vpop.xlane.xlu1 %1472  ;;  %v1499_v19 = vmul.f32 0.6931472, %v2031_v53 }
 0x35c   :  { %2036 = vlog2.f32 %v1473_v27 }
 0x35d   :  { %v1518_v18 = vadd.f32 %v1499_v19, %v3231_v49  ;;  %v1664_v49 = vpop.xlane.xlu0 %1663 }
 0x35e   :  { %v2033_v36 = vpop.eup %2032 }
 0x35f   :  { %v1649_v25 = vpop.xlane.xlu1 %1648  ;;  %v1501_v9 = vmul.f32 0.6931472, %v2033_v36  ;;  %v1680_v50 = vsub.f32 %v1518_v18, %v1658_v5 }
 0x360   :  { %v1677_v7 = vsub.f32 %v1515_v44, %v1649_v25 }
 0x361   :  { %v1519_v46 = vadd.f32 %v1501_v9, %v3238_v4 }
 0x362   :  { %v2035_v32 = vpop.eup %2034  ;;  %v1692_v14 = vadd.f32 %v1691_v38, %v1677_v7 }
 0x363   :  { %v1503_v6 = vmul.f32 0.6931472, %v2035_v32  ;;  %v1655_v55 = vpop.xlane.xlu1 %1654 }
 0x364   :  { %v1679_v8 = vsub.f32 %v1517_v39, %v1655_v55  ;;  %v1693_v20 = vadd.f32 %v1692_v14, %v1678_v34 }
 0x365   :  { %v1520_v10 = vadd.f32 %v1503_v6, %v3247_v48 }
 0x366   :  { %v2037_v56 = vpop.eup %2036  ;;  %v1694_v59 = vadd.f32 %v1693_v20, %v1679_v8 }
 0x367   :  { %v1505_v11 = vmul.f32 0.6931472, %v2037_v56  ;;  %v1661_v52 = vpop.xlane.xlu1 %1660  ;;  %v1682_v54 = vsub.f32 %v1520_v10, %v1664_v49 }
 0x368   :  { %v1681_v3 = vsub.f32 %v1519_v46, %v1661_v52  ;;  %v1695_v13 = vadd.f32 %v1694_v59, %v1680_v50 }
 0x369   :  { %v1521_v22 = vadd.f32 %v1505_v11, %v3255_v17 }
 0x36a   :  { %v1696_v41 = vadd.f32 %v1695_v13, %v1681_v3 }
 0x36b   :  { %v1667_v28 = vpop.xlane.xlu1 %1666 }
 0x36c   :  { %v1683_v58 = vsub.f32 %v1521_v22, %v1667_v28  ;;  %v1697_v63 = vadd.f32 %v1696_v41, %v1682_v54 }
 0x36e   :  { %v1698_v26 = vadd.f32 %v1697_v63, %v1683_v58 }
 0x370   :  { %v1699_v37 = vrot.slane %v1698_v26, 4 }
 0x372   :  { %v1700_v51 = vadd.f32 %v1699_v37, %v1698_v26 }
 0x374   :  { %v1701_v60 = vrot.slane %v1700_v51, 2 }
 0x376   :  { %v1702_v48 = vadd.f32 %v1701_v60, %v1700_v51 }
 0x378   :  { %v1703_v4 = vrot.slane %v1702_v48, 1 }
 0x37a   :  { %v1704_v61 = vadd.f32 %v1703_v4, %v1702_v48 }
 0x37c   :  { %1706 = vst.msk [vmem:[#allocation2] sm:$0x1] %vm1705_vm1, %v1704_v61 }
 0x37d   :  { %2049 = shalt.err (!%p2046_p4)
}
 0x37e   :  { %s2050_s12 = scalar_lea.hbm %s3334_s11, 16 }
 0x37f   :  { %p2051_p5 = scmp.ne.s32.totalorder %s3334_s11, %s2050_s12  ;;  %p2054_p6 = scmp.lt.u32.totalorder %s2050_s12, %s3334_s11 }
 0x381   :  { %p2056_p7 = pnand %p2054_p6, %p2051_p5 }
 0x383   :  { %2059 = shalt.err (!%p2056_p7)
}
 0x384   :  { %1718 = dma.vmem_to_hbm [thread:$0]  %s1716_s10, 16, %s3334_s11, [#allocation3]  }
 0x385   :  { %2060 = dma.done.wait [#allocation3], 16  }
 0x386   :  { %2061 = vsyncadd [#allocation3], 4294967280 }
 0x387   :  { %1724 = vsyncpa [#allocation3], 1 }

</bundles_post_ra>
